<compile_context>
chip_gen: v6e
topology: v6e:2x2x1
jax: 0.10.0
libtpu: 0.0.40
codegen_flags: <defaults>
</compile_context>

<pallas_src>
import math

import jax
import jax.numpy as jnp
from jax.experimental import pallas as pl
from jax.experimental.pallas import tpu as pltpu

EPS = 1e-5
LANES = 128     # channel padding target for activations (lane-dense)
COL_OFF = 8     # sublane-aligned column offset of the image in the pad scratch


def _round_up(x, m):
    return (x + m - 1) // m * m


def _nbytes(shape, dtype):
    return math.prod(shape) * jnp.dtype(dtype).itemsize


def _zero_halo(pad_ref, h, w, c):
    """Zero only the halo strips the taps read (O(H+W), not O(H*W))."""
    zdt = pad_ref.dtype
    pad_ref[pl.ds(0, 1), pl.ds(COL_OFF - 1, w + 2), :] = jnp.zeros((1, w + 2, c), zdt)
    pad_ref[pl.ds(h + 1, 1), pl.ds(COL_OFF - 1, w + 2), :] = jnp.zeros((1, w + 2, c), zdt)
    pad_ref[pl.ds(1, h), pl.ds(COL_OFF - 1, 1), :] = jnp.zeros((h, 1, c), zdt)
    pad_ref[pl.ds(1, h), pl.ds(COL_OFF + w, 1), :] = jnp.zeros((h, 1, c), zdt)


def _tap_matmul(pad_ref, w_ref, h, w, c_in, cp_out):
    """9 accumulating tap matmuls straight from the pad scratch (no im2col)."""
    acc = None
    for dy in range(3):
        for dx in range(3):
            tap = pad_ref[pl.ds(dy, h), pl.ds(COL_OFF - 1 + dx, w), :]
            prod = jnp.dot(tap.reshape(h * w, c_in), w_ref[dy * 3 + dx],
                           preferred_element_type=jnp.float32)
            acc = prod if acc is None else acc + prod
    return acc                                          # (H*W, Cp_out) f32


# ------------------- kernel 1: 3x3 conv (+ BN partial sums) -------------------
def _conv3x3_kernel(x_ref, w_ref, y_ref, stats_ref, pad_ref):
    """x_ref    : (1, H, W, Cin)  f32   true (unpadded) input
    w_ref    : (9, Cin, Cp)    bf16  tap-major weights (out dim lane-padded)
    y_ref    : (1, H, W, Cp)   bf16  pre-BN conv output (lane dense)
    stats_ref: (1, 2, Cp)      f32   row0 = sum, row1 = sum of squares
    pad_ref  : (H+2, WP, Cin)  bf16  scratch: image at (row 1, col COL_OFF)
    """
    _, h, w, cin = x_ref.shape
    cp = y_ref.shape[-1]
    _zero_halo(pad_ref, h, w, cin)
    # In-kernel bf16 cast; single sublane-aligned interior store.
    pad_ref[pl.ds(1, h), pl.ds(COL_OFF, w), :] = x_ref[0].astype(pad_ref.dtype)
    acc = _tap_matmul(pad_ref, w_ref, h, w, cin, cp)
    y_ref[...] = acc.reshape(1, h, w, cp).astype(y_ref.dtype)
    stats_ref[0, pl.ds(0, 1), :] = jnp.sum(acc, axis=0, keepdims=True)
    stats_ref[0, pl.ds(1, 1), :] = jnp.sum(acc * acc, axis=0, keepdims=True)


# --------------- kernel 2: BN1 affine + ReLU fused with 3x3 conv2 -------------
def _bn_relu_conv3x3_kernel(y_ref, scale_ref, shift_ref, w_ref,
                            out_ref, stats_ref, pad_ref):
    """y_ref    : (1, H, W, Cp)  bf16  layer-1 pre-BN conv output
    scale_ref: (1, Cp)         f32   gamma1 * rsqrt(var1 + eps)
    shift_ref: (1, Cp)         f32   beta1 - mean1 * scale1
    w_ref    : (9, Cp, Cp)     bf16  layer-2 tap-major conv weights
    out_ref  : (1, H, W, Cp)   bf16  layer-2 pre-BN conv output
    stats_ref: (1, 2, Cp)      f32   row0 = sum, row1 = sum of squares
    pad_ref  : (H+2, WP, Cp)   bf16  scratch (zero halo strips, aligned image)
    """
    _, h, w, cp = y_ref.shape
    _zero_halo(pad_ref, h, w, cp)
    a = y_ref[0].astype(jnp.float32) * scale_ref[...] + shift_ref[...]
    a = jnp.maximum(a, 0.0)                              # f32 BN math (v5e-safe)
    pad_ref[pl.ds(1, h), pl.ds(COL_OFF, w), :] = a.astype(pad_ref.dtype)
    acc = _tap_matmul(pad_ref, w_ref, h, w, cp, cp)
    out_ref[...] = acc.reshape(1, h, w, cp).astype(out_ref.dtype)
    stats_ref[0, pl.ds(0, 1), :] = jnp.sum(acc, axis=0, keepdims=True)
    stats_ref[0, pl.ds(1, 1), :] = jnp.sum(acc * acc, axis=0, keepdims=True)


# ------------------------- kernel 3: BN2 affine + ReLU ------------------------
def _bn_relu_kernel(y_ref, scale_ref, shift_ref, out_ref):
    """Emit only the real Cout channels (f32) -> Cp/Cout fewer HBM bytes."""
    cout = out_ref.shape[-1]
    a = y_ref[...].astype(jnp.float32) * scale_ref[...] + shift_ref[...]
    a = jnp.maximum(a, 0.0)
    out_ref[...] = a[..., :cout]


# --------------------------------- wrapper -----------------------------------
def _bn_fold(stats, gamma_p, beta_p, count):
    """Per-image [sum, sumsq] (N, 2, Cp) -> fused BN scale/shift (train mode)."""
    s = jnp.sum(stats[:, 0, :], axis=0)
    ss = jnp.sum(stats[:, 1, :], axis=0)
    mean = s / count
    # NOTE: E[x^2]-E[x]^2 in f32 can cancel for very large N*H*W; fine here.
    var = jnp.maximum(ss / count - mean * mean, 0.0)
    scale = gamma_p * jax.lax.rsqrt(var + EPS)
    shift = beta_p - mean * scale
    return (scale.reshape(1, -1).astype(jnp.float32),
            shift.reshape(1, -1).astype(jnp.float32))


def conv_block(x_nchw, params):
    """Forward of Conv_Block.  x_nchw: (N, Cin, H, W) -> (N, Cout, H, W) f32."""
    w1, g1, b1, w2, g2, b2 = params          # PyTorch layouts, w: (Cout,Cin,3,3)
    n, cin, h, w = x_nchw.shape
    cout = w1.shape[0]
    cp = _round_up(max(cin, cout), LANES)
    count = n * h * w
    wp = COL_OFF + w + 8                     # scratch width (aligned image slot)

    # ---- glue: layout / weight prep (cheap, once per call) ----
    x = jnp.transpose(x_nchw, (0, 2, 3, 1))                        # NHWC, f32

    def prep_w(wt, ci_pad):
        # (Cout, Cin, 3, 3) -> (9, ci_pad, Cp), tap-major, bf16.
        whwio = jnp.transpose(wt, (2, 3, 1, 0))                    # (3,3,Cin,Cout)
        ci = whwio.shape[2]
        whwio = jnp.pad(whwio, ((0, 0), (0, 0), (0, ci_pad - ci), (0, cp - cout)))
        return whwio.reshape(9, ci_pad, cp).astype(jnp.bfloat16)

    w1m = prep_w(w1, cin)       # layer 1: K = Cin (input channels stay native)
    w2m = prep_w(w2, cp)        # layer 2: input is lane-dense y1 (Cp channels)
    g1p = jnp.pad(g1, (0, cp - cout)).astype(jnp.float32)
    b1p = jnp.pad(b1, (0, cp - cout)).astype(jnp.float32)
    g2p = jnp.pad(g2, (0, cp - cout)).astype(jnp.float32)
    b2p = jnp.pad(b2, (0, cp - cout)).astype(jnp.float32)

    img_spec = pl.BlockSpec((1, h, w, cp), lambda i: (i, 0, 0, 0))
    x_spec = pl.BlockSpec((1, h, w, cin), lambda i: (i, 0, 0, 0))
    out3_spec = pl.BlockSpec((1, h, w, cout), lambda i: (i, 0, 0, 0))
    vec_spec = pl.BlockSpec((1, cp), lambda i: (0, 0))
    w1_spec = pl.BlockSpec((9, cin, cp), lambda i: (0, 0, 0))
    w2_spec = pl.BlockSpec((9, cp, cp), lambda i: (0, 0, 0))
    stats_spec = pl.BlockSpec((1, 2, cp), lambda i: (i, 0, 0))

    def cparams(block_bytes, scratch_bytes=0):
        # explicit VMEM budget: double-buffered blocks + scratch, 2x headroom
        need = 2 * block_bytes + scratch_bytes
        limit = int(min(max(2 * need, 16 << 20), 64 << 20))
        return pltpu.CompilerParams(dimension_semantics=("parallel",),
                                    vmem_limit_bytes=limit)

    # ---- layer 1: conv (+ BN partial sums); reads only true input bytes ----
    b1_bytes = (_nbytes((1, h, w, cin), jnp.float32)
                + _nbytes((9, cin, cp), jnp.bfloat16)
                + _nbytes((1, h, w, cp), jnp.bfloat16)
                + _nbytes((1, 2, cp), jnp.float32))
    y1, st1 = pl.pallas_call(
        _conv3x3_kernel,
        grid=(n,),
        in_specs=[x_spec, w1_spec],
        out_specs=[img_spec, stats_spec],
        out_shape=[jax.ShapeDtypeStruct((n, h, w, cp), jnp.bfloat16),
                   jax.ShapeDtypeStruct((n, 2, cp), jnp.float32)],
        scratch_shapes=[pltpu.VMEM((h + 2, wp, cin), jnp.bfloat16)],
        compiler_params=cparams(b1_bytes, _nbytes((h + 2, wp, cin), jnp.bfloat16)),
    )(x, w1m)
    scale1, shift1 = _bn_fold(st1, g1p, b1p, count)

    # ---- layer 1 BN+ReLU fused with layer 2 conv (+ BN partial sums) ----
    b2_bytes = (_nbytes((1, h, w, cp), jnp.bfloat16) * 2
                + _nbytes((9, cp, cp), jnp.bfloat16)
                + 2 * _nbytes((1, cp), jnp.float32)
                + _nbytes((1, 2, cp), jnp.float32))
    y2, st2 = pl.pallas_call(
        _bn_relu_conv3x3_kernel,
        grid=(n,),
        in_specs=[img_spec, vec_spec, vec_spec, w2_spec],
        out_specs=[img_spec, stats_spec],
        out_shape=[jax.ShapeDtypeStruct((n, h, w, cp), jnp.bfloat16),
                   jax.ShapeDtypeStruct((n, 2, cp), jnp.float32)],
        scratch_shapes=[pltpu.VMEM((h + 2, wp, cp), jnp.bfloat16)],
        compiler_params=cparams(b2_bytes, _nbytes((h + 2, wp, cp), jnp.bfloat16)),
    )(y1, scale1, shift1, w2m)
    scale2, shift2 = _bn_fold(st2, g2p, b2p, count)

    # ---- layer 2 BN+ReLU: only the real Cout channels hit HBM ----
    b3_bytes = (_nbytes((1, h, w, cp), jnp.bfloat16)
                + 2 * _nbytes((1, cp), jnp.float32)
                + _nbytes((1, h, w, cout), jnp.float32))
    out = pl.pallas_call(
        _bn_relu_kernel,
        grid=(n,),
        in_specs=[img_spec, vec_spec, vec_spec],
        out_specs=out3_spec,
        out_shape=jax.ShapeDtypeStruct((n, h, w, cout), jnp.float32),
        compiler_params=cparams(b3_bytes),
    )(y2, scale2, shift2)

    return jnp.transpose(out, (0, 3, 1, 2))               # NHWC -> NCHW (tiny)


# ----------------------------- reference (pure JAX) ---------------------------
def _ref_conv_block(x_nchw, params):
    w1, g1, b1, w2, g2, b2 = params

    def conv(x, wt):
        whwio = jnp.transpose(wt, (2, 3, 1, 0))           # (3,3,Cin,Cout)
        return jax.lax.conv_general_dilated(
            x, whwio, window_strides=(1, 1), padding="SAME",
            dimension_numbers=("NCHW", "HWIO", "NCHW"))

    def bn_relu(y, g, b):
        mean = jnp.mean(y, axis=(0, 2, 3), keepdims=True)
        var = jnp.mean(jnp.square(y - mean), axis=(0, 2, 3), keepdims=True)
        yn = (y - mean) * jax.lax.rsqrt(var + EPS)
        yn = yn * g.reshape(1, -1, 1, 1) + b.reshape(1, -1, 1, 1)
        return jnp.maximum(yn, 0.0)

    y = bn_relu(conv(x_nchw, w1), g1, b1)
    return bn_relu(conv(y, w2), g2, b2)


# ------------------------------------ main ------------------------------------
if __name__ == "__main__":
    N, Cin, Cout, H, W = 2, 4, 8, 16, 16

    key = jax.random.PRNGKey(0)
    kx, kw1, kw2, kg1, kb1, kg2, kb2 = jax.random.split(key, 7)

    x = jax.random.normal(kx, (N, Cin, H, W), jnp.float32)
    # PyTorch layouts: Conv2d weight (Cout, Cin, 3, 3), no bias; BN affine (C,).
    w1 = jax.random.normal(kw1, (Cout, Cin, 3, 3), jnp.float32) * 0.1
    w2 = jax.random.normal(kw2, (Cout, Cout, 3, 3), jnp.float32) * 0.1
    g1 = 1.0 + 0.1 * jax.random.normal(kg1, (Cout,), jnp.float32)
    b1 = 0.1 * jax.random.normal(kb1, (Cout,), jnp.float32)
    g2 = 1.0 + 0.1 * jax.random.normal(kg2, (Cout,), jnp.float32)
    b2 = 0.1 * jax.random.normal(kb2, (Cout,), jnp.float32)
    params = (w1, g1, b1, w2, g2, b2)

    out = jax.block_until_ready(jax.jit(conv_block)(x, params))
    assert out.shape == (N, Cout, H, W), out.shape

    ref = jax.block_until_ready(_ref_conv_block(x, params))
    err = float(jnp.max(jnp.abs(out - ref)))
    assert jnp.allclose(out, ref, atol=5e-2, rtol=5e-2), err

    print("KERNEL_OK")
</pallas_src>

<mosaic_0001>
module attributes {stable_mosaic.version = 11 : i64} {
  func.func @_conv3x3_kernel(%arg0: i32, %arg1: memref<1x16x16x4xf32, #tpu.memory_space<vmem>>, %arg2: memref<9x4x128xbf16, #tpu.memory_space<vmem>>, %arg3: memref<1x16x16x128xbf16, #tpu.memory_space<vmem>>, %arg4: memref<1x2x128xf32, #tpu.memory_space<vmem>>, %arg5: memref<18x32x4xbf16, #tpu.memory_space<vmem>>) attributes {dimension_semantics = [#tpu.dimension_semantics<parallel>], iteration_bounds = array<i64: 2>, scalar_prefetch = 0 : i64, scratch_operands = 1 : i64, tpu.core_type = #tpu.core_type<tc>, window_params = [{transform_indices = @transform_0, window_bounds = array<i64: 1, 16, 16, 4>}, {pipeline_mode = #tpu.pipeline_mode<synchronous>, transform_indices = @transform_1, window_bounds = array<i64: 9, 4, 128>}, {transform_indices = @transform_2, window_bounds = array<i64: 1, 16, 16, 128>}, {transform_indices = @transform_3, window_bounds = array<i64: 1, 2, 128>}]} {
    %cst = arith.constant 0.000000e+00 : bf16
    %0 = vector.broadcast %cst : bf16 to vector<1x18x4xbf16>
    %c0 = arith.constant 0 : index
    %c7 = arith.constant 7 : index
    %c0_0 = arith.constant 0 : index
    %1 = vector.load %arg5[%c0, %c7, %c0_0] : memref<18x32x4xbf16, #tpu.memory_space<vmem>>, vector<1x18x4xbf16>
    tpu.vector_store %arg5[%c0, %c7, %c0_0], %0 {strides = array<i32>} : memref<18x32x4xbf16, #tpu.memory_space<vmem>>, vector<1x18x4xbf16>,
    %cst_1 = arith.constant 0.000000e+00 : bf16
    %2 = vector.broadcast %cst_1 : bf16 to vector<1x18x4xbf16>
    %c17 = arith.constant 17 : index
    %c7_2 = arith.constant 7 : index
    %c0_3 = arith.constant 0 : index
    %3 = vector.load %arg5[%c17, %c7_2, %c0_3] : memref<18x32x4xbf16, #tpu.memory_space<vmem>>, vector<1x18x4xbf16>
    tpu.vector_store %arg5[%c17, %c7_2, %c0_3], %2 {strides = array<i32>} : memref<18x32x4xbf16, #tpu.memory_space<vmem>>, vector<1x18x4xbf16>,
    %cst_4 = arith.constant 0.000000e+00 : bf16
    %4 = vector.broadcast %cst_4 : bf16 to vector<16x1x4xbf16>
    %c1 = arith.constant 1 : index
    %c7_5 = arith.constant 7 : index
    %c0_6 = arith.constant 0 : index
    %5 = vector.load %arg5[%c1, %c7_5, %c0_6] : memref<18x32x4xbf16, #tpu.memory_space<vmem>>, vector<16x1x4xbf16>
    tpu.vector_store %arg5[%c1, %c7_5, %c0_6], %4 {strides = array<i32>} : memref<18x32x4xbf16, #tpu.memory_space<vmem>>, vector<16x1x4xbf16>,
    %cst_7 = arith.constant 0.000000e+00 : bf16
    %6 = vector.broadcast %cst_7 : bf16 to vector<16x1x4xbf16>
    %c1_8 = arith.constant 1 : index
    %c24 = arith.constant 24 : index
    %c0_9 = arith.constant 0 : index
    %7 = vector.load %arg5[%c1_8, %c24, %c0_9] : memref<18x32x4xbf16, #tpu.memory_space<vmem>>, vector<16x1x4xbf16>
    tpu.vector_store %arg5[%c1_8, %c24, %c0_9], %6 {strides = array<i32>} : memref<18x32x4xbf16, #tpu.memory_space<vmem>>, vector<16x1x4xbf16>,
    %c0_10 = arith.constant 0 : index
    %c0_11 = arith.constant 0 : index
    %c0_12 = arith.constant 0 : index
    %c0_13 = arith.constant 0 : index
    %8 = vector.load %arg1[%c0_10, %c0_11, %c0_12, %c0_13] : memref<1x16x16x4xf32, #tpu.memory_space<vmem>>, vector<1x16x16x4xf32>
    %9 = vector.shape_cast %8 : vector<1x16x16x4xf32> to vector<16x16x4xf32>
    %10 = arith.truncf %9 : vector<16x16x4xf32> to vector<16x16x4xbf16>
    %c1_14 = arith.constant 1 : index
    %c8 = arith.constant 8 : index
    %c0_15 = arith.constant 0 : index
    %11 = vector.load %arg5[%c1_14, %c8, %c0_15] : memref<18x32x4xbf16, #tpu.memory_space<vmem>>, vector<16x16x4xbf16>
    tpu.vector_store %arg5[%c1_14, %c8, %c0_15], %10 {strides = array<i32>} : memref<18x32x4xbf16, #tpu.memory_space<vmem>>, vector<16x16x4xbf16>,
    %c0_16 = arith.constant 0 : index
    %c7_17 = arith.constant 7 : index
    %c0_18 = arith.constant 0 : index
    %12 = vector.load %arg5[%c0_16, %c7_17, %c0_18] : memref<18x32x4xbf16, #tpu.memory_space<vmem>>, vector<16x16x4xbf16>
    %13 = vector.shape_cast %12 : vector<16x16x4xbf16> to vector<256x4xbf16>
    %c0_19 = arith.constant 0 : index
    %c0_20 = arith.constant 0 : index
    %c0_21 = arith.constant 0 : index
    %14 = vector.load %arg2[%c0_19, %c0_20, %c0_21] : memref<9x4x128xbf16, #tpu.memory_space<vmem>>, vector<1x4x128xbf16>
    %15 = vector.shape_cast %14 : vector<1x4x128xbf16> to vector<4x128xbf16>
    %cst_22 = arith.constant dense<0.000000e+00> : vector<256x128xf32>
    %16 = tpu.matmul %13, %15, %cst_22 {dimension_numbers = #tpu.dot_dimension_numbers<[1], [0], [0], [1], [0, 0, 1, 1], [], []>} : vector<256x4xbf16>, vector<4x128xbf16>, vector<256x128xf32> -> vector<256x128xf32>
    %c0_23 = arith.constant 0 : index
    %c8_24 = arith.constant 8 : index
    %c0_25 = arith.constant 0 : index
    %17 = vector.load %arg5[%c0_23, %c8_24, %c0_25] : memref<18x32x4xbf16, #tpu.memory_space<vmem>>, vector<16x16x4xbf16>
    %18 = vector.shape_cast %17 : vector<16x16x4xbf16> to vector<256x4xbf16>
    %c1_26 = arith.constant 1 : index
    %c0_27 = arith.constant 0 : index
    %c0_28 = arith.constant 0 : index
    %19 = vector.load %arg2[%c1_26, %c0_27, %c0_28] : memref<9x4x128xbf16, #tpu.memory_space<vmem>>, vector<1x4x128xbf16>
    %20 = vector.shape_cast %19 : vector<1x4x128xbf16> to vector<4x128xbf16>
    %cst_29 = arith.constant dense<0.000000e+00> : vector<256x128xf32>
    %21 = tpu.matmul %18, %20, %cst_29 {dimension_numbers = #tpu.dot_dimension_numbers<[1], [0], [0], [1], [0, 0, 1, 1], [], []>} : vector<256x4xbf16>, vector<4x128xbf16>, vector<256x128xf32> -> vector<256x128xf32>
    %22 = arith.addf %16, %21 : vector<256x128xf32>
    %c0_30 = arith.constant 0 : index
    %c9 = arith.constant 9 : index
    %c0_31 = arith.constant 0 : index
    %23 = vector.load %arg5[%c0_30, %c9, %c0_31] : memref<18x32x4xbf16, #tpu.memory_space<vmem>>, vector<16x16x4xbf16>
    %24 = vector.shape_cast %23 : vector<16x16x4xbf16> to vector<256x4xbf16>
    %c2 = arith.constant 2 : index
    %c0_32 = arith.constant 0 : index
    %c0_33 = arith.constant 0 : index
    %25 = vector.load %arg2[%c2, %c0_32, %c0_33] : memref<9x4x128xbf16, #tpu.memory_space<vmem>>, vector<1x4x128xbf16>
    %26 = vector.shape_cast %25 : vector<1x4x128xbf16> to vector<4x128xbf16>
    %cst_34 = arith.constant dense<0.000000e+00> : vector<256x128xf32>
    %27 = tpu.matmul %24, %26, %cst_34 {dimension_numbers = #tpu.dot_dimension_numbers<[1], [0], [0], [1], [0, 0, 1, 1], [], []>} : vector<256x4xbf16>, vector<4x128xbf16>, vector<256x128xf32> -> vector<256x128xf32>
    %28 = arith.addf %22, %27 : vector<256x128xf32>
    %c1_35 = arith.constant 1 : index
    %c7_36 = arith.constant 7 : index
    %c0_37 = arith.constant 0 : index
    %29 = vector.load %arg5[%c1_35, %c7_36, %c0_37] : memref<18x32x4xbf16, #tpu.memory_space<vmem>>, vector<16x16x4xbf16>
    %30 = vector.shape_cast %29 : vector<16x16x4xbf16> to vector<256x4xbf16>
    %c3 = arith.constant 3 : index
    %c0_38 = arith.constant 0 : index
    %c0_39 = arith.constant 0 : index
    %31 = vector.load %arg2[%c3, %c0_38, %c0_39] : memref<9x4x128xbf16, #tpu.memory_space<vmem>>, vector<1x4x128xbf16>
    %32 = vector.shape_cast %31 : vector<1x4x128xbf16> to vector<4x128xbf16>
    %cst_40 = arith.constant dense<0.000000e+00> : vector<256x128xf32>
    %33 = tpu.matmul %30, %32, %cst_40 {dimension_numbers = #tpu.dot_dimension_numbers<[1], [0], [0], [1], [0, 0, 1, 1], [], []>} : vector<256x4xbf16>, vector<4x128xbf16>, vector<256x128xf32> -> vector<256x128xf32>
    %34 = arith.addf %28, %33 : vector<256x128xf32>
    %c1_41 = arith.constant 1 : index
    %c8_42 = arith.constant 8 : index
    %c0_43 = arith.constant 0 : index
    %35 = vector.load %arg5[%c1_41, %c8_42, %c0_43] : memref<18x32x4xbf16, #tpu.memory_space<vmem>>, vector<16x16x4xbf16>
    %36 = vector.shape_cast %35 : vector<16x16x4xbf16> to vector<256x4xbf16>
    %c4 = arith.constant 4 : index
    %c0_44 = arith.constant 0 : index
    %c0_45 = arith.constant 0 : index
    %37 = vector.load %arg2[%c4, %c0_44, %c0_45] : memref<9x4x128xbf16, #tpu.memory_space<vmem>>, vector<1x4x128xbf16>
    %38 = vector.shape_cast %37 : vector<1x4x128xbf16> to vector<4x128xbf16>
    %cst_46 = arith.constant dense<0.000000e+00> : vector<256x128xf32>
    %39 = tpu.matmul %36, %38, %cst_46 {dimension_numbers = #tpu.dot_dimension_numbers<[1], [0], [0], [1], [0, 0, 1, 1], [], []>} : vector<256x4xbf16>, vector<4x128xbf16>, vector<256x128xf32> -> vector<256x128xf32>
    %40 = arith.addf %34, %39 : vector<256x128xf32>
    %c1_47 = arith.constant 1 : index
    %c9_48 = arith.constant 9 : index
    %c0_49 = arith.constant 0 : index
    %41 = vector.load %arg5[%c1_47, %c9_48, %c0_49] : memref<18x32x4xbf16, #tpu.memory_space<vmem>>, vector<16x16x4xbf16>
    %42 = vector.shape_cast %41 : vector<16x16x4xbf16> to vector<256x4xbf16>
    %c5 = arith.constant 5 : index
    %c0_50 = arith.constant 0 : index
    %c0_51 = arith.constant 0 : index
    %43 = vector.load %arg2[%c5, %c0_50, %c0_51] : memref<9x4x128xbf16, #tpu.memory_space<vmem>>, vector<1x4x128xbf16>
    %44 = vector.shape_cast %43 : vector<1x4x128xbf16> to vector<4x128xbf16>
    %cst_52 = arith.constant dense<0.000000e+00> : vector<256x128xf32>
    %45 = tpu.matmul %42, %44, %cst_52 {dimension_numbers = #tpu.dot_dimension_numbers<[1], [0], [0], [1], [0, 0, 1, 1], [], []>} : vector<256x4xbf16>, vector<4x128xbf16>, vector<256x128xf32> -> vector<256x128xf32>
    %46 = arith.addf %40, %45 : vector<256x128xf32>
    %c2_53 = arith.constant 2 : index
    %c7_54 = arith.constant 7 : index
    %c0_55 = arith.constant 0 : index
    %47 = vector.load %arg5[%c2_53, %c7_54, %c0_55] : memref<18x32x4xbf16, #tpu.memory_space<vmem>>, vector<16x16x4xbf16>
    %48 = vector.shape_cast %47 : vector<16x16x4xbf16> to vector<256x4xbf16>
    %c6 = arith.constant 6 : index
    %c0_56 = arith.constant 0 : index
    %c0_57 = arith.constant 0 : index
    %49 = vector.load %arg2[%c6, %c0_56, %c0_57] : memref<9x4x128xbf16, #tpu.memory_space<vmem>>, vector<1x4x128xbf16>
    %50 = vector.shape_cast %49 : vector<1x4x128xbf16> to vector<4x128xbf16>
    %cst_58 = arith.constant dense<0.000000e+00> : vector<256x128xf32>
    %51 = tpu.matmul %48, %50, %cst_58 {dimension_numbers = #tpu.dot_dimension_numbers<[1], [0], [0], [1], [0, 0, 1, 1], [], []>} : vector<256x4xbf16>, vector<4x128xbf16>, vector<256x128xf32> -> vector<256x128xf32>
    %52 = arith.addf %46, %51 : vector<256x128xf32>
    %c2_59 = arith.constant 2 : index
    %c8_60 = arith.constant 8 : index
    %c0_61 = arith.constant 0 : index
    %53 = vector.load %arg5[%c2_59, %c8_60, %c0_61] : memref<18x32x4xbf16, #tpu.memory_space<vmem>>, vector<16x16x4xbf16>
    %54 = vector.shape_cast %53 : vector<16x16x4xbf16> to vector<256x4xbf16>
    %c7_62 = arith.constant 7 : index
    %c0_63 = arith.constant 0 : index
    %c0_64 = arith.constant 0 : index
    %55 = vector.load %arg2[%c7_62, %c0_63, %c0_64] : memref<9x4x128xbf16, #tpu.memory_space<vmem>>, vector<1x4x128xbf16>
    %56 = vector.shape_cast %55 : vector<1x4x128xbf16> to vector<4x128xbf16>
    %cst_65 = arith.constant dense<0.000000e+00> : vector<256x128xf32>
    %57 = tpu.matmul %54, %56, %cst_65 {dimension_numbers = #tpu.dot_dimension_numbers<[1], [0], [0], [1], [0, 0, 1, 1], [], []>} : vector<256x4xbf16>, vector<4x128xbf16>, vector<256x128xf32> -> vector<256x128xf32>
    %58 = arith.addf %52, %57 : vector<256x128xf32>
    %c2_66 = arith.constant 2 : index
    %c9_67 = arith.constant 9 : index
    %c0_68 = arith.constant 0 : index
    %59 = vector.load %arg5[%c2_66, %c9_67, %c0_68] : memref<18x32x4xbf16, #tpu.memory_space<vmem>>, vector<16x16x4xbf16>
    %60 = vector.shape_cast %59 : vector<16x16x4xbf16> to vector<256x4xbf16>
    %c8_69 = arith.constant 8 : index
    %c0_70 = arith.constant 0 : index
    %c0_71 = arith.constant 0 : index
    %61 = vector.load %arg2[%c8_69, %c0_70, %c0_71] : memref<9x4x128xbf16, #tpu.memory_space<vmem>>, vector<1x4x128xbf16>
    %62 = vector.shape_cast %61 : vector<1x4x128xbf16> to vector<4x128xbf16>
    %cst_72 = arith.constant dense<0.000000e+00> : vector<256x128xf32>
    %63 = tpu.matmul %60, %62, %cst_72 {dimension_numbers = #tpu.dot_dimension_numbers<[1], [0], [0], [1], [0, 0, 1, 1], [], []>} : vector<256x4xbf16>, vector<4x128xbf16>, vector<256x128xf32> -> vector<256x128xf32>
    %64 = arith.addf %58, %63 : vector<256x128xf32>
    %65 = vector.shape_cast %64 : vector<256x128xf32> to vector<1x16x16x128xf32>
    %66 = arith.truncf %65 : vector<1x16x16x128xf32> to vector<1x16x16x128xbf16>
    %c0_73 = arith.constant 0 : index
    %c0_74 = arith.constant 0 : index
    %c0_75 = arith.constant 0 : index
    %c0_76 = arith.constant 0 : index
    %67 = vector.load %arg3[%c0_73, %c0_74, %c0_75, %c0_76] : memref<1x16x16x128xbf16, #tpu.memory_space<vmem>>, vector<1x16x16x128xbf16>
    tpu.vector_store %arg3[%c0_73, %c0_74, %c0_75, %c0_76], %66 {strides = array<i32>} : memref<1x16x16x128xbf16, #tpu.memory_space<vmem>>, vector<1x16x16x128xbf16>,
    %cst_77 = arith.constant dense<0.000000e+00> : vector<128xf32>
    %68 = vector.multi_reduction <add>, %64, %cst_77 [0] : vector<256x128xf32> to vector<128xf32>
    %69 = vector.shape_cast %68 : vector<128xf32> to vector<1x128xf32>
    %c0_78 = arith.constant 0 : index
    %c0_79 = arith.constant 0 : index
    %c0_80 = arith.constant 0 : index
    %70 = vector.load %arg4[%c0_78, %c0_79, %c0_80] : memref<1x2x128xf32, #tpu.memory_space<vmem>>, vector<1x1x128xf32>
    %71 = vector.shape_cast %70 : vector<1x1x128xf32> to vector<1x128xf32>
    %72 = vector.shape_cast %69 : vector<1x128xf32> to vector<1x1x128xf32>
    tpu.vector_store %arg4[%c0_78, %c0_79, %c0_80], %72 {strides = array<i32>} : memref<1x2x128xf32, #tpu.memory_space<vmem>>, vector<1x1x128xf32>,
    %73 = arith.mulf %64, %64 : vector<256x128xf32>
    %cst_81 = arith.constant dense<0.000000e+00> : vector<128xf32>
    %74 = vector.multi_reduction <add>, %73, %cst_81 [0] : vector<256x128xf32> to vector<128xf32>
    %75 = vector.shape_cast %74 : vector<128xf32> to vector<1x128xf32>
    %c0_82 = arith.constant 0 : index
    %c1_83 = arith.constant 1 : index
    %c0_84 = arith.constant 0 : index
    %76 = vector.load %arg4[%c0_82, %c1_83, %c0_84] : memref<1x2x128xf32, #tpu.memory_space<vmem>>, vector<1x1x128xf32>
    %77 = vector.shape_cast %76 : vector<1x1x128xf32> to vector<1x128xf32>
    %78 = vector.shape_cast %75 : vector<1x128xf32> to vector<1x1x128xf32>
    tpu.vector_store %arg4[%c0_82, %c1_83, %c0_84], %78 {strides = array<i32>} : memref<1x2x128xf32, #tpu.memory_space<vmem>>, vector<1x1x128xf32>,
    return
  }
  func.func @transform_0(%arg0: i32) -> (i32, i32, i32, i32) {
    %c0_i32 = arith.constant 0 : i32
    %c0_i32_0 = arith.constant 0 : i32
    %c0_i32_1 = arith.constant 0 : i32
    %c0_i32_2 = arith.constant 0 : i32
    return %arg0, %c0_i32, %c0_i32_0, %c0_i32_1 : i32, i32, i32, i32
  }
  func.func @transform_1(%arg0: i32) -> (i32, i32, i32) {
    %c0_i32 = arith.constant 0 : i32
    %c0_i32_0 = arith.constant 0 : i32
    %c0_i32_1 = arith.constant 0 : i32
    %c0_i32_2 = arith.constant 0 : i32
    return %c0_i32, %c0_i32_0, %c0_i32_1 : i32, i32, i32
  }
  func.func @transform_2(%arg0: i32) -> (i32, i32, i32, i32) {
    %c0_i32 = arith.constant 0 : i32
    %c0_i32_0 = arith.constant 0 : i32
    %c0_i32_1 = arith.constant 0 : i32
    %c0_i32_2 = arith.constant 0 : i32
    return %arg0, %c0_i32, %c0_i32_0, %c0_i32_1 : i32, i32, i32, i32
  }
  func.func @transform_3(%arg0: i32) -> (i32, i32, i32) {
    %c0_i32 = arith.constant 0 : i32
    %c0_i32_0 = arith.constant 0 : i32
    %c0_i32_1 = arith.constant 0 : i32
    return %arg0, %c0_i32, %c0_i32_0 : i32, i32, i32
  }
}

module attributes {stable_mosaic.version = 11 : i64} {
  func.func @_bn_relu_conv3x3_kernel(%arg0: i32, %arg1: memref<1x16x16x128xbf16, #tpu.memory_space<vmem>>, %arg2: memref<1x128xf32, #tpu.memory_space<vmem>>, %arg3: memref<1x128xf32, #tpu.memory_space<vmem>>, %arg4: memref<9x128x128xbf16, #tpu.memory_space<vmem>>, %arg5: memref<1x16x16x128xbf16, #tpu.memory_space<vmem>>, %arg6: memref<1x2x128xf32, #tpu.memory_space<vmem>>, %arg7: memref<18x32x128xbf16, #tpu.memory_space<vmem>>) attributes {dimension_semantics = [#tpu.dimension_semantics<parallel>], iteration_bounds = array<i64: 2>, scalar_prefetch = 0 : i64, scratch_operands = 1 : i64, tpu.core_type = #tpu.core_type<tc>, window_params = [{transform_indices = @transform_0, window_bounds = array<i64: 1, 16, 16, 128>}, {pipeline_mode = #tpu.pipeline_mode<synchronous>, transform_indices = @transform_1, window_bounds = array<i64: 1, 128>}, {pipeline_mode = #tpu.pipeline_mode<synchronous>, transform_indices = @transform_2, window_bounds = array<i64: 1, 128>}, {pipeline_mode = #tpu.pipeline_mode<synchronous>, transform_indices = @transform_3, window_bounds = array<i64: 9, 128, 128>}, {transform_indices = @transform_4, window_bounds = array<i64: 1, 16, 16, 128>}, {transform_indices = @transform_5, window_bounds = array<i64: 1, 2, 128>}]} {
    %cst = arith.constant 0.000000e+00 : bf16
    %0 = vector.broadcast %cst : bf16 to vector<1x18x128xbf16>
    %c0 = arith.constant 0 : index
    %c7 = arith.constant 7 : index
    %c0_0 = arith.constant 0 : index
    %1 = vector.load %arg7[%c0, %c7, %c0_0] : memref<18x32x128xbf16, #tpu.memory_space<vmem>>, vector<1x18x128xbf16>
    tpu.vector_store %arg7[%c0, %c7, %c0_0], %0 {strides = array<i32>} : memref<18x32x128xbf16, #tpu.memory_space<vmem>>, vector<1x18x128xbf16>,
    %cst_1 = arith.constant 0.000000e+00 : bf16
    %2 = vector.broadcast %cst_1 : bf16 to vector<1x18x128xbf16>
    %c17 = arith.constant 17 : index
    %c7_2 = arith.constant 7 : index
    %c0_3 = arith.constant 0 : index
    %3 = vector.load %arg7[%c17, %c7_2, %c0_3] : memref<18x32x128xbf16, #tpu.memory_space<vmem>>, vector<1x18x128xbf16>
    tpu.vector_store %arg7[%c17, %c7_2, %c0_3], %2 {strides = array<i32>} : memref<18x32x128xbf16, #tpu.memory_space<vmem>>, vector<1x18x128xbf16>,
    %cst_4 = arith.constant 0.000000e+00 : bf16
    %4 = vector.broadcast %cst_4 : bf16 to vector<16x1x128xbf16>
    %c1 = arith.constant 1 : index
    %c7_5 = arith.constant 7 : index
    %c0_6 = arith.constant 0 : index
    %5 = vector.load %arg7[%c1, %c7_5, %c0_6] : memref<18x32x128xbf16, #tpu.memory_space<vmem>>, vector<16x1x128xbf16>
    tpu.vector_store %arg7[%c1, %c7_5, %c0_6], %4 {strides = array<i32>} : memref<18x32x128xbf16, #tpu.memory_space<vmem>>, vector<16x1x128xbf16>,
    %cst_7 = arith.constant 0.000000e+00 : bf16
    %6 = vector.broadcast %cst_7 : bf16 to vector<16x1x128xbf16>
    %c1_8 = arith.constant 1 : index
    %c24 = arith.constant 24 : index
    %c0_9 = arith.constant 0 : index
    %7 = vector.load %arg7[%c1_8, %c24, %c0_9] : memref<18x32x128xbf16, #tpu.memory_space<vmem>>, vector<16x1x128xbf16>
    tpu.vector_store %arg7[%c1_8, %c24, %c0_9], %6 {strides = array<i32>} : memref<18x32x128xbf16, #tpu.memory_space<vmem>>, vector<16x1x128xbf16>,
    %c0_10 = arith.constant 0 : index
    %c0_11 = arith.constant 0 : index
    %c0_12 = arith.constant 0 : index
    %c0_13 = arith.constant 0 : index
    %8 = vector.load %arg1[%c0_10, %c0_11, %c0_12, %c0_13] : memref<1x16x16x128xbf16, #tpu.memory_space<vmem>>, vector<1x16x16x128xbf16>
    %9 = vector.shape_cast %8 : vector<1x16x16x128xbf16> to vector<16x16x128xbf16>
    %10 = arith.extf %9 : vector<16x16x128xbf16> to vector<16x16x128xf32>
    %c0_14 = arith.constant 0 : index
    %c0_15 = arith.constant 0 : index
    %11 = vector.load %arg2[%c0_14, %c0_15] : memref<1x128xf32, #tpu.memory_space<vmem>>, vector<1x128xf32>
    %12 = vector.shape_cast %11 : vector<1x128xf32> to vector<1x1x128xf32>
    %13 = vector.broadcast %12 : vector<1x1x128xf32> to vector<16x16x128xf32>
    %14 = arith.mulf %10, %13 : vector<16x16x128xf32>
    %c0_16 = arith.constant 0 : index
    %c0_17 = arith.constant 0 : index
    %15 = vector.load %arg3[%c0_16, %c0_17] : memref<1x128xf32, #tpu.memory_space<vmem>>, vector<1x128xf32>
    %16 = vector.shape_cast %15 : vector<1x128xf32> to vector<1x1x128xf32>
    %17 = vector.broadcast %16 : vector<1x1x128xf32> to vector<16x16x128xf32>
    %18 = arith.addf %14, %17 : vector<16x16x128xf32>
    %cst_18 = arith.constant 0.000000e+00 : f32
    %19 = vector.broadcast %cst_18 : f32 to vector<16x16x128xf32>
    %20 = arith.maximumf %18, %19 : vector<16x16x128xf32>
    %21 = arith.truncf %20 : vector<16x16x128xf32> to vector<16x16x128xbf16>
    %c1_19 = arith.constant 1 : index
    %c8 = arith.constant 8 : index
    %c0_20 = arith.constant 0 : index
    %22 = vector.load %arg7[%c1_19, %c8, %c0_20] : memref<18x32x128xbf16, #tpu.memory_space<vmem>>, vector<16x16x128xbf16>
    tpu.vector_store %arg7[%c1_19, %c8, %c0_20], %21 {strides = array<i32>} : memref<18x32x128xbf16, #tpu.memory_space<vmem>>, vector<16x16x128xbf16>,
    %c0_21 = arith.constant 0 : index
    %c7_22 = arith.constant 7 : index
    %c0_23 = arith.constant 0 : index
    %23 = vector.load %arg7[%c0_21, %c7_22, %c0_23] : memref<18x32x128xbf16, #tpu.memory_space<vmem>>, vector<16x16x128xbf16>
    %24 = vector.shape_cast %23 : vector<16x16x128xbf16> to vector<256x128xbf16>
    %c0_24 = arith.constant 0 : index
    %c0_25 = arith.constant 0 : index
    %c0_26 = arith.constant 0 : index
    %25 = vector.load %arg4[%c0_24, %c0_25, %c0_26] : memref<9x128x128xbf16, #tpu.memory_space<vmem>>, vector<1x128x128xbf16>
    %26 = vector.shape_cast %25 : vector<1x128x128xbf16> to vector<128x128xbf16>
    %cst_27 = arith.constant dense<0.000000e+00> : vector<256x128xf32>
    %27 = tpu.matmul %24, %26, %cst_27 {dimension_numbers = #tpu.dot_dimension_numbers<[1], [0], [0], [1], [0, 0, 1, 1], [], []>} : vector<256x128xbf16>, vector<128x128xbf16>, vector<256x128xf32> -> vector<256x128xf32>
    %c0_28 = arith.constant 0 : index
    %c8_29 = arith.constant 8 : index
    %c0_30 = arith.constant 0 : index
    %28 = vector.load %arg7[%c0_28, %c8_29, %c0_30] : memref<18x32x128xbf16, #tpu.memory_space<vmem>>, vector<16x16x128xbf16>
    %29 = vector.shape_cast %28 : vector<16x16x128xbf16> to vector<256x128xbf16>
    %c1_31 = arith.constant 1 : index
    %c0_32 = arith.constant 0 : index
    %c0_33 = arith.constant 0 : index
    %30 = vector.load %arg4[%c1_31, %c0_32, %c0_33] : memref<9x128x128xbf16, #tpu.memory_space<vmem>>, vector<1x128x128xbf16>
    %31 = vector.shape_cast %30 : vector<1x128x128xbf16> to vector<128x128xbf16>
    %cst_34 = arith.constant dense<0.000000e+00> : vector<256x128xf32>
    %32 = tpu.matmul %29, %31, %cst_34 {dimension_numbers = #tpu.dot_dimension_numbers<[1], [0], [0], [1], [0, 0, 1, 1], [], []>} : vector<256x128xbf16>, vector<128x128xbf16>, vector<256x128xf32> -> vector<256x128xf32>
    %33 = arith.addf %27, %32 : vector<256x128xf32>
    %c0_35 = arith.constant 0 : index
    %c9 = arith.constant 9 : index
    %c0_36 = arith.constant 0 : index
    %34 = vector.load %arg7[%c0_35, %c9, %c0_36] : memref<18x32x128xbf16, #tpu.memory_space<vmem>>, vector<16x16x128xbf16>
    %35 = vector.shape_cast %34 : vector<16x16x128xbf16> to vector<256x128xbf16>
    %c2 = arith.constant 2 : index
    %c0_37 = arith.constant 0 : index
    %c0_38 = arith.constant 0 : index
    %36 = vector.load %arg4[%c2, %c0_37, %c0_38] : memref<9x128x128xbf16, #tpu.memory_space<vmem>>, vector<1x128x128xbf16>
    %37 = vector.shape_cast %36 : vector<1x128x128xbf16> to vector<128x128xbf16>
    %cst_39 = arith.constant dense<0.000000e+00> : vector<256x128xf32>
    %38 = tpu.matmul %35, %37, %cst_39 {dimension_numbers = #tpu.dot_dimension_numbers<[1], [0], [0], [1], [0, 0, 1, 1], [], []>} : vector<256x128xbf16>, vector<128x128xbf16>, vector<256x128xf32> -> vector<256x128xf32>
    %39 = arith.addf %33, %38 : vector<256x128xf32>
    %c1_40 = arith.constant 1 : index
    %c7_41 = arith.constant 7 : index
    %c0_42 = arith.constant 0 : index
    %40 = vector.load %arg7[%c1_40, %c7_41, %c0_42] : memref<18x32x128xbf16, #tpu.memory_space<vmem>>, vector<16x16x128xbf16>
    %41 = vector.shape_cast %40 : vector<16x16x128xbf16> to vector<256x128xbf16>
    %c3 = arith.constant 3 : index
    %c0_43 = arith.constant 0 : index
    %c0_44 = arith.constant 0 : index
    %42 = vector.load %arg4[%c3, %c0_43, %c0_44] : memref<9x128x128xbf16, #tpu.memory_space<vmem>>, vector<1x128x128xbf16>
    %43 = vector.shape_cast %42 : vector<1x128x128xbf16> to vector<128x128xbf16>
    %cst_45 = arith.constant dense<0.000000e+00> : vector<256x128xf32>
    %44 = tpu.matmul %41, %43, %cst_45 {dimension_numbers = #tpu.dot_dimension_numbers<[1], [0], [0], [1], [0, 0, 1, 1], [], []>} : vector<256x128xbf16>, vector<128x128xbf16>, vector<256x128xf32> -> vector<256x128xf32>
    %45 = arith.addf %39, %44 : vector<256x128xf32>
    %c1_46 = arith.constant 1 : index
    %c8_47 = arith.constant 8 : index
    %c0_48 = arith.constant 0 : index
    %46 = vector.load %arg7[%c1_46, %c8_47, %c0_48] : memref<18x32x128xbf16, #tpu.memory_space<vmem>>, vector<16x16x128xbf16>
    %47 = vector.shape_cast %46 : vector<16x16x128xbf16> to vector<256x128xbf16>
    %c4 = arith.constant 4 : index
    %c0_49 = arith.constant 0 : index
    %c0_50 = arith.constant 0 : index
    %48 = vector.load %arg4[%c4, %c0_49, %c0_50] : memref<9x128x128xbf16, #tpu.memory_space<vmem>>, vector<1x128x128xbf16>
    %49 = vector.shape_cast %48 : vector<1x128x128xbf16> to vector<128x128xbf16>
    %cst_51 = arith.constant dense<0.000000e+00> : vector<256x128xf32>
    %50 = tpu.matmul %47, %49, %cst_51 {dimension_numbers = #tpu.dot_dimension_numbers<[1], [0], [0], [1], [0, 0, 1, 1], [], []>} : vector<256x128xbf16>, vector<128x128xbf16>, vector<256x128xf32> -> vector<256x128xf32>
    %51 = arith.addf %45, %50 : vector<256x128xf32>
    %c1_52 = arith.constant 1 : index
    %c9_53 = arith.constant 9 : index
    %c0_54 = arith.constant 0 : index
    %52 = vector.load %arg7[%c1_52, %c9_53, %c0_54] : memref<18x32x128xbf16, #tpu.memory_space<vmem>>, vector<16x16x128xbf16>
    %53 = vector.shape_cast %52 : vector<16x16x128xbf16> to vector<256x128xbf16>
    %c5 = arith.constant 5 : index
    %c0_55 = arith.constant 0 : index
    %c0_56 = arith.constant 0 : index
    %54 = vector.load %arg4[%c5, %c0_55, %c0_56] : memref<9x128x128xbf16, #tpu.memory_space<vmem>>, vector<1x128x128xbf16>
    %55 = vector.shape_cast %54 : vector<1x128x128xbf16> to vector<128x128xbf16>
    %cst_57 = arith.constant dense<0.000000e+00> : vector<256x128xf32>
    %56 = tpu.matmul %53, %55, %cst_57 {dimension_numbers = #tpu.dot_dimension_numbers<[1], [0], [0], [1], [0, 0, 1, 1], [], []>} : vector<256x128xbf16>, vector<128x128xbf16>, vector<256x128xf32> -> vector<256x128xf32>
    %57 = arith.addf %51, %56 : vector<256x128xf32>
    %c2_58 = arith.constant 2 : index
    %c7_59 = arith.constant 7 : index
    %c0_60 = arith.constant 0 : index
    %58 = vector.load %arg7[%c2_58, %c7_59, %c0_60] : memref<18x32x128xbf16, #tpu.memory_space<vmem>>, vector<16x16x128xbf16>
    %59 = vector.shape_cast %58 : vector<16x16x128xbf16> to vector<256x128xbf16>
    %c6 = arith.constant 6 : index
    %c0_61 = arith.constant 0 : index
    %c0_62 = arith.constant 0 : index
    %60 = vector.load %arg4[%c6, %c0_61, %c0_62] : memref<9x128x128xbf16, #tpu.memory_space<vmem>>, vector<1x128x128xbf16>
    %61 = vector.shape_cast %60 : vector<1x128x128xbf16> to vector<128x128xbf16>
    %cst_63 = arith.constant dense<0.000000e+00> : vector<256x128xf32>
    %62 = tpu.matmul %59, %61, %cst_63 {dimension_numbers = #tpu.dot_dimension_numbers<[1], [0], [0], [1], [0, 0, 1, 1], [], []>} : vector<256x128xbf16>, vector<128x128xbf16>, vector<256x128xf32> -> vector<256x128xf32>
    %63 = arith.addf %57, %62 : vector<256x128xf32>
    %c2_64 = arith.constant 2 : index
    %c8_65 = arith.constant 8 : index
    %c0_66 = arith.constant 0 : index
    %64 = vector.load %arg7[%c2_64, %c8_65, %c0_66] : memref<18x32x128xbf16, #tpu.memory_space<vmem>>, vector<16x16x128xbf16>
    %65 = vector.shape_cast %64 : vector<16x16x128xbf16> to vector<256x128xbf16>
    %c7_67 = arith.constant 7 : index
    %c0_68 = arith.constant 0 : index
    %c0_69 = arith.constant 0 : index
    %66 = vector.load %arg4[%c7_67, %c0_68, %c0_69] : memref<9x128x128xbf16, #tpu.memory_space<vmem>>, vector<1x128x128xbf16>
    %67 = vector.shape_cast %66 : vector<1x128x128xbf16> to vector<128x128xbf16>
    %cst_70 = arith.constant dense<0.000000e+00> : vector<256x128xf32>
    %68 = tpu.matmul %65, %67, %cst_70 {dimension_numbers = #tpu.dot_dimension_numbers<[1], [0], [0], [1], [0, 0, 1, 1], [], []>} : vector<256x128xbf16>, vector<128x128xbf16>, vector<256x128xf32> -> vector<256x128xf32>
    %69 = arith.addf %63, %68 : vector<256x128xf32>
    %c2_71 = arith.constant 2 : index
    %c9_72 = arith.constant 9 : index
    %c0_73 = arith.constant 0 : index
    %70 = vector.load %arg7[%c2_71, %c9_72, %c0_73] : memref<18x32x128xbf16, #tpu.memory_space<vmem>>, vector<16x16x128xbf16>
    %71 = vector.shape_cast %70 : vector<16x16x128xbf16> to vector<256x128xbf16>
    %c8_74 = arith.constant 8 : index
    %c0_75 = arith.constant 0 : index
    %c0_76 = arith.constant 0 : index
    %72 = vector.load %arg4[%c8_74, %c0_75, %c0_76] : memref<9x128x128xbf16, #tpu.memory_space<vmem>>, vector<1x128x128xbf16>
    %73 = vector.shape_cast %72 : vector<1x128x128xbf16> to vector<128x128xbf16>
    %cst_77 = arith.constant dense<0.000000e+00> : vector<256x128xf32>
    %74 = tpu.matmul %71, %73, %cst_77 {dimension_numbers = #tpu.dot_dimension_numbers<[1], [0], [0], [1], [0, 0, 1, 1], [], []>} : vector<256x128xbf16>, vector<128x128xbf16>, vector<256x128xf32> -> vector<256x128xf32>
    %75 = arith.addf %69, %74 : vector<256x128xf32>
    %76 = vector.shape_cast %75 : vector<256x128xf32> to vector<1x16x16x128xf32>
    %77 = arith.truncf %76 : vector<1x16x16x128xf32> to vector<1x16x16x128xbf16>
    %c0_78 = arith.constant 0 : index
    %c0_79 = arith.constant 0 : index
    %c0_80 = arith.constant 0 : index
    %c0_81 = arith.constant 0 : index
    %78 = vector.load %arg5[%c0_78, %c0_79, %c0_80, %c0_81] : memref<1x16x16x128xbf16, #tpu.memory_space<vmem>>, vector<1x16x16x128xbf16>
    tpu.vector_store %arg5[%c0_78, %c0_79, %c0_80, %c0_81], %77 {strides = array<i32>} : memref<1x16x16x128xbf16, #tpu.memory_space<vmem>>, vector<1x16x16x128xbf16>,
    %cst_82 = arith.constant dense<0.000000e+00> : vector<128xf32>
    %79 = vector.multi_reduction <add>, %75, %cst_82 [0] : vector<256x128xf32> to vector<128xf32>
    %80 = vector.shape_cast %79 : vector<128xf32> to vector<1x128xf32>
    %c0_83 = arith.constant 0 : index
    %c0_84 = arith.constant 0 : index
    %c0_85 = arith.constant 0 : index
    %81 = vector.load %arg6[%c0_83, %c0_84, %c0_85] : memref<1x2x128xf32, #tpu.memory_space<vmem>>, vector<1x1x128xf32>
    %82 = vector.shape_cast %81 : vector<1x1x128xf32> to vector<1x128xf32>
    %83 = vector.shape_cast %80 : vector<1x128xf32> to vector<1x1x128xf32>
    tpu.vector_store %arg6[%c0_83, %c0_84, %c0_85], %83 {strides = array<i32>} : memref<1x2x128xf32, #tpu.memory_space<vmem>>, vector<1x1x128xf32>,
    %84 = arith.mulf %75, %75 : vector<256x128xf32>
    %cst_86 = arith.constant dense<0.000000e+00> : vector<128xf32>
    %85 = vector.multi_reduction <add>, %84, %cst_86 [0] : vector<256x128xf32> to vector<128xf32>
    %86 = vector.shape_cast %85 : vector<128xf32> to vector<1x128xf32>
    %c0_87 = arith.constant 0 : index
    %c1_88 = arith.constant 1 : index
    %c0_89 = arith.constant 0 : index
    %87 = vector.load %arg6[%c0_87, %c1_88, %c0_89] : memref<1x2x128xf32, #tpu.memory_space<vmem>>, vector<1x1x128xf32>
    %88 = vector.shape_cast %87 : vector<1x1x128xf32> to vector<1x128xf32>
    %89 = vector.shape_cast %86 : vector<1x128xf32> to vector<1x1x128xf32>
    tpu.vector_store %arg6[%c0_87, %c1_88, %c0_89], %89 {strides = array<i32>} : memref<1x2x128xf32, #tpu.memory_space<vmem>>, vector<1x1x128xf32>,
    return
  }
  func.func @transform_0(%arg0: i32) -> (i32, i32, i32, i32) {
    %c0_i32 = arith.constant 0 : i32
    %c0_i32_0 = arith.constant 0 : i32
    %c0_i32_1 = arith.constant 0 : i32
    %c0_i32_2 = arith.constant 0 : i32
    return %arg0, %c0_i32, %c0_i32_0, %c0_i32_1 : i32, i32, i32, i32
  }
  func.func @transform_1(%arg0: i32) -> (i32, i32) {
    %c0_i32 = arith.constant 0 : i32
    %c0_i32_0 = arith.constant 0 : i32
    %c0_i32_1 = arith.constant 0 : i32
    return %c0_i32, %c0_i32_0 : i32, i32
  }
  func.func @transform_2(%arg0: i32) -> (i32, i32) {
    %c0_i32 = arith.constant 0 : i32
    %c0_i32_0 = arith.constant 0 : i32
    %c0_i32_1 = arith.constant 0 : i32
    return %c0_i32, %c0_i32_0 : i32, i32
  }
  func.func @transform_3(%arg0: i32) -> (i32, i32, i32) {
    %c0_i32 = arith.constant 0 : i32
    %c0_i32_0 = arith.constant 0 : i32
    %c0_i32_1 = arith.constant 0 : i32
    %c0_i32_2 = arith.constant 0 : i32
    return %c0_i32, %c0_i32_0, %c0_i32_1 : i32, i32, i32
  }
  func.func @transform_4(%arg0: i32) -> (i32, i32, i32, i32) {
    %c0_i32 = arith.constant 0 : i32
    %c0_i32_0 = arith.constant 0 : i32
    %c0_i32_1 = arith.constant 0 : i32
    %c0_i32_2 = arith.constant 0 : i32
    return %arg0, %c0_i32, %c0_i32_0, %c0_i32_1 : i32, i32, i32, i32
  }
  func.func @transform_5(%arg0: i32) -> (i32, i32, i32) {
    %c0_i32 = arith.constant 0 : i32
    %c0_i32_0 = arith.constant 0 : i32
    %c0_i32_1 = arith.constant 0 : i32
    return %arg0, %c0_i32, %c0_i32_0 : i32, i32, i32
  }
}

module attributes {stable_mosaic.version = 11 : i64} {
  func.func @_bn_relu_kernel(%arg0: i32, %arg1: memref<1x16x16x128xbf16, #tpu.memory_space<vmem>>, %arg2: memref<1x128xf32, #tpu.memory_space<vmem>>, %arg3: memref<1x128xf32, #tpu.memory_space<vmem>>, %arg4: memref<1x16x16x8xf32, #tpu.memory_space<vmem>>) attributes {dimension_semantics = [#tpu.dimension_semantics<parallel>], iteration_bounds = array<i64: 2>, scalar_prefetch = 0 : i64, scratch_operands = 0 : i64, tpu.core_type = #tpu.core_type<tc>, window_params = [{transform_indices = @transform_0, window_bounds = array<i64: 1, 16, 16, 128>}, {pipeline_mode = #tpu.pipeline_mode<synchronous>, transform_indices = @transform_1, window_bounds = array<i64: 1, 128>}, {pipeline_mode = #tpu.pipeline_mode<synchronous>, transform_indices = @transform_2, window_bounds = array<i64: 1, 128>}, {transform_indices = @transform_3, window_bounds = array<i64: 1, 16, 16, 8>}]} {
    %c0 = arith.constant 0 : index
    %c0_0 = arith.constant 0 : index
    %c0_1 = arith.constant 0 : index
    %c0_2 = arith.constant 0 : index
    %0 = vector.load %arg1[%c0, %c0_0, %c0_1, %c0_2] : memref<1x16x16x128xbf16, #tpu.memory_space<vmem>>, vector<1x16x16x128xbf16>
    %1 = arith.extf %0 : vector<1x16x16x128xbf16> to vector<1x16x16x128xf32>
    %c0_3 = arith.constant 0 : index
    %c0_4 = arith.constant 0 : index
    %2 = vector.load %arg2[%c0_3, %c0_4] : memref<1x128xf32, #tpu.memory_space<vmem>>, vector<1x128xf32>
    %3 = vector.shape_cast %2 : vector<1x128xf32> to vector<1x1x1x128xf32>
    %4 = vector.broadcast %3 : vector<1x1x1x128xf32> to vector<1x16x16x128xf32>
    %5 = arith.mulf %1, %4 : vector<1x16x16x128xf32>
    %c0_5 = arith.constant 0 : index
    %c0_6 = arith.constant 0 : index
    %6 = vector.load %arg3[%c0_5, %c0_6] : memref<1x128xf32, #tpu.memory_space<vmem>>, vector<1x128xf32>
    %7 = vector.shape_cast %6 : vector<1x128xf32> to vector<1x1x1x128xf32>
    %8 = vector.broadcast %7 : vector<1x1x1x128xf32> to vector<1x16x16x128xf32>
    %9 = arith.addf %5, %8 : vector<1x16x16x128xf32>
    %cst = arith.constant 0.000000e+00 : f32
    %10 = vector.broadcast %cst : f32 to vector<1x16x16x128xf32>
    %11 = arith.maximumf %9, %10 : vector<1x16x16x128xf32>
    %12 = vector.extract_strided_slice %11 {offsets = [0, 0, 0, 0], sizes = [1, 16, 16, 8], strides = [1, 1, 1, 1]} : vector<1x16x16x128xf32> to vector<1x16x16x8xf32>
    %c0_7 = arith.constant 0 : index
    %c0_8 = arith.constant 0 : index
    %c0_9 = arith.constant 0 : index
    %c0_10 = arith.constant 0 : index
    %13 = vector.load %arg4[%c0_7, %c0_8, %c0_9, %c0_10] : memref<1x16x16x8xf32, #tpu.memory_space<vmem>>, vector<1x16x16x8xf32>
    tpu.vector_store %arg4[%c0_7, %c0_8, %c0_9, %c0_10], %12 {strides = array<i32>} : memref<1x16x16x8xf32, #tpu.memory_space<vmem>>, vector<1x16x16x8xf32>,
    return
  }
  func.func @transform_0(%arg0: i32) -> (i32, i32, i32, i32) {
    %c0_i32 = arith.constant 0 : i32
    %c0_i32_0 = arith.constant 0 : i32
    %c0_i32_1 = arith.constant 0 : i32
    %c0_i32_2 = arith.constant 0 : i32
    return %arg0, %c0_i32, %c0_i32_0, %c0_i32_1 : i32, i32, i32, i32
  }
  func.func @transform_1(%arg0: i32) -> (i32, i32) {
    %c0_i32 = arith.constant 0 : i32
    %c0_i32_0 = arith.constant 0 : i32
    %c0_i32_1 = arith.constant 0 : i32
    return %c0_i32, %c0_i32_0 : i32, i32
  }
  func.func @transform_2(%arg0: i32) -> (i32, i32) {
    %c0_i32 = arith.constant 0 : i32
    %c0_i32_0 = arith.constant 0 : i32
    %c0_i32_1 = arith.constant 0 : i32
    return %c0_i32, %c0_i32_0 : i32, i32
  }
  func.func @transform_3(%arg0: i32) -> (i32, i32, i32, i32) {
    %c0_i32 = arith.constant 0 : i32
    %c0_i32_0 = arith.constant 0 : i32
    %c0_i32_1 = arith.constant 0 : i32
    %c0_i32_2 = arith.constant 0 : i32
    return %arg0, %c0_i32, %c0_i32_0, %c0_i32_1 : i32, i32, i32, i32
  }
}

</mosaic_0001>

<bundles_post_ra>
// kernel: conv_block.5
= control target key start
LH: loop header
LB: loop body
LE: loop exit
PB: predicated region body
PF: predicated region fallthrough
CT: control target
= control target key end

     0   :  { %s563_s12 = smov 0   ;;  %s742_s0 = inlined_call_operand.vmem [shape: bf16[2,16,16,128], index: 0, kind: input, shape index: {}]   ;;  %s743_s1 = inlined_call_operand.vmem [shape: f32[1,128], index: 1, kind: input, shape index: {}]   ;;  %s744_s2 = inlined_call_operand.vmem [shape: f32[1,128], index: 2, kind: input, shape index: {}]   ;;  %s745_s3 = inlined_call_operand.vmem [shape: f32[2,16,16,8], index: 3, kind: output, shape index: {}]  }
   0x1 LB: > { %s433_s13 = sadd.s32 4294967295, %s541_s12   ;;  %p437_p0 = scmp.ge.s32.totalorder %s541_s12, 1  ;;  %s541_s12 = sphi %s563_s12, %s13_s12  }
   0x2   : > { %p137_p1 = scmp.lt.s32.totalorder %s541_s12, 3 }
   0x4   : > { %p138_p2 = pnand %p437_p0, %p137_p1 }
   0x5   : > { %p161_p3 = scmp.lt.s32.totalorder (!%p138_p2), %s433_s13, 1 }
   0x6   : > { %141 = sbr.rel (%p138_p2) target bundleno = 51 (0x33), region = 32 }
   0xb   : > { %s747_s13 = smov (!%p161_p3, %s433_s13), 1  ;;  %v582_v0 = vld [vmem:[%s743_s1] ss:$0 sm:$0xff]  ;;  %vm345_vm0 = vcmask 64512  }
   0xc   : > { %s446_s14 = sshll.u32 %s747_s13, 7  ;;  %v591_v9 = vld [vmem:[%s744_s2] ss:$0 sm:$0xff]  ;;  %s447_s22 = sshll.u32 %s747_s13, 8 }
   0xd   : > { %s577_s17 = scalar_lea.vmem %s742_s0, %s446_s14  ;;  %s609_s25 = scalar_lea.vmem %s745_s3, %s447_s22 }
   0xe   : > { %v449_v1 = vld [vmem:[%s577_s17] sm:$0xff]   ;;  %v512_v2 = vld [vmem:[%s577_s17 + $0x8] sm:$0xff]   ;;  %v513_v3 = vld [vmem:[%s577_s17 + $0x10] sm:$0xff]  }
   0xf   : > { %v450_v4 = vunpack.c.l.bf16 %v449_v1  ;;  %v451_v5 = vunpack.c.h.bf16 %v449_v1  ;;  %v454_v6 = vunpack.c.l.bf16 %v512_v2  ;;  %v455_v7 = vunpack.c.h.bf16 %v512_v2  ;;  %v514_v8 = vld [vmem:[%s577_s17 + $0x18] sm:$0xff]   ;;  %v515_v30 = vld [vmem:[%s577_s17 + $0x20] sm:$0xff]   ;;  %v516_v31 = vld [vmem:[%s577_s17 + $0x28] sm:$0xff]  }
  0x10   : > { %v458_v10 = vunpack.c.l.bf16 %v513_v3  ;;  %v459_v11 = vunpack.c.h.bf16 %v513_v3  ;;  %v462_v12 = vunpack.c.l.bf16 %v514_v8  ;;  %v463_v13 = vunpack.c.h.bf16 %v514_v8  ;;  %v517_v36 = vld [vmem:[%s577_s17 + $0x30] sm:$0xff]   ;;  %v518_v37 = vld [vmem:[%s577_s17 + $0x38] sm:$0xff]   ;;  %v519_v3 = vld [vmem:[%s577_s17 + $0x40] sm:$0xff]  }
  0x11   : > { %v242_v14 = vmul.f32 %v450_v4, %v582_v0  ;;  %v243_v15 = vmul.f32 %v451_v5, %v582_v0  ;;  %v244_v16 = vmul.f32 %v454_v6, %v582_v0  ;;  %v245_v17 = vmul.f32 %v455_v7, %v582_v0  ;;  %v520_v4 = vld [vmem:[%s577_s17 + $0x48] sm:$0xff]  }
  0x12   : > { %v246_v18 = vmul.f32 %v458_v10, %v582_v0  ;;  %v247_v19 = vmul.f32 %v459_v11, %v582_v0  ;;  %v248_v20 = vmul.f32 %v462_v12, %v582_v0  ;;  %v249_v21 = vmul.f32 %v463_v13, %v582_v0  ;;  %v521_v10 = vld [vmem:[%s577_s17 + $0x50] sm:$0xff]   ;;  %v522_v11 = vld [vmem:[%s577_s17 + $0x58] sm:$0xff]  }
  0x13   : > { %v281_v22 = vadd.f32 %v591_v9, %v242_v14  ;;  %v282_v23 = vadd.f32 %v591_v9, %v243_v15  ;;  %v283_v24 = vadd.f32 %v591_v9, %v244_v16  ;;  %v284_v25 = vadd.f32 %v591_v9, %v245_v17 }
  0x14   : > { %v285_v26 = vadd.f32 %v591_v9, %v246_v18  ;;  %v286_v27 = vadd.f32 %v591_v9, %v247_v19  ;;  %v287_v28 = vadd.f32 %v591_v9, %v248_v20  ;;  %v288_v29 = vadd.f32 %v591_v9, %v249_v21 }
  0x15   : > { %v313_v32 = vmax.f32 %v281_v22, 0.0  ;;  %v314_v33 = vmax.f32 %v282_v23, 0.0  ;;  %v315_v34 = vmax.f32 %v283_v24, 0.0  ;;  %v316_v35 = vmax.f32 %v284_v25, 0.0 }
  0x16   : > { %v317_v38 = vmax.f32 %v285_v26, 0.0  ;;  %v318_v39 = vmax.f32 %v286_v27, 0.0  ;;  %v319_v40 = vmax.f32 %v287_v28, 0.0  ;;  %v320_v41 = vmax.f32 %v288_v29, 0.0 }
  0x17   : > { %346 = vst.msk [vmem:[%s609_s25] sm:$0xff] %vm345_vm0, %v313_v32  ;;  %347 = vst.msk [vmem:[%s609_s25 + $0x8] sm:$0xff] %vm345_vm0, %v314_v33  ;;  %v466_v42 = vunpack.c.l.bf16 %v515_v30  ;;  %v467_v43 = vunpack.c.h.bf16 %v515_v30  ;;  %v470_v44 = vunpack.c.l.bf16 %v516_v31  ;;  %v471_v45 = vunpack.c.h.bf16 %v516_v31 }
  0x18   : > { %348 = vst.msk [vmem:[%s609_s25 + $0x10] sm:$0xff] %vm345_vm0, %v315_v34  ;;  %349 = vst.msk [vmem:[%s609_s25 + $0x18] sm:$0xff] %vm345_vm0, %v316_v35  ;;  %v474_v46 = vunpack.c.l.bf16 %v517_v36  ;;  %v475_v47 = vunpack.c.h.bf16 %v517_v36  ;;  %v478_v48 = vunpack.c.l.bf16 %v518_v37  ;;  %v479_v49 = vunpack.c.h.bf16 %v518_v37 }
  0x19   : > { %350 = vst.msk [vmem:[%s609_s25 + $0x20] sm:$0xff] %vm345_vm0, %v317_v38  ;;  %351 = vst.msk [vmem:[%s609_s25 + $0x28] sm:$0xff] %vm345_vm0, %v318_v39  ;;  %v250_v50 = vmul.f32 %v466_v42, %v582_v0  ;;  %v251_v51 = vmul.f32 %v467_v43, %v582_v0  ;;  %v252_v52 = vmul.f32 %v470_v44, %v582_v0  ;;  %v482_v16 = vunpack.c.l.bf16 %v519_v3 }
  0x1a   : > { %352 = vst.msk [vmem:[%s609_s25 + $0x30] sm:$0xff] %vm345_vm0, %v319_v40  ;;  %353 = vst.msk [vmem:[%s609_s25 + $0x38] sm:$0xff] %vm345_vm0, %v320_v41  ;;  %v253_v53 = vmul.f32 %v471_v45, %v582_v0  ;;  %v254_v54 = vmul.f32 %v474_v46, %v582_v0  ;;  %v255_v55 = vmul.f32 %v475_v47, %v582_v0  ;;  %v483_v17 = vunpack.c.h.bf16 %v519_v3  ;;  %v523_v40 = vld [vmem:[%s577_s17 + $0x60] sm:$0xff]   ;;  %v524_v41 = vld [vmem:[%s577_s17 + $0x68] sm:$0xff]  }
  0x1b   : > { %v256_v56 = vmul.f32 %v478_v48, %v582_v0  ;;  %v257_v57 = vmul.f32 %v479_v49, %v582_v0  ;;  %v289_v58 = vadd.f32 %v591_v9, %v250_v50  ;;  %v290_v59 = vadd.f32 %v591_v9, %v251_v51  ;;  %v525_v46 = vld [vmem:[%s577_s17 + $0x70] sm:$0xff]   ;;  %v526_v47 = vld [vmem:[%s577_s17 + $0x78] sm:$0xff]  }
  0x1c   : > { %v291_v60 = vadd.f32 %v591_v9, %v252_v52  ;;  %v292_v61 = vadd.f32 %v591_v9, %v253_v53  ;;  %v293_v62 = vadd.f32 %v591_v9, %v254_v54  ;;  %v294_v63 = vadd.f32 %v591_v9, %v255_v55 }
  0x1d   : > { %v295_v1 = vadd.f32 %v591_v9, %v256_v56  ;;  %v296_v2 = vadd.f32 %v591_v9, %v257_v57  ;;  %v321_v5 = vmax.f32 %v289_v58, 0.0  ;;  %v322_v6 = vmax.f32 %v290_v59, 0.0 }
  0x1e   : > { %v323_v7 = vmax.f32 %v291_v60, 0.0  ;;  %v324_v8 = vmax.f32 %v292_v61, 0.0  ;;  %v325_v12 = vmax.f32 %v293_v62, 0.0  ;;  %v326_v13 = vmax.f32 %v294_v63, 0.0 }
  0x1f   : > { %v327_v14 = vmax.f32 %v295_v1, 0.0  ;;  %v328_v15 = vmax.f32 %v296_v2, 0.0  ;;  %354 = vst.msk [vmem:[%s609_s25 + $0x40] sm:$0xff] %vm345_vm0, %v321_v5  ;;  %355 = vst.msk [vmem:[%s609_s25 + $0x48] sm:$0xff] %vm345_vm0, %v322_v6  ;;  %v486_v18 = vunpack.c.l.bf16 %v520_v4  ;;  %v487_v19 = vunpack.c.h.bf16 %v520_v4 }
  0x20   : > { %356 = vst.msk [vmem:[%s609_s25 + $0x50] sm:$0xff] %vm345_vm0, %v323_v7  ;;  %357 = vst.msk [vmem:[%s609_s25 + $0x58] sm:$0xff] %vm345_vm0, %v324_v8  ;;  %v490_v20 = vunpack.c.l.bf16 %v521_v10  ;;  %v491_v21 = vunpack.c.h.bf16 %v521_v10  ;;  %v494_v22 = vunpack.c.l.bf16 %v522_v11  ;;  %v495_v23 = vunpack.c.h.bf16 %v522_v11 }
  0x21   : > { %358 = vst.msk [vmem:[%s609_s25 + $0x60] sm:$0xff] %vm345_vm0, %v325_v12  ;;  %359 = vst.msk [vmem:[%s609_s25 + $0x68] sm:$0xff] %vm345_vm0, %v326_v13  ;;  %v258_v24 = vmul.f32 %v482_v16, %v582_v0  ;;  %v259_v25 = vmul.f32 %v483_v17, %v582_v0  ;;  %v260_v26 = vmul.f32 %v486_v18, %v582_v0  ;;  %v498_v52 = vunpack.c.l.bf16 %v523_v40 }
  0x22   : > { %360 = vst.msk [vmem:[%s609_s25 + $0x70] sm:$0xff] %vm345_vm0, %v327_v14  ;;  %361 = vst.msk [vmem:[%s609_s25 + $0x78] sm:$0xff] %vm345_vm0, %v328_v15  ;;  %v261_v27 = vmul.f32 %v487_v19, %v582_v0  ;;  %v262_v28 = vmul.f32 %v490_v20, %v582_v0  ;;  %v263_v29 = vmul.f32 %v491_v21, %v582_v0  ;;  %v499_v53 = vunpack.c.h.bf16 %v523_v40 }
  0x23   : > { %v264_v30 = vmul.f32 %v494_v22, %v582_v0  ;;  %v265_v31 = vmul.f32 %v495_v23, %v582_v0  ;;  %v297_v32 = vadd.f32 %v591_v9, %v258_v24  ;;  %v298_v33 = vadd.f32 %v591_v9, %v259_v25 }
  0x24   : > { %v299_v34 = vadd.f32 %v591_v9, %v260_v26  ;;  %v300_v35 = vadd.f32 %v591_v9, %v261_v27  ;;  %v301_v36 = vadd.f32 %v591_v9, %v262_v28  ;;  %v302_v37 = vadd.f32 %v591_v9, %v263_v29 }
  0x25   : > { %v303_v38 = vadd.f32 %v591_v9, %v264_v30  ;;  %v304_v39 = vadd.f32 %v591_v9, %v265_v31  ;;  %v329_v42 = vmax.f32 %v297_v32, 0.0  ;;  %v330_v43 = vmax.f32 %v298_v33, 0.0 }
  0x26   : > { %v331_v44 = vmax.f32 %v299_v34, 0.0  ;;  %v332_v45 = vmax.f32 %v300_v35, 0.0  ;;  %v333_v48 = vmax.f32 %v301_v36, 0.0  ;;  %v334_v49 = vmax.f32 %v302_v37, 0.0 }
  0x27   : > { %v335_v50 = vmax.f32 %v303_v38, 0.0  ;;  %v336_v51 = vmax.f32 %v304_v39, 0.0  ;;  %362 = vst.msk [vmem:[%s609_s25 + $0x80] sm:$0xff] %vm345_vm0, %v329_v42  ;;  %363 = vst.msk [vmem:[%s609_s25 + $0x88] sm:$0xff] %vm345_vm0, %v330_v43  ;;  %v502_v54 = vunpack.c.l.bf16 %v524_v41  ;;  %v503_v55 = vunpack.c.h.bf16 %v524_v41 }
  0x28   : > { %364 = vst.msk [vmem:[%s609_s25 + $0x90] sm:$0xff] %vm345_vm0, %v331_v44  ;;  %365 = vst.msk [vmem:[%s609_s25 + $0x98] sm:$0xff] %vm345_vm0, %v332_v45  ;;  %v506_v56 = vunpack.c.l.bf16 %v525_v46  ;;  %v507_v57 = vunpack.c.h.bf16 %v525_v46  ;;  %v510_v58 = vunpack.c.l.bf16 %v526_v47  ;;  %v511_v59 = vunpack.c.h.bf16 %v526_v47 }
  0x29   : > { %366 = vst.msk [vmem:[%s609_s25 + $0xa0] sm:$0xff] %vm345_vm0, %v333_v48  ;;  %367 = vst.msk [vmem:[%s609_s25 + $0xa8] sm:$0xff] %vm345_vm0, %v334_v49  ;;  %v266_v60 = vmul.f32 %v498_v52, %v582_v0  ;;  %v267_v61 = vmul.f32 %v499_v53, %v582_v0  ;;  %v268_v62 = vmul.f32 %v502_v54, %v582_v0 }
  0x2a   : > { %368 = vst.msk [vmem:[%s609_s25 + $0xb0] sm:$0xff] %vm345_vm0, %v335_v50  ;;  %369 = vst.msk [vmem:[%s609_s25 + $0xb8] sm:$0xff] %vm345_vm0, %v336_v51  ;;  %v269_v63 = vmul.f32 %v503_v55, %v582_v0  ;;  %v270_v1 = vmul.f32 %v506_v56, %v582_v0  ;;  %v271_v2 = vmul.f32 %v507_v57, %v582_v0 }
  0x2b   : > { %v272_v3 = vmul.f32 %v510_v58, %v582_v0  ;;  %v273_v4 = vmul.f32 %v511_v59, %v582_v0  ;;  %v305_v5 = vadd.f32 %v591_v9, %v266_v60  ;;  %v306_v6 = vadd.f32 %v591_v9, %v267_v61 }
  0x2c   : > { %v307_v7 = vadd.f32 %v591_v9, %v268_v62  ;;  %v308_v8 = vadd.f32 %v591_v9, %v269_v63  ;;  %v309_v10 = vadd.f32 %v591_v9, %v270_v1  ;;  %v310_v11 = vadd.f32 %v591_v9, %v271_v2 }
  0x2d   : > { %v311_v0 = vadd.f32 %v591_v9, %v272_v3  ;;  %v312_v12 = vadd.f32 %v591_v9, %v273_v4  ;;  %v337_v13 = vmax.f32 %v305_v5, 0.0  ;;  %v338_v14 = vmax.f32 %v306_v6, 0.0 }
  0x2e   : > { %v339_v15 = vmax.f32 %v307_v7, 0.0  ;;  %v340_v16 = vmax.f32 %v308_v8, 0.0  ;;  %v341_v17 = vmax.f32 %v309_v10, 0.0  ;;  %v342_v18 = vmax.f32 %v310_v11, 0.0 }
  0x2f   : > { %v343_v19 = vmax.f32 %v311_v0, 0.0  ;;  %v344_v20 = vmax.f32 %v312_v12, 0.0  ;;  %370 = vst.msk [vmem:[%s609_s25 + $0xc0] sm:$0xff] %vm345_vm0, %v337_v13  ;;  %371 = vst.msk [vmem:[%s609_s25 + $0xc8] sm:$0xff] %vm345_vm0, %v338_v14 }
  0x30   : > { %372 = vst.msk [vmem:[%s609_s25 + $0xd0] sm:$0xff] %vm345_vm0, %v339_v15  ;;  %373 = vst.msk [vmem:[%s609_s25 + $0xd8] sm:$0xff] %vm345_vm0, %v340_v16 }
  0x31   : > { %374 = vst.msk [vmem:[%s609_s25 + $0xe0] sm:$0xff] %vm345_vm0, %v341_v17  ;;  %375 = vst.msk [vmem:[%s609_s25 + $0xe8] sm:$0xff] %vm345_vm0, %v342_v18 }
  0x32   : > { %376 = vst.msk [vmem:[%s609_s25 + $0xf0] sm:$0xff] %vm345_vm0, %v343_v19  ;;  %377 = vst.msk [vmem:[%s609_s25 + $0xf8] sm:$0xff] %vm345_vm0, %v344_v20 }
  0x33 PF: > { %s13_s12 = sadd.s32 1, %s541_s12  }
  0x34   : > { %p10_p4 = scmp.ge.s32.totalorder %s13_s12, 4  }
  0x36   :  { %12 = sbr.rel (!%p10_p4) target bundleno = 1 (0x1), region = 62 }

// kernel: conv_block.3
= control target key start
LH: loop header
LB: loop body
LE: loop exit
PB: predicated region body
PF: predicated region fallthrough
CT: control target
= control target key end

     0   :  { %s7197_s12 = smov 0   ;;  %s9219_s0 = inlined_call_operand.vmem [shape: f32[2,16,16,4], index: 0, kind: input, shape index: {}]   ;;  %s9220_s1 = inlined_call_operand.vmem [shape: bf16[9,4,128], index: 1, kind: input, shape index: {}]   ;;  %s9221_s2 = inlined_call_operand.vmem [shape: bf16[2,16,16,128], index: 2, kind: output, shape index: {0}]   ;;  %s9222_s3 = inlined_call_operand.vmem [shape: f32[2,2,128], index: 3, kind: output, shape index: {1}]  }
   0x1 LB: > { %s6031_s13 = sadd.s32 4294967295, %s7174_s12   ;;  %p6035_p0 = scmp.ge.s32.totalorder %s7174_s12, 1  ;;  %s7174_s12 = sphi %s7197_s12, %s14_s12  }
   0x2   : > { %p140_p1 = scmp.lt.s32.totalorder %s7174_s12, 3 }
   0x4   : > { %p141_p2 = pnand %p6035_p0, %p140_p1 }
   0x6   : > { %144 = sbr.rel (%p141_p2) target bundleno = 673 (0x2a1), region = 28 }
   0xb   : > { %v6089_v0 = vld [vmem:[%s9220_s1 + $0x2] sm:$0x3]  ;;  %vm1030_vm0 = vcmask 1041408   ;;  %vm189_vm1 = vcmask 27648   ;;  %v7176_v2 = vmov 0   ;;  %p168_p3 = scmp.lt.s32.totalorder %s6031_s13, 1 }
   0xc   : > { %7073 = vmatprep.subr.msk.bf16.mxu0 %vm1030_vm0, %v6089_v0  ;;  %7074 = vmatprep.subr.msk.bf16.mxu1 %vm1030_vm0, %v6089_v0  ;;  %v1032_v1 = vsel %vm1030_vm0, %v6089_v0, 0  ;;  %190 = vst.msk [vmem:[#allocation2 + $0x4] sm:$0xf] %vm189_vm1, %v7176_v2  ;;  %191 = vst.msk [vmem:[#allocation2 + $0x8] sm:$0xf] %vm189_vm1, %v7176_v2  ;;  %vm192_vm2 = vcmask 24576  }
   0xd   : > { %202 = vst.msk [vmem:[#allocation2 + $0x114] sm:$0xf] %vm189_vm1, %v7176_v2  ;;  %203 = vst.msk [vmem:[#allocation2 + $0x118] sm:$0xf] %vm189_vm1, %v7176_v2  ;;  %v898_v3 = vld [vmem:[%s9220_s1] sm:$0x3]  ;;  %6766 = vmatpush3.bf16.msra.mxu0 %v1032_v1  ;;  %7072 = vmatpush3.bf16.msra.mxu1 %v1032_v1 }
   0xe   : > { %v6154_v4 = vld [vmem:[%s9220_s1 + $0x4] sm:$0x3]  ;;  %vm193_vm3 = vsmask.f32 256  ;;  %s9552_s13 = smov (!%p168_p3, %s6031_s13), 1  ;;  %7075 = vmatprep.subr.msk.bf16.mxu1 %vm1030_vm0, %v898_v3  ;;  %vm183_vm5 = vcmask 27651  }
   0xf   : > { %7076 = vmatprep.subr.msk.bf16.mxu0 %vm1030_vm0, %v6154_v4  ;;  %vm7226_vm4 = vmand %vm192_vm2, %vm193_vm3  ;;  %v195_v6 = vld [vmem:[#allocation2 + $0xc] sm:$0x1]  ;;  %s6451_s20 = sshll.u32 %s9552_s13, 8  ;;  %vm184_vm6 = vsmask.f32 7950  ;;  %vm981_vm7 = vcmask 31744  }
  0x10   : > { %v196_v7 = vsel %vm7226_vm4, 0, %v195_v6  ;;  %v186_v8 = vld [vmem:[#allocation2] sm:$0x8]  ;;  %s7236_s23 = scalar_lea.vmem %s9219_s0, %s6451_s20  ;;  %vm544_vm8 = vsmask.f32 4368  ;;  %vm7238_vm9 = vmand %vm183_vm5, %vm184_vm6  ;;  %v7246_v14 = vsel %vm1030_vm0, %v898_v3, 0 }
  0x11   : > { %197 = vst [vmem:[#allocation2 + $0xc] sm:$0x1] %v196_v7  ;;  %v256_v10 = vld [vmem:[#allocation2 + $0x1c] sm:$0x1]  ;;  %v304_v11 = vld [vmem:[%s7236_s23] sm:$0xff]  ;;  %v305_v12 = vld [vmem:[%s7236_s23 + $0x8] sm:$0xff] }
  0x12   : > { %v318_v13 = vld [vmem:[%s7236_s23 + $0x70] sm:$0xff]  ;;  %v187_v15 = vsel %vm7238_vm9, 0, %v186_v8  ;;  %v257_v16 = vsel %vm7226_vm4, 0, %v256_v10  ;;  %v6453_v19 = vpack.c.bf16 %v304_v11, %v304_v11  ;;  %v6454_v20 = vpack.c.bf16 %v305_v12, %v305_v12  ;;  %v319_v21 = vld [vmem:[%s7236_s23 + $0x78] sm:$0xff]  ;;  %v7261_v24 = vld [vmem:[%s9220_s1 + $0x6] sm:$0x3] }
  0x13   : > { %v7252_v17 = vld [vmem:[#allocation2 + $0x4] sm:$0xf]  ;;  %v498_v18 = vld [vmem:[#allocation2 + $0x8] sm:$0xf]  ;;  %v6467_v22 = vpack.c.bf16 %v318_v13, %v318_v13  ;;  %v7256_v23 = vsel %vm1030_vm0, %v6154_v4, 0  ;;  %vm7269_vm10 = vmor %vm193_vm3, %vm544_vm8  ;;  %v6468_v33 = vpack.c.bf16 %v319_v21, %v319_v21  ;;  %v7300_v59 = vsel %vm1030_vm0, %v7261_v24, 0 }
  0x14   : > { %188 = vst [vmem:[#allocation2] sm:$0x8] %v187_v15  ;;  %258 = vst [vmem:[#allocation2 + $0x1c] sm:$0x1] %v257_v16  ;;  %v552_v25 = vshrl.u32 %v7252_v17, 16  ;;  %v555_v26 = vshll.u32 %v7252_v17, 16  ;;  %v6090_v32 = vcombine.low %v7252_v17, %v498_v18 }
  0x15   : > { %v561_v27 = vshrl.u32 %v498_v18, 16  ;;  %v564_v28 = vshll.u32 %v498_v18, 16  ;;  %v320_v29 = vld [vmem:[%s7236_s23 + $0x80] sm:$0xff]  ;;  %v321_v30 = vld [vmem:[%s7236_s23 + $0x88] sm:$0xff]  ;;  %464 = vst.msk [vmem:[#allocation2 + $0x14] sm:$0xf] %vm189_vm1, %v6453_v19 }
  0x16   : > { %465 = vst.msk [vmem:[#allocation2 + $0x18] sm:$0xf] %vm189_vm1, %v6454_v20  ;;  %478 = vst.msk [vmem:[#allocation2 + $0x84] sm:$0xf] %vm189_vm1, %v6467_v22  ;;  %v6469_v34 = vpack.c.bf16 %v320_v29, %v320_v29  ;;  %v6470_v35 = vpack.c.bf16 %v321_v30, %v321_v30  ;;  %v306_v36 = vld [vmem:[%s7236_s23 + $0x10] sm:$0xff]  ;;  %v307_v37 = vld [vmem:[%s7236_s23 + $0x18] sm:$0xff]  ;;  %6767 = vmatprep.mubr.msk.bf16.mxu0 %vm981_vm7, %v6090_v32 }
  0x17   : > { %v308_v38 = vld [vmem:[%s7236_s23 + $0x20] sm:$0xff]  ;;  %v7280_v39 = vrot.slane %v552_v25, 7  ;;  %v563_v40 = vrot.slane %v561_v27, 7  ;;  %v6455_v41 = vpack.c.bf16 %v306_v36, %v306_v36  ;;  %v6456_v42 = vpack.c.bf16 %v307_v37, %v307_v37  ;;  %v309_v43 = vld [vmem:[%s7236_s23 + $0x28] sm:$0xff]  ;;  %v322_v44 = vld [vmem:[%s7236_s23 + $0x90] sm:$0xff]  ;;  %s6452_s9 = sshll.u32 %s9552_s13, 7 }
  0x18   : > { %v323_v45 = vld [vmem:[%s7236_s23 + $0x98] sm:$0xff]  ;;  %479 = vst.msk [vmem:[#allocation2 + $0x88] sm:$0xf] %vm189_vm1, %v6468_v33  ;;  %480 = vst.msk [vmem:[#allocation2 + $0x94] sm:$0xf] %vm189_vm1, %v6469_v34  ;;  %v6457_v46 = vpack.c.bf16 %v308_v38, %v308_v38  ;;  %v6458_v47 = vpack.c.bf16 %v309_v43, %v309_v43  ;;  %v6471_v48 = vpack.c.bf16 %v322_v44, %v322_v44  ;;  %v324_v50 = vld [vmem:[%s7236_s23 + $0xa0] sm:$0xff]  ;;  %s9158_s14 = scalar_lea.vmem %s9221_s2, %s6452_s9 }
  0x19   : > { %481 = vst.msk [vmem:[#allocation2 + $0x98] sm:$0xf] %vm189_vm1, %v6470_v35  ;;  %v6472_v49 = vpack.c.bf16 %v323_v45, %v323_v45  ;;  %v325_v51 = vld [vmem:[%s7236_s23 + $0xa8] sm:$0xff]  ;;  %v310_v52 = vld [vmem:[%s7236_s23 + $0x30] sm:$0xff]  ;;  %v559_v53 = vrot.slane %v7280_v39, 4  ;;  %v566_v54 = vor.u32 %v564_v28, %v563_v40  ;;  %v6473_v55 = vpack.c.bf16 %v324_v50, %v324_v50  ;;  %v311_v56 = vld [vmem:[%s7236_s23 + $0x38] sm:$0xff] }
  0x1a   : > { %466 = vst.msk [vmem:[#allocation2 + $0x24] sm:$0xf] %vm189_vm1, %v6455_v41  ;;  %467 = vst.msk [vmem:[#allocation2 + $0x28] sm:$0xf] %vm189_vm1, %v6456_v42  ;;  %v312_v57 = vld [vmem:[%s7236_s23 + $0x40] sm:$0xff]  ;;  %v313_v58 = vld [vmem:[%s7236_s23 + $0x48] sm:$0xff]  ;;  %v6474_v60 = vpack.c.bf16 %v325_v51, %v325_v51  ;;  %v6459_v61 = vpack.c.bf16 %v310_v52, %v310_v52  ;;  %v6460_v62 = vpack.c.bf16 %v311_v56, %v311_v56 }
  0x1b   : > { %468 = vst.msk [vmem:[#allocation2 + $0x34] sm:$0xf] %vm189_vm1, %v6457_v46  ;;  %469 = vst.msk [vmem:[#allocation2 + $0x38] sm:$0xf] %vm189_vm1, %v6458_v47  ;;  %v6461_v63 = vpack.c.bf16 %v312_v57, %v312_v57  ;;  %v326_v0 = vld [vmem:[%s7236_s23 + $0xb0] sm:$0xff]  ;;  %v327_v1 = vld [vmem:[%s7236_s23 + $0xb8] sm:$0xff]  ;;  %v6462_v3 = vpack.c.bf16 %v313_v58, %v313_v58  ;;  %v7314_v12 = vor.u32 %v555_v26, %v7280_v39 }
  0x1c   : > { %482 = vst.msk [vmem:[#allocation2 + $0xa4] sm:$0xf] %vm189_vm1, %v6471_v48  ;;  %483 = vst.msk [vmem:[#allocation2 + $0xa8] sm:$0xf] %vm189_vm1, %v6472_v49  ;;  %v328_v2 = vld [vmem:[%s7236_s23 + $0xc0] sm:$0xff]  ;;  %v6475_v4 = vpack.c.bf16 %v326_v0, %v326_v0  ;;  %v6476_v6 = vpack.c.bf16 %v327_v1, %v327_v1  ;;  %v329_v7 = vld [vmem:[%s7236_s23 + $0xc8] sm:$0xff]  ;;  %v7329_v28 = vsel %vm7269_vm10, %v559_v53, %v566_v54 }
  0x1d   : > { %484 = vst.msk [vmem:[#allocation2 + $0xb4] sm:$0xf] %vm189_vm1, %v6473_v55  ;;  %v6477_v8 = vpack.c.bf16 %v328_v2, %v328_v2  ;;  %v314_v10 = vld [vmem:[%s7236_s23 + $0x50] sm:$0xff]  ;;  %v315_v11 = vld [vmem:[%s7236_s23 + $0x58] sm:$0xff]  ;;  %485 = vst.msk [vmem:[#allocation2 + $0xb8] sm:$0xf] %vm189_vm1, %v6474_v60  ;;  %v6478_v13 = vpack.c.bf16 %v329_v7, %v329_v7 }
  0x1e   : > { %470 = vst.msk [vmem:[#allocation2 + $0x44] sm:$0xf] %vm189_vm1, %v6459_v61  ;;  %471 = vst.msk [vmem:[#allocation2 + $0x48] sm:$0xf] %vm189_vm1, %v6460_v62  ;;  %v6463_v15 = vpack.c.bf16 %v314_v10, %v314_v10  ;;  %v6464_v16 = vpack.c.bf16 %v315_v11, %v315_v11  ;;  %v316_v17 = vld [vmem:[%s7236_s23 + $0x60] sm:$0xff]  ;;  %v317_v18 = vld [vmem:[%s7236_s23 + $0x68] sm:$0xff] }
  0x1f   : > { %472 = vst.msk [vmem:[#allocation2 + $0x54] sm:$0xf] %vm189_vm1, %v6461_v63  ;;  %v330_v19 = vld [vmem:[%s7236_s23 + $0xd0] sm:$0xff]  ;;  %v501_v21 = vld [vmem:[#allocation2 + $0x18] sm:$0xf]  ;;  %v6465_v25 = vpack.c.bf16 %v316_v17, %v316_v17  ;;  %v6466_v26 = vpack.c.bf16 %v317_v18, %v317_v18  ;;  %s6040_s15 = sshll.u32 %s9552_s13, 1 }
  0x20   : > { %v500_v20 = vld [vmem:[#allocation2 + $0x14] sm:$0xf]  ;;  %v521_v22 = vld [vmem:[#allocation2 + $0x84] sm:$0xf]  ;;  %473 = vst.msk [vmem:[#allocation2 + $0x58] sm:$0xf] %vm189_vm1, %v6462_v3  ;;  %v6479_v27 = vpack.c.bf16 %v330_v19, %v330_v19  ;;  %s181_s18 = scalar_lea.vmem %s9222_s3, %s6040_s15 }
  0x21   : > { %486 = vst.msk [vmem:[#allocation2 + $0xc4] sm:$0xf] %vm189_vm1, %v6475_v4  ;;  %487 = vst.msk [vmem:[#allocation2 + $0xc8] sm:$0xf] %vm189_vm1, %v6476_v6  ;;  %v574_v29 = vshrl.u32 %v500_v20, 16  ;;  %v577_v30 = vshll.u32 %v500_v20, 16  ;;  %v6091_v35 = vcombine.low %v500_v20, %v501_v21 }
  0x22   : > { %488 = vst.msk [vmem:[#allocation2 + $0xd4] sm:$0xf] %vm189_vm1, %v6477_v8  ;;  %v583_v32 = vshrl.u32 %v501_v21, 16  ;;  %v586_v33 = vshll.u32 %v501_v21, 16  ;;  %489 = vst.msk [vmem:[#allocation2 + $0xd8] sm:$0xf] %vm189_vm1, %v6478_v13 }
  0x23   : > { %474 = vst.msk [vmem:[#allocation2 + $0x64] sm:$0xf] %vm189_vm1, %v6463_v15  ;;  %475 = vst.msk [vmem:[#allocation2 + $0x68] sm:$0xf] %vm189_vm1, %v6464_v16  ;;  %v331_v34 = vld [vmem:[%s7236_s23 + $0xd8] sm:$0xff]  ;;  %v728_v37 = vshrl.u32 %v521_v22, 16  ;;  %6768 = vmatmul.mubr.msk.bf16.vlgmr.msra.gmra.mxu0 %vm981_vm7, %v6091_v35 }
  0x24   : > { %v522_v36 = vld [vmem:[#allocation2 + $0x88] sm:$0xf]  ;;  %v731_v38 = vshll.u32 %v521_v22, 16  ;;  %476 = vst.msk [vmem:[#allocation2 + $0x74] sm:$0xf] %vm189_vm1, %v6465_v25  ;;  %v6480_v39 = vpack.c.bf16 %v331_v34, %v331_v34  ;;  %v7338_v40 = vrot.slane %v574_v29, 7  ;;  %6834 = vmatpush3.bf16.msra.mxu0 %v7256_v23 }
  0x25   : > { %477 = vst.msk [vmem:[#allocation2 + $0x78] sm:$0xf] %vm189_vm1, %v6466_v26  ;;  %490 = vst.msk [vmem:[#allocation2 + $0xe4] sm:$0xf] %vm189_vm1, %v6479_v27  ;;  %v585_v41 = vrot.slane %v583_v32, 7  ;;  %v737_v42 = vshrl.u32 %v522_v36, 16  ;;  %v6098_v46 = vcombine.low %v521_v22, %v522_v36 }
  0x26   : > { %v740_v43 = vshll.u32 %v522_v36, 16  ;;  %v7340_v44 = vld [vmem:[#allocation2 + $0x94] sm:$0xf]  ;;  %v7343_v45 = vrot.slane %v728_v37, 7  ;;  %v7345_v47 = vld [vmem:[#allocation2 + $0x98] sm:$0xf]  ;;  %v7351_v50 = vor.u32 %v577_v30, %v7338_v40 }
  0x27   : > { %9247 = vst [vmem:[#allocation3_spill] sm:$0xff] %v7345_v47  ;;  %v750_v48 = vshrl.u32 %v7340_v44, 16  ;;  %491 = vst.msk [vmem:[#allocation2 + $0xe8] sm:$0xf] %vm189_vm1, %v6480_v39  ;;  %v7354_v52 = vor.u32 %v586_v33, %v585_v41  ;;  %v739_v53 = vrot.slane %v737_v42, 7  ;;  %6783 = vmatprep.mubr.msk.bf16.mxu1 %vm981_vm7, %v6098_v46  ;;  %v759_v60 = vshrl.u32 %v7345_v47, 16 }
  0x28   : > { %v7357_v54 = vld [vmem:[#allocation2 + $0x24] sm:$0xf]  ;;  %v7359_v55 = vld [vmem:[#allocation2 + $0x28] sm:$0xf]  ;;  %v7362_v56 = vor.u32 %v731_v38, %v7343_v45  ;;  %v7369_v61 = vld [vmem:[#allocation2 + $0x34] sm:$0xf]  ;;  %v6099_v63 = vcombine.low %v7340_v44, %v7345_v47 }
  0x29   : > { %v7366_v58 = vrot.slane %v750_v48, 7  ;;  %v7371_v62 = vor.u32 %v740_v43, %v739_v53  ;;  %v596_v0 = vshrl.u32 %v7357_v54, 16  ;;  %v7377_v1 = vld [vmem:[#allocation2 + $0x38] sm:$0xf]  ;;  %v7379_v2 = vld [vmem:[#allocation2 + $0xa4] sm:$0xf]  ;;  %v6092_v11 = vcombine.low %v7357_v54, %v7359_v55 }
  0x2a   : > { %9248 = vst [vmem:[#allocation4_spill] sm:$0xff] %v7362_v56  ;;  %9249 = vst [vmem:[#allocation5_spill] sm:$0xff] %v7379_v2  ;;  %v7381_v3 = vrot.slane %v759_v60, 7  ;;  %v605_v6 = vshrl.u32 %v7359_v55, 16  ;;  %v7386_v8 = vld [vmem:[#allocation2 + $0xa8] sm:$0xf]  ;;  %6784 = vmatmul.mubr.msk.bf16.vlgmr.msra.gmra.mxu1 %vm981_vm7, %v6099_v63  ;;  %v6093_v20 = vcombine.low %v7369_v61, %v7377_v1 }
  0x2b   : > { %9250 = vst [vmem:[#allocation6_spill] sm:$0xff] %v7386_v8  ;;  %v7389_v10 = vrot.slane %v596_v0, 7  ;;  %v618_v13 = vshrl.u32 %v7369_v61, 16  ;;  %v7395_v16 = vld [vmem:[#allocation2 + $0xb4] sm:$0xf]  ;;  %6800 = vmatpush3.bf16.msra.mxu1 %v7246_v14  ;;  %v627_v18 = vshrl.u32 %v7377_v1, 16  ;;  %6771 = vmatprep.mubr.msk.bf16.mxu0 %vm981_vm7, %v6092_v11  ;;  %v6100_v33 = vcombine.low %v7379_v2, %v7386_v8 }
  0x2c   : > { %9251 = vst [vmem:[#allocation7_spill] sm:$0xff] %v7395_v16  ;;  %v7398_v17 = vrot.slane %v605_v6, 7  ;;  %v7404_v21 = vld [vmem:[#allocation2 + $0xb8] sm:$0xf]  ;;  %v772_v25 = vshrl.u32 %v7379_v2, 16  ;;  %v781_v14 = vshrl.u32 %v7386_v8, 16  ;;  %7077 = vmatprep.subr.msk.bf16.mxu1 %vm1030_vm0, %v7261_v24  ;;  %6772 = vmatmul.mubr.msk.bf16.gmra.mxu0 %vm981_vm7, %v6093_v20 }
  0x2d   : > { %9252 = vst [vmem:[#allocation8_spill] sm:$0xff] %v7404_v21  ;;  %v7407_v22 = vrot.slane %v618_v13, 7  ;;  %v7412_v27 = vld [vmem:[#allocation2 + $0x44] sm:$0xf]  ;;  %v7414_v29 = vld [vmem:[#allocation2 + $0x48] sm:$0xf]  ;;  %6787 = vmatprep.mubr.msk.bf16.mxu1 %vm981_vm7, %v6100_v33  ;;  %v6101_v43 = vcombine.low %v7395_v16, %v7404_v21 }
  0x2e   : > { %v7418_v30 = vrot.slane %v627_v18, 7  ;;  %v794_v34 = vshrl.u32 %v7395_v16, 16  ;;  %v7425_v35 = vld [vmem:[#allocation2 + $0x54] sm:$0xf]  ;;  %v7427_v36 = vrot.slane %v772_v25, 7  ;;  %v7429_v37 = vrot.slane %v781_v14, 7 }
  0x2f   : > { %v803_v24 = vshrl.u32 %v7404_v21, 16  ;;  %v7433_v39 = vld [vmem:[#allocation2 + $0x58] sm:$0xf]  ;;  %v640_v46 = vshrl.u32 %v7412_v27, 16  ;;  %v7442_v48 = vld [vmem:[#allocation2 + $0xc4] sm:$0xf]  ;;  %v6094_v13 = vcombine.low %v7412_v27, %v7414_v29 }
  0x30   : > { %9253 = vst [vmem:[#allocation9_spill] sm:$0xff] %v7427_v36  ;;  %9254 = vst [vmem:[#allocation10_spill] sm:$0xff] %v7429_v37  ;;  %v7436_v41 = vrot.slane %v794_v34, 7  ;;  %v649_v63 = vshrl.u32 %v7414_v29, 16  ;;  %v7449_v6 = vld [vmem:[#allocation2 + $0xc8] sm:$0xf] }
  0x31   : > { %9256 = vst [vmem:[#allocation12_spill] sm:$0xff] %v7442_v48  ;;  %v7444_v53 = vrot.slane %v803_v24, 7  ;;  %9258 = vst [vmem:[#allocation14_spill] sm:$0xff] %v7449_v6  ;;  %v7451_v11 = vrot.slane %v640_v46, 7  ;;  %v662_v18 = vshrl.u32 %v7425_v35, 16  ;;  %v671_v33 = vshrl.u32 %v7433_v39, 16  ;;  %6775 = vmatprep.mubr.msk.bf16.mxu0 %vm981_vm7, %v6094_v13 }
  0x32   : > { %9255 = vst [vmem:[#allocation11_spill] sm:$0xff] %v7436_v41  ;;  %v7457_v25 = vld [vmem:[#allocation2 + $0xd4] sm:$0xf]  ;;  %6788 = vmatmul.mubr.msk.bf16.gmra.mxu1 %vm981_vm7, %v6101_v43  ;;  %v7460_v14 = vrot.slane %v649_v63, 7  ;;  %v6095_v24 = vcombine.low %v7425_v35, %v7433_v39  ;;  %v7466_v46 = vld [vmem:[#allocation2 + $0xd8] sm:$0xf]  ;;  %v6102_v49 = vcombine.low %v7442_v48, %v7449_v6 }
  0x33   : > { %9257 = vst [vmem:[#allocation13_spill] sm:$0xff] %v7444_v53  ;;  %9259 = vst [vmem:[#allocation15_spill] sm:$0xff] %v7457_v25  ;;  %v7469_v42 = vrot.slane %v662_v18, 7  ;;  %v816_v38 = vshrl.u32 %v7442_v48, 16  ;;  %v825_v43 = vshrl.u32 %v7449_v6, 16  ;;  %v7476_v26 = vrot.slane %v671_v33, 7 }
  0x34   : > { %9260 = vst [vmem:[#allocation16_spill] sm:$0xff] %v7466_v46  ;;  %v7474_v63 = vld [vmem:[#allocation2 + $0x64] sm:$0xf]  ;;  %v838_v57 = vshrl.u32 %v7457_v25, 16  ;;  %v7482_v13 = vld [vmem:[#allocation2 + $0x68] sm:$0xf]  ;;  %6776 = vmatmul.mubr.msk.bf16.gmra.mxu0 %vm981_vm7, %v6095_v24  ;;  %6791 = vmatprep.mubr.msk.bf16.mxu1 %vm981_vm7, %v6102_v49  ;;  %v6103_v24 = vcombine.low %v7457_v25, %v7466_v46 }
  0x35   : > { %v7485_v18 = vrot.slane %v816_v38, 7  ;;  %v7487_v32 = vrot.slane %v825_v43, 7  ;;  %v847_v33 = vshrl.u32 %v7466_v46, 16  ;;  %v7491_v20 = vld [vmem:[#allocation2 + $0x74] sm:$0xf]  ;;  %v684_v38 = vshrl.u32 %v7474_v63, 16 }
  0x36   : > { %v7494_v23 = vrot.slane %v838_v57, 7  ;;  %v7500_v43 = vld [vmem:[#allocation2 + $0x78] sm:$0xf]  ;;  %v693_v19 = vshrl.u32 %v7482_v13, 16  ;;  %v7507_v57 = vld [vmem:[#allocation2 + $0xe4] sm:$0xf]  ;;  %v6096_v15 = vcombine.low %v7474_v63, %v7482_v13 }
  0x37   : > { %9261 = vst [vmem:[#allocation17_spill] sm:$0xff] %v7485_v18  ;;  %9262 = vst [vmem:[#allocation18_spill] sm:$0xff] %v7487_v32  ;;  %v7502_v60 = vrot.slane %v847_v33, 7  ;;  %vm1503_vm11 = vsmask.f32 3328  ;;  %v7509_v0 = vrot.slane %v684_v38, 7  ;;  %v6097_v38 = vcombine.low %v7491_v20, %v7500_v43 }
  0x38   : > { %9263 = vst [vmem:[#allocation19_spill] sm:$0xff] %v7494_v23  ;;  %9265 = vst [vmem:[#allocation21_spill] sm:$0xff] %v7507_v57  ;;  %vm1504_vm12 = vsmask.f32 7440  ;;  %v706_v7 = vshrl.u32 %v7491_v20, 16  ;;  %v332_v34 = vld [vmem:[%s7236_s23 + $0xe0] sm:$0xff]  ;;  %6779 = vmatprep.mubr.msk.bf16.mxu0 %vm981_vm7, %v6096_v15 }
  0x39   : > { %9264 = vst [vmem:[#allocation20_spill] sm:$0xff] %v7502_v60  ;;  %v7515_v4 = vld [vmem:[#allocation2 + $0xe8] sm:$0xf]  ;;  %v7518_v51 = vrot.slane %v693_v19, 7  ;;  %v715_v49 = vshrl.u32 %v7500_v43, 16  ;;  %v860_v33 = vshrl.u32 %v7507_v57, 16  ;;  %v6481_v21 = vpack.c.bf16 %v332_v34, %v332_v34  ;;  %vm7551_vm13 = vmor %vm1503_vm11, %vm1504_vm12 }
  0x3a   : > { %9266 = vst [vmem:[#allocation22_spill] sm:$0xff] %v7515_v4  ;;  %v333_v60 = vld [vmem:[%s7236_s23 + $0xe8] sm:$0xff]  ;;  %v1455_v25 = vld [vmem:[#allocation2 + $0x4] sm:$0xf]  ;;  %6792 = vmatmul.mubr.msk.bf16.gmra.mxu1 %vm981_vm7, %v6103_v24  ;;  %v7527_v23 = vrot.slane %v706_v7, 7  ;;  %v869_v6 = vshrl.u32 %v7515_v4, 16  ;;  %v6104_v18 = vcombine.low %v7507_v57, %v7515_v4 }
  0x3b   : > { %v1456_v32 = vld [vmem:[#allocation2 + $0x8] sm:$0xf]  ;;  %v7532_v48 = vrot.slane %v715_v49, 7  ;;  %v1457_v24 = vld [vmem:[#allocation2 + $0xc] sm:$0x1]  ;;  %v7537_v15 = vrot.slane %v860_v33, 7  ;;  %v6482_v16 = vpack.c.bf16 %v333_v60, %v333_v60 }
  0x3c   : > { %v496_v53 = vld [vmem:[#allocation2] sm:$0x8]  ;;  %v7539_v7 = vrot.slane %v869_v6, 7  ;;  %v1507_v41 = vshrl.u32 %v1455_v25, 16  ;;  %v1458_v19 = vld [vmem:[#allocation2 + $0x14] sm:$0xf]  ;;  %6780 = vmatmul.mubr.msk.bf16.gmra.mxu0 %vm981_vm7, %v6097_v38  ;;  %6795 = vmatprep.mubr.msk.bf16.mxu1 %vm981_vm7, %v6104_v18 }
  0x3d   : > { %9267 = vst [vmem:[#allocation23_spill] sm:$0xff] %v7537_v15  ;;  %492 = vst.msk [vmem:[#allocation2 + $0xf4] sm:$0xf] %vm189_vm1, %v6481_v21  ;;  %v1510_v49 = vshll.u32 %v1455_v25, 16  ;;  %v1516_v46 = vshll.u32 %v1456_v32, 16  ;;  %v1520_v8 = vshrl.u32 %v1456_v32, 16 }
  0x3e   : > { %9268 = vst [vmem:[#allocation24_spill] sm:$0xff] %v7539_v7  ;;  %v1526_v4 = vshll.u32 %v1457_v24, 16  ;;  %v1459_v34 = vld [vmem:[#allocation2 + $0x18] sm:$0xf]  ;;  %493 = vst.msk [vmem:[#allocation2 + $0xf8] sm:$0xf] %vm189_vm1, %v6482_v16 }
  0x3f   : > { %v1509_v33 = vrot.slane %v1507_v41, 4  ;;  %v547_v57 = vshrl.u32 %v496_v53, 16  ;;  %v1460_v6 = vld [vmem:[#allocation2 + $0x1c] sm:$0x1]  ;;  %v1531_v7 = vshrl.u32 %v1458_v19, 16  ;;  %v1534_v60 = vshll.u32 %v1458_v19, 16 }
  0x40   : > { %v1512_v15 = vrot.slane %v1510_v49, 5  ;;  %v1518_v37 = vrot.slane %v1516_v46, 5  ;;  %v1522_v2 = vrot.slane %v1520_v8, 4  ;;  %v1528_v38 = vrot.slane %v1526_v4, 5  ;;  %v208_v36 = vld [vmem:[#allocation2 + $0x10] sm:$0x8] }
  0x41   : > { %v6073_v18 = vrot.slane %v547_v57, 11  ;;  %v1533_v56 = vrot.slane %v1531_v7, 4  ;;  %v1536_v21 = vrot.slane %v1534_v60, 5  ;;  %v1540_v25 = vshll.u32 %v1459_v34, 16  ;;  %v6236_v32 = vld [vmem:[%s9220_s1 + $0x8] sm:$0x3] }
  0x42   : > { %v1513_v24 = vor.u32 %v1512_v15, %v1509_v33  ;;  %v1523_v16 = vor.u32 %v1522_v2, %v1518_v37  ;;  %v1544_v41 = vshrl.u32 %v1459_v34, 16  ;;  %v1550_v53 = vshll.u32 %v1460_v6, 16  ;;  %7078 = vmatprep.subr.msk.bf16.mxu0 %vm1030_vm0, %v6236_v32  ;;  %v259_v2 = vld [vmem:[#allocation2 + $0x2c] sm:$0x1]  ;;  %v1461_v33 = vld [vmem:[#allocation2 + $0x24] sm:$0xf] }
  0x43   : > { %v558_v4 = vsel %vm7269_vm10, %v6073_v18, %v7314_v12  ;;  %v1537_v46 = vor.u32 %v1536_v21, %v1533_v56  ;;  %v1542_v57 = vrot.slane %v1540_v25, 5  ;;  %v209_v19 = vsel %vm7238_vm9, 0, %v208_v36 }
  0x44   : > { %v1514_v15 = vrot.slane %v1513_v24, 4  ;;  %v1524_v7 = vrot.slane %v1523_v16, 4  ;;  %v6122_v49 = vcombine.low %v558_v4, %v7329_v28  ;;  %v1546_v34 = vrot.slane %v1544_v41, 4  ;;  %210 = vst [vmem:[#allocation2 + $0x10] sm:$0x8] %v209_v19 }
  0x45   : > { %v7561_v6 = vld [vmem:[#allocation2 + $0xf4] sm:$0xf]  ;;  %v1538_v60 = vrot.slane %v1537_v46, 4  ;;  %v1552_v47 = vrot.slane %v1550_v53, 5  ;;  %v9271_v12 = vrot.slane %v7338_v40, 4  ;;  %v3009_v36 = vsel %vm1030_vm0, %v6236_v32, 0 }
  0x46   : > { %v7571_v18 = vld [vmem:[#allocation2 + $0xf8] sm:$0xf]  ;;  %v882_v28 = vshrl.u32 %v7561_v6, 16  ;;  %v1519_v25 = vsel %vm7551_vm13, %v1514_v15, %v1518_v37  ;;  %v1529_v24 = vsel %vm7551_vm13, %v1524_v7, %v1528_v38  ;;  %v1462_v16 = vld [vmem:[#allocation2 + $0x28] sm:$0xf]  ;;  %v1547_v19 = vor.u32 %v1546_v34, %v1542_v57 }
  0x47   : > { %v7568_v56 = vsel %vm7269_vm10, %v9271_v12, %v7354_v52  ;;  %9272 = vst [vmem:[#allocation25_spill] sm:$0xff] %v7571_v18  ;;  %v891_v40 = vshrl.u32 %v7571_v18, 16  ;;  %v6105_v32 = vcombine.low %v7561_v6, %v7571_v18  ;;  %v6155_v41 = vcombine.low %v1519_v25, %v1529_v24  ;;  %v211_v53 = vld [vmem:[#allocation2 + $0x20] sm:$0x8]  ;;  %v262_v25 = vld [vmem:[#allocation2 + $0x3c] sm:$0x1] }
  0x48   : > { %v7583_v4 = vrot.slane %v882_v28, 7  ;;  %v1543_v46 = vsel %vm7551_vm13, %v1538_v60, %v1542_v57  ;;  %v260_v37 = vsel %vm7226_vm4, 0, %v259_v2  ;;  %v1555_v15 = vshrl.u32 %v1461_v33, 16  ;;  %v1464_v60 = vld [vmem:[#allocation2 + $0x34] sm:$0xf] }
  0x49   : > { %v7589_v38 = vrot.slane %v891_v40, 7  ;;  %6796 = vmatmul.mubr.msk.bf16.gmra.mxu1 %vm981_vm7, %v6105_v32  ;;  %6835 = vmatprep.mubr.msk.bf16.mxu0 %vm981_vm7, %v6155_v41  ;;  %261 = vst [vmem:[#allocation2 + $0x2c] sm:$0x1] %v260_v37  ;;  %v1558_v7 = vshll.u32 %v1461_v33, 16  ;;  %v1564_v12 = vshll.u32 %v1462_v16, 16  ;;  %v1548_v28 = vrot.slane %v1547_v19, 4 }
  0x4a   : > { %6801 = vmatprep.mubr.msk.bf16.mxu1 %vm981_vm7, %v6122_v49  ;;  %v1568_v24 = vshrl.u32 %v1462_v16, 16  ;;  %v212_v57 = vsel %vm7238_vm9, 0, %v211_v53  ;;  %v9273_v2 = vshll.u32 %v7357_v54, 16  ;;  %v1557_v32 = vrot.slane %v1555_v15, 4  ;;  %v1465_v54 = vld [vmem:[#allocation2 + $0x38] sm:$0xf] }
  0x4b   : > { %v499_v40 = vld [vmem:[#allocation2 + $0x10] sm:$0x8]  ;;  %v1560_v41 = vrot.slane %v1558_v7, 5  ;;  %v1566_v37 = vrot.slane %v1564_v12, 5  ;;  %213 = vst [vmem:[#allocation2 + $0x20] sm:$0x8] %v212_v57  ;;  %v1553_v49 = vsel %vm7551_vm13, %v1548_v28, %v1552_v47 }
  0x4c   : > { %v7599_v34 = vor.u32 %v9273_v2, %v7389_v10  ;;  %v603_v33 = vrot.slane %v7389_v10, 4  ;;  %v569_v16 = vshrl.u32 %v499_v40, 16  ;;  %v1570_v19 = vrot.slane %v1568_v24, 4  ;;  %v214_v12 = vld [vmem:[#allocation2 + $0x30] sm:$0x8] }
  0x4d   : > { %v9274_v53 = vshll.u32 %v7359_v55, 16  ;;  %v6156_v2 = vcombine.low %v1543_v46, %v1553_v49  ;;  %v1561_v21 = vor.u32 %v1560_v41, %v1557_v32  ;;  %v263_v15 = vsel %vm7226_vm4, 0, %v262_v25  ;;  %v265_v46 = vld [vmem:[#allocation2 + $0x4c] sm:$0x1] }
  0x4e   : > { %v1579_v7 = vshrl.u32 %v1464_v60, 16  ;;  %v6074_v57 = vrot.slane %v569_v16, 11  ;;  %v1571_v18 = vor.u32 %v1570_v19, %v1566_v37  ;;  %264 = vst [vmem:[#allocation2 + $0x3c] sm:$0x1] %v263_v15  ;;  %v1582_v47 = vshll.u32 %v1464_v60, 16 }
  0x4f   : > { %v610_v52 = vor.u32 %v9274_v53, %v7398_v17  ;;  %6836 = vmatmul.mubr.msk.bf16.vlgmr.msra.gmra.mxu0 %vm981_vm7, %v6156_v2  ;;  %v1562_v28 = vrot.slane %v1561_v21, 4  ;;  %v1588_v17 = vshll.u32 %v1465_v54, 16  ;;  %v1592_v24 = vshrl.u32 %v1465_v54, 16  ;;  %v1467_v16 = vld [vmem:[#allocation2 + $0x44] sm:$0xf] }
  0x50   : > { %v1581_v55 = vrot.slane %v1579_v7, 4  ;;  %v580_v25 = vsel %vm7269_vm10, %v6074_v57, %v7351_v50  ;;  %6902 = vmatpush3.bf16.msra.mxu0 %v3009_v36  ;;  %v1463_v40 = vld [vmem:[#allocation2 + $0x2c] sm:$0x1]  ;;  %v1572_v32 = vrot.slane %v1571_v18, 4  ;;  %v1584_v41 = vrot.slane %v1582_v47, 5 }
  0x51   : > { %v611_v10 = vsel %vm7269_vm10, %v603_v33, %v610_v52  ;;  %v215_v52 = vsel %vm7238_vm9, 0, %v214_v12  ;;  %v6123_v60 = vcombine.low %v580_v25, %v7568_v56  ;;  %v1567_v21 = vsel %vm7551_vm13, %v1562_v28, %v1566_v37  ;;  %v1468_v2 = vld [vmem:[#allocation2 + $0x48] sm:$0xf] }
  0x52   : > { %v1574_v33 = vshll.u32 %v1463_v40, 16  ;;  %v1590_v49 = vrot.slane %v1588_v17, 5  ;;  %216 = vst [vmem:[#allocation2 + $0x30] sm:$0x8] %v215_v52  ;;  %v502_v19 = vld [vmem:[#allocation2 + $0x20] sm:$0x8]  ;;  %v1585_v53 = vor.u32 %v1584_v41, %v1581_v55 }
  0x53   : > { %v1594_v54 = vrot.slane %v1592_v24, 4  ;;  %v9275_v50 = vshll.u32 %v7369_v61, 16  ;;  %v625_v18 = vrot.slane %v7407_v22, 4  ;;  %6802 = vmatmul.mubr.msk.bf16.vlgmr.msra.gmra.mxu1 %vm981_vm7, %v6123_v60  ;;  %v591_v15 = vshrl.u32 %v502_v19, 16  ;;  %v268_v41 = vld [vmem:[#allocation2 + $0x5c] sm:$0x1] }
  0x54   : > { %v1576_v56 = vrot.slane %v1574_v33, 5  ;;  %v9276_v37 = vshll.u32 %v7377_v1, 16  ;;  %v266_v12 = vsel %vm7226_vm4, 0, %v265_v46  ;;  %6868 = vmatpush3.bf16.msra.mxu1 %v7300_v59  ;;  %v1586_v57 = vrot.slane %v1585_v53, 4 }
  0x55   : > { %v7623_v36 = vor.u32 %v9275_v50, %v7407_v22  ;;  %v1595_v61 = vor.u32 %v1594_v54, %v1590_v49  ;;  %267 = vst [vmem:[#allocation2 + $0x4c] sm:$0x1] %v266_v12  ;;  %v1603_v47 = vshrl.u32 %v1467_v16, 16  ;;  %v1606_v28 = vshll.u32 %v1467_v16, 16  ;;  %v1466_v17 = vld [vmem:[#allocation2 + $0x3c] sm:$0x1] }
  0x56   : > { %v632_v7 = vor.u32 %v9276_v37, %v7418_v30  ;;  %v1577_v22 = vsel %vm7551_vm13, %v1572_v32, %v1576_v56  ;;  %v6075_v55 = vrot.slane %v591_v15, 11  ;;  %v1612_v1 = vshll.u32 %v1468_v2, 16  ;;  %v217_v30 = vld [vmem:[#allocation2 + $0x40] sm:$0x8]  ;;  %v1470_v16 = vld [vmem:[#allocation2 + $0x54] sm:$0xf] }
  0x57   : > { %v6157_v25 = vcombine.low %v1567_v21, %v1577_v22  ;;  %v1591_v46 = vsel %vm7551_vm13, %v1586_v57, %v1590_v49  ;;  %v1596_v59 = vrot.slane %v1595_v61, 4  ;;  %v1598_v40 = vshll.u32 %v1466_v17, 16  ;;  %v1471_v57 = vld [vmem:[#allocation2 + $0x58] sm:$0xf] }
  0x58   : > { %v633_v24 = vsel %vm7269_vm10, %v625_v18, %v632_v7  ;;  %v602_v52 = vsel %vm7269_vm10, %v6075_v55, %v7599_v34  ;;  %v1605_v60 = vrot.slane %v1603_v47, 4  ;;  %v1608_v32 = vrot.slane %v1606_v28, 5 }
  0x59   : > { %v1614_v33 = vrot.slane %v1612_v1, 5  ;;  %6839 = vmatprep.mubr.msk.bf16.mxu0 %vm981_vm7, %v6157_v25  ;;  %v6124_v19 = vcombine.low %v602_v52, %v611_v10  ;;  %v1600_v53 = vrot.slane %v1598_v40, 5  ;;  %v505_v54 = vld [vmem:[#allocation2 + $0x30] sm:$0x8]  ;;  %v1616_v21 = vshrl.u32 %v1468_v2, 16 }
  0x5a   : > { %v218_v49 = vsel %vm7238_vm9, 0, %v217_v30  ;;  %v613_v50 = vshrl.u32 %v505_v54, 16  ;;  %v1609_v18 = vor.u32 %v1608_v32, %v1605_v60  ;;  %v9277_v56 = vshll.u32 %v7412_v27, 16  ;;  %v220_v30 = vld [vmem:[#allocation2 + $0x50] sm:$0x8] }
  0x5b   : > { %219 = vst [vmem:[#allocation2 + $0x40] sm:$0x8] %v218_v49  ;;  %v647_v15 = vrot.slane %v7451_v11, 4  ;;  %6805 = vmatprep.mubr.msk.bf16.mxu1 %vm981_vm7, %v6124_v19  ;;  %v1601_v10 = vsel %vm7551_vm13, %v1596_v59, %v1600_v53  ;;  %v1618_v37 = vrot.slane %v1616_v21, 4  ;;  %v9278_v2 = vshll.u32 %v7414_v29, 16 }
  0x5c   : > { %v7648_v34 = vor.u32 %v9277_v56, %v7451_v11  ;;  %v269_v12 = vsel %vm7226_vm4, 0, %v268_v41  ;;  %v6158_v61 = vcombine.low %v1591_v46, %v1601_v10  ;;  %v6076_v27 = vrot.slane %v613_v50, 11  ;;  %v1469_v47 = vld [vmem:[#allocation2 + $0x4c] sm:$0x1]  ;;  %v1474_v56 = vld [vmem:[#allocation2 + $0x68] sm:$0xf] }
  0x5d   : > { %v654_v7 = vor.u32 %v9278_v2, %v7460_v14  ;;  %v1610_v28 = vrot.slane %v1609_v18, 4  ;;  %270 = vst [vmem:[#allocation2 + $0x5c] sm:$0x1] %v269_v12  ;;  %v1627_v11 = vshrl.u32 %v1470_v16, 16  ;;  %v1619_v22 = vor.u32 %v1618_v37, %v1614_v33  ;;  %v271_v60 = vld [vmem:[#allocation2 + $0x6c] sm:$0x1] }
  0x5e   : > { %v1622_v55 = vshll.u32 %v1469_v47, 16  ;;  %v1630_v1 = vshll.u32 %v1470_v16, 16  ;;  %6840 = vmatmul.mubr.msk.bf16.gmra.mxu0 %vm981_vm7, %v6158_v61  ;;  %v624_v29 = vsel %vm7269_vm10, %v6076_v27, %v7623_v36  ;;  %v1636_v46 = vshll.u32 %v1471_v57, 16  ;;  %v1473_v36 = vld [vmem:[#allocation2 + $0x64] sm:$0xf] }
  0x5f   : > { %v655_v17 = vsel %vm7269_vm10, %v647_v15, %v654_v7  ;;  %v1615_v14 = vsel %vm7551_vm13, %v1610_v28, %v1614_v33  ;;  %v1629_v25 = vrot.slane %v1627_v11, 4  ;;  %v6125_v59 = vcombine.low %v624_v29, %v633_v24  ;;  %v223_v47 = vld [vmem:[#allocation2 + $0x60] sm:$0x8] }
  0x60   : > { %v1620_v40 = vrot.slane %v1619_v22, 4  ;;  %v1624_v41 = vrot.slane %v1622_v55, 5  ;;  %v1632_v52 = vrot.slane %v1630_v1, 5  ;;  %v1638_v32 = vrot.slane %v1636_v46, 5 }
  0x61   : > { %v1640_v19 = vshrl.u32 %v1471_v57, 16  ;;  %v221_v16 = vsel %vm7238_vm9, 0, %v220_v30  ;;  %v9279_v53 = vshll.u32 %v7425_v35, 16  ;;  %6806 = vmatmul.mubr.msk.bf16.gmra.mxu1 %vm981_vm7, %v6125_v59  ;;  %v669_v49 = vrot.slane %v7469_v42, 4 }
  0x62   : > { %v1625_v24 = vsel %vm7551_vm13, %v1620_v40, %v1624_v41  ;;  %v508_v33 = vld [vmem:[#allocation2 + $0x40] sm:$0x8]  ;;  %v1633_v21 = vor.u32 %v1632_v52, %v1629_v25  ;;  %222 = vst [vmem:[#allocation2 + $0x50] sm:$0x8] %v221_v16  ;;  %v9280_v50 = vshll.u32 %v7433_v39, 16  ;;  %v272_v37 = vsel %vm7226_vm4, 0, %v271_v60 }
  0x63   : > { %v7672_v54 = vor.u32 %v9279_v53, %v7469_v42  ;;  %v6159_v15 = vcombine.low %v1615_v14, %v1625_v24  ;;  %v635_v35 = vshrl.u32 %v508_v33, 16  ;;  %v1642_v10 = vrot.slane %v1640_v19, 4  ;;  %273 = vst [vmem:[#allocation2 + $0x6c] sm:$0x1] %v272_v37  ;;  %v274_v41 = vld [vmem:[#allocation2 + $0x7c] sm:$0x1] }
  0x64   : > { %v676_v18 = vor.u32 %v9280_v50, %v7476_v26  ;;  %v1472_v2 = vld [vmem:[#allocation2 + $0x5c] sm:$0x1]  ;;  %v1634_v7 = vrot.slane %v1633_v21, 4  ;;  %v1651_v57 = vshrl.u32 %v1473_v36, 16  ;;  %v1654_v61 = vshll.u32 %v1473_v36, 16 }
  0x65   : > { %6843 = vmatprep.mubr.msk.bf16.mxu0 %vm981_vm7, %v6159_v15  ;;  %v6077_v42 = vrot.slane %v635_v35, 11  ;;  %v1643_v39 = vor.u32 %v1642_v10, %v1638_v32  ;;  %v1646_v26 = vshll.u32 %v1472_v2, 16  ;;  %v1660_v27 = vshll.u32 %v1474_v56, 16  ;;  %v1476_v52 = vld [vmem:[#allocation2 + $0x74] sm:$0xf] }
  0x66   : > { %v677_v12 = vsel %vm7269_vm10, %v669_v49, %v676_v18  ;;  %v1639_v28 = vsel %vm7551_vm13, %v1634_v7, %v1638_v32  ;;  %v1653_v11 = vrot.slane %v1651_v57, 4  ;;  %v1656_v22 = vrot.slane %v1654_v61, 5  ;;  %v1477_v49 = vld [vmem:[#allocation2 + $0x78] sm:$0xf]  ;;  %v226_v50 = vld [vmem:[#allocation2 + $0x70] sm:$0x8] }
  0x67   : > { %v1664_v55 = vshrl.u32 %v1474_v56, 16  ;;  %v646_v1 = vsel %vm7269_vm10, %v6077_v42, %v7648_v34  ;;  %v1644_v30 = vrot.slane %v1643_v39, 4  ;;  %v1648_v29 = vrot.slane %v1646_v26, 5  ;;  %v277_v61 = vld [vmem:[#allocation2 + $0x8c] sm:$0x1] }
  0x68   : > { %v1662_v14 = vrot.slane %v1660_v27, 5  ;;  %v6126_v25 = vcombine.low %v646_v1, %v655_v17  ;;  %v1657_v46 = vor.u32 %v1656_v22, %v1653_v11  ;;  %v224_v40 = vsel %vm7238_vm9, 0, %v223_v47  ;;  %v1479_v1 = vld [vmem:[#allocation2 + $0x84] sm:$0xf] }
  0x69   : > { %v1666_v59 = vrot.slane %v1664_v55, 4  ;;  %v1649_v60 = vsel %vm7551_vm13, %v1644_v30, %v1648_v29  ;;  %v511_v32 = vld [vmem:[#allocation2 + $0x50] sm:$0x8]  ;;  %225 = vst [vmem:[#allocation2 + $0x60] sm:$0x8] %v224_v40  ;;  %v9281_v19 = vshll.u32 %v7474_v63, 16 }
  0x6a   : > { %v691_v16 = vrot.slane %v7509_v0, 4  ;;  %v9282_v17 = vshll.u32 %v7482_v13, 16  ;;  %6809 = vmatprep.mubr.msk.bf16.mxu1 %vm981_vm7, %v6126_v25  ;;  %v6160_v36 = vcombine.low %v1639_v28, %v1649_v60  ;;  %v657_v24 = vshrl.u32 %v511_v32, 16  ;;  %v1475_v18 = vld [vmem:[#allocation2 + $0x6c] sm:$0x1] }
  0x6b   : > { %v7698_v34 = vor.u32 %v9281_v19, %v7509_v0  ;;  %v1658_v33 = vrot.slane %v1657_v46, 4  ;;  %v1667_v21 = vor.u32 %v1666_v59, %v1662_v14  ;;  %v275_v56 = vsel %vm7226_vm4, 0, %v274_v41  ;;  %v1480_v30 = vld [vmem:[#allocation2 + $0x88] sm:$0xf] }
  0x6c   : > { %v698_v53 = vor.u32 %v9282_v17, %v7518_v51  ;;  %v1675_v0 = vshrl.u32 %v1476_v52, 16  ;;  %v1678_v15 = vshll.u32 %v1476_v52, 16  ;;  %6844 = vmatmul.mubr.msk.bf16.gmra.mxu0 %vm981_vm7, %v6160_v36  ;;  %v6078_v51 = vrot.slane %v657_v24, 11  ;;  %276 = vst [vmem:[#allocation2 + $0x7c] sm:$0x1] %v275_v56 }
  0x6d   : > { %v1663_v13 = vsel %vm7551_vm13, %v1658_v33, %v1662_v14  ;;  %v1668_v35 = vrot.slane %v1667_v21, 4  ;;  %v1670_v10 = vshll.u32 %v1475_v18, 16  ;;  %v1684_v7 = vshll.u32 %v1477_v49, 16  ;;  %v229_v52 = vld [vmem:[#allocation2 + $0x80] sm:$0x8] }
  0x6e   : > { %v699_v63 = vsel %vm7269_vm10, %v691_v16, %v698_v53  ;;  %v1677_v37 = vrot.slane %v1675_v0, 4  ;;  %v1680_v2 = vrot.slane %v1678_v15, 5  ;;  %v1688_v57 = vshrl.u32 %v1477_v49, 16  ;;  %v280_v16 = vld [vmem:[#allocation2 + $0x9c] sm:$0x1] }
  0x6f   : > { %v668_v42 = vsel %vm7269_vm10, %v6078_v51, %v7672_v54  ;;  %v1672_v39 = vrot.slane %v1670_v10, 5  ;;  %v227_v26 = vsel %vm7238_vm9, 0, %v226_v50  ;;  %v9283_v27 = vshll.u32 %v7491_v20, 16  ;;  %v1482_v50 = vld [vmem:[#allocation2 + $0x94] sm:$0xf] }
  0x70   : > { %v6127_v28 = vcombine.low %v668_v42, %v677_v12  ;;  %v1681_v11 = vor.u32 %v1680_v2, %v1677_v37  ;;  %v1686_v22 = vrot.slane %v1684_v7, 5  ;;  %v1690_v55 = vrot.slane %v1688_v57, 4  ;;  %228 = vst [vmem:[#allocation2 + $0x70] sm:$0x8] %v227_v26  ;;  %v514_v54 = vld [vmem:[#allocation2 + $0x60] sm:$0x8] }
  0x71   : > { %v7720_v47 = vor.u32 %v9283_v27, %v7527_v23  ;;  %v1673_v29 = vsel %vm7551_vm13, %v1668_v35, %v1672_v39  ;;  %v713_v14 = vrot.slane %v7527_v23, 4  ;;  %v9284_v25 = vshll.u32 %v7500_v43, 16  ;;  %v7753_v7 = vld [vmem:[%s9220_s1 + $0xa] sm:$0x3]  ;;  %v232_v42 = vld [vmem:[#allocation2 + $0x90] sm:$0x8] }
  0x72   : > { %v278_v20 = vsel %vm7226_vm4, 0, %v277_v61  ;;  %6810 = vmatmul.mubr.msk.bf16.gmra.mxu1 %vm981_vm7, %v6127_v28  ;;  %v6161_v12 = vcombine.low %v1663_v13, %v1673_v29  ;;  %v679_v59 = vshrl.u32 %v514_v54, 16  ;;  %v1682_v40 = vrot.slane %v1681_v11, 4  ;;  %v1483_v13 = vld [vmem:[#allocation2 + $0x98] sm:$0xf]  ;;  %7079 = vmatprep.subr.msk.bf16.mxu1 %vm1030_vm0, %v7753_v7 }
  0x73   : > { %v720_v46 = vor.u32 %v9284_v25, %v7532_v48  ;;  %v1691_v41 = vor.u32 %v1690_v55, %v1686_v22  ;;  %279 = vst [vmem:[#allocation2 + $0x8c] sm:$0x1] %v278_v20  ;;  %v1699_v32 = vshrl.u32 %v1479_v1, 16  ;;  %v1702_v23 = vshll.u32 %v1479_v1, 16  ;;  %v1478_v43 = vld [vmem:[#allocation2 + $0x7c] sm:$0x1] }
  0x74   : > { %v1708_v19 = vshll.u32 %v1480_v30, 16  ;;  %6847 = vmatprep.mubr.msk.bf16.mxu0 %vm981_vm7, %v6161_v12  ;;  %v6079_v48 = vrot.slane %v679_v59, 11  ;;  %v1687_v17 = vsel %vm7551_vm13, %v1682_v40, %v1686_v22  ;;  %v1712_v36 = vshrl.u32 %v1480_v30, 16  ;;  %v7763_v30 = vld [vmem:[%s9220_s1 + $0xc] sm:$0x3] }
  0x75   : > { %v721_v60 = vsel %vm7269_vm10, %v713_v14, %v720_v46  ;;  %v1692_v53 = vrot.slane %v1691_v41, 4  ;;  %v1694_v24 = vshll.u32 %v1478_v43, 16  ;;  %v1701_v33 = vrot.slane %v1699_v32, 4  ;;  %v283_v46 = vld [vmem:[#allocation2 + $0xac] sm:$0x1]  ;;  %7080 = vmatprep.subr.msk.bf16.mxu0 %vm1030_vm0, %v7763_v30 }
  0x76   : > { %v1704_v21 = vrot.slane %v1702_v23, 5  ;;  %v1710_v49 = vrot.slane %v1708_v19, 5  ;;  %v690_v18 = vsel %vm7269_vm10, %v6079_v48, %v7698_v34  ;;  %v1714_v56 = vrot.slane %v1712_v36, 4  ;;  %v1485_v41 = vld [vmem:[#allocation2 + $0xa4] sm:$0xf] }
  0x77   : > { %v230_v0 = vsel %vm7238_vm9, 0, %v229_v52  ;;  %v9285_v15 = vrot.slane %v7343_v45, 4  ;;  %v6128_v35 = vcombine.low %v690_v18, %v699_v63  ;;  %v1696_v10 = vrot.slane %v1694_v24, 5  ;;  %v517_v37 = vld [vmem:[#allocation2 + $0x70] sm:$0x8] }
  0x78   : > { %v1705_v2 = vor.u32 %v1704_v21, %v1701_v33  ;;  %231 = vst [vmem:[#allocation2 + $0x80] sm:$0x8] %v230_v0  ;;  %v281_v34 = vsel %vm7226_vm4, 0, %v280_v16  ;;  %v701_v57 = vshrl.u32 %v517_v37, 16  ;;  %v1715_v45 = vor.u32 %v1714_v56, %v1710_v49  ;;  %v1486_v48 = vld [vmem:[#allocation2 + $0xa8] sm:$0xf] }
  0x79   : > { %v7746_v51 = vsel %vm7269_vm10, %v9285_v15, %v7371_v62  ;;  %282 = vst [vmem:[#allocation2 + $0x9c] sm:$0x1] %v281_v34  ;;  %v1723_v61 = vshrl.u32 %v1482_v50, 16  ;;  %v1726_v62 = vshll.u32 %v1482_v50, 16  ;;  %6813 = vmatprep.mubr.msk.bf16.mxu1 %vm981_vm7, %v6128_v35  ;;  %v1697_v63 = vsel %vm7551_vm13, %v1692_v53, %v1696_v10  ;;  %v9287_v53 = vld [vmem:[#allocation3_spill] sm:$0xff] }
  0x7a   : > { %v1481_v39 = vld [vmem:[#allocation2 + $0x8c] sm:$0x1]  ;;  %v1706_v26 = vrot.slane %v1705_v2, 4  ;;  %v1732_v27 = vshll.u32 %v1483_v13, 16  ;;  %v1736_v28 = vshrl.u32 %v1483_v13, 16  ;;  %v6162_v11 = vcombine.low %v1687_v17, %v1697_v63  ;;  %v9290_v63 = vld [vmem:[#allocation9_spill] sm:$0xff] }
  0x7b   : > { %v6080_v22 = vrot.slane %v701_v57, 11  ;;  %v1716_v55 = vrot.slane %v1715_v45, 4  ;;  %v1718_v1 = vshll.u32 %v1481_v39, 16  ;;  %v1725_v54 = vrot.slane %v1723_v61, 4  ;;  %v235_v33 = vld [vmem:[#allocation2 + $0xa0] sm:$0x8] }
  0x7c   : > { %v1711_v29 = vsel %vm7551_vm13, %v1706_v26, %v1710_v49  ;;  %v1728_v14 = vrot.slane %v1726_v62, 5  ;;  %v1734_v25 = vrot.slane %v1732_v27, 5  ;;  %6848 = vmatmul.mubr.msk.bf16.gmra.mxu0 %vm981_vm7, %v6162_v11  ;;  %v1738_v59 = vrot.slane %v1736_v28, 4  ;;  %v286_v45 = vld [vmem:[#allocation2 + $0xbc] sm:$0x1]  ;;  %v9289_v61 = vld [vmem:[#allocation4_spill] sm:$0xff] }
  0x7d   : > { %v712_v20 = vsel %vm7269_vm10, %v6080_v22, %v7720_v47  ;;  %v1720_v12 = vrot.slane %v1718_v1, 5  ;;  %v233_v40 = vsel %vm7238_vm9, 0, %v232_v42  ;;  %v9286_v23 = vshll.u32 %v7340_v44, 16  ;;  %v9291_v39 = vld [vmem:[#allocation5_spill] sm:$0xff] }
  0x7e   : > { %v6129_v52 = vcombine.low %v712_v20, %v721_v60  ;;  %v1729_v32 = vor.u32 %v1728_v14, %v1725_v54  ;;  %234 = vst [vmem:[#allocation2 + $0x90] sm:$0x8] %v233_v40  ;;  %v757_v16 = vrot.slane %v7366_v58, 4  ;;  %v1739_v17 = vor.u32 %v1738_v59, %v1734_v25  ;;  %v1488_v11 = vld [vmem:[#allocation2 + $0xb4] sm:$0xf]  ;;  %v9293_v20 = vld [vmem:[#allocation10_spill] sm:$0xff] }
  0x7f   : > { %v7778_v19 = vor.u32 %v9286_v23, %v7366_v58  ;;  %v1721_v47 = vsel %vm7551_vm13, %v1716_v55, %v1720_v12  ;;  %v520_v43 = vld [vmem:[#allocation2 + $0x80] sm:$0x8]  ;;  %v9288_v36 = vshll.u32 %v9287_v53, 16  ;;  %v284_v60 = vsel %vm7226_vm4, 0, %v283_v46  ;;  %v1489_v14 = vld [vmem:[#allocation2 + $0xb8] sm:$0xf] }
  0x80   : > { %6814 = vmatmul.mubr.msk.bf16.gmra.mxu1 %vm981_vm7, %v6129_v52  ;;  %v6163_v44 = vcombine.low %v1711_v29, %v1721_v47  ;;  %v723_v21 = vshrl.u32 %v520_v43, 16  ;;  %v1484_v49 = vld [vmem:[#allocation2 + $0x9c] sm:$0x1]  ;;  %v1730_v58 = vrot.slane %v1729_v32, 4  ;;  %285 = vst [vmem:[#allocation2 + $0xac] sm:$0x1] %v284_v60 }
  0x81   : > { %v764_v24 = vor.u32 %v9288_v36, %v7381_v3  ;;  %v1747_v50 = vshrl.u32 %v1485_v41, 16  ;;  %v1740_v18 = vrot.slane %v1739_v17, 4  ;;  %v1742_v56 = vshll.u32 %v1484_v49, 16  ;;  %v9294_v12 = vld [vmem:[#allocation6_spill] sm:$0xff]  ;;  %v238_v53 = vld [vmem:[#allocation2 + $0xb0] sm:$0x8] }
  0x82   : > { %v1750_v15 = vshll.u32 %v1485_v41, 16  ;;  %6851 = vmatprep.mubr.msk.bf16.mxu0 %vm981_vm7, %v6163_v44  ;;  %v6081_v3 = vrot.slane %v723_v21, 11  ;;  %v1735_v13 = vsel %vm7551_vm13, %v1730_v58, %v1734_v25  ;;  %v1756_v10 = vshll.u32 %v1486_v48, 16 }
  0x83   : > { %v765_v0 = vsel %vm7269_vm10, %v757_v16, %v764_v24  ;;  %v1749_v35 = vrot.slane %v1747_v50, 4  ;;  %v1744_v37 = vrot.slane %v1742_v56, 5  ;;  %v1760_v34 = vshrl.u32 %v1486_v48, 16  ;;  %v289_v50 = vld [vmem:[#allocation2 + $0xcc] sm:$0x1] }
  0x84   : > { %v1752_v2 = vrot.slane %v1750_v15, 5  ;;  %v236_v57 = vsel %vm7238_vm9, 0, %v235_v33  ;;  %v734_v62 = vsel %vm7269_vm10, %v6081_v3, %v9289_v61  ;;  %v1758_v42 = vrot.slane %v1756_v10, 5 }
  0x85   : > { %237 = vst [vmem:[#allocation2 + $0xa0] sm:$0x8] %v236_v57  ;;  %v9292_v26 = vshll.u32 %v9291_v39, 16  ;;  %v779_v28 = vrot.slane %v9290_v63, 4  ;;  %v6130_v22 = vcombine.low %v734_v62, %v7746_v51  ;;  %v1745_v55 = vsel %vm7551_vm13, %v1740_v18, %v1744_v37  ;;  %v523_v1 = vld [vmem:[#allocation2 + $0x90] sm:$0x8] }
  0x86   : > { %v1753_v29 = vor.u32 %v1752_v2, %v1749_v35  ;;  %v1762_v54 = vrot.slane %v1760_v34, 4  ;;  %v6164_v25 = vcombine.low %v1735_v13, %v1745_v55  ;;  %v745_v46 = vshrl.u32 %v523_v1, 16  ;;  %v9296_v13 = vld [vmem:[#allocation11_spill] sm:$0xff] }
  0x87   : > { %v7802_v27 = vor.u32 %v9292_v26, %v9290_v63  ;;  %v9295_v59 = vshll.u32 %v9294_v12, 16  ;;  %v287_v41 = vsel %vm7226_vm4, 0, %v286_v45  ;;  %6817 = vmatprep.mubr.msk.bf16.mxu1 %vm981_vm7, %v6130_v22  ;;  %v1487_v52 = vld [vmem:[#allocation2 + $0xac] sm:$0x1]  ;;  %v1771_v23 = vshrl.u32 %v1488_v11, 16  ;;  %v9297_v35 = vld [vmem:[#allocation7_spill] sm:$0xff] }
  0x88   : > { %v1754_v51 = vrot.slane %v1753_v29, 4  ;;  %v1763_v32 = vor.u32 %v1762_v54, %v1758_v42  ;;  %288 = vst [vmem:[#allocation2 + $0xbc] sm:$0x1] %v287_v41  ;;  %v1774_v16 = vshll.u32 %v1488_v11, 16  ;;  %6852 = vmatmul.mubr.msk.bf16.gmra.mxu0 %vm981_vm7, %v6164_v25  ;;  %v6082_v48 = vrot.slane %v745_v46, 11  ;;  %v9300_v63 = vld [vmem:[#allocation8_spill] sm:$0xff] }
  0x89   : > { %v786_v40 = vor.u32 %v9295_v59, %v9293_v20  ;;  %v1766_v47 = vshll.u32 %v1487_v52, 16  ;;  %v1780_v17 = vshll.u32 %v1489_v14, 16  ;;  %v1773_v60 = vrot.slane %v1771_v23, 4  ;;  %v1491_v2 = vld [vmem:[#allocation2 + $0xc4] sm:$0xf] }
  0x8a   : > { %v1759_v36 = vsel %vm7551_vm13, %v1754_v51, %v1758_v42  ;;  %v1764_v24 = vrot.slane %v1763_v32, 4  ;;  %v1776_v33 = vrot.slane %v1774_v16, 5  ;;  %v756_v44 = vsel %vm7269_vm10, %v6082_v48, %v7778_v19  ;;  %v9299_v42 = vld [vmem:[#allocation13_spill] sm:$0xff]  ;;  %v241_v20 = vld [vmem:[#allocation2 + $0xc0] sm:$0x8] }
  0x8b   : > { %v787_v43 = vsel %vm7269_vm10, %v779_v28, %v786_v40  ;;  %v1768_v21 = vrot.slane %v1766_v47, 5  ;;  %v1782_v49 = vrot.slane %v1780_v17, 5  ;;  %v1784_v58 = vshrl.u32 %v1489_v14, 16  ;;  %v292_v52 = vld [vmem:[#allocation2 + $0xdc] sm:$0x1] }
  0x8c   : > { %v6131_v18 = vcombine.low %v756_v44, %v765_v0  ;;  %v526_v56 = vld [vmem:[#allocation2 + $0xa0] sm:$0x8]  ;;  %v1777_v15 = vor.u32 %v1776_v33, %v1773_v60  ;;  %v239_v3 = vsel %vm7238_vm9, 0, %v238_v53  ;;  %v9298_v10 = vshll.u32 %v9297_v35, 16  ;;  %v1492_v0 = vld [vmem:[#allocation2 + $0xc8] sm:$0xf] }
  0x8d   : > { %v1769_v34 = vsel %vm7551_vm13, %v1764_v24, %v1768_v21  ;;  %v767_v19 = vshrl.u32 %v526_v56, 16  ;;  %v1786_v57 = vrot.slane %v1784_v58, 4  ;;  %240 = vst [vmem:[#allocation2 + $0xb0] sm:$0x8] %v239_v3  ;;  %v801_v45 = vrot.slane %v9296_v13, 4  ;;  %v9302_v53 = vld [vmem:[#allocation17_spill] sm:$0xff] }
  0x8e   : > { %v7827_v37 = vor.u32 %v9298_v10, %v9296_v13  ;;  %6818 = vmatmul.mubr.msk.bf16.gmra.mxu1 %vm981_vm7, %v6131_v18  ;;  %v6165_v61 = vcombine.low %v1759_v36, %v1769_v34  ;;  %v1778_v62 = vrot.slane %v1777_v15, 4  ;;  %v9301_v39 = vshll.u32 %v9300_v63, 16  ;;  %v1494_v48 = vld [vmem:[#allocation2 + $0xd4] sm:$0xf]  ;;  %v9303_v36 = vld [vmem:[#allocation12_spill] sm:$0xff]  ;;  %v9306_v58 = vld [vmem:[#allocation14_spill] sm:$0xff] }
  0x8f   : > { %v290_v28 = vsel %vm7226_vm4, 0, %v289_v50  ;;  %v6083_v11 = vrot.slane %v767_v19, 11  ;;  %v1490_v22 = vld [vmem:[#allocation2 + $0xbc] sm:$0x1]  ;;  %v1787_v55 = vor.u32 %v1786_v57, %v1782_v49  ;;  %v1795_v1 = vshrl.u32 %v1491_v2, 16 }
  0x90   : > { %v808_v26 = vor.u32 %v9301_v39, %v9299_v42  ;;  %291 = vst [vmem:[#allocation2 + $0xcc] sm:$0x1] %v290_v28  ;;  %v1798_v29 = vshll.u32 %v1491_v2, 16  ;;  %6855 = vmatprep.mubr.msk.bf16.mxu0 %vm981_vm7, %v6165_v61  ;;  %v1783_v54 = vsel %vm7551_vm13, %v1778_v62, %v1782_v49  ;;  %v1790_v14 = vshll.u32 %v1490_v22, 16  ;;  %v1495_v33 = vld [vmem:[#allocation2 + $0xd8] sm:$0xf] }
  0x91   : > { %v1804_v46 = vshll.u32 %v1492_v0, 16  ;;  %v778_v12 = vsel %vm7269_vm10, %v6083_v11, %v7802_v27  ;;  %v1788_v59 = vrot.slane %v1787_v55, 4  ;;  %v1797_v40 = vrot.slane %v1795_v1, 4  ;;  %v9305_v49 = vld [vmem:[#allocation18_spill] sm:$0xff]  ;;  %v295_v63 = vld [vmem:[#allocation2 + $0xec] sm:$0x1] }
  0x92   : > { %v809_v25 = vsel %vm7269_vm10, %v801_v45, %v808_v26  ;;  %v1800_v41 = vrot.slane %v1798_v29, 5  ;;  %v6132_v51 = vcombine.low %v778_v12, %v787_v43  ;;  %v1792_v32 = vrot.slane %v1790_v14, 5  ;;  %v244_v45 = vld [vmem:[#allocation2 + $0xd0] sm:$0x8]  ;;  %v1497_v22 = vld [vmem:[#allocation2 + $0xe4] sm:$0xf] }
  0x93   : > { %v1806_v23 = vrot.slane %v1804_v46, 5  ;;  %v1808_v16 = vshrl.u32 %v1492_v0, 16  ;;  %v242_v17 = vsel %vm7238_vm9, 0, %v241_v20  ;;  %v9304_v24 = vshll.u32 %v9303_v36, 16  ;;  %v9309_v14 = vld [vmem:[#allocation15_spill] sm:$0xff] }
  0x94   : > { %v1801_v47 = vor.u32 %v1800_v41, %v1797_v40  ;;  %v823_v27 = vrot.slane %v9302_v53, 4  ;;  %6821 = vmatprep.mubr.msk.bf16.mxu1 %vm981_vm7, %v6132_v51  ;;  %v1793_v43 = vsel %vm7551_vm13, %v1788_v59, %v1792_v32  ;;  %v529_v44 = vld [vmem:[#allocation2 + $0xb0] sm:$0x8]  ;;  %243 = vst [vmem:[#allocation2 + $0xc0] sm:$0x8] %v242_v17  ;;  %v9307_v50 = vshll.u32 %v9306_v58, 16 }
  0x95   : > { %v7851_v60 = vor.u32 %v9304_v24, %v9302_v53  ;;  %v1810_v21 = vrot.slane %v1808_v16, 4  ;;  %v293_v56 = vsel %vm7226_vm4, 0, %v292_v52  ;;  %v6166_v15 = vcombine.low %v1783_v54, %v1793_v43  ;;  %v9308_v54 = vld [vmem:[#allocation19_spill] sm:$0xff]  ;;  %v9312_v32 = vld [vmem:[#allocation16_spill] sm:$0xff] }
  0x96   : > { %v830_v18 = vor.u32 %v9307_v50, %v9305_v49  ;;  %v789_v3 = vshrl.u32 %v529_v44, 16  ;;  %v1802_v13 = vrot.slane %v1801_v47, 4  ;;  %294 = vst [vmem:[#allocation2 + $0xdc] sm:$0x1] %v293_v56  ;;  %v1819_v35 = vshrl.u32 %v1494_v48, 16 }
  0x97   : > { %v1493_v10 = vld [vmem:[#allocation2 + $0xcc] sm:$0x1]  ;;  %v1811_v2 = vor.u32 %v1810_v21, %v1806_v23  ;;  %v1822_v19 = vshll.u32 %v1494_v48, 16  ;;  %v1828_v57 = vshll.u32 %v1495_v33, 16  ;;  %6856 = vmatmul.mubr.msk.bf16.gmra.mxu0 %vm981_vm7, %v6166_v15  ;;  %v1832_v11 = vshrl.u32 %v1495_v33, 16 }
  0x98   : > { %v831_v34 = vsel %vm7269_vm10, %v823_v27, %v830_v18  ;;  %v6084_v0 = vrot.slane %v789_v3, 11  ;;  %v1807_v61 = vsel %vm7551_vm13, %v1802_v13, %v1806_v23  ;;  %v1814_v62 = vshll.u32 %v1493_v10, 16  ;;  %v1498_v47 = vld [vmem:[#allocation2 + $0xe8] sm:$0xf]  ;;  %v247_v33 = vld [vmem:[#allocation2 + $0xe0] sm:$0x8] }
  0x99   : > { %v1821_v42 = vrot.slane %v1819_v35, 4  ;;  %v1812_v39 = vrot.slane %v1811_v2, 4  ;;  %v1824_v26 = vrot.slane %v1822_v19, 5  ;;  %v1830_v28 = vrot.slane %v1828_v57, 5  ;;  %v298_v10 = vld [vmem:[#allocation2 + $0xfc] sm:$0x1] }
  0x9a   : > { %v800_v55 = vsel %vm7269_vm10, %v6084_v0, %v7827_v37  ;;  %v1816_v1 = vrot.slane %v1814_v62, 5  ;;  %v245_v29 = vsel %vm7238_vm9, 0, %v244_v45  ;;  %v9310_v46 = vshll.u32 %v9309_v14, 16  ;;  %v9311_v37 = vld [vmem:[#allocation20_spill] sm:$0xff]  ;;  %v9314_v57 = vld [vmem:[#allocation23_spill] sm:$0xff]  ;;  %v9315_v45 = vld [vmem:[#allocation21_spill] sm:$0xff] }
  0x9b   : > { %v6133_v12 = vcombine.low %v800_v55, %v809_v25  ;;  %v1825_v59 = vor.u32 %v1824_v26, %v1821_v42  ;;  %v1834_v40 = vrot.slane %v1832_v11, 4  ;;  %246 = vst [vmem:[#allocation2 + $0xd0] sm:$0x8] %v245_v29  ;;  %v845_v41 = vrot.slane %v9308_v54, 4  ;;  %v532_v51 = vld [vmem:[#allocation2 + $0xc0] sm:$0x8] }
  0x9c   : > { %v7875_v20 = vor.u32 %v9310_v46, %v9308_v54  ;;  %v1817_v52 = vsel %vm7551_vm13, %v1812_v39, %v1816_v1  ;;  %v9313_v23 = vshll.u32 %v9312_v32, 16  ;;  %v296_v48 = vsel %vm7226_vm4, 0, %v295_v63  ;;  %v1500_v42 = vld [vmem:[#allocation2 + $0xf4] sm:$0xf]  ;;  %v9317_v1 = vld [vmem:[#allocation24_spill] sm:$0xff]  ;;  %v9318_v29 = vld [vmem:[#allocation22_spill] sm:$0xff] }
  0x9d   : > { %v1843_v17 = vshrl.u32 %v1497_v22, 16  ;;  %6822 = vmatmul.mubr.msk.bf16.gmra.mxu1 %vm981_vm7, %v6133_v12  ;;  %v6167_v25 = vcombine.low %v1807_v61, %v1817_v52  ;;  %v811_v53 = vshrl.u32 %v532_v51, 16  ;;  %v1496_v36 = vld [vmem:[#allocation2 + $0xdc] sm:$0x1]  ;;  %v1826_v24 = vrot.slane %v1825_v59, 4 }
  0x9e   : > { %v852_v16 = vor.u32 %v9313_v23, %v9311_v37  ;;  %v1835_v27 = vor.u32 %v1834_v40, %v1830_v28  ;;  %297 = vst [vmem:[#allocation2 + $0xec] sm:$0x1] %v296_v48  ;;  %v1838_v43 = vshll.u32 %v1496_v36, 16  ;;  %v1846_v49 = vshll.u32 %v1497_v22, 16  ;;  %v1501_v22 = vld [vmem:[#allocation2 + $0xf8] sm:$0xf] }
  0x9f   : > { %v1845_v21 = vrot.slane %v1843_v17, 4  ;;  %6859 = vmatprep.mubr.msk.bf16.mxu0 %vm981_vm7, %v6167_v25  ;;  %v6085_v58 = vrot.slane %v811_v53, 11  ;;  %v1831_v50 = vsel %vm7551_vm13, %v1826_v24, %v1830_v28  ;;  %v1852_v56 = vshll.u32 %v1498_v47, 16  ;;  %v250_v23 = vld [vmem:[#allocation2 + $0xf0] sm:$0x8] }
  0xa0   : > { %v853_v44 = vsel %vm7269_vm10, %v845_v41, %v852_v16  ;;  %v1836_v18 = vrot.slane %v1835_v27, 4  ;;  %v1840_v15 = vrot.slane %v1838_v43, 5  ;;  %v1848_v3 = vrot.slane %v1846_v49, 5  ;;  %v7918_v27 = vld [vmem:[#allocation2 + $0x14] sm:$0xf] }
  0xa1   : > { %v1856_v13 = vshrl.u32 %v1498_v47, 16  ;;  %v248_v35 = vsel %vm7238_vm9, 0, %v247_v33  ;;  %v822_v2 = vsel %vm7269_vm10, %v6085_v58, %v7851_v60  ;;  %v1854_v19 = vrot.slane %v1852_v56, 5 }
  0xa2   : > { %249 = vst [vmem:[#allocation2 + $0xe0] sm:$0x8] %v248_v35  ;;  %v9316_v0 = vshll.u32 %v9315_v45, 16  ;;  %v867_v62 = vrot.slane %v9314_v57, 4  ;;  %v6134_v63 = vcombine.low %v822_v2, %v831_v34  ;;  %v1841_v39 = vsel %vm7551_vm13, %v1836_v18, %v1840_v15  ;;  %v535_v26 = vld [vmem:[#allocation2 + $0xd0] sm:$0x8] }
  0xa3   : > { %v1849_v28 = vor.u32 %v1848_v3, %v1845_v21  ;;  %v1858_v11 = vrot.slane %v1856_v13, 4  ;;  %v6168_v55 = vcombine.low %v1831_v50, %v1841_v39  ;;  %v833_v60 = vshrl.u32 %v535_v26, 16  ;;  %v2186_v18 = vld [vmem:[#allocation2 + $0x18] sm:$0xf]  ;;  %v9321_v35 = vld [vmem:[#allocation25_spill] sm:$0xff] }
  0xa4   : > { %v7899_v61 = vor.u32 %v9316_v0, %v9314_v57  ;;  %v9319_v54 = vshll.u32 %v9318_v29, 16  ;;  %v299_v46 = vsel %vm7226_vm4, 0, %v298_v10  ;;  %6825 = vmatprep.mubr.msk.bf16.mxu1 %vm981_vm7, %v6134_v63  ;;  %v1867_v40 = vshrl.u32 %v1500_v42, 16 }
  0xa5   : > { %v1499_v12 = vld [vmem:[#allocation2 + $0xec] sm:$0x1]  ;;  %v1850_v34 = vrot.slane %v1849_v28, 4  ;;  %v1859_v59 = vor.u32 %v1858_v11, %v1854_v19  ;;  %300 = vst [vmem:[#allocation2 + $0xfc] sm:$0x1] %v299_v46  ;;  %v1870_v41 = vshll.u32 %v1500_v42, 16  ;;  %6860 = vmatmul.mubr.msk.bf16.gmra.mxu0 %vm981_vm7, %v6168_v55 }
  0xa6   : > { %v874_v14 = vor.u32 %v9319_v54, %v9317_v1  ;;  %v6086_v52 = vrot.slane %v833_v60, 11  ;;  %v1862_v51 = vshll.u32 %v1499_v12, 16  ;;  %v1876_v32 = vshll.u32 %v1501_v22, 16  ;;  %v7946_v60 = vld [vmem:[#allocation2 + $0x28] sm:$0xf] }
  0xa7   : > { %v1855_v16 = vsel %vm7551_vm13, %v1850_v34, %v1854_v19  ;;  %v1860_v48 = vrot.slane %v1859_v59, 4  ;;  %v1869_v47 = vrot.slane %v1867_v40, 4  ;;  %v1872_v17 = vrot.slane %v1870_v41, 5  ;;  %v2184_v19 = vld [vmem:[#allocation2 + $0x10] sm:$0x8] }
  0xa8   : > { %v875_v37 = vsel %vm7269_vm10, %v867_v62, %v874_v14  ;;  %v844_v25 = vsel %vm7269_vm10, %v6086_v52, %v7875_v20  ;;  %v1864_v53 = vrot.slane %v1862_v51, 5  ;;  %v1878_v36 = vrot.slane %v1876_v32, 5  ;;  %v2187_v40 = vld [vmem:[#allocation2 + $0x20] sm:$0x8] }
  0xa9   : > { %v1880_v24 = vshrl.u32 %v1501_v22, 16  ;;  %v6135_v33 = vcombine.low %v844_v25, %v853_v44  ;;  %v538_v43 = vld [vmem:[#allocation2 + $0xe0] sm:$0x8]  ;;  %v1873_v21 = vor.u32 %v1872_v17, %v1869_v47  ;;  %v251_v49 = vsel %vm7238_vm9, 0, %v250_v23 }
  0xaa   : > { %v9320_v58 = vshll.u32 %v7561_v6, 16  ;;  %v1865_v20 = vsel %vm7551_vm13, %v1860_v48, %v1864_v53  ;;  %v855_v56 = vshrl.u32 %v538_v43, 16  ;;  %252 = vst [vmem:[#allocation2 + $0xf0] sm:$0x8] %v251_v49  ;;  %v889_v3 = vrot.slane %v7583_v4, 4 }
  0xab   : > { %v1882_v15 = vrot.slane %v1880_v24, 4  ;;  %6826 = vmatmul.mubr.msk.bf16.gmra.mxu1 %vm981_vm7, %v6135_v33  ;;  %v6169_v44 = vcombine.low %v1855_v16, %v1865_v20  ;;  %v1874_v13 = vrot.slane %v1873_v21, 4  ;;  %v9322_v10 = vshll.u32 %v9321_v35, 16  ;;  %v2192_v21 = vld [vmem:[#allocation2 + $0x38] sm:$0xf] }
  0xac   : > { %v7925_v50 = vor.u32 %v9320_v58, %v7583_v4  ;;  %v2238_v6 = vshrl.u32 %v7918_v27, 16  ;;  %v6087_v57 = vrot.slane %v855_v56, 11  ;;  %v1502_v45 = vld [vmem:[#allocation2 + $0xfc] sm:$0x1]  ;;  %v2241_v62 = vshll.u32 %v7918_v27, 16 }
  0xad   : > { %v896_v2 = vor.u32 %v9322_v10, %v7589_v38  ;;  %v1883_v0 = vor.u32 %v1882_v15, %v1878_v36  ;;  %v2247_v42 = vshrl.u32 %v2186_v18, 16  ;;  %6863 = vmatprep.mubr.msk.bf16.mxu0 %vm981_vm7, %v6169_v44  ;;  %v1879_v4 = vsel %vm7551_vm13, %v1874_v13, %v1878_v36  ;;  %v7941_v38 = vld [vmem:[#allocation2 + $0x24] sm:$0xf]  ;;  %v2191_v36 = vld [vmem:[#allocation2 + $0x34] sm:$0xf] }
  0xae   : > { %v1886_v63 = vshll.u32 %v1502_v45, 16  ;;  %v2240_v26 = vrot.slane %v2238_v6, 7  ;;  %v866_v28 = vsel %vm7269_vm10, %v6087_v57, %v7899_v61  ;;  %v2250_v55 = vshll.u32 %v2186_v18, 16  ;;  %v2190_v56 = vld [vmem:[#allocation2 + $0x30] sm:$0x8] }
  0xaf   : > { %v897_v39 = vsel %vm7269_vm10, %v889_v3, %v896_v2  ;;  %v1884_v11 = vrot.slane %v1883_v0, 4  ;;  %v2249_v22 = vrot.slane %v2247_v42, 7  ;;  %v6136_v1 = vcombine.low %v866_v28, %v875_v37  ;;  %v7973_v35 = vld [vmem:[#allocation2 + $0x44] sm:$0xf] }
  0xb0   : > { %v1888_v29 = vrot.slane %v1886_v63, 5  ;;  %v6237_v54 = vcombine.low %v7918_v27, %v2186_v18  ;;  %v2233_v14 = vshrl.u32 %v2184_v19, 16  ;;  %v2243_v46 = vor.u32 %v2241_v62, %v2240_v26  ;;  %v7977_v19 = vld [vmem:[#allocation2 + $0x48] sm:$0xf] }
  0xb1   : > { %v2245_v12 = vrot.slane %v2240_v26, 4  ;;  %v2252_v34 = vor.u32 %v2250_v55, %v2249_v22  ;;  %v2260_v59 = vshrl.u32 %v7941_v38, 16  ;;  %6829 = vmatprep.mubr.msk.bf16.mxu1 %vm981_vm7, %v6136_v1  ;;  %v541_v41 = vld [vmem:[#allocation2 + $0xf0] sm:$0x8]  ;;  %v2263_v51 = vshll.u32 %v7941_v38, 16 }
  0xb2   : > { %v1889_v61 = vsel %vm7551_vm13, %v1884_v11, %v1888_v29  ;;  %v6187_v52 = vrot.slane %v2233_v14, 11  ;;  %v2269_v37 = vshrl.u32 %v7946_v60, 16  ;;  %v877_v23 = vshrl.u32 %v541_v41, 16  ;;  %v2198_v29 = vld [vmem:[#allocation2 + $0x58] sm:$0xf] }
  0xb3   : > { %v6170_v32 = vcombine.low %v1879_v4, %v1889_v61  ;;  %v2253_v16 = vsel %vm7269_vm10, %v2245_v12, %v2252_v34  ;;  %v2262_v48 = vrot.slane %v2260_v59, 7  ;;  %v2272_v25 = vshll.u32 %v7946_v60, 16  ;;  %v2196_v59 = vld [vmem:[#allocation2 + $0x50] sm:$0x8] }
  0xb4   : > { %v2244_v47 = vsel %vm7269_vm10, %v6187_v52, %v2243_v46  ;;  %v2271_v17 = vrot.slane %v2269_v37, 7  ;;  %v6238_v53 = vcombine.low %v7941_v38, %v7946_v60  ;;  %v6088_v24 = vrot.slane %v877_v23, 11 }
  0xb5   : > { %6864 = vmatmul.mubr.msk.bf16.gmra.mxu0 %vm981_vm7, %v6170_v32  ;;  %v6204_v27 = vcombine.low %v2244_v47, %v2253_v16  ;;  %v2255_v33 = vshrl.u32 %v2187_v40, 16  ;;  %v2265_v43 = vor.u32 %v2263_v51, %v2262_v48  ;;  %v2267_v49 = vrot.slane %v2262_v48, 4  ;;  %v8004_v16 = vld [vmem:[#allocation2 + $0x64] sm:$0xf]  ;;  %v8006_v48 = vld [vmem:[#allocation2 + $0x68] sm:$0xf] }
  0xb6   : > { %6903 = vmatprep.mubr.msk.bf16.mxu0 %vm981_vm7, %v6237_v54  ;;  %v2274_v58 = vor.u32 %v2272_v25, %v2271_v17  ;;  %v7966_v18 = vsel %vm1030_vm0, %v7753_v7, 0  ;;  %v4430_v20 = vsel %vm1030_vm0, %v7763_v30, 0  ;;  %v888_v15 = vsel %vm7269_vm10, %v6088_v24, %v7925_v50  ;;  %v2193_v50 = vld [vmem:[#allocation2 + $0x40] sm:$0x8]  ;;  %v7994_v54 = vld [vmem:[%s9220_s1 + $0x10] sm:$0x3] }
  0xb7   : > { %v6188_v3 = vrot.slane %v2255_v33, 11  ;;  %v2282_v44 = vshrl.u32 %v2191_v36, 16  ;;  %v2285_v13 = vshll.u32 %v2191_v36, 16  ;;  %v6137_v10 = vcombine.low %v888_v15, %v897_v39  ;;  %v7984_v39 = vld [vmem:[#allocation2 + $0x54] sm:$0xf] }
  0xb8   : > { %v2275_v2 = vsel %vm7269_vm10, %v2267_v49, %v2274_v58  ;;  %v2291_v6 = vshrl.u32 %v2192_v21, 16  ;;  %v2294_v7 = vshll.u32 %v2192_v21, 16  ;;  %v6239_v45 = vcombine.low %v2191_v36, %v2192_v21  ;;  %v2199_v36 = vld [vmem:[#allocation2 + $0x60] sm:$0x8]  ;;  %v8015_v21 = vld [vmem:[#allocation2 + $0x74] sm:$0xf] }
  0xb9   : > { %v2266_v30 = vsel %vm7269_vm10, %v6188_v3, %v2265_v43  ;;  %v2284_v57 = vrot.slane %v2282_v44, 7  ;;  %v2277_v0 = vshrl.u32 %v2190_v56, 16  ;;  %6830 = vmatmul.mubr.msk.bf16.gmra.mxu1 %vm981_vm7, %v6137_v10  ;;  %v2304_v4 = vshrl.u32 %v7973_v35, 16  ;;  %v8020_v49 = vld [vmem:[%s9220_s1 + $0xe] sm:$0x3] }
  0xba   : > { %v6205_v62 = vcombine.low %v2266_v30, %v2275_v2  ;;  %v2293_v42 = vrot.slane %v2291_v6, 7  ;;  %v2307_v63 = vshll.u32 %v7973_v35, 16  ;;  %6869 = vmatprep.mubr.msk.bf16.mxu1 %vm981_vm7, %v6204_v27  ;;  %v2313_v11 = vshrl.u32 %v7977_v19, 16  ;;  %v2204_v3 = vld [vmem:[#allocation2 + $0x78] sm:$0xf] }
  0xbb   : > { %v6189_v26 = vrot.slane %v2277_v0, 11  ;;  %v2287_v38 = vor.u32 %v2285_v13, %v2284_v57  ;;  %v2289_v28 = vrot.slane %v2284_v57, 4  ;;  %v2306_v55 = vrot.slane %v2304_v4, 7  ;;  %v2202_v0 = vld [vmem:[#allocation2 + $0x70] sm:$0x8] }
  0xbc   : > { %v2296_v22 = vor.u32 %v2294_v7, %v2293_v42  ;;  %v2316_v60 = vshll.u32 %v7977_v19, 16  ;;  %v6240_v1 = vcombine.low %v7973_v35, %v7977_v19  ;;  %v2315_v46 = vrot.slane %v2313_v11, 7 }
  0xbd   : > { %6904 = vmatmul.mubr.msk.bf16.vlgmr.msra.gmra.mxu0 %vm981_vm7, %v6238_v53  ;;  %v2288_v14 = vsel %vm7269_vm10, %v6189_v26, %v2287_v38  ;;  %v2299_v12 = vshrl.u32 %v2193_v50, 16  ;;  %v2326_v34 = vshrl.u32 %v7984_v39, 16  ;;  %v2309_v61 = vor.u32 %v2307_v63, %v2306_v55  ;;  %v8041_v63 = vld [vmem:[#allocation2 + $0x84] sm:$0xf] }
  0xbe   : > { %6970 = vmatpush3.bf16.msra.mxu0 %v4430_v20  ;;  %6907 = vmatprep.mubr.msk.bf16.mxu0 %vm981_vm7, %v6239_v45  ;;  %v2297_v40 = vsel %vm7269_vm10, %v2289_v28, %v2296_v22  ;;  %v2311_v41 = vrot.slane %v2306_v55, 4  ;;  %v2329_v52 = vshll.u32 %v7984_v39, 16  ;;  %v2318_v32 = vor.u32 %v2316_v60, %v2315_v46 }
  0xbf   : > { %v6206_v51 = vcombine.low %v2288_v14, %v2297_v40  ;;  %v6190_v37 = vrot.slane %v2299_v12, 11  ;;  %v2328_v23 = vrot.slane %v2326_v34, 7  ;;  %7082 = vmatprep.subr.msk.bf16.mxu0 %vm1030_vm0, %v7994_v54  ;;  %v2335_v47 = vshrl.u32 %v2198_v29, 16  ;;  %v2205_v34 = vld [vmem:[#allocation2 + $0x80] sm:$0x8] }
  0xc0   : > { %v2338_v17 = vshll.u32 %v2198_v29, 16  ;;  %v6241_v25 = vcombine.low %v7984_v39, %v2198_v29  ;;  %v2321_v53 = vshrl.u32 %v2196_v59, 16  ;;  %v2319_v27 = vsel %vm7269_vm10, %v2311_v41, %v2318_v32  ;;  %v8051_v59 = vld [vmem:[#allocation2 + $0x94] sm:$0xf] }
  0xc1   : > { %v2310_v24 = vsel %vm7269_vm10, %v6190_v37, %v2309_v61  ;;  %v2331_v33 = vor.u32 %v2329_v52, %v2328_v23  ;;  %v2333_v43 = vrot.slane %v2328_v23, 4  ;;  %6870 = vmatmul.mubr.msk.bf16.vlgmr.msra.gmra.mxu1 %vm981_vm7, %v6205_v62  ;;  %v2337_v20 = vrot.slane %v2335_v47, 7 }
  0xc2   : > { %v6207_v58 = vcombine.low %v2310_v24, %v2319_v27  ;;  %v6191_v56 = vrot.slane %v2321_v53, 11  ;;  %v2348_v15 = vshrl.u32 %v8004_v16, 16  ;;  %6936 = vmatpush3.bf16.msra.mxu1 %v7966_v18  ;;  %6873 = vmatprep.mubr.msk.bf16.mxu1 %vm981_vm7, %v6206_v51  ;;  %v2351_v44 = vshll.u32 %v8004_v16, 16  ;;  %v2208_v53 = vld [vmem:[#allocation2 + $0x90] sm:$0x8] }
  0xc3   : > { %v2357_v13 = vshrl.u32 %v8006_v48, 16  ;;  %v2360_v35 = vshll.u32 %v8006_v48, 16  ;;  %v6242_v10 = vcombine.low %v8004_v16, %v8006_v48  ;;  %v2340_v6 = vor.u32 %v2338_v17, %v2337_v20  ;;  %7081 = vmatprep.subr.msk.bf16.mxu1 %vm1030_vm0, %v8020_v49  ;;  %v2210_v16 = vld [vmem:[#allocation2 + $0x98] sm:$0xf] }
  0xc4   : > { %v2332_v2 = vsel %vm7269_vm10, %v6191_v56, %v2331_v33  ;;  %v2350_v7 = vrot.slane %v2348_v15, 7  ;;  %v2343_v19 = vshrl.u32 %v2199_v36, 16  ;;  %v2370_v30 = vshrl.u32 %v8015_v21, 16  ;;  %v8068_v56 = vld [vmem:[#allocation2 + $0xa4] sm:$0xf] }
  0xc5   : > { %6908 = vmatmul.mubr.msk.bf16.gmra.mxu0 %vm981_vm7, %v6240_v1  ;;  %v2359_v18 = vrot.slane %v2357_v13, 7  ;;  %v2373_v57 = vshll.u32 %v8015_v21, 16  ;;  %v2379_v45 = vshrl.u32 %v2204_v3, 16  ;;  %v2341_v50 = vsel %vm7269_vm10, %v2333_v43, %v2340_v6  ;;  %v8046_v1 = vld [vmem:[#allocation2 + $0x88] sm:$0xf] }
  0xc6   : > { %6911 = vmatprep.mubr.msk.bf16.mxu0 %vm981_vm7, %v6241_v25  ;;  %v6192_v62 = vrot.slane %v2343_v19, 11  ;;  %v2353_v42 = vor.u32 %v2351_v44, %v2350_v7  ;;  %v2355_v4 = vrot.slane %v2350_v7, 4  ;;  %v6208_v39 = vcombine.low %v2332_v2, %v2341_v50  ;;  %v2211_v19 = vld [vmem:[#allocation2 + $0xa0] sm:$0x8] }
  0xc7   : > { %v2362_v26 = vor.u32 %v2360_v35, %v2359_v18  ;;  %v2372_v38 = vrot.slane %v2370_v30, 7  ;;  %v2381_v28 = vrot.slane %v2379_v45, 7  ;;  %v2382_v22 = vshll.u32 %v2204_v3, 16  ;;  %v8071_v35 = vld [vmem:[#allocation2 + $0xa8] sm:$0xf] }
  0xc8   : > { %v2354_v11 = vsel %vm7269_vm10, %v6192_v62, %v2353_v42  ;;  %v6243_v55 = vcombine.low %v8015_v21, %v2204_v3  ;;  %v2365_v60 = vshrl.u32 %v2202_v0, 16  ;;  %v2392_v12 = vshrl.u32 %v8041_v63, 16  ;;  %v8079_v0 = vld [vmem:[#allocation2 + $0xb4] sm:$0xf] }
  0xc9   : > { %v2363_v29 = vsel %vm7269_vm10, %v2355_v4, %v2362_v26  ;;  %v2375_v14 = vor.u32 %v2373_v57, %v2372_v38  ;;  %v2377_v46 = vrot.slane %v2372_v38, 4  ;;  %6874 = vmatmul.mubr.msk.bf16.gmra.mxu1 %vm981_vm7, %v6207_v58  ;;  %v2384_v41 = vor.u32 %v2382_v22, %v2381_v28  ;;  %v2216_v28 = vld [vmem:[#allocation2 + $0xb8] sm:$0xf] }
  0xca   : > { %v6209_v40 = vcombine.low %v2354_v11, %v2363_v29  ;;  %v6193_v61 = vrot.slane %v2365_v60, 11  ;;  %v2395_v52 = vshll.u32 %v8041_v63, 16  ;;  %6877 = vmatprep.mubr.msk.bf16.mxu1 %vm981_vm7, %v6208_v39  ;;  %v2394_v51 = vrot.slane %v2392_v12, 7  ;;  %v2214_v11 = vld [vmem:[#allocation2 + $0xb0] sm:$0x8] }
  0xcb   : > { %v2401_v37 = vshrl.u32 %v8046_v1, 16  ;;  %v2404_v32 = vshll.u32 %v8046_v1, 16  ;;  %v6244_v23 = vcombine.low %v8041_v63, %v8046_v1  ;;  %v2385_v47 = vsel %vm7269_vm10, %v2377_v46, %v2384_v41  ;;  %v8093_v29 = vld [vmem:[#allocation2 + $0xc4] sm:$0xf] }
  0xcc   : > { %v2376_v48 = vsel %vm7269_vm10, %v6193_v61, %v2375_v14  ;;  %v2387_v17 = vshrl.u32 %v2205_v34, 16  ;;  %v2414_v25 = vshrl.u32 %v8051_v59, 16  ;;  %v2397_v27 = vor.u32 %v2395_v52, %v2394_v51 }
  0xcd   : > { %6912 = vmatmul.mubr.msk.bf16.gmra.mxu0 %vm981_vm7, %v6242_v10  ;;  %v6210_v36 = vcombine.low %v2376_v48, %v2385_v47  ;;  %v2403_v24 = vrot.slane %v2401_v37, 7  ;;  %v2399_v33 = vrot.slane %v2394_v51, 4  ;;  %v2417_v58 = vshll.u32 %v8051_v59, 16 }
  0xce   : > { %6915 = vmatprep.mubr.msk.bf16.mxu0 %vm981_vm7, %v6243_v55  ;;  %v6194_v43 = vrot.slane %v2387_v17, 11  ;;  %v2416_v21 = vrot.slane %v2414_v25, 7  ;;  %v2423_v20 = vshrl.u32 %v2210_v16, 16  ;;  %v2426_v3 = vshll.u32 %v2210_v16, 16  ;;  %v2217_v25 = vld [vmem:[#allocation2 + $0xc0] sm:$0x8] }
  0xcf   : > { %v2406_v15 = vor.u32 %v2404_v32, %v2403_v24  ;;  %v6245_v44 = vcombine.low %v8051_v59, %v2210_v16  ;;  %v2409_v13 = vshrl.u32 %v2208_v53, 16  ;;  %v2436_v57 = vshrl.u32 %v8068_v56, 16  ;;  %v8100_v32 = vld [vmem:[#allocation2 + $0xc8] sm:$0xf] }
  0xd0   : > { %v2398_v10 = vsel %vm7269_vm10, %v6194_v43, %v2397_v27  ;;  %v2425_v2 = vrot.slane %v2423_v20, 7  ;;  %v2419_v6 = vor.u32 %v2417_v58, %v2416_v21  ;;  %v2421_v7 = vrot.slane %v2416_v21, 4 }
  0xd1   : > { %v2407_v18 = vsel %vm7269_vm10, %v2399_v33, %v2406_v15  ;;  %v6195_v30 = vrot.slane %v2409_v13, 11  ;;  %v2439_v45 = vshll.u32 %v8068_v56, 16  ;;  %6878 = vmatmul.mubr.msk.bf16.gmra.mxu1 %vm981_vm7, %v6209_v40  ;;  %v2445_v42 = vshrl.u32 %v8071_v35, 16  ;;  %v8106_v33 = vld [vmem:[#allocation2 + $0xd4] sm:$0xf] }
  0xd2   : > { %v6211_v50 = vcombine.low %v2398_v10, %v2407_v18  ;;  %v2428_v62 = vor.u32 %v2426_v3, %v2425_v2  ;;  %v2448_v4 = vshll.u32 %v8071_v35, 16  ;;  %6881 = vmatprep.mubr.msk.bf16.mxu1 %vm981_vm7, %v6210_v36  ;;  %v2438_v39 = vrot.slane %v2436_v57, 7 }
  0xd3   : > { %v2420_v63 = vsel %vm7269_vm10, %v6195_v30, %v2419_v6  ;;  %v6246_v26 = vcombine.low %v8068_v56, %v8071_v35  ;;  %v2431_v38 = vshrl.u32 %v2211_v19, 16  ;;  %v2447_v55 = vrot.slane %v2445_v42, 7  ;;  %v2222_v56 = vld [vmem:[#allocation2 + $0xd8] sm:$0xf]  ;;  %v2220_v35 = vld [vmem:[#allocation2 + $0xd0] sm:$0x8] }
  0xd4   : > { %v2429_v22 = vsel %vm7269_vm10, %v2421_v7, %v2428_v62  ;;  %v2458_v60 = vshrl.u32 %v8079_v0, 16  ;;  %v2461_v1 = vshll.u32 %v8079_v0, 16  ;;  %v2441_v12 = vor.u32 %v2439_v45, %v2438_v39  ;;  %v8120_v19 = vld [vmem:[#allocation2 + $0xe4] sm:$0xf] }
  0xd5   : > { %6916 = vmatmul.mubr.msk.bf16.gmra.mxu0 %vm981_vm7, %v6244_v23  ;;  %v6212_v14 = vcombine.low %v2420_v63, %v2429_v22  ;;  %v6196_v46 = vrot.slane %v2431_v38, 11  ;;  %v2443_v34 = vrot.slane %v2438_v39, 4  ;;  %v2450_v59 = vor.u32 %v2448_v4, %v2447_v55  ;;  %v8125_v4 = vld [vmem:[#allocation2 + $0xe8] sm:$0xf] }
  0xd6   : > { %6919 = vmatprep.mubr.msk.bf16.mxu0 %vm981_vm7, %v6245_v44  ;;  %v2460_v40 = vrot.slane %v2458_v60, 7  ;;  %v2467_v61 = vshrl.u32 %v2216_v28, 16  ;;  %v2470_v41 = vshll.u32 %v2216_v28, 16  ;;  %v6247_v51 = vcombine.low %v8079_v0, %v2216_v28  ;;  %v2223_v28 = vld [vmem:[#allocation2 + $0xe0] sm:$0x8] }
  0xd7   : > { %v2442_v52 = vsel %vm7269_vm10, %v6196_v46, %v2441_v12  ;;  %v2453_v37 = vshrl.u32 %v2214_v11, 16  ;;  %v2480_v23 = vshrl.u32 %v8093_v29, 16  ;;  %v2451_v16 = vsel %vm7269_vm10, %v2443_v34, %v2450_v59  ;;  %v8134_v12 = vld [vmem:[#allocation2 + $0xf4] sm:$0xf] }
  0xd8   : > { %v2469_v48 = vrot.slane %v2467_v61, 7  ;;  %v2463_v47 = vor.u32 %v2461_v1, %v2460_v40  ;;  %v2465_v17 = vrot.slane %v2460_v40, 4  ;;  %v6213_v53 = vcombine.low %v2442_v52, %v2451_v16  ;;  %v334_v16 = vld [vmem:[%s7236_s23 + $0xf0] sm:$0xff] }
  0xd9   : > { %v6197_v36 = vrot.slane %v2453_v37, 11  ;;  %v2482_v24 = vrot.slane %v2480_v23, 7  ;;  %v2483_v27 = vshll.u32 %v8093_v29, 16  ;;  %6882 = vmatmul.mubr.msk.bf16.gmra.mxu1 %vm981_vm7, %v6211_v50  ;;  %v2489_v21 = vshrl.u32 %v8100_v32, 16  ;;  %v2226_v23 = vld [vmem:[#allocation2 + $0xf0] sm:$0x8] }
  0xda   : > { %v2472_v43 = vor.u32 %v2470_v41, %v2469_v48  ;;  %v2492_v58 = vshll.u32 %v8100_v32, 16  ;;  %v6248_v20 = vcombine.low %v8093_v29, %v8100_v32  ;;  %6885 = vmatprep.mubr.msk.bf16.mxu1 %vm981_vm7, %v6212_v14  ;;  %v2475_v3 = vshrl.u32 %v2217_v25, 16  ;;  %v8142_v41 = vld [vmem:[#allocation2 + $0xf8] sm:$0xf] }
  0xdb   : > { %v2464_v15 = vsel %vm7269_vm10, %v6197_v36, %v2463_v47  ;;  %v2485_v44 = vor.u32 %v2483_v27, %v2482_v24  ;;  %v2487_v13 = vrot.slane %v2482_v24, 4  ;;  %v2491_v2 = vrot.slane %v2489_v21, 7  ;;  %v253_v36 = vld [vmem:[#allocation2 + $0x100] sm:$0x8] }
  0xdc   : > { %v2473_v10 = vsel %vm7269_vm10, %v2465_v17, %v2472_v43  ;;  %v2502_v6 = vshrl.u32 %v8106_v33, 16  ;;  %v2505_v7 = vshll.u32 %v8106_v33, 16  ;;  %v6198_v30 = vrot.slane %v2475_v3, 11  ;;  %v3931_v3 = vld [vmem:[#allocation2 + $0x20] sm:$0x8] }
  0xdd   : > { %6920 = vmatmul.mubr.msk.bf16.gmra.mxu0 %vm981_vm7, %v6246_v26  ;;  %v6214_v18 = vcombine.low %v2464_v15, %v2473_v10  ;;  %v2511_v57 = vshrl.u32 %v2222_v56, 16  ;;  %v2514_v45 = vshll.u32 %v2222_v56, 16  ;;  %v2494_v0 = vor.u32 %v2492_v58, %v2491_v2  ;;  %v3933_v2 = vld [vmem:[#allocation2 + $0x28] sm:$0xf] }
  0xde   : > { %6923 = vmatprep.mubr.msk.bf16.mxu0 %vm981_vm7, %v6247_v51  ;;  %v2504_v50 = vrot.slane %v2502_v6, 7  ;;  %v6249_v62 = vcombine.low %v8106_v33, %v2222_v56  ;;  %v2497_v42 = vshrl.u32 %v2220_v35, 16  ;;  %v2486_v63 = vsel %vm7269_vm10, %v6198_v30, %v2485_v44  ;;  %v3932_v44 = vld [vmem:[#allocation2 + $0x24] sm:$0xf]  ;;  %v3204_v6 = vld [vmem:[#allocation2 + $0x14] sm:$0xf] }
  0xdf   : > { %v2513_v39 = vrot.slane %v2511_v57, 7  ;;  %v2524_v38 = vshrl.u32 %v8120_v19, 16  ;;  %v2527_v26 = vshll.u32 %v8120_v19, 16  ;;  %v2495_v11 = vsel %vm7269_vm10, %v2487_v13, %v2494_v0 }
  0xe0   : > { %v6199_v22 = vrot.slane %v2497_v42, 11  ;;  %v2507_v55 = vor.u32 %v2505_v7, %v2504_v50  ;;  %v2509_v60 = vrot.slane %v2504_v50, 4  ;;  %v6215_v1 = vcombine.low %v2486_v63, %v2495_v11  ;;  %v3205_v42 = vld [vmem:[#allocation2 + $0x18] sm:$0xf] }
  0xe1   : > { %v2516_v29 = vor.u32 %v2514_v45, %v2513_v39  ;;  %v2526_v14 = vrot.slane %v2524_v38, 7  ;;  %v2533_v46 = vshrl.u32 %v8125_v4, 16  ;;  %6886 = vmatmul.mubr.msk.bf16.gmra.mxu1 %vm981_vm7, %v6213_v53  ;;  %v2536_v59 = vshll.u32 %v8125_v4, 16  ;;  %v335_v53 = vld [vmem:[%s7236_s23 + $0xf8] sm:$0xff] }
  0xe2   : > { %v2508_v34 = vsel %vm7269_vm10, %v6199_v22, %v2507_v55  ;;  %v6250_v40 = vcombine.low %v8120_v19, %v8125_v4  ;;  %v2519_v61 = vshrl.u32 %v2223_v28, 16  ;;  %6889 = vmatprep.mubr.msk.bf16.mxu1 %vm981_vm7, %v6214_v18  ;;  %v2546_v17 = vshrl.u32 %v8134_v12, 16 }
  0xe3   : > { %v2517_v52 = vsel %vm7269_vm10, %v2509_v60, %v2516_v29  ;;  %v2535_v51 = vrot.slane %v2533_v46, 7  ;;  %v2529_v37 = vor.u32 %v2527_v26, %v2526_v14  ;;  %v2531_v32 = vrot.slane %v2526_v14, 4  ;;  %v3206_v26 = vld [vmem:[#allocation2 + $0x1c] sm:$0x1]  ;;  %v3934_v29 = vld [vmem:[#allocation2 + $0x30] sm:$0x8] }
  0xe4   : > { %v6216_v48 = vcombine.low %v2508_v34, %v2517_v52  ;;  %v6200_v47 = vrot.slane %v2519_v61, 11  ;;  %v2549_v25 = vshll.u32 %v8134_v12, 16  ;;  %v2555_v27 = vshrl.u32 %v8142_v41, 16  ;;  %v8171_v34 = vld [vmem:[#allocation2 + $0x34] sm:$0xf] }
  0xe5   : > { %6924 = vmatmul.mubr.msk.bf16.gmra.mxu0 %vm981_vm7, %v6248_v20  ;;  %v2538_v24 = vor.u32 %v2536_v59, %v2535_v51  ;;  %v2558_v33 = vshll.u32 %v8142_v41, 16  ;;  %v6251_v43 = vcombine.low %v8134_v12, %v8142_v41  ;;  %v2548_v58 = vrot.slane %v2546_v17, 7 }
  0xe6   : > { %6927 = vmatprep.mubr.msk.bf16.mxu0 %vm981_vm7, %v6249_v62  ;;  %v2530_v21 = vsel %vm7269_vm10, %v6200_v47, %v2529_v37  ;;  %v2541_v56 = vshrl.u32 %v2226_v23, 16  ;;  %v6483_v15 = vpack.c.bf16 %v334_v16, %v334_v16  ;;  %v2557_v13 = vrot.slane %v2555_v27, 7  ;;  %v8178_v16 = vpop.f32.mrf.mxu0 }
  0xe7   : > { %v2539_v20 = vsel %vm7269_vm10, %v2531_v32, %v2538_v24  ;;  %v6484_v35 = vpack.c.bf16 %v335_v53, %v335_v53  ;;  %v254_v10 = vsel %vm7238_vm9, 0, %v253_v36  ;;  %v2551_v30 = vor.u32 %v2549_v25, %v2548_v58 }
  0xe8   : > { %v6217_v7 = vcombine.low %v2530_v21, %v2539_v20  ;;  %v6201_v18 = vrot.slane %v2541_v56, 11  ;;  %v2553_v57 = vrot.slane %v2548_v58, 4  ;;  %494 = vst.msk [vmem:[#allocation2 + $0x104] sm:$0xf] %vm189_vm1, %v6483_v15  ;;  %255 = vst [vmem:[#allocation2 + $0x100] sm:$0x8] %v254_v10  ;;  %v2560_v45 = vor.u32 %v2558_v33, %v2557_v13  ;;  %v8185_v33 = vpop.f32.mrf.mxu0 }
  0xe9   : > { %495 = vst.msk [vmem:[#allocation2 + $0x108] sm:$0xf] %vm189_vm1, %v6484_v35  ;;  %v3980_v0 = vshrl.u32 %v3931_v3, 16  ;;  %v3985_v50 = vshrl.u32 %v3932_v44, 16  ;;  %v3988_v62 = vshll.u32 %v3932_v44, 16  ;;  %6890 = vmatmul.mubr.msk.bf16.gmra.mxu1 %vm981_vm7, %v6215_v1  ;;  %v3994_v39 = vshrl.u32 %v3933_v2, 16 }
  0xea   : > { %v2552_v63 = vsel %vm7269_vm10, %v6201_v18, %v2551_v30  ;;  %v3997_v38 = vshll.u32 %v3933_v2, 16  ;;  %v3253_v28 = vshrl.u32 %v3204_v6, 16  ;;  %6893 = vmatprep.mubr.msk.bf16.mxu1 %vm981_vm7, %v6216_v48  ;;  %v2561_v11 = vsel %vm7269_vm10, %v2553_v57, %v2560_v45  ;;  %v3936_v13 = vld [vmem:[#allocation2 + $0x38] sm:$0xf]  ;;  %v8188_v35 = vpop.f32.mrf.mxu0  ;;  %v3207_v30 = vld [vmem:[#allocation2 + $0x24] sm:$0xf]  ;;  %v8191_v57 = vpop.f32.mrf.mxu1 }
  0xeb   : > { %v6302_v22 = vrot.slane %v3980_v0, 11  ;;  %v3987_v55 = vrot.slane %v3985_v50, 7  ;;  %v3256_v60 = vshll.u32 %v3204_v6, 16  ;;  %v6218_v14 = vcombine.low %v2552_v63, %v2561_v11  ;;  %9323 = vst [vmem:[#allocation3_spill] sm:$0xff] %v8188_v35  ;;  %v3222_v35 = vld [vmem:[#allocation2 + $0x74] sm:$0xf] }
  0xec   : > { %v3996_v46 = vrot.slane %v3994_v39, 7  ;;  %v3255_v12 = vrot.slane %v3253_v28, 4  ;;  %v3262_v1 = vshll.u32 %v3205_v42, 16  ;;  %v3266_v52 = vshrl.u32 %v3205_v42, 16  ;;  %v8199_v28 = vpop.f32.mrf.mxu1 }
  0xed   : > { %6928 = vmatmul.mubr.msk.bf16.gmra.mxu0 %vm981_vm7, %v6250_v40  ;;  %v3990_v59 = vor.u32 %v3988_v62, %v3987_v55  ;;  %v3992_v61 = vrot.slane %v3987_v55, 4  ;;  %v3258_v41 = vrot.slane %v3256_v60, 5  ;;  %v3272_v32 = vshll.u32 %v3206_v26, 16  ;;  %v8195_v62 = vpop.f32.mrf.mxu0  ;;  %v3208_v26 = vld [vmem:[#allocation2 + $0x28] sm:$0xf] }
  0xee   : > { %6931 = vmatprep.mubr.msk.bf16.mxu0 %vm981_vm7, %v6251_v43  ;;  %v3999_v51 = vor.u32 %v3997_v38, %v3996_v46  ;;  %v3264_v37 = vrot.slane %v3262_v1, 5  ;;  %v4002_v23 = vshrl.u32 %v3934_v29, 16  ;;  %v3268_v4 = vrot.slane %v3266_v52, 4  ;;  %9324 = vst [vmem:[#allocation4_spill] sm:$0xff] %v8195_v62  ;;  %v3209_v60 = vld [vmem:[#allocation2 + $0x2c] sm:$0x1] }
  0xef   : > { %v2230_v48 = vld [vmem:[#allocation2 + $0x104] sm:$0xf]  ;;  %v2229_v47 = vld [vmem:[#allocation2 + $0x100] sm:$0x8]  ;;  %v3991_v17 = vsel %vm7269_vm10, %v6302_v22, %v3990_v59  ;;  %v3259_v19 = vor.u32 %v3258_v41, %v3255_v12  ;;  %v4007_v40 = vshrl.u32 %v8171_v34, 16  ;;  %v3274_v2 = vrot.slane %v3272_v32, 5  ;;  %v8210_v59 = vpop.f32.mrf.mxu1 }
  0xf0   : > { %v2231_v25 = vld [vmem:[#allocation2 + $0x108] sm:$0xf]  ;;  %v2568_v53 = vshrl.u32 %v2230_v48, 16  ;;  %v2571_v36 = vshll.u32 %v2230_v48, 16  ;;  %v2563_v24 = vshrl.u32 %v2229_v47, 16  ;;  %v4000_v27 = vsel %vm7269_vm10, %v3992_v61, %v3999_v51  ;;  %9325 = vst [vmem:[#allocation9_spill] sm:$0xff] %v8210_v59 }
  0xf1   : > { %v2577_v43 = vshrl.u32 %v2231_v25, 16  ;;  %v2580_v21 = vshll.u32 %v2231_v25, 16  ;;  %v6252_v58 = vcombine.low %v2230_v48, %v2231_v25  ;;  %v6319_v56 = vcombine.low %v3991_v17, %v4000_v27  ;;  %6894 = vmatmul.mubr.msk.bf16.gmra.mxu1 %vm981_vm7, %v6217_v7 }
  0xf2   : > { %v2570_v15 = vrot.slane %v2568_v53, 7  ;;  %v6202_v3 = vrot.slane %v2563_v24, 11  ;;  %v3260_v44 = vrot.slane %v3259_v19, 4  ;;  %v3269_v20 = vor.u32 %v3268_v4, %v3264_v37  ;;  %6897 = vmatprep.mubr.msk.bf16.mxu1 %vm981_vm7, %v6218_v14  ;;  %v8206_v14 = vpop.f32.mrf.mxu0  ;;  %v3938_v19 = vld [vmem:[#allocation2 + $0x44] sm:$0xf]  ;;  %v8216_v4 = vpop.f32.mrf.mxu1 }
  0xf3   : > { %v2579_v10 = vrot.slane %v2577_v43, 7  ;;  %v6303_v6 = vrot.slane %v4002_v23, 11  ;;  %v4009_v18 = vrot.slane %v4007_v40, 7  ;;  %v4010_v63 = vshll.u32 %v8171_v34, 16  ;;  %9326 = vst [vmem:[#allocation5_spill] sm:$0xff] %v8216_v4 }
  0xf4   : > { %v2573_v45 = vor.u32 %v2571_v36, %v2570_v15  ;;  %v2575_v0 = vrot.slane %v2570_v15, 4  ;;  %v3265_v7 = vsel %vm7551_vm13, %v3260_v44, %v3264_v37  ;;  %v3270_v50 = vrot.slane %v3269_v20, 4  ;;  %v3937_v37 = vld [vmem:[#allocation2 + $0x40] sm:$0x8]  ;;  %v8212_v32 = vpop.f32.mrf.mxu0  ;;  %v3939_v24 = vld [vmem:[#allocation2 + $0x48] sm:$0xf] }
  0xf5   : > { %6932 = vmatmul.mubr.msk.bf16.gmra.mxu0 %vm981_vm7, %v6252_v58  ;;  %v2582_v42 = vor.u32 %v2580_v21, %v2579_v10  ;;  %v4014_v39 = vrot.slane %v4009_v18, 4  ;;  %v4016_v38 = vshrl.u32 %v3936_v13, 16  ;;  %v4019_v55 = vshll.u32 %v3936_v13, 16  ;;  %v3210_v15 = vld [vmem:[#allocation2 + $0x34] sm:$0xf] }
  0xf6   : > { %v2574_v11 = vsel %vm7269_vm10, %v6202_v3, %v2573_v45  ;;  %6971 = vmatprep.mubr.msk.bf16.mxu0 %vm981_vm7, %v6319_v56  ;;  %v3275_v22 = vsel %vm7551_vm13, %v3270_v50, %v3274_v2  ;;  %v3277_v29 = vshrl.u32 %v3207_v30, 16  ;;  %v4012_v1 = vor.u32 %v4010_v63, %v4009_v18  ;;  %v8225_v27 = vpop.f32.mrf.mxu0  ;;  %v8230_v3 = vpop.f32.mrf.mxu1  ;;  %v3211_v10 = vld [vmem:[#allocation2 + $0x38] sm:$0xf] }
  0xf7   : > { %v2583_v46 = vsel %vm7269_vm10, %v2575_v0, %v2582_v42  ;;  %v6270_v12 = vcombine.low %v3265_v7, %v3275_v22  ;;  %v4018_v34 = vrot.slane %v4016_v38, 7  ;;  %v3280_v52 = vshll.u32 %v3207_v30, 16  ;;  %9327 = vst [vmem:[#allocation10_spill] sm:$0xff] %v8225_v27  ;;  %9328 = vst [vmem:[#allocation6_spill] sm:$0xff] %v8230_v3  ;;  %v3974_v3 = vld [vmem:[#allocation2 + $0x104] sm:$0xf] }
  0xf8   : > { %v6219_v61 = vcombine.low %v2574_v11, %v2583_v46  ;;  %v3279_v41 = vrot.slane %v3277_v29, 4  ;;  %v3286_v51 = vshll.u32 %v3208_v26, 16  ;;  %v4013_v23 = vsel %vm7269_vm10, %v6303_v6, %v4012_v1  ;;  %v8234_v45 = vpop.f32.mrf.mxu1  ;;  %v3940_v1 = vld [vmem:[#allocation2 + $0x50] sm:$0x8] }
  0xf9   : > { %v4021_v48 = vor.u32 %v4019_v55, %v4018_v34  ;;  %v3290_v47 = vshrl.u32 %v3208_v26, 16  ;;  %v3296_v17 = vshll.u32 %v3209_v60, 16  ;;  %v3282_v40 = vrot.slane %v3280_v52, 5  ;;  %9329 = vst [vmem:[#allocation11_spill] sm:$0xff] %v8234_v45  ;;  %v3212_v26 = vld [vmem:[#allocation2 + $0x3c] sm:$0x1] }
  0xfa   : > { %6898 = vmatmul.mubr.msk.bf16.gmra.mxu1 %vm981_vm7, %v6219_v61  ;;  %v3288_v25 = vrot.slane %v3286_v51, 5  ;;  %v8221_v53 = vsel %vm1030_vm0, %v8020_v49, 0  ;;  %v5482_v36 = vsel %vm1030_vm0, %v7994_v54, 0  ;;  %v4024_v56 = vshrl.u32 %v3937_v37, 16  ;;  %v8232_v54 = vpop.f32.mrf.mxu0  ;;  %v8239_v55 = vpop.f32.mrf.mxu1  ;;  %v3941_v34 = vld [vmem:[#allocation2 + $0x54] sm:$0xf] }
  0xfb   : > { %6937 = vmatprep.mubr.msk.bf16.mxu1 %vm981_vm7, %v6270_v12  ;;  %v4022_v43 = vsel %vm7269_vm10, %v4014_v39, %v4021_v48  ;;  %v3292_v21 = vrot.slane %v3290_v47, 4  ;;  %v3298_v58 = vrot.slane %v3296_v17, 5  ;;  %v3283_v49 = vor.u32 %v3282_v40, %v3279_v41  ;;  %9330 = vst [vmem:[#allocation7_spill] sm:$0xff] %v8239_v55  ;;  %v3942_v40 = vld [vmem:[#allocation2 + $0x58] sm:$0xf] }
  0xfc   : > { %v6320_v44 = vcombine.low %v4013_v23, %v4022_v43  ;;  %v4029_v20 = vshrl.u32 %v3938_v19, 16  ;;  %v4032_v13 = vshll.u32 %v3938_v19, 16  ;;  %v6304_v6 = vrot.slane %v4024_v56, 11  ;;  %v8237_v63 = vpop.f32.mrf.mxu0  ;;  %v8247_v23 = vpop.f32.mrf.mxu1  ;;  %v3240_v55 = vld [vmem:[#allocation2 + $0xd4] sm:$0xf] }
  0xfd   : > { %v3293_v2 = vor.u32 %v3292_v21, %v3288_v25  ;;  %v4038_v18 = vshrl.u32 %v3939_v24, 16  ;;  %v4041_v30 = vshll.u32 %v3939_v24, 16  ;;  %v3284_v0 = vrot.slane %v3283_v49, 4  ;;  %9331 = vst [vmem:[#allocation13_spill] sm:$0xff] %v8247_v23 }
  0xfe   : > { %6972 = vmatmul.mubr.msk.bf16.vlgmr.msra.gmra.mxu0 %vm981_vm7, %v6320_v44  ;;  %v4031_v7 = vrot.slane %v4029_v20, 7  ;;  %v3301_v50 = vshrl.u32 %v3210_v15, 16  ;;  %v3304_v42 = vshll.u32 %v3210_v15, 16  ;;  %v3310_v11 = vshll.u32 %v3211_v10, 16  ;;  %v8243_v61 = vpop.f32.mrf.mxu0  ;;  %v8255_v56 = vpop.f32.mrf.mxu1 }
  0xff   : > { %v3294_v39 = vrot.slane %v3293_v2, 4  ;;  %7038 = vmatpush3.bf16.msra.mxu0 %v5482_v36  ;;  %v4040_v38 = vrot.slane %v4038_v18, 7  ;;  %v3314_v22 = vshrl.u32 %v3211_v10, 16  ;;  %v3289_v60 = vsel %vm7551_vm13, %v3284_v0, %v3288_v25  ;;  %9332 = vst [vmem:[#allocation8_spill] sm:$0xff] %v8255_v56 }
 0x100   : > { %v4034_v29 = vor.u32 %v4032_v13, %v4031_v7  ;;  %v4036_v46 = vrot.slane %v4031_v7, 4  ;;  %v3303_v12 = vrot.slane %v3301_v50, 4  ;;  %v3306_v51 = vrot.slane %v3304_v42, 5  ;;  %v8251_v25 = vpop.f32.mrf.mxu0  ;;  %v8261_v0 = vpop.f32.mrf.mxu1 }
 0x101   : > { %v3299_v41 = vsel %vm7551_vm13, %v3294_v39, %v3298_v58  ;;  %v4043_v52 = vor.u32 %v4041_v30, %v4040_v38  ;;  %v3312_v37 = vrot.slane %v3310_v11, 5  ;;  %v3316_v17 = vrot.slane %v3314_v22, 4  ;;  %v3213_v58 = vld [vmem:[#allocation2 + $0x44] sm:$0xf]  ;;  %v3214_v30 = vld [vmem:[#allocation2 + $0x48] sm:$0xf] }
 0x102   : > { %v6271_v48 = vcombine.low %v3289_v60, %v3299_v41  ;;  %v4035_v47 = vsel %vm7269_vm10, %v6304_v6, %v4034_v29  ;;  %v3320_v19 = vshll.u32 %v3212_v26, 16  ;;  %v3307_v24 = vor.u32 %v3306_v51, %v3303_v12  ;;  %v8258_v13 = vpop.f32.mrf.mxu0  ;;  %9333 = vst [vmem:[#allocation17_spill] sm:$0xff] %v8261_v0  ;;  %v3943_v60 = vld [vmem:[#allocation2 + $0x60] sm:$0x8]  ;;  %v3944_v41 = vld [vmem:[#allocation2 + $0x64] sm:$0xf] }
 0x103   : > { %v4044_v36 = vsel %vm7269_vm10, %v4036_v46, %v4043_v52  ;;  %v4046_v43 = vshrl.u32 %v3940_v1, 16  ;;  %v4051_v21 = vshrl.u32 %v3941_v34, 16  ;;  %v3317_v44 = vor.u32 %v3316_v17, %v3312_v37  ;;  %v8272_v17 = vpop.f32.mrf.mxu1 }
 0x104   : > { %6938 = vmatmul.mubr.msk.bf16.vlgmr.msra.gmra.mxu1 %vm981_vm7, %v6271_v48  ;;  %v6321_v15 = vcombine.low %v4035_v47, %v4044_v36  ;;  %v3322_v49 = vrot.slane %v3320_v19, 5  ;;  %v4054_v20 = vshll.u32 %v3941_v34, 16  ;;  %v3308_v10 = vrot.slane %v3307_v24, 4  ;;  %v8266_v29 = vpop.f32.mrf.mxu0  ;;  %v3945_v47 = vld [vmem:[#allocation2 + $0x68] sm:$0xf]  ;;  %9334 = vst [vmem:[#allocation12_spill] sm:$0xff] %v8272_v17 }
 0x105   : > { %7004 = vmatpush3.bf16.msra.mxu1 %v8221_v53  ;;  %v6305_v2 = vrot.slane %v4046_v43, 11  ;;  %v4053_v6 = vrot.slane %v4051_v21, 7  ;;  %v4060_v18 = vshrl.u32 %v3942_v40, 16  ;;  %v3318_v7 = vrot.slane %v3317_v44, 4  ;;  %v3215_v53 = vld [vmem:[#allocation2 + $0x4c] sm:$0x1] }
 0x106   : > { %6975 = vmatprep.mubr.msk.bf16.mxu0 %vm981_vm7, %v6321_v15  ;;  %v4063_v50 = vshll.u32 %v3942_v40, 16  ;;  %v3325_v42 = vshrl.u32 %v3213_v58, 16  ;;  %v3328_v39 = vshll.u32 %v3213_v58, 16  ;;  %v3313_v38 = vsel %vm7551_vm13, %v3308_v10, %v3312_v37  ;;  %v3216_v43 = vld [vmem:[#allocation2 + $0x54] sm:$0xf] }
 0x107   : > { %v4056_v26 = vor.u32 %v4054_v20, %v4053_v6  ;;  %v4058_v11 = vrot.slane %v4053_v6, 4  ;;  %v4062_v22 = vrot.slane %v4060_v18, 7  ;;  %v3323_v46 = vsel %vm7551_vm13, %v3318_v7, %v3322_v49  ;;  %v3217_v49 = vld [vmem:[#allocation2 + $0x58] sm:$0xf]  ;;  %v8277_v20 = vpop.f32.mrf.mxu0 }
 0x108   : > { %v3327_v12 = vrot.slane %v3325_v42, 4  ;;  %v3330_v1 = vrot.slane %v3328_v39, 5  ;;  %v3334_v34 = vshll.u32 %v3214_v30, 16  ;;  %v6272_v52 = vcombine.low %v3313_v38, %v3323_v46  ;;  %v8279_v39 = vpop.f32.mrf.mxu1 }
 0x109   : > { %v4057_v51 = vsel %vm7269_vm10, %v6305_v2, %v4056_v26  ;;  %v4065_v48 = vor.u32 %v4063_v50, %v4062_v22  ;;  %v3338_v37 = vshrl.u32 %v3214_v30, 16  ;;  %v3344_v36 = vshll.u32 %v3215_v53, 16  ;;  %9335 = vst [vmem:[#allocation18_spill] sm:$0xff] %v8279_v39  ;;  %v3218_v26 = vld [vmem:[#allocation2 + $0x5c] sm:$0x1] }
 0x10a   : > { %v3331_v19 = vor.u32 %v3330_v1, %v3327_v12  ;;  %v3336_v40 = vrot.slane %v3334_v34, 5  ;;  %v4068_v24 = vshrl.u32 %v3943_v60, 16  ;;  %6941 = vmatprep.mubr.msk.bf16.mxu1 %vm981_vm7, %v6272_v52  ;;  %v4073_v15 = vshrl.u32 %v3944_v41, 16  ;;  %v3946_v34 = vld [vmem:[#allocation2 + $0x70] sm:$0x8] }
 0x10b   : > { %v4066_v21 = vsel %vm7269_vm10, %v4058_v11, %v4065_v48  ;;  %v3340_v58 = vrot.slane %v3338_v37, 4  ;;  %v4076_v44 = vshll.u32 %v3944_v41, 16  ;;  %v3346_v6 = vrot.slane %v3344_v36, 5  ;;  %v8284_v41 = vpop.f32.mrf.mxu0  ;;  %v3965_v39 = vld [vmem:[#allocation2 + $0xd4] sm:$0xf] }
 0x10c   : > { %v6322_v10 = vcombine.low %v4057_v51, %v4066_v21  ;;  %v3332_v2 = vrot.slane %v3331_v19, 4  ;;  %v6306_v18 = vrot.slane %v4068_v24, 11  ;;  %v4075_v7 = vrot.slane %v4073_v15, 7 }
 0x10d   : > { %v3341_v30 = vor.u32 %v3340_v58, %v3336_v40  ;;  %v4082_v50 = vshrl.u32 %v3945_v47, 16  ;;  %v4085_v42 = vshll.u32 %v3945_v47, 16  ;;  %v3349_v11 = vshrl.u32 %v3216_v43, 16  ;;  %v3947_v47 = vld [vmem:[#allocation2 + $0x74] sm:$0xf] }
 0x10e   : > { %6976 = vmatmul.mubr.msk.bf16.gmra.mxu0 %vm981_vm7, %v6322_v10  ;;  %v3337_v38 = vsel %vm7551_vm13, %v3332_v2, %v3336_v40  ;;  %v3352_v22 = vshll.u32 %v3216_v43, 16  ;;  %v3358_v53 = vshll.u32 %v3217_v49, 16  ;;  %v4078_v46 = vor.u32 %v4076_v44, %v4075_v7  ;;  %v8290_v43 = vpop.f32.mrf.mxu1  ;;  %v3948_v44 = vld [vmem:[#allocation2 + $0x78] sm:$0xf]  ;;  %v3219_v2 = vld [vmem:[#allocation2 + $0x64] sm:$0xf] }
 0x10f   : > { %v3342_v60 = vrot.slane %v3341_v30, 4  ;;  %v4080_v12 = vrot.slane %v4075_v7, 4  ;;  %v4084_v1 = vrot.slane %v4082_v50, 7  ;;  %v3351_v52 = vrot.slane %v3349_v11, 4  ;;  %9336 = vst [vmem:[#allocation14_spill] sm:$0xff] %v8290_v43 }
 0x110   : > { %v3354_v51 = vrot.slane %v3352_v22, 5  ;;  %v3360_v48 = vrot.slane %v3358_v53, 5  ;;  %v3362_v37 = vshrl.u32 %v3217_v49, 16  ;;  %v4079_v40 = vsel %vm7269_vm10, %v6306_v18, %v4078_v46  ;;  %v8294_v11 = vpop.f32.mrf.mxu1  ;;  %v8296_v18 = vpop.f32.mrf.mxu0 }
 0x111   : > { %v3347_v19 = vsel %vm7551_vm13, %v3342_v60, %v3346_v6  ;;  %v4087_v36 = vor.u32 %v4085_v42, %v4084_v1  ;;  %v3368_v24 = vshll.u32 %v3218_v26, 16  ;;  %v4090_v10 = vshrl.u32 %v3946_v34, 16  ;;  %v3220_v6 = vld [vmem:[#allocation2 + $0x68] sm:$0xf]  ;;  %9337 = vst [vmem:[#allocation19_spill] sm:$0xff] %v8294_v11 }
 0x112   : > { %v6273_v21 = vcombine.low %v3337_v38, %v3347_v19  ;;  %v3355_v58 = vor.u32 %v3354_v51, %v3351_v52  ;;  %v3364_v15 = vrot.slane %v3362_v37, 4  ;;  %v4095_v7 = vshrl.u32 %v3947_v47, 16  ;;  %v3221_v1 = vld [vmem:[#allocation2 + $0x6c] sm:$0x1]  ;;  %v3949_v19 = vld [vmem:[#allocation2 + $0x80] sm:$0x8] }
 0x113   : > { %v4088_v49 = vsel %vm7269_vm10, %v4080_v12, %v4087_v36  ;;  %v3370_v30 = vrot.slane %v3368_v24, 5  ;;  %v4098_v50 = vshll.u32 %v3947_v47, 16  ;;  %v6307_v22 = vrot.slane %v4090_v10, 11  ;;  %v8299_v12 = vpop.f32.mrf.mxu1 }
 0x114   : > { %6942 = vmatmul.mubr.msk.bf16.gmra.mxu1 %vm981_vm7, %v6273_v21  ;;  %v6323_v42 = vcombine.low %v4079_v40, %v4088_v49  ;;  %v3356_v38 = vrot.slane %v3355_v58, 4  ;;  %v3365_v26 = vor.u32 %v3364_v15, %v3360_v48  ;;  %v4097_v53 = vrot.slane %v4095_v7, 7  ;;  %9338 = vst [vmem:[#allocation15_spill] sm:$0xff] %v8299_v12  ;;  %v3950_v58 = vld [vmem:[#allocation2 + $0x84] sm:$0xf] }
 0x115   : > { %v4104_v60 = vshrl.u32 %v3948_v44, 16  ;;  %v4107_v46 = vshll.u32 %v3948_v44, 16  ;;  %v3373_v34 = vshrl.u32 %v3219_v2, 16  ;;  %v3376_v37 = vshll.u32 %v3219_v2, 16  ;;  %v8304_v15 = vpop.f32.mrf.mxu1  ;;  %v8306_v44 = vpop.f32.mrf.mxu0 }
 0x116   : > { %6979 = vmatprep.mubr.msk.bf16.mxu0 %vm981_vm7, %v6323_v42  ;;  %v3361_v52 = vsel %vm7551_vm13, %v3356_v38, %v3360_v48  ;;  %v3366_v51 = vrot.slane %v3365_v26, 4  ;;  %v3382_v47 = vshll.u32 %v3220_v6, 16  ;;  %v4100_v40 = vor.u32 %v4098_v50, %v4097_v53  ;;  %9339 = vst [vmem:[#allocation20_spill] sm:$0xff] %v8304_v15  ;;  %9340 = vst [vmem:[#allocation16_spill] sm:$0xff] %v8306_v44  ;;  %v3951_v48 = vld [vmem:[#allocation2 + $0x88] sm:$0xf] }
 0x117   : > { %v4102_v36 = vrot.slane %v4097_v53, 4  ;;  %v4106_v24 = vrot.slane %v4104_v60, 7  ;;  %v3375_v21 = vrot.slane %v3373_v34, 4  ;;  %v3378_v49 = vrot.slane %v3376_v37, 5  ;;  %v8312_v53 = vpop.f32.mrf.mxu0  ;;  %v3223_v37 = vld [vmem:[#allocation2 + $0x78] sm:$0xf] }
 0x118   : > { %v3371_v10 = vsel %vm7551_vm13, %v3366_v51, %v3370_v30  ;;  %v3384_v7 = vrot.slane %v3382_v47, 5  ;;  %v3386_v42 = vshrl.u32 %v3220_v6, 16  ;;  %v4101_v2 = vsel %vm7269_vm10, %v6307_v22, %v4100_v40  ;;  %9341 = vst [vmem:[#allocation23_spill] sm:$0xff] %v8312_v53  ;;  %v8317_v47 = vpop.f32.mrf.mxu1 }
 0x119   : > { %v6274_v38 = vcombine.low %v3361_v52, %v3371_v10  ;;  %v4109_v50 = vor.u32 %v4107_v46, %v4106_v24  ;;  %v3392_v26 = vshll.u32 %v3221_v1, 16  ;;  %v3379_v60 = vor.u32 %v3378_v49, %v3375_v21 }
 0x11a   : > { %v3388_v34 = vrot.slane %v3386_v42, 4  ;;  %v4112_v27 = vshrl.u32 %v3949_v19, 16  ;;  %v4117_v62 = vshrl.u32 %v3950_v58, 16  ;;  %v4120_v51 = vshll.u32 %v3950_v58, 16  ;;  %v8319_v49 = vpop.f32.mrf.mxu1  ;;  %v8321_v42 = vpop.f32.mrf.mxu0 }
 0x11b   : > { %6945 = vmatprep.mubr.msk.bf16.mxu1 %vm981_vm7, %v6274_v38  ;;  %v4110_v30 = vsel %vm7269_vm10, %v4102_v36, %v4109_v50  ;;  %v3394_v6 = vrot.slane %v3392_v26, 5  ;;  %v4126_v52 = vshrl.u32 %v3951_v48, 16  ;;  %v3380_v46 = vrot.slane %v3379_v60, 4  ;;  %9342 = vst [vmem:[#allocation21_spill] sm:$0xff] %v8321_v42  ;;  %v3224_v38 = vld [vmem:[#allocation2 + $0x7c] sm:$0x1] }
 0x11c   : > { %v6324_v22 = vcombine.low %v4101_v2, %v4110_v30  ;;  %v3389_v1 = vor.u32 %v3388_v34, %v3384_v7  ;;  %v6308_v40 = vrot.slane %v4112_v27, 11  ;;  %v4119_v24 = vrot.slane %v4117_v62, 7  ;;  %v3952_v34 = vld [vmem:[#allocation2 + $0x90] sm:$0x8]  ;;  %v8328_v12 = vpop.f32.mrf.mxu1 }
 0x11d   : > { %v4128_v21 = vrot.slane %v4126_v52, 7  ;;  %v4129_v19 = vshll.u32 %v3951_v48, 16  ;;  %v3397_v10 = vshrl.u32 %v3222_v35, 16  ;;  %v3385_v36 = vsel %vm7551_vm13, %v3380_v46, %v3384_v7  ;;  %v3953_v48 = vld [vmem:[#allocation2 + $0x94] sm:$0xf]  ;;  %9343 = vst [vmem:[#allocation24_spill] sm:$0xff] %v8328_v12 }
 0x11e   : > { %6980 = vmatmul.mubr.msk.bf16.gmra.mxu0 %vm981_vm7, %v6324_v22  ;;  %v3390_v58 = vrot.slane %v3389_v1, 4  ;;  %v3400_v50 = vshll.u32 %v3222_v35, 16  ;;  %v3406_v2 = vshll.u32 %v3223_v37, 16  ;;  %v4122_v26 = vor.u32 %v4120_v51, %v4119_v24  ;;  %v3954_v22 = vld [vmem:[#allocation2 + $0x98] sm:$0xf]  ;;  %v8334_v1 = vpop.f32.mrf.mxu0 }
 0x11f   : > { %v4124_v60 = vrot.slane %v4119_v24, 4  ;;  %v4131_v27 = vor.u32 %v4129_v19, %v4128_v21  ;;  %v3399_v62 = vrot.slane %v3397_v10, 4  ;;  %v3410_v15 = vshrl.u32 %v3223_v37, 16  ;;  %9344 = vst [vmem:[#allocation22_spill] sm:$0xff] %v8334_v1  ;;  %v3225_v10 = vld [vmem:[#allocation2 + $0x84] sm:$0xf] }
 0x120   : > { %v3395_v30 = vsel %vm7551_vm13, %v3390_v58, %v3394_v6  ;;  %v3402_v52 = vrot.slane %v3400_v50, 5  ;;  %v3408_v42 = vrot.slane %v3406_v2, 5  ;;  %v4123_v35 = vsel %vm7269_vm10, %v6308_v40, %v4122_v26  ;;  %v3226_v2 = vld [vmem:[#allocation2 + $0x88] sm:$0xf]  ;;  %v3956_v1 = vld [vmem:[#allocation2 + $0xa4] sm:$0xf] }
 0x121   : > { %v6275_v7 = vcombine.low %v3385_v36, %v3395_v30  ;;  %v4132_v51 = vsel %vm7269_vm10, %v4124_v60, %v4131_v27  ;;  %v3416_v46 = vshll.u32 %v3224_v38, 16  ;;  %v3412_v19 = vrot.slane %v3410_v15, 4  ;;  %v8338_v27 = vpop.f32.mrf.mxu1 }
 0x122   : > { %v6325_v24 = vcombine.low %v4123_v35, %v4132_v51  ;;  %v3403_v21 = vor.u32 %v3402_v52, %v3399_v62  ;;  %v4134_v6 = vshrl.u32 %v3952_v34, 16  ;;  %v4139_v58 = vshrl.u32 %v3953_v48, 16  ;;  %9345 = vst [vmem:[#allocation25_spill] sm:$0xff] %v8338_v27  ;;  %v8340_v52 = vpop.f32.mrf.mxu0  ;;  %v3227_v35 = vld [vmem:[#allocation2 + $0x8c] sm:$0x1] }
 0x123   : > { %6946 = vmatmul.mubr.msk.bf16.gmra.mxu1 %vm981_vm7, %v6275_v7  ;;  %v3418_v37 = vrot.slane %v3416_v46, 5  ;;  %v4142_v50 = vshll.u32 %v3953_v48, 16  ;;  %v4148_v36 = vshrl.u32 %v3954_v22, 16  ;;  %v3413_v26 = vor.u32 %v3412_v19, %v3408_v42  ;;  %9346 = vst [vmem:[#allocation26_spill] sm:$0xff] %v8340_v52  ;;  %v3957_v52 = vld [vmem:[#allocation2 + $0xa8] sm:$0xf] }
 0x124   : > { %6983 = vmatprep.mubr.msk.bf16.mxu0 %vm981_vm7, %v6325_v24  ;;  %v3404_v40 = vrot.slane %v3403_v21, 4  ;;  %v6309_v60 = vrot.slane %v4134_v6, 11  ;;  %v4151_v38 = vshll.u32 %v3954_v22, 16  ;;  %v4141_v30 = vrot.slane %v4139_v58, 7  ;;  %v3955_v22 = vld [vmem:[#allocation2 + $0xa0] sm:$0x8]  ;;  %v8344_v27 = vpop.f32.mrf.mxu0 }
 0x125   : > { %v4150_v62 = vrot.slane %v4148_v36, 7  ;;  %v3421_v15 = vshrl.u32 %v3225_v10, 16  ;;  %v3424_v34 = vshll.u32 %v3225_v10, 16  ;;  %v3414_v48 = vrot.slane %v3413_v26, 4  ;;  %9347 = vst [vmem:[#allocation27_spill] sm:$0xff] %v8344_v27 }
 0x126   : > { %v3409_v7 = vsel %vm7551_vm13, %v3404_v40, %v3408_v42  ;;  %v3430_v51 = vshll.u32 %v3226_v2, 16  ;;  %v3434_v46 = vshrl.u32 %v3226_v2, 16  ;;  %v4144_v24 = vor.u32 %v4142_v50, %v4141_v30  ;;  %v8348_v42 = vpop.f32.mrf.mxu1  ;;  %v3228_v27 = vld [vmem:[#allocation2 + $0x94] sm:$0xf] }
 0x127   : > { %v4146_v21 = vrot.slane %v4141_v30, 4  ;;  %v4153_v19 = vor.u32 %v4151_v38, %v4150_v62  ;;  %v3423_v6 = vrot.slane %v3421_v15, 4  ;;  %v3419_v10 = vsel %vm7551_vm13, %v3414_v48, %v3418_v37  ;;  %v8354_v37 = vpop.f32.mrf.mxu0 }
 0x128   : > { %v3426_v58 = vrot.slane %v3424_v34, 5  ;;  %v3432_v36 = vrot.slane %v3430_v51, 5  ;;  %v3436_v12 = vrot.slane %v3434_v46, 4  ;;  %v6276_v40 = vcombine.low %v3409_v7, %v3419_v10  ;;  %9348 = vst [vmem:[#allocation28_spill] sm:$0xff] %v8354_v37  ;;  %v3229_v46 = vld [vmem:[#allocation2 + $0x98] sm:$0xf]  ;;  %v8357_v10 = vpop.f32.mrf.mxu1 }
 0x129   : > { %v4145_v50 = vsel %vm7269_vm10, %v6309_v60, %v4144_v24  ;;  %v4154_v2 = vsel %vm7269_vm10, %v4146_v21, %v4153_v19  ;;  %v3440_v26 = vshll.u32 %v3227_v35, 16  ;;  %v4156_v15 = vshrl.u32 %v3955_v22, 16  ;;  %v8364_v37 = vpop.f32.mrf.mxu0 }
 0x12a   : > { %v6326_v38 = vcombine.low %v4145_v50, %v4154_v2  ;;  %v3427_v30 = vor.u32 %v3426_v58, %v3423_v6  ;;  %v3437_v62 = vor.u32 %v3436_v12, %v3432_v36  ;;  %6949 = vmatprep.mubr.msk.bf16.mxu1 %vm981_vm7, %v6276_v40  ;;  %v4161_v48 = vshrl.u32 %v3956_v1, 16  ;;  %v3230_v40 = vld [vmem:[#allocation2 + $0x9c] sm:$0x1]  ;;  %9349 = vst [vmem:[#allocation29_spill] sm:$0xff] %v8364_v37 }
 0x12b   : > { %v3442_v34 = vrot.slane %v3440_v26, 5  ;;  %v4164_v51 = vshll.u32 %v3956_v1, 16  ;;  %v4170_v7 = vshrl.u32 %v3957_v52, 16  ;;  %v6310_v24 = vrot.slane %v4156_v15, 11  ;;  %v3958_v26 = vld [vmem:[#allocation2 + $0xb0] sm:$0x8] }
 0x12c   : > { %6984 = vmatmul.mubr.msk.bf16.gmra.mxu0 %vm981_vm7, %v6326_v38  ;;  %v3428_v60 = vrot.slane %v3427_v30, 4  ;;  %v3438_v35 = vrot.slane %v3437_v62, 4  ;;  %v4173_v21 = vshll.u32 %v3957_v52, 16  ;;  %v4163_v12 = vrot.slane %v4161_v48, 7  ;;  %v3959_v15 = vld [vmem:[#allocation2 + $0xb4] sm:$0xf]  ;;  %v8366_v48 = vpop.f32.mrf.mxu1 }
 0x12d   : > { %v4172_v19 = vrot.slane %v4170_v7, 7  ;;  %v3445_v6 = vshrl.u32 %v3228_v27, 16  ;;  %v3448_v22 = vshll.u32 %v3228_v27, 16  ;;  %v3454_v50 = vshll.u32 %v3229_v46, 16  ;;  %9350 = vst [vmem:[#allocation30_spill] sm:$0xff] %v8366_v48 }
 0x12e   : > { %v3433_v58 = vsel %vm7551_vm13, %v3428_v60, %v3432_v36  ;;  %v3443_v1 = vsel %vm7551_vm13, %v3438_v35, %v3442_v34  ;;  %v3458_v2 = vshrl.u32 %v3229_v46, 16  ;;  %v4166_v30 = vor.u32 %v4164_v51, %v4163_v12  ;;  %v3960_v60 = vld [vmem:[#allocation2 + $0xb8] sm:$0xf]  ;;  %v8375_v37 = vpop.f32.mrf.mxu1 }
 0x12f   : > { %v6277_v38 = vcombine.low %v3433_v58, %v3443_v1  ;;  %v4168_v62 = vrot.slane %v4163_v12, 4  ;;  %v4175_v52 = vor.u32 %v4173_v21, %v4172_v19  ;;  %v3447_v27 = vrot.slane %v3445_v6, 4  ;;  %v3231_v1 = vld [vmem:[#allocation2 + $0xa4] sm:$0xf]  ;;  %v3232_v6 = vld [vmem:[#allocation2 + $0xa8] sm:$0xf] }
 0x130   : > { %v3450_v7 = vrot.slane %v3448_v22, 5  ;;  %v3456_v11 = vrot.slane %v3454_v50, 5  ;;  %v3460_v36 = vrot.slane %v3458_v2, 4  ;;  %v4167_v34 = vsel %vm7269_vm10, %v6310_v24, %v4166_v30  ;;  %v8373_v22 = vpop.f32.mrf.mxu0 }
 0x131   : > { %6950 = vmatmul.mubr.msk.bf16.gmra.mxu1 %vm981_vm7, %v6277_v38  ;;  %v4176_v46 = vsel %vm7269_vm10, %v4168_v62, %v4175_v52  ;;  %v3464_v35 = vshll.u32 %v3230_v40, 16  ;;  %v4178_v51 = vshrl.u32 %v3958_v26, 16  ;;  %v4183_v58 = vshrl.u32 %v3959_v15, 16  ;;  %9351 = vst [vmem:[#allocation31_spill] sm:$0xff] %v8373_v22  ;;  %v3233_v52 = vld [vmem:[#allocation2 + $0xac] sm:$0x1] }
 0x132   : > { %v6327_v12 = vcombine.low %v4167_v34, %v4176_v46  ;;  %v3451_v21 = vor.u32 %v3450_v7, %v3447_v27  ;;  %v3461_v19 = vor.u32 %v3460_v36, %v3456_v11  ;;  %v4186_v48 = vshll.u32 %v3959_v15, 16  ;;  %v8378_v34 = vpop.f32.mrf.mxu0  ;;  %v8384_v22 = vpop.f32.mrf.mxu1 }
 0x133   : > { %v3466_v50 = vrot.slane %v3464_v35, 5  ;;  %v6311_v2 = vrot.slane %v4178_v51, 11  ;;  %v4192_v38 = vshrl.u32 %v3960_v60, 16  ;;  %v4185_v40 = vrot.slane %v4183_v58, 7  ;;  %9352 = vst [vmem:[#allocation32_spill] sm:$0xff] %v8378_v34 }
 0x134   : > { %6987 = vmatprep.mubr.msk.bf16.mxu0 %vm981_vm7, %v6327_v12  ;;  %v3452_v24 = vrot.slane %v3451_v21, 4  ;;  %v3462_v30 = vrot.slane %v3461_v19, 4  ;;  %v4195_v26 = vshll.u32 %v3960_v60, 16  ;;  %v3469_v27 = vshrl.u32 %v3231_v1, 16  ;;  %v3961_v12 = vld [vmem:[#allocation2 + $0xc0] sm:$0x8] }
 0x135   : > { %v4194_v62 = vrot.slane %v4192_v38, 7  ;;  %v3472_v7 = vshll.u32 %v3231_v1, 16  ;;  %v3478_v36 = vshll.u32 %v3232_v6, 16  ;;  %v4188_v35 = vor.u32 %v4186_v48, %v4185_v40  ;;  %v3962_v21 = vld [vmem:[#allocation2 + $0xc4] sm:$0xf] }
 0x136   : > { %v3457_v46 = vsel %vm7551_vm13, %v3452_v24, %v3456_v11  ;;  %v3467_v15 = vsel %vm7551_vm13, %v3462_v30, %v3466_v50  ;;  %v4190_v51 = vrot.slane %v4185_v40, 4  ;;  %v3471_v60 = vrot.slane %v3469_v27, 4  ;;  %v3963_v11 = vld [vmem:[#allocation2 + $0xc8] sm:$0xf]  ;;  %v3234_v40 = vld [vmem:[#allocation2 + $0xb4] sm:$0xf] }
 0x137   : > { %v6278_v19 = vcombine.low %v3457_v46, %v3467_v15  ;;  %v4197_v58 = vor.u32 %v4195_v26, %v4194_v62  ;;  %v3474_v38 = vrot.slane %v3472_v7, 5  ;;  %v4189_v1 = vsel %vm7269_vm10, %v6311_v2, %v4188_v35  ;;  %v8391_v26 = vpop.f32.mrf.mxu1  ;;  %v8393_v62 = vpop.f32.mrf.mxu0  ;;  %v3235_v35 = vld [vmem:[#allocation2 + $0xb8] sm:$0xf] }
 0x138   : > { %v3480_v34 = vrot.slane %v3478_v36, 5  ;;  %v3482_v53 = vshrl.u32 %v3232_v6, 16  ;;  %v3488_v44 = vshll.u32 %v3233_v52, 16  ;;  %v4200_v24 = vshrl.u32 %v3961_v12, 16  ;;  %9353 = vst [vmem:[#allocation33_spill] sm:$0xff] %v8393_v62 }
 0x139   : > { %6953 = vmatprep.mubr.msk.bf16.mxu1 %vm981_vm7, %v6278_v19  ;;  %v4198_v48 = vsel %vm7269_vm10, %v4190_v51, %v4197_v58  ;;  %v3475_v50 = vor.u32 %v3474_v38, %v3471_v60  ;;  %v4205_v30 = vshrl.u32 %v3962_v21, 16  ;;  %v4208_v36 = vshll.u32 %v3962_v21, 16  ;;  %v3236_v12 = vld [vmem:[#allocation2 + $0xbc] sm:$0x1]  ;;  %v8396_v38 = vpop.f32.mrf.mxu1 }
 0x13a   : > { %v6328_v27 = vcombine.low %v4189_v1, %v4198_v48  ;;  %v3484_v7 = vrot.slane %v3482_v53, 4  ;;  %v3490_v2 = vrot.slane %v3488_v44, 5  ;;  %v6312_v52 = vrot.slane %v4200_v24, 11  ;;  %v3964_v48 = vld [vmem:[#allocation2 + $0xd0] sm:$0x8] }
 0x13b   : > { %v3476_v6 = vrot.slane %v3475_v50, 4  ;;  %v4207_v46 = vrot.slane %v4205_v30, 7  ;;  %v4214_v15 = vshrl.u32 %v3963_v11, 16  ;;  %v4217_v19 = vshll.u32 %v3963_v11, 16  ;;  %v8400_v50 = vpop.f32.mrf.mxu0  ;;  %v8406_v17 = vpop.f32.mrf.mxu1 }
 0x13c   : > { %6988 = vmatmul.mubr.msk.bf16.gmra.mxu0 %vm981_vm7, %v6328_v27  ;;  %v3485_v51 = vor.u32 %v3484_v7, %v3480_v34  ;;  %v3493_v58 = vshrl.u32 %v3234_v40, 16  ;;  %v3496_v60 = vshll.u32 %v3234_v40, 16  ;;  %9354 = vst [vmem:[#allocation34_spill] sm:$0xff] %v8400_v50  ;;  %v3502_v27 = vshll.u32 %v3235_v35, 16 }
 0x13d   : > { %v3481_v1 = vsel %vm7551_vm13, %v3476_v6, %v3480_v34  ;;  %v4210_v53 = vor.u32 %v4208_v36, %v4207_v46  ;;  %v4212_v44 = vrot.slane %v4207_v46, 4  ;;  %v4216_v21 = vrot.slane %v4214_v15, 7  ;;  %v3966_v46 = vld [vmem:[#allocation2 + $0xd8] sm:$0xf] }
 0x13e   : > { %v3486_v24 = vrot.slane %v3485_v51, 4  ;;  %v3495_v30 = vrot.slane %v3493_v58, 4  ;;  %v3498_v62 = vrot.slane %v3496_v60, 5  ;;  %v3506_v40 = vshrl.u32 %v3235_v35, 16 }
 0x13f   : > { %v4211_v11 = vsel %vm7269_vm10, %v6312_v52, %v4210_v53  ;;  %v4219_v7 = vor.u32 %v4217_v19, %v4216_v21  ;;  %v3512_v43 = vshll.u32 %v3236_v12, 16  ;;  %v3504_v6 = vrot.slane %v3502_v27, 5  ;;  %v3237_v52 = vld [vmem:[#allocation2 + $0xc4] sm:$0xf]  ;;  %v8410_v19 = vpop.f32.mrf.mxu0  ;;  %v3239_v27 = vld [vmem:[#allocation2 + $0xcc] sm:$0x1] }
 0x140   : > { %v3491_v34 = vsel %vm7551_vm13, %v3486_v24, %v3490_v2  ;;  %v3499_v36 = vor.u32 %v3498_v62, %v3495_v30  ;;  %v4222_v15 = vshrl.u32 %v3964_v48, 16  ;;  %v3508_v60 = vrot.slane %v3506_v40, 4  ;;  %9355 = vst [vmem:[#allocation35_spill] sm:$0xff] %v8410_v19  ;;  %v3238_v2 = vld [vmem:[#allocation2 + $0xc8] sm:$0xf]  ;;  %v8418_v40 = vpop.f32.mrf.mxu1 }
 0x141   : > { %v6279_v51 = vcombine.low %v3481_v1, %v3491_v34  ;;  %v4220_v58 = vsel %vm7269_vm10, %v4212_v44, %v4219_v7  ;;  %v3514_v50 = vrot.slane %v3512_v43, 5  ;;  %v4227_v21 = vshrl.u32 %v3965_v39, 16  ;;  %v8413_v1 = vpop.f32.mrf.mxu0  ;;  %v3968_v19 = vld [vmem:[#allocation2 + $0xe4] sm:$0xf] }
 0x142   : > { %v6329_v35 = vcombine.low %v4211_v11, %v4220_v58  ;;  %v3500_v12 = vrot.slane %v3499_v36, 4  ;;  %v6313_v53 = vrot.slane %v4222_v15, 11  ;;  %v3509_v62 = vor.u32 %v3508_v60, %v3504_v6  ;;  %9356 = vst [vmem:[#allocation36_spill] sm:$0xff] %v8413_v1  ;;  %v8422_v0 = vpop.f32.mrf.mxu1 }
 0x143   : > { %6954 = vmatmul.mubr.msk.bf16.gmra.mxu1 %vm981_vm7, %v6279_v51  ;;  %v4230_v48 = vshll.u32 %v3965_v39, 16  ;;  %v4236_v24 = vshrl.u32 %v3966_v46, 16  ;;  %v4239_v30 = vshll.u32 %v3966_v46, 16  ;;  %v4229_v44 = vrot.slane %v4227_v21, 7  ;;  %v3967_v39 = vld [vmem:[#allocation2 + $0xe0] sm:$0x8]  ;;  %v8420_v58 = vpop.f32.mrf.mxu0 }
 0x144   : > { %6991 = vmatprep.mubr.msk.bf16.mxu0 %vm981_vm7, %v6329_v35  ;;  %v3505_v43 = vsel %vm7551_vm13, %v3500_v12, %v3504_v6  ;;  %v3517_v11 = vshrl.u32 %v3237_v52, 16  ;;  %v3520_v7 = vshll.u32 %v3237_v52, 16  ;;  %v3510_v34 = vrot.slane %v3509_v62, 4  ;;  %9357 = vst [vmem:[#allocation37_spill] sm:$0xff] %v8420_v58  ;;  %v3969_v58 = vld [vmem:[#allocation2 + $0xe8] sm:$0xf] }
 0x145   : > { %v4238_v36 = vrot.slane %v4236_v24, 7  ;;  %v3526_v15 = vshll.u32 %v3238_v2, 16  ;;  %v3530_v51 = vshrl.u32 %v3238_v2, 16  ;;  %v4232_v46 = vor.u32 %v4230_v48, %v4229_v44  ;;  %v8428_v48 = vpop.f32.mrf.mxu0 }
 0x146   : > { %v4234_v60 = vrot.slane %v4229_v44, 4  ;;  %v3519_v1 = vrot.slane %v3517_v11, 4  ;;  %v3522_v35 = vrot.slane %v3520_v7, 5  ;;  %v3515_v6 = vsel %vm7551_vm13, %v3510_v34, %v3514_v50  ;;  %9358 = vst [vmem:[#allocation38_spill] sm:$0xff] %v8428_v48  ;;  %v8432_v50 = vpop.f32.mrf.mxu1  ;;  %v3243_v48 = vld [vmem:[#allocation2 + $0xe4] sm:$0xf] }
 0x147   : > { %v4241_v52 = vor.u32 %v4239_v30, %v4238_v36  ;;  %v3528_v12 = vrot.slane %v3526_v15, 5  ;;  %v3532_v21 = vrot.slane %v3530_v51, 4  ;;  %v6280_v62 = vcombine.low %v3505_v43, %v3515_v6  ;;  %v3241_v51 = vld [vmem:[#allocation2 + $0xd8] sm:$0xf] }
 0x148   : > { %v4233_v2 = vsel %vm7269_vm10, %v6313_v53, %v4232_v46  ;;  %v3523_v24 = vor.u32 %v3522_v35, %v3519_v1  ;;  %v3536_v56 = vshll.u32 %v3239_v27, 16  ;;  %v4244_v7 = vshrl.u32 %v3967_v39, 16 }
 0x149   : > { %v4242_v44 = vsel %vm7269_vm10, %v4234_v60, %v4241_v52  ;;  %v3533_v11 = vor.u32 %v3532_v21, %v3528_v12  ;;  %v4249_v23 = vshrl.u32 %v3968_v19, 16  ;;  %6957 = vmatprep.mubr.msk.bf16.mxu1 %vm981_vm7, %v6280_v62  ;;  %v4252_v53 = vshll.u32 %v3968_v19, 16  ;;  %v3242_v60 = vld [vmem:[#allocation2 + $0xdc] sm:$0x1]  ;;  %v8438_v52 = vpop.f32.mrf.mxu0 }
 0x14a   : > { %v6330_v30 = vcombine.low %v4233_v2, %v4242_v44  ;;  %v3524_v43 = vrot.slane %v3523_v24, 4  ;;  %v3538_v34 = vrot.slane %v3536_v56, 5  ;;  %v6314_v27 = vrot.slane %v4244_v7, 11  ;;  %9359 = vst [vmem:[#allocation39_spill] sm:$0xff] %v8438_v52  ;;  %v3971_v2 = vld [vmem:[#allocation2 + $0xf4] sm:$0xf]  ;;  %v8442_v24 = vpop.f32.mrf.mxu1 }
 0x14b   : > { %v3534_v1 = vrot.slane %v3533_v11, 4  ;;  %v4251_v36 = vrot.slane %v4249_v23, 7  ;;  %v4258_v15 = vshrl.u32 %v3969_v58, 16  ;;  %v4261_v46 = vshll.u32 %v3969_v58, 16  ;;  %v3970_v23 = vld [vmem:[#allocation2 + $0xf0] sm:$0x8]  ;;  %v8444_v58 = vpop.f32.mrf.mxu0 }
 0x14c   : > { %6992 = vmatmul.mubr.msk.bf16.gmra.mxu0 %vm981_vm7, %v6330_v30  ;;  %v3529_v39 = vsel %vm7551_vm13, %v3524_v43, %v3528_v12  ;;  %v3541_v35 = vshrl.u32 %v3240_v55, 16  ;;  %v3544_v6 = vshll.u32 %v3240_v55, 16  ;;  %v3550_v12 = vshll.u32 %v3241_v51, 16  ;;  %9360 = vst [vmem:[#allocation40_spill] sm:$0xff] %v8444_v58 }
 0x14d   : > { %v3539_v56 = vsel %vm7551_vm13, %v3534_v1, %v3538_v34  ;;  %v4254_v19 = vor.u32 %v4252_v53, %v4251_v36  ;;  %v4256_v21 = vrot.slane %v4251_v36, 4  ;;  %v4260_v62 = vrot.slane %v4258_v15, 7  ;;  %v3972_v34 = vld [vmem:[#allocation2 + $0xf8] sm:$0xf] }
 0x14e   : > { %v6281_v44 = vcombine.low %v3529_v39, %v3539_v56  ;;  %v3543_v11 = vrot.slane %v3541_v35, 4  ;;  %v3546_v7 = vrot.slane %v3544_v6, 5  ;;  %v3554_v43 = vshrl.u32 %v3241_v51, 16  ;;  %v8451_v58 = vpop.f32.mrf.mxu1 }
 0x14f   : > { %v4255_v55 = vsel %vm7269_vm10, %v6314_v27, %v4254_v19  ;;  %v4263_v30 = vor.u32 %v4261_v46, %v4260_v62  ;;  %v3560_v52 = vshll.u32 %v3242_v60, 16  ;;  %v3552_v1 = vrot.slane %v3550_v12, 5  ;;  %v3244_v19 = vld [vmem:[#allocation2 + $0xe8] sm:$0xf]  ;;  %v8453_v62 = vpop.f32.mrf.mxu0 }
 0x150   : > { %6958 = vmatmul.mubr.msk.bf16.gmra.mxu1 %vm981_vm7, %v6281_v44  ;;  %v3547_v53 = vor.u32 %v3546_v7, %v3543_v11  ;;  %v4266_v36 = vshrl.u32 %v3970_v23, 16  ;;  %v4271_v15 = vshrl.u32 %v3971_v2, 16  ;;  %v3556_v35 = vrot.slane %v3554_v43, 4  ;;  %9361 = vst [vmem:[#allocation41_spill] sm:$0xff] %v8453_v62  ;;  %v3245_v7 = vld [vmem:[#allocation2 + $0xec] sm:$0x1]  ;;  %v8455_v45 = vpop.f32.mrf.mxu1 }
 0x151   : > { %v4264_v39 = vsel %vm7269_vm10, %v4256_v21, %v4263_v30  ;;  %v3562_v6 = vrot.slane %v3560_v52, 5  ;;  %v4274_v56 = vshll.u32 %v3971_v2, 16  ;;  %v4280_v11 = vshrl.u32 %v3972_v34, 16  ;;  %v3973_v30 = vld [vmem:[#allocation2 + $0x100] sm:$0x8]  ;;  %v8462_v4 = vpop.f32.mrf.mxu0 }
 0x152   : > { %v6331_v27 = vcombine.low %v4255_v55, %v4264_v39  ;;  %v3548_v46 = vrot.slane %v3547_v53, 4  ;;  %v6315_v51 = vrot.slane %v4266_v36, 11  ;;  %v4273_v60 = vrot.slane %v4271_v15, 7  ;;  %9362 = vst [vmem:[#allocation42_spill] sm:$0xff] %v8462_v4  ;;  %v3247_v4 = vld [vmem:[#allocation2 + $0xf8] sm:$0xf] }
 0x153   : > { %v3557_v44 = vor.u32 %v3556_v35, %v3552_v1  ;;  %v4283_v23 = vshll.u32 %v3972_v34, 16  ;;  %v3565_v12 = vshrl.u32 %v3243_v48, 16  ;;  %v3568_v55 = vshll.u32 %v3243_v48, 16  ;;  %v3975_v48 = vld [vmem:[#allocation2 + $0x108] sm:$0xf] }
 0x154   : > { %6995 = vmatprep.mubr.msk.bf16.mxu0 %vm981_vm7, %v6331_v27  ;;  %v3553_v52 = vsel %vm7551_vm13, %v3548_v46, %v3552_v1  ;;  %v4276_v21 = vor.u32 %v4274_v56, %v4273_v60  ;;  %v4278_v2 = vrot.slane %v4273_v60, 4  ;;  %v4282_v53 = vrot.slane %v4280_v11, 7  ;;  %v8466_v60 = vpop.f32.mrf.mxu1 }
 0x155   : > { %v3558_v43 = vrot.slane %v3557_v44, 4  ;;  %v3567_v36 = vrot.slane %v3565_v12, 4  ;;  %v3574_v15 = vshll.u32 %v3244_v19, 16  ;;  %v3570_v39 = vrot.slane %v3568_v55, 5  ;;  %9363 = vst [vmem:[#allocation43_spill] sm:$0xff] %v8466_v60 }
 0x156   : > { %v4277_v34 = vsel %vm7269_vm10, %v6315_v51, %v4276_v21  ;;  %v3578_v35 = vshrl.u32 %v3244_v19, 16  ;;  %v3584_v62 = vshll.u32 %v3245_v7, 16  ;;  %v4285_v56 = vor.u32 %v4283_v23, %v4282_v53  ;;  %v3246_v51 = vld [vmem:[#allocation2 + $0xf4] sm:$0xf] }
 0x157   : > { %v3563_v1 = vsel %vm7551_vm13, %v3558_v43, %v3562_v6  ;;  %v3576_v27 = vrot.slane %v3574_v15, 5  ;;  %v4288_v46 = vshrl.u32 %v3973_v30, 16  ;;  %v3571_v11 = vor.u32 %v3570_v39, %v3567_v36  ;;  %v8471_v53 = vpop.f32.mrf.mxu0  ;;  %v199_v39 = vld [vmem:[#allocation2 + $0x110] sm:$0x8] }
 0x158   : > { %v6282_v44 = vcombine.low %v3553_v52, %v3563_v1  ;;  %v3580_v12 = vrot.slane %v3578_v35, 4  ;;  %v3586_v59 = vrot.slane %v3584_v62, 5  ;;  %v4286_v19 = vsel %vm7269_vm10, %v4278_v2, %v4285_v56  ;;  %9364 = vst [vmem:[#allocation44_spill] sm:$0xff] %v8471_v53  ;;  %v8473_v35 = vpop.f32.mrf.mxu1 }
 0x159   : > { %v6316_v7 = vrot.slane %v4288_v46, 11  ;;  %v4293_v21 = vshrl.u32 %v3974_v3, 16  ;;  %v4296_v55 = vshll.u32 %v3974_v3, 16  ;;  %v6332_v6 = vcombine.low %v4277_v34, %v4286_v19  ;;  %9365 = vst [vmem:[#allocation45_spill] sm:$0xff] %v8473_v35  ;;  %v3248_v34 = vld [vmem:[#allocation2 + $0xfc] sm:$0x1]  ;;  %v8478_v46 = vpop.f32.mrf.mxu0 }
 0x15a   : > { %6961 = vmatprep.mubr.msk.bf16.mxu1 %vm981_vm7, %v6282_v44  ;;  %v3572_v23 = vrot.slane %v3571_v11, 4  ;;  %v3581_v43 = vor.u32 %v3580_v12, %v3576_v27  ;;  %v4302_v30 = vshrl.u32 %v3975_v48, 16  ;;  %v4305_v36 = vshll.u32 %v3975_v48, 16  ;;  %9366 = vst [vmem:[#allocation46_spill] sm:$0xff] %v8478_v46  ;;  %v8480_v19 = vld [vmem:[#allocation2 + $0x114] sm:$0xf] }
 0x15b   : > { %v4295_v52 = vrot.slane %v4293_v21, 7  ;;  %v3589_v15 = vshrl.u32 %v3246_v51, 16  ;;  %v3592_v62 = vshll.u32 %v3246_v51, 16  ;;  %6996 = vmatmul.mubr.msk.bf16.gmra.mxu0 %vm981_vm7, %v6332_v6  ;;  %v3598_v56 = vshll.u32 %v3247_v4, 16  ;;  %9367 = vst [vmem:[#allocation47_spill] sm:$0xff] %v8480_v19 }
 0x15c   : > { %v3577_v3 = vsel %vm7551_vm13, %v3572_v23, %v3576_v27  ;;  %v3582_v2 = vrot.slane %v3581_v43, 4  ;;  %v4304_v1 = vrot.slane %v4302_v30, 7  ;;  %v3602_v53 = vshrl.u32 %v3247_v4, 16  ;;  %v8486_v30 = vld [vmem:[#allocation2 + $0x118] sm:$0xf] }
 0x15d   : > { %v4298_v44 = vor.u32 %v4296_v55, %v4295_v52  ;;  %v4300_v11 = vrot.slane %v4295_v52, 4  ;;  %v3591_v12 = vrot.slane %v3589_v15, 4  ;;  %v3594_v48 = vrot.slane %v3592_v62, 5  ;;  %v301_v55 = vld [vmem:[#allocation2 + $0x10c] sm:$0x1]  ;;  %v8488_v52 = vpop.f32.mrf.mxu1  ;;  %v8490_v15 = vpop.f32.mrf.mxu0 }
 0x15e   : > { %v3587_v51 = vsel %vm7551_vm13, %v3582_v2, %v3586_v59  ;;  %v4307_v21 = vor.u32 %v4305_v36, %v4304_v1  ;;  %v3600_v6 = vrot.slane %v3598_v56, 5  ;;  %v3608_v43 = vshll.u32 %v3248_v34, 16  ;;  %9368 = vst [vmem:[#allocation48_spill] sm:$0xff] %v8488_v52  ;;  %9369 = vst [vmem:[#allocation49_spill] sm:$0xff] %v8490_v15  ;;  %v4952_v46 = vld [vmem:[#allocation2 + $0x28] sm:$0xf] }
 0x15f   : > { %v6283_v35 = vcombine.low %v3577_v3, %v3587_v51  ;;  %v4299_v27 = vsel %vm7269_vm10, %v6316_v7, %v4298_v44  ;;  %v3595_v23 = vor.u32 %v3594_v48, %v3591_v12  ;;  %v3604_v59 = vrot.slane %v3602_v53, 4  ;;  %v3249_v3 = vld [vmem:[#allocation2 + $0x104] sm:$0xf]  ;;  %v8498_v34 = vpop.f32.mrf.mxu1 }
 0x160   : > { %v4308_v62 = vsel %vm7269_vm10, %v4300_v11, %v4307_v21  ;;  %v200_v4 = vsel %vm7238_vm9, 0, %v199_v39  ;;  %v4315_v36 = vshrl.u32 %v8480_v19, 16  ;;  %v3610_v1 = vrot.slane %v3608_v43, 5  ;;  %9370 = vst [vmem:[#allocation50_spill] sm:$0xff] %v8498_v34  ;;  %v3250_v11 = vld [vmem:[#allocation2 + $0x108] sm:$0xf]  ;;  %v8506_v21 = vpop.f32.mrf.mxu0 }
 0x161   : > { %6962 = vmatmul.mubr.msk.bf16.gmra.mxu1 %vm981_vm7, %v6283_v35  ;;  %v6333_v7 = vcombine.low %v4299_v27, %v4308_v62  ;;  %v3596_v2 = vrot.slane %v3595_v23, 4  ;;  %201 = vst [vmem:[#allocation2 + $0x110] sm:$0x8] %v200_v4  ;;  %v3605_v56 = vor.u32 %v3604_v59, %v3600_v6  ;;  %v4324_v12 = vshrl.u32 %v8486_v30, 16  ;;  %v4951_v51 = vld [vmem:[#allocation2 + $0x24] sm:$0xf]  ;;  %v8510_v59 = vpop.f32.mrf.mxu1 }
 0x162   : > { %v4317_v44 = vrot.slane %v4315_v36, 7  ;;  %v4327_v53 = vshll.u32 %v8486_v30, 16  ;;  %v4318_v9 = vshll.u32 %v8480_v19, 16  ;;  %v302_v39 = vsel %vm7226_vm4, 0, %v301_v55  ;;  %9371 = vst [vmem:[#allocation51_spill] sm:$0xff] %v8506_v21  ;;  %9372 = vst [vmem:[#allocation52_spill] sm:$0xff] %v8510_v59 }
 0x163   : > { %6999 = vmatprep.mubr.msk.bf16.mxu0 %vm981_vm7, %v6333_v7  ;;  %v3613_v35 = vshrl.u32 %v3249_v3, 16  ;;  %v3616_v48 = vshll.u32 %v3249_v3, 16  ;;  %v3601_v27 = vsel %vm7551_vm13, %v3596_v2, %v3600_v6  ;;  %v3606_v23 = vrot.slane %v3605_v56, 4  ;;  %303 = vst [vmem:[#allocation2 + $0x10c] sm:$0x1] %v302_v39  ;;  %v9426_v5 = vld [vmem:[#allocation47_spill] sm:$0xff] }
 0x164   : > { %v4322_v43 = vrot.slane %v4317_v44, 4  ;;  %v4326_v62 = vrot.slane %v4324_v12, 7  ;;  %v3622_v7 = vshll.u32 %v3250_v11, 16  ;;  %v3626_v15 = vshrl.u32 %v3250_v11, 16  ;;  %v4953_v56 = vld [vmem:[#allocation2 + $0x2c] sm:$0x1]  ;;  %v8516_v11 = vpop.f32.mrf.mxu1 }
 0x165   : > { %v3615_v4 = vrot.slane %v3613_v35, 4  ;;  %v3618_v36 = vrot.slane %v3616_v48, 5  ;;  %v3611_v55 = vsel %vm7551_vm13, %v3606_v23, %v3610_v1  ;;  %v5000_v34 = vshrl.u32 %v4951_v51, 16  ;;  %v8514_v12 = vpop.f32.mrf.mxu0 }
 0x166   : > { %v4329_v3 = vor.u32 %v4327_v53, %v4326_v62  ;;  %v5003_v21 = vshll.u32 %v4951_v51, 16  ;;  %v6284_v52 = vcombine.low %v3601_v27, %v3611_v55  ;;  %v3624_v6 = vrot.slane %v3622_v7, 5  ;;  %9373 = vst [vmem:[#allocation53_spill] sm:$0xff] %v8514_v12  ;;  %v4954_v27 = vld [vmem:[#allocation2 + $0x34] sm:$0xf] }
 0x167   : > { %v3619_v60 = vor.u32 %v3618_v36, %v3615_v4  ;;  %v3628_v2 = vrot.slane %v3626_v15, 4  ;;  %v4320_v59 = vor.u32 %v4318_v9, %v4317_v44  ;;  %v5002_v35 = vrot.slane %v5000_v34, 4  ;;  %v8519_v62 = vpop.f32.mrf.mxu0  ;;  %v4955_v34 = vld [vmem:[#allocation2 + $0x38] sm:$0xf] }
 0x168   : > { %v3976_v39 = vld [vmem:[#allocation2 + $0x110] sm:$0x8]  ;;  %v5005_v48 = vrot.slane %v5003_v21, 5  ;;  %v5009_v19 = vshll.u32 %v4952_v46, 16  ;;  %6965 = vmatprep.mubr.msk.bf16.mxu1 %vm981_vm7, %v6284_v52  ;;  %v5013_v51 = vshrl.u32 %v4952_v46, 16  ;;  %9374 = vst [vmem:[#allocation54_spill] sm:$0xff] %v8519_v62  ;;  %v4330_v15 = vsel %vm7269_vm10, %v4322_v43, %v4329_v3 }
 0x169   : > { %v4310_v1 = vshrl.u32 %v3976_v39, 16  ;;  %v3620_v53 = vrot.slane %v3619_v60, 4  ;;  %v3629_v23 = vor.u32 %v3628_v2, %v3624_v6  ;;  %v5019_v44 = vshll.u32 %v4953_v56, 16 }
 0x16a   : > { %v5006_v4 = vor.u32 %v5005_v48, %v5002_v35  ;;  %v5011_v36 = vrot.slane %v5009_v19, 5  ;;  %v3251_v21 = vld [vmem:[#allocation2 + $0x10c] sm:$0x1]  ;;  %v5015_v55 = vrot.slane %v5013_v51, 4  ;;  %v5024_v39 = vshrl.u32 %v4954_v27, 16  ;;  %v8529_v48 = vpop.f32.mrf.mxu0 }
 0x16b   : > { %v6317_v9 = vrot.slane %v4310_v1, 11  ;;  %v3625_v7 = vsel %vm7551_vm13, %v3620_v53, %v3624_v6  ;;  %v3630_v52 = vrot.slane %v3629_v23, 4  ;;  %v3632_v60 = vshll.u32 %v3251_v21, 16  ;;  %v8525_v12 = vpop.f32.mrf.mxu1  ;;  %v4956_v19 = vld [vmem:[#allocation2 + $0x3c] sm:$0x1]  ;;  %9375 = vst [vmem:[#allocation55_spill] sm:$0xff] %v8529_v48 }
 0x16c   : > { %v5007_v2 = vrot.slane %v5006_v4, 4  ;;  %v5021_v46 = vrot.slane %v5019_v44, 5  ;;  %v5016_v3 = vor.u32 %v5015_v55, %v5011_v36  ;;  %v5027_v56 = vshll.u32 %v4954_v27, 16  ;;  %v7139_v27 = vld [vmem:[#allocation2 + $0x28] sm:$0xf] }
 0x16d   : > { %v4321_v43 = vsel %vm7269_vm10, %v6317_v9, %v4320_v59  ;;  %v5033_v35 = vshll.u32 %v4955_v34, 16  ;;  %v3634_v62 = vrot.slane %v3632_v60, 5  ;;  %v5026_v53 = vrot.slane %v5024_v39, 4  ;;  %v8533_v23 = vpop.f32.mrf.mxu1  ;;  %v7138_v59 = vld [vmem:[#allocation2 + $0x24] sm:$0xf] }
 0x16e   : > { %v6334_v1 = vcombine.low %v4321_v43, %v4330_v15  ;;  %v5012_v6 = vsel %vm7551_vm13, %v5007_v2, %v5011_v36  ;;  %9376 = vst [vmem:[#allocation56_spill] sm:$0xff] %v8533_v23  ;;  %v5017_v51 = vrot.slane %v5016_v3, 4  ;;  %v5029_v4 = vrot.slane %v5027_v56, 5  ;;  %v4957_v55 = vld [vmem:[#allocation2 + $0x44] sm:$0xf]  ;;  %v8540_v56 = vpop.f32.mrf.mxu0 }
 0x16f   : > { %v5035_v44 = vrot.slane %v5033_v35, 5  ;;  %v5037_v21 = vshrl.u32 %v4955_v34, 16  ;;  %v3635_v31 = vsel %vm7551_vm13, %v3630_v52, %v3634_v62  ;;  %v6352_v9 = vcombine.low %v7138_v59, %v7139_v27  ;;  %v4958_v43 = vld [vmem:[#allocation2 + $0x48] sm:$0xf]  ;;  %v4959_v3 = vld [vmem:[#allocation2 + $0x4c] sm:$0x1]  ;;  %v8542_v62 = vpop.f32.mrf.mxu1 }
 0x170   : > { %7000 = vmatmul.mubr.msk.bf16.gmra.mxu0 %vm981_vm7, %v6334_v1  ;;  %v5043_v15 = vshll.u32 %v4956_v19, 16  ;;  %v6285_v60 = vcombine.low %v3625_v7, %v3635_v31  ;;  %v5022_v36 = vsel %vm7551_vm13, %v5017_v51, %v5021_v46  ;;  %v5030_v2 = vor.u32 %v5029_v4, %v5026_v53  ;;  %9377 = vst [vmem:[#allocation57_spill] sm:$0xff] %v8540_v56  ;;  %v7140_v35 = vld [vmem:[#allocation2 + $0x34] sm:$0xf]  ;;  %v7141_v1 = vld [vmem:[#allocation2 + $0x38] sm:$0xf] }
 0x171   : > { %v5039_v39 = vrot.slane %v5037_v21, 4  ;;  %v6385_v34 = vcombine.low %v5012_v6, %v5022_v36  ;;  %v6353_v48 = vcombine.low %v7140_v35, %v7141_v1  ;;  %9378 = vst [vmem:[#allocation58_spill] sm:$0xff] %v8542_v62  ;;  %v5048_v31 = vshrl.u32 %v4957_v55, 16  ;;  %v4960_v59 = vld [vmem:[#allocation2 + $0x54] sm:$0xf] }
 0x172   : > { %6966 = vmatmul.mubr.msk.bf16.gmra.mxu1 %vm981_vm7, %v6285_v60  ;;  %v5031_v52 = vrot.slane %v5030_v2, 4  ;;  %v5045_v7 = vrot.slane %v5043_v15, 5  ;;  %v5051_v46 = vshll.u32 %v4957_v55, 16  ;;  %v5057_v53 = vshll.u32 %v4958_v43, 16  ;;  %v4961_v4 = vld [vmem:[#allocation2 + $0x58] sm:$0xf]  ;;  %v8551_v55 = vpop.f32.mrf.mxu1 }
 0x173   : > { %v5040_v19 = vor.u32 %v5039_v39, %v5035_v44  ;;  %7039 = vmatprep.mubr.msk.bf16.mxu0 %vm981_vm7, %v6385_v34  ;;  %7005 = vmatprep.mubr.msk.bf16.mxu1 %vm981_vm7, %v6352_v9  ;;  %v5061_v51 = vshrl.u32 %v4958_v43, 16  ;;  %v5067_v6 = vshll.u32 %v4959_v3, 16  ;;  %v5050_v36 = vrot.slane %v5048_v31, 4  ;;  %v7142_v60 = vld [vmem:[#allocation2 + $0x44] sm:$0xf]  ;;  %9380 = vst [vmem:[#allocation60_spill] sm:$0xff] %v8551_v55 }
 0x174   : > { %v5036_v21 = vsel %vm7551_vm13, %v5031_v52, %v5035_v44  ;;  %v7143_v2 = vld [vmem:[#allocation2 + $0x48] sm:$0xf]  ;;  %v5053_v35 = vrot.slane %v5051_v46, 5  ;;  %v5059_v1 = vrot.slane %v5057_v53, 5  ;;  %v4962_v9 = vld [vmem:[#allocation2 + $0x5c] sm:$0x1] }
 0x175   : > { %v5041_v27 = vrot.slane %v5040_v19, 4  ;;  %v6354_v39 = vcombine.low %v7142_v60, %v7143_v2  ;;  %v8549_v15 = vpop.f32.mrf.mxu0  ;;  %v5063_v34 = vrot.slane %v5061_v51, 4  ;;  %v5069_v56 = vrot.slane %v5067_v6, 5 }
 0x176   : > { %9379 = vst [vmem:[#allocation59_spill] sm:$0xff] %v8549_v15  ;;  %v5072_v3 = vshrl.u32 %v4960_v59, 16  ;;  %v5075_v62 = vshll.u32 %v4960_v59, 16  ;;  %v5081_v44 = vshll.u32 %v4961_v4, 16  ;;  %v5054_v31 = vor.u32 %v5053_v35, %v5050_v36  ;;  %v4964_v36 = vld [vmem:[#allocation2 + $0x68] sm:$0xf] }
 0x177   : > { %v5046_v43 = vsel %vm7551_vm13, %v5041_v27, %v5045_v7  ;;  %v8555_v52 = vpop.f32.mrf.mxu0  ;;  %v5064_v60 = vor.u32 %v5063_v34, %v5059_v1  ;;  %v5085_v2 = vshrl.u32 %v4961_v4, 16  ;;  %v5091_v51 = vshll.u32 %v4962_v9, 16  ;;  %v4963_v27 = vld [vmem:[#allocation2 + $0x64] sm:$0xf] }
 0x178   : > { %9381 = vst [vmem:[#allocation61_spill] sm:$0xff] %v8555_v52  ;;  %v6386_v19 = vcombine.low %v5036_v21, %v5046_v43  ;;  %v5074_v15 = vrot.slane %v5072_v3, 4  ;;  %v5077_v46 = vrot.slane %v5075_v62, 5  ;;  %v5083_v53 = vrot.slane %v5081_v44, 5  ;;  %v4965_v43 = vld [vmem:[#allocation2 + $0x6c] sm:$0x1] }
 0x179   : > { %v8557_v6 = vpop.f32.mrf.mxu0  ;;  %v5055_v55 = vrot.slane %v5054_v31, 4  ;;  %v5065_v23 = vrot.slane %v5064_v60, 4  ;;  %v5087_v7 = vrot.slane %v5085_v2, 4  ;;  %v8560_v59 = vpop.f32.mrf.mxu1  ;;  %v5093_v9 = vrot.slane %v5091_v51, 5 }
 0x17a   : > { %9382 = vst [vmem:[#allocation62_spill] sm:$0xff] %v8557_v6  ;;  %7040 = vmatmul.mubr.msk.bf16.vlgmr.msra.gmra.mxu0 %vm981_vm7, %v6386_v19  ;;  %7006 = vmatmul.mubr.msk.bf16.vlgmr.msra.gmra.mxu1 %vm981_vm7, %v6353_v48  ;;  %v5078_v21 = vor.u32 %v5077_v46, %v5074_v15  ;;  %v7144_v48 = vld [vmem:[#allocation2 + $0x54] sm:$0xf]  ;;  %v7145_v15 = vld [vmem:[#allocation2 + $0x58] sm:$0xf]  ;;  %v5096_v60 = vshrl.u32 %v4963_v27, 16 }
 0x17b   : > { %v8563_v35 = vpop.f32.mrf.mxu0  ;;  %v5060_v62 = vsel %vm7551_vm13, %v5055_v55, %v5059_v1  ;;  %v5070_v4 = vsel %vm7551_vm13, %v5065_v23, %v5069_v56  ;;  %7009 = vmatprep.mubr.msk.bf16.mxu1 %vm981_vm7, %v6354_v39  ;;  %v5088_v34 = vor.u32 %v5087_v7, %v5083_v53  ;;  %v8570_v3 = vpop.f32.mrf.mxu1  ;;  %v6355_v31 = vcombine.low %v7144_v48, %v7145_v15  ;;  %v4966_v23 = vld [vmem:[#allocation2 + $0x74] sm:$0xf]  ;;  %v4967_v48 = vld [vmem:[#allocation2 + $0x78] sm:$0xf]  ;;  %v4968_v6 = vld [vmem:[#allocation2 + $0x7c] sm:$0x1] }
 0x17c   : > { %9383 = vst [vmem:[#allocation63_spill] sm:$0xff] %v8563_v35  ;;  %9384 = vst [vmem:[#allocation64_spill] sm:$0xff] %v8570_v3  ;;  %v6387_v44 = vcombine.low %v5060_v62, %v5070_v4  ;;  %v5079_v19 = vrot.slane %v5078_v21, 4  ;;  %v5099_v1 = vshll.u32 %v4963_v27, 16  ;;  %v5105_v55 = vshll.u32 %v4964_v36, 16 }
 0x17d   : > { %v8572_v2 = vpop.f32.mrf.mxu0  ;;  %v5089_v46 = vrot.slane %v5088_v34, 4  ;;  %v5109_v35 = vshrl.u32 %v4964_v36, 16  ;;  %v8574_v56 = vpop.f32.mrf.mxu1  ;;  %v5098_v51 = vrot.slane %v5096_v60, 4  ;;  %v5115_v7 = vshll.u32 %v4965_v43, 16  ;;  %v7146_v21 = vld [vmem:[#allocation2 + $0x64] sm:$0xf] }
 0x17e   : > { %9385 = vst [vmem:[#allocation65_spill] sm:$0xff] %v8572_v2  ;;  %9386 = vst [vmem:[#allocation66_spill] sm:$0xff] %v8574_v56  ;;  %7043 = vmatprep.mubr.msk.bf16.mxu0 %vm981_vm7, %v6387_v44  ;;  %v5084_v39 = vsel %vm7551_vm13, %v5079_v19, %v5083_v53  ;;  %v7147_v62 = vld [vmem:[#allocation2 + $0x68] sm:$0xf]  ;;  %v5101_v36 = vrot.slane %v5099_v1, 5  ;;  %v5107_v34 = vrot.slane %v5105_v55, 5 }
 0x17f   : > { %v6356_v4 = vcombine.low %v7146_v21, %v7147_v62  ;;  %v8579_v15 = vpop.f32.mrf.mxu0  ;;  %v5094_v27 = vsel %vm7551_vm13, %v5089_v46, %v5093_v9  ;;  %v5111_v2 = vrot.slane %v5109_v35, 4  ;;  %v8583_v52 = vpop.f32.mrf.mxu1  ;;  %v5117_v56 = vrot.slane %v5115_v7, 5 }
 0x180   : > { %9387 = vst [vmem:[#allocation67_spill] sm:$0xff] %v8579_v15  ;;  %v6388_v44 = vcombine.low %v5084_v39, %v5094_v27  ;;  %v5120_v53 = vshrl.u32 %v4966_v23, 16  ;;  %v5123_v19 = vshll.u32 %v4966_v23, 16  ;;  %v5102_v60 = vor.u32 %v5101_v36, %v5098_v51  ;;  %v4970_v27 = vld [vmem:[#allocation2 + $0x88] sm:$0xf] }
 0x181   : > { %v8585_v43 = vpop.f32.mrf.mxu0  ;;  %v5112_v21 = vor.u32 %v5111_v2, %v5107_v34  ;;  %v5129_v62 = vshll.u32 %v4967_v48, 16  ;;  %v5133_v3 = vshrl.u32 %v4967_v48, 16  ;;  %v8587_v15 = vpop.f32.mrf.mxu1  ;;  %v5139_v46 = vshll.u32 %v4968_v6, 16  ;;  %v4969_v2 = vld [vmem:[#allocation2 + $0x84] sm:$0xf] }
 0x182   : > { %9388 = vst [vmem:[#allocation68_spill] sm:$0xff] %v8585_v43  ;;  %9389 = vst [vmem:[#allocation69_spill] sm:$0xff] %v8587_v15  ;;  %7044 = vmatmul.mubr.msk.bf16.gmra.mxu0 %vm981_vm7, %v6388_v44  ;;  %7010 = vmatmul.mubr.msk.bf16.gmra.mxu1 %vm981_vm7, %v6355_v31  ;;  %v5122_v35 = vrot.slane %v5120_v53, 4  ;;  %v5125_v9 = vrot.slane %v5123_v19, 5  ;;  %v5103_v55 = vrot.slane %v5102_v60, 4 }
 0x183   : > { %v8591_v1 = vpop.f32.mrf.mxu0  ;;  %v5113_v39 = vrot.slane %v5112_v21, 4  ;;  %7013 = vmatprep.mubr.msk.bf16.mxu1 %vm981_vm7, %v6356_v4  ;;  %v5131_v23 = vrot.slane %v5129_v62, 5  ;;  %v5135_v51 = vrot.slane %v5133_v3, 4  ;;  %v8594_v7 = vpop.f32.mrf.mxu1  ;;  %v5141_v53 = vrot.slane %v5139_v46, 5  ;;  %v4971_v19 = vld [vmem:[#allocation2 + $0x8c] sm:$0x1] }
 0x184   : > { %9390 = vst [vmem:[#allocation70_spill] sm:$0xff] %v8591_v1  ;;  %9391 = vst [vmem:[#allocation71_spill] sm:$0xff] %v8594_v7  ;;  %v5126_v48 = vor.u32 %v5125_v9, %v5122_v35  ;;  %v5108_v31 = vsel %vm7551_vm13, %v5103_v55, %v5107_v34  ;;  %v7148_v21 = vld [vmem:[#allocation2 + $0x74] sm:$0xf]  ;;  %v7149_v62 = vld [vmem:[#allocation2 + $0x78] sm:$0xf] }
 0x185   : > { %v8596_v36 = vpop.f32.mrf.mxu0  ;;  %v5118_v6 = vsel %vm7551_vm13, %v5113_v39, %v5117_v56  ;;  %v5136_v44 = vor.u32 %v5135_v51, %v5131_v23  ;;  %v8602_v60 = vpop.f32.mrf.mxu1  ;;  %v6357_v1 = vcombine.low %v7148_v21, %v7149_v62  ;;  %v5144_v35 = vshrl.u32 %v4969_v2, 16  ;;  %v4972_v55 = vld [vmem:[#allocation2 + $0x94] sm:$0xf]  ;;  %v7150_v51 = vld [vmem:[#allocation2 + $0x84] sm:$0xf] }
 0x186   : > { %9392 = vst [vmem:[#allocation72_spill] sm:$0xff] %v8596_v36  ;;  %9393 = vst [vmem:[#allocation73_spill] sm:$0xff] %v8602_v60  ;;  %v6389_v4 = vcombine.low %v5108_v31, %v5118_v6  ;;  %v5127_v3 = vrot.slane %v5126_v48, 4  ;;  %v5147_v36 = vshll.u32 %v4969_v2, 16  ;;  %v5153_v7 = vshll.u32 %v4970_v27, 16 }
 0x187   : > { %v8604_v9 = vpop.f32.mrf.mxu0  ;;  %v5137_v43 = vrot.slane %v5136_v44, 4  ;;  %v5157_v34 = vshrl.u32 %v4970_v27, 16  ;;  %v8606_v15 = vpop.f32.mrf.mxu1  ;;  %v5146_v46 = vrot.slane %v5144_v35, 4  ;;  %v5163_v39 = vshll.u32 %v4971_v19, 16  ;;  %v7151_v48 = vld [vmem:[#allocation2 + $0x88] sm:$0xf] }
 0x188   : > { %9394 = vst [vmem:[#allocation74_spill] sm:$0xff] %v8604_v9  ;;  %9395 = vst [vmem:[#allocation75_spill] sm:$0xff] %v8606_v15  ;;  %7047 = vmatprep.mubr.msk.bf16.mxu0 %vm981_vm7, %v6389_v4  ;;  %v5132_v56 = vsel %vm7551_vm13, %v5127_v3, %v5131_v23  ;;  %v6358_v31 = vcombine.low %v7150_v51, %v7151_v48  ;;  %v4973_v6 = vld [vmem:[#allocation2 + $0x98] sm:$0xf]  ;;  %v5149_v27 = vrot.slane %v5147_v36, 5  ;;  %v5155_v44 = vrot.slane %v5153_v7, 5 }
 0x189   : > { %v8611_v21 = vpop.f32.mrf.mxu0  ;;  %v5142_v2 = vsel %vm7551_vm13, %v5137_v43, %v5141_v53  ;;  %v5159_v62 = vrot.slane %v5157_v34, 4  ;;  %v4974_v15 = vld [vmem:[#allocation2 + $0x9c] sm:$0x1]  ;;  %v8615_v60 = vpop.f32.mrf.mxu1  ;;  %v5165_v23 = vrot.slane %v5163_v39, 5  ;;  %v5168_v19 = vshrl.u32 %v4972_v55, 16 }
 0x18a   : > { %9396 = vst [vmem:[#allocation76_spill] sm:$0xff] %v8611_v21  ;;  %v6390_v4 = vcombine.low %v5132_v56, %v5142_v2  ;;  %7014 = vmatmul.mubr.msk.bf16.gmra.mxu1 %vm981_vm7, %v6357_v1  ;;  %v5171_v3 = vshll.u32 %v4972_v55, 16  ;;  %v5150_v51 = vor.u32 %v5149_v27, %v5146_v46  ;;  %v5177_v21 = vshll.u32 %v4973_v6, 16  ;;  %v4975_v9 = vld [vmem:[#allocation2 + $0xa4] sm:$0xf] }
 0x18b   : > { %v8618_v35 = vpop.f32.mrf.mxu0  ;;  %v5160_v48 = vor.u32 %v5159_v62, %v5155_v44  ;;  %7017 = vmatprep.mubr.msk.bf16.mxu1 %vm981_vm7, %v6358_v31  ;;  %v5181_v43 = vshrl.u32 %v4973_v6, 16  ;;  %v8621_v36 = vpop.f32.mrf.mxu1  ;;  %v5170_v7 = vrot.slane %v5168_v19, 4  ;;  %v5187_v34 = vshll.u32 %v4974_v15, 16  ;;  %v7152_v27 = vld [vmem:[#allocation2 + $0x94] sm:$0xf] }
 0x18c   : > { %9397 = vst [vmem:[#allocation77_spill] sm:$0xff] %v8618_v35  ;;  %9398 = vst [vmem:[#allocation78_spill] sm:$0xff] %v8621_v36  ;;  %7048 = vmatmul.mubr.msk.bf16.gmra.mxu0 %vm981_vm7, %v6390_v4  ;;  %v5173_v53 = vrot.slane %v5171_v3, 5  ;;  %v5151_v1 = vrot.slane %v5150_v51, 4  ;;  %v5179_v55 = vrot.slane %v5177_v21, 5  ;;  %v8630_v31 = vadd.f32 %v8317_v47, %v8178_v16 }
 0x18d   : > { %v8624_v56 = vpop.f32.mrf.mxu0  ;;  %v5161_v39 = vrot.slane %v5160_v48, 4  ;;  %v5183_v2 = vrot.slane %v5181_v43, 4  ;;  %v8626_v46 = vpop.f32.mrf.mxu1  ;;  %v7153_v62 = vld [vmem:[#allocation2 + $0x98] sm:$0xf]  ;;  %v4976_v19 = vld [vmem:[#allocation2 + $0xa8] sm:$0xf]  ;;  %v8642_v16 = vadd.f32 %v8319_v49, %v8185_v33 }
 0x18e   : > { %9399 = vst [vmem:[#allocation79_spill] sm:$0xff] %v8624_v56  ;;  %9400 = vst [vmem:[#allocation80_spill] sm:$0xff] %v8626_v46  ;;  %v5174_v6 = vor.u32 %v5173_v53, %v5170_v7  ;;  %v6359_v4 = vcombine.low %v7152_v27, %v7153_v62  ;;  %v5156_v15 = vsel %vm7551_vm13, %v5151_v1, %v5155_v44  ;;  %v5189_v48 = vrot.slane %v5187_v34, 5  ;;  %v4977_v43 = vld [vmem:[#allocation2 + $0xac] sm:$0x1] }
 0x18f   : > { %v8632_v3 = vpop.f32.mrf.mxu0  ;;  %v5166_v21 = vsel %vm7551_vm13, %v5161_v39, %v5165_v23  ;;  %v5184_v51 = vor.u32 %v5183_v2, %v5179_v55  ;;  %v8638_v46 = vpop.f32.mrf.mxu1  ;;  %v5192_v53 = vshrl.u32 %v4975_v9, 16  ;;  %v5201_v44 = vshll.u32 %v4976_v19, 16  ;;  %v4978_v56 = vld [vmem:[#allocation2 + $0xb4] sm:$0xf]  ;;  %v7154_v39 = vld [vmem:[#allocation2 + $0xa4] sm:$0xf] }
 0x190   : > { %9401 = vst [vmem:[#allocation81_spill] sm:$0xff] %v8632_v3  ;;  %v6391_v47 = vcombine.low %v5156_v15, %v5166_v21  ;;  %v5175_v7 = vrot.slane %v5174_v6, 4  ;;  %v5195_v3 = vshll.u32 %v4975_v9, 16  ;;  %v5205_v1 = vshrl.u32 %v4976_v19, 16  ;;  %v7155_v2 = vld [vmem:[#allocation2 + $0xa8] sm:$0xf] }
 0x191   : > { %v8644_v27 = vpop.f32.mrf.mxu0  ;;  %v5185_v62 = vrot.slane %v5184_v51, 4  ;;  %v8646_v23 = vpop.f32.mrf.mxu1  ;;  %v5194_v33 = vrot.slane %v5192_v53, 4  ;;  %v5211_v49 = vshll.u32 %v4977_v43, 16  ;;  %v6360_v6 = vcombine.low %v7154_v39, %v7155_v2  ;;  %v4979_v15 = vld [vmem:[#allocation2 + $0xb8] sm:$0xf] }
 0x192   : > { %9402 = vst [vmem:[#allocation82_spill] sm:$0xff] %v8644_v27  ;;  %9403 = vst [vmem:[#allocation83_spill] sm:$0xff] %v8646_v23  ;;  %7051 = vmatprep.mubr.msk.bf16.mxu0 %vm981_vm7, %v6391_v47  ;;  %v5180_v34 = vsel %vm7551_vm13, %v5175_v7, %v5179_v55  ;;  %7018 = vmatmul.mubr.msk.bf16.gmra.mxu1 %vm981_vm7, %v6359_v4  ;;  %v5197_v19 = vrot.slane %v5195_v3, 5  ;;  %v5203_v51 = vrot.slane %v5201_v44, 5  ;;  %v5207_v27 = vrot.slane %v5205_v1, 4 }
 0x193   : > { %v8652_v21 = vpop.f32.mrf.mxu0  ;;  %v5190_v9 = vsel %vm7551_vm13, %v5185_v62, %v5189_v48  ;;  %v4980_v47 = vld [vmem:[#allocation2 + $0xbc] sm:$0x1]  ;;  %v8656_v35 = vpop.f32.mrf.mxu1  ;;  %v5213_v7 = vrot.slane %v5211_v49, 5  ;;  %7021 = vmatprep.mubr.msk.bf16.mxu1 %vm981_vm7, %v6360_v6  ;;  %v5216_v4 = vshrl.u32 %v4978_v56, 16  ;;  %v5219_v43 = vshll.u32 %v4978_v56, 16 }
 0x194   : > { %9404 = vst [vmem:[#allocation84_spill] sm:$0xff] %v8652_v21  ;;  %v6392_v55 = vcombine.low %v5180_v34, %v5190_v9  ;;  %v5198_v39 = vor.u32 %v5197_v19, %v5194_v33  ;;  %v5208_v2 = vor.u32 %v5207_v27, %v5203_v51  ;;  %v5225_v21 = vshll.u32 %v4979_v15, 16  ;;  %v4981_v27 = vld [vmem:[#allocation2 + $0xc4] sm:$0xf]  ;;  %v7156_v9 = vld [vmem:[#allocation2 + $0xb4] sm:$0xf] }
 0x195   : > { %v8659_v53 = vpop.f32.mrf.mxu0  ;;  %v5229_v36 = vshrl.u32 %v4979_v15, 16  ;;  %v8661_v23 = vpop.f32.mrf.mxu1  ;;  %v8665_v3 = vadd.f32 %v8348_v42, %v8206_v14  ;;  %v5218_v48 = vrot.slane %v5216_v4, 4  ;;  %v5221_v62 = vrot.slane %v5219_v43, 5  ;;  %v7157_v19 = vld [vmem:[#allocation2 + $0xb8] sm:$0xf] }
 0x196   : > { %9405 = vst [vmem:[#allocation85_spill] sm:$0xff] %v8659_v53  ;;  %7052 = vmatmul.mubr.msk.bf16.gmra.mxu0 %vm981_vm7, %v6392_v55  ;;  %v5235_v44 = vshll.u32 %v4980_v47, 16  ;;  %v5199_v56 = vrot.slane %v5198_v39, 4  ;;  %v5209_v34 = vrot.slane %v5208_v2, 4  ;;  %v5227_v49 = vrot.slane %v5225_v21, 5 }
 0x197   : > { %v8668_v1 = vpop.f32.mrf.mxu0  ;;  %v5231_v33 = vrot.slane %v5229_v36, 4  ;;  %v8670_v6 = vpop.f32.mrf.mxu1  ;;  %v8674_v15 = vadd.f32 %v8357_v10, %v8212_v32  ;;  %v8678_v14 = vadd.f32 %v8375_v37, %v8232_v54  ;;  %v5222_v42 = vor.u32 %v5221_v62, %v5218_v48  ;;  %v4982_v55 = vld [vmem:[#allocation2 + $0xc8] sm:$0xf]  ;;  %v4983_v10 = vld [vmem:[#allocation2 + $0xcc] sm:$0x1] }
 0x198   : > { %9406 = vst [vmem:[#allocation86_spill] sm:$0xff] %v8668_v1  ;;  %v6361_v47 = vcombine.low %v7156_v9, %v7157_v19  ;;  %v5204_v36 = vsel %vm7551_vm13, %v5199_v56, %v5203_v51  ;;  %v5214_v21 = vsel %vm7551_vm13, %v5209_v34, %v5213_v7  ;;  %v5237_v32 = vrot.slane %v5235_v44, 5  ;;  %v4984_v34 = vld [vmem:[#allocation2 + $0xd4] sm:$0xf]  ;;  %v7159_v19 = vld [vmem:[#allocation2 + $0xc8] sm:$0xf] }
 0x199   : > { %v8680_v4 = vpop.f32.mrf.mxu0  ;;  %v5232_v43 = vor.u32 %v5231_v33, %v5227_v49  ;;  %v8686_v39 = vpop.f32.mrf.mxu1  ;;  %v8690_v54 = vadd.f32 %v8384_v22, %v8237_v63  ;;  %v6393_v37 = vcombine.low %v5204_v36, %v5214_v21  ;;  %v5223_v2 = vrot.slane %v5222_v42, 4  ;;  %v7158_v42 = vld [vmem:[#allocation2 + $0xc4] sm:$0xf]  ;;  %v4985_v36 = vld [vmem:[#allocation2 + $0xd8] sm:$0xf] }
 0x19a   : > { %9407 = vst [vmem:[#allocation87_spill] sm:$0xff] %v8680_v4  ;;  %7022 = vmatmul.mubr.msk.bf16.gmra.mxu1 %vm981_vm7, %v6361_v47  ;;  %v5240_v48 = vshrl.u32 %v4981_v27, 16  ;;  %v5243_v56 = vshll.u32 %v4981_v27, 16  ;;  %v5249_v9 = vshll.u32 %v4982_v55, 16  ;;  %v5253_v7 = vshrl.u32 %v4982_v55, 16 }
 0x19b   : > { %v8693_v62 = vpop.f32.mrf.mxu0  ;;  %v5233_v51 = vrot.slane %v5232_v43, 4  ;;  %v8695_v44 = vpop.f32.mrf.mxu1  ;;  %7055 = vmatprep.mubr.msk.bf16.mxu0 %vm981_vm7, %v6393_v37  ;;  %v5228_v63 = vsel %vm7551_vm13, %v5223_v2, %v5227_v49  ;;  %v5259_v33 = vshll.u32 %v4983_v10, 16  ;;  %v6362_v47 = vcombine.low %v7158_v42, %v7159_v19  ;;  %v4986_v4 = vld [vmem:[#allocation2 + $0xdc] sm:$0x1] }
 0x19c   : > { %9408 = vst [vmem:[#allocation88_spill] sm:$0xff] %v8693_v62  ;;  %9409 = vst [vmem:[#allocation89_spill] sm:$0xff] %v8695_v44  ;;  %v5242_v22 = vrot.slane %v5240_v48, 4  ;;  %v5245_v55 = vrot.slane %v5243_v56, 5  ;;  %v5251_v43 = vrot.slane %v5249_v9, 5  ;;  %v5255_v62 = vrot.slane %v5253_v7, 4 }
 0x19d   : > { %v8700_v21 = vpop.f32.mrf.mxu0  ;;  %v5238_v27 = vsel %vm7551_vm13, %v5233_v51, %v5237_v32  ;;  %v8704_v1 = vpop.f32.mrf.mxu1  ;;  %v5261_v53 = vrot.slane %v5259_v33, 5  ;;  %7025 = vmatprep.mubr.msk.bf16.mxu1 %vm981_vm7, %v6362_v47  ;;  %v5264_v49 = vshrl.u32 %v4984_v34, 16  ;;  %v5267_v10 = vshll.u32 %v4984_v34, 16 }
 0x19e   : > { %9410 = vst [vmem:[#allocation90_spill] sm:$0xff] %v8700_v21  ;;  %v6394_v37 = vcombine.low %v5228_v63, %v5238_v27  ;;  %v5246_v48 = vor.u32 %v5245_v55, %v5242_v22  ;;  %v5256_v42 = vor.u32 %v5255_v62, %v5251_v43  ;;  %v5273_v19 = vshll.u32 %v4985_v36, 16  ;;  %v4987_v62 = vld [vmem:[#allocation2 + $0xe4] sm:$0xf]  ;;  %v7160_v27 = vld [vmem:[#allocation2 + $0xd4] sm:$0xf] }
 0x19f   : > { %v8707_v2 = vpop.f32.mrf.mxu0  ;;  %v5277_v21 = vshrl.u32 %v4985_v36, 16  ;;  %v8709_v44 = vpop.f32.mrf.mxu1  ;;  %v8713_v32 = vadd.f32 %v8391_v26, %v8243_v61  ;;  %v5266_v51 = vrot.slane %v5264_v49, 4  ;;  %v5269_v56 = vrot.slane %v5267_v10, 5 }
 0x1a0   : > { %9411 = vst [vmem:[#allocation91_spill] sm:$0xff] %v8707_v2  ;;  %9412 = vst [vmem:[#allocation92_spill] sm:$0xff] %v8709_v44  ;;  %7056 = vmatmul.mubr.msk.bf16.gmra.mxu0 %vm981_vm7, %v6394_v37  ;;  %v5283_v9 = vshll.u32 %v4986_v4, 16  ;;  %v5247_v34 = vrot.slane %v5246_v48, 4  ;;  %v5257_v63 = vrot.slane %v5256_v42, 4  ;;  %v5275_v33 = vrot.slane %v5273_v19, 5 }
 0x1a1   : > { %v8716_v7 = vpop.f32.mrf.mxu0  ;;  %v5279_v22 = vrot.slane %v5277_v21, 4  ;;  %v8718_v47 = vpop.f32.mrf.mxu1  ;;  %v8722_v36 = vadd.f32 %v8396_v38, %v8251_v25  ;;  %v8726_v61 = vadd.f32 %v8406_v17, %v8258_v13  ;;  %v5270_v26 = vor.u32 %v5269_v56, %v5266_v51  ;;  %v7161_v4 = vld [vmem:[#allocation2 + $0xd8] sm:$0xf]  ;;  %v4988_v37 = vld [vmem:[#allocation2 + $0xe8] sm:$0xf] }
 0x1a2   : > { %9413 = vst [vmem:[#allocation93_spill] sm:$0xff] %v8716_v7  ;;  %9414 = vst [vmem:[#allocation94_spill] sm:$0xff] %v8718_v47  ;;  %v6363_v55 = vcombine.low %v7160_v27, %v7161_v4  ;;  %v5252_v21 = vsel %vm7551_vm13, %v5247_v34, %v5251_v43  ;;  %v5262_v10 = vsel %vm7551_vm13, %v5257_v63, %v5261_v53  ;;  %v5285_v25 = vrot.slane %v5283_v9, 5  ;;  %v4989_v38 = vld [vmem:[#allocation2 + $0xec] sm:$0x1] }
 0x1a3   : > { %v8728_v49 = vpop.f32.mrf.mxu0  ;;  %v5280_v48 = vor.u32 %v5279_v22, %v5275_v33  ;;  %v8734_v42 = vpop.f32.mrf.mxu1  ;;  %v8738_v13 = vadd.f32 %v8418_v40, %v8266_v29  ;;  %v6395_v17 = vcombine.low %v5252_v21, %v5262_v10  ;;  %v5271_v19 = vrot.slane %v5270_v26, 4  ;;  %v4990_v63 = vld [vmem:[#allocation2 + $0xf4] sm:$0xf]  ;;  %v7162_v26 = vld [vmem:[#allocation2 + $0xe4] sm:$0xf]  ;;  %v9450_v47 = vld [vmem:[#allocation60_spill] sm:$0xff] }
 0x1a4   : > { %9415 = vst [vmem:[#allocation95_spill] sm:$0xff] %v8728_v49  ;;  %9416 = vst [vmem:[#allocation96_spill] sm:$0xff] %v8734_v42  ;;  %7026 = vmatmul.mubr.msk.bf16.gmra.mxu1 %vm981_vm7, %v6363_v55  ;;  %v5288_v51 = vshrl.u32 %v4987_v62, 16  ;;  %v5291_v34 = vshll.u32 %v4987_v62, 16  ;;  %v5297_v27 = vshll.u32 %v4988_v37, 16  ;;  %v5301_v53 = vshrl.u32 %v4988_v37, 16 }
 0x1a5   : > { %v8741_v56 = vpop.f32.mrf.mxu0  ;;  %v5281_v43 = vrot.slane %v5280_v48, 4  ;;  %v8743_v9 = vpop.f32.mrf.mxu1  ;;  %7059 = vmatprep.mubr.msk.bf16.mxu0 %vm981_vm7, %v6395_v17  ;;  %v5276_v29 = vsel %vm7551_vm13, %v5271_v19, %v5275_v33  ;;  %v5307_v22 = vshll.u32 %v4989_v38, 16  ;;  %v7163_v4 = vld [vmem:[#allocation2 + $0xe8] sm:$0xf]  ;;  %v4991_v21 = vld [vmem:[#allocation2 + $0xf8] sm:$0xf] }
 0x1a6   : > { %9417 = vst [vmem:[#allocation97_spill] sm:$0xff] %v8741_v56  ;;  %9418 = vst [vmem:[#allocation98_spill] sm:$0xff] %v8743_v9  ;;  %v5290_v40 = vrot.slane %v5288_v51, 4  ;;  %v6364_v55 = vcombine.low %v7162_v26, %v7163_v4  ;;  %v5293_v37 = vrot.slane %v5291_v34, 5  ;;  %v5299_v48 = vrot.slane %v5297_v27, 5 }
 0x1a7   : > { %v8748_v10 = vpop.f32.mrf.mxu0  ;;  %v5286_v62 = vsel %vm7551_vm13, %v5281_v43, %v5285_v25  ;;  %v5303_v56 = vrot.slane %v5301_v53, 4  ;;  %v4992_v49 = vld [vmem:[#allocation2 + $0xfc] sm:$0x1]  ;;  %v8752_v7 = vpop.f32.mrf.mxu1  ;;  %v5309_v2 = vrot.slane %v5307_v22, 5  ;;  %v5312_v33 = vshrl.u32 %v4990_v63, 16 }
 0x1a8   : > { %9419 = vst [vmem:[#allocation99_spill] sm:$0xff] %v8748_v10  ;;  %v6396_v17 = vcombine.low %v5276_v29, %v5286_v62  ;;  %7029 = vmatprep.mubr.msk.bf16.mxu1 %vm981_vm7, %v6364_v55  ;;  %v5315_v38 = vshll.u32 %v4990_v63, 16  ;;  %v5294_v51 = vor.u32 %v5293_v37, %v5290_v40  ;;  %v5321_v4 = vshll.u32 %v4991_v21, 16  ;;  %v7164_v62 = vld [vmem:[#allocation2 + $0xf4] sm:$0xf] }
 0x1a9   : > { %v8755_v19 = vpop.f32.mrf.mxu0  ;;  %v5304_v26 = vor.u32 %v5303_v56, %v5299_v48  ;;  %v5325_v10 = vshrl.u32 %v4991_v21, 16  ;;  %v8757_v9 = vpop.f32.mrf.mxu1  ;;  %v8761_v25 = vadd.f32 %v8422_v0, %v8277_v20  ;;  %v5314_v43 = vrot.slane %v5312_v33, 4  ;;  %v4993_v56 = vld [vmem:[#allocation2 + $0x104] sm:$0xf] }
 0x1aa   : > { %9420 = vst [vmem:[#allocation100_spill] sm:$0xff] %v8755_v19  ;;  %7060 = vmatmul.mubr.msk.bf16.gmra.mxu0 %vm981_vm7, %v6396_v17  ;;  %v5317_v34 = vrot.slane %v5315_v38, 5  ;;  %v5331_v27 = vshll.u32 %v4992_v49, 16  ;;  %v5295_v63 = vrot.slane %v5294_v51, 4  ;;  %v5323_v22 = vrot.slane %v5321_v4, 5 }
 0x1ab   : > { %v8764_v53 = vpop.f32.mrf.mxu0  ;;  %v5305_v29 = vrot.slane %v5304_v26, 4  ;;  %v5327_v40 = vrot.slane %v5325_v10, 4  ;;  %v8766_v55 = vpop.f32.mrf.mxu1  ;;  %v8770_v21 = vadd.f32 %v8432_v50, %v8284_v41  ;;  %v8774_v0 = vadd.f32 %v8442_v24, %v8296_v18  ;;  %v7165_v49 = vld [vmem:[#allocation2 + $0xf8] sm:$0xf]  ;;  %v4994_v17 = vld [vmem:[#allocation2 + $0x108] sm:$0xf] }
 0x1ac   : > { %9421 = vst [vmem:[#allocation101_spill] sm:$0xff] %v8764_v53  ;;  %v5318_v20 = vor.u32 %v5317_v34, %v5314_v43  ;;  %v6365_v37 = vcombine.low %v7164_v62, %v7165_v49  ;;  %v5300_v10 = vsel %vm7551_vm13, %v5295_v63, %v5299_v48  ;;  %v5333_v41 = vrot.slane %v5331_v27, 5  ;;  %v4995_v50 = vld [vmem:[#allocation2 + $0x10c] sm:$0x1]  ;;  %v204_v34 = vld [vmem:[#allocation2 + $0x11c] sm:$0x1] }
 0x1ad   : > { %v8776_v33 = vpop.f32.mrf.mxu0  ;;  %v5310_v38 = vsel %vm7551_vm13, %v5305_v29, %v5309_v2  ;;  %v5328_v51 = vor.u32 %v5327_v40, %v5323_v22  ;;  %v8782_v26 = vpop.f32.mrf.mxu1  ;;  %v8786_v18 = vadd.f32 %v8451_v58, %v8191_v57  ;;  %v5336_v43 = vshrl.u32 %v4993_v56, 16  ;;  %v4996_v27 = vld [vmem:[#allocation2 + $0x114] sm:$0xf]  ;;  %v7166_v49 = vld [vmem:[#allocation2 + $0x104] sm:$0xf] }
 0x1ae   : > { %9422 = vst [vmem:[#allocation102_spill] sm:$0xff] %v8776_v33  ;;  %v6397_v24 = vcombine.low %v5300_v10, %v5310_v38  ;;  %v5319_v4 = vrot.slane %v5318_v20, 4  ;;  %7030 = vmatmul.mubr.msk.bf16.gmra.mxu1 %vm981_vm7, %v6365_v37  ;;  %v5339_v63 = vshll.u32 %v4993_v56, 16  ;;  %v5345_v2 = vshll.u32 %v4994_v17, 16  ;;  %v7167_v37 = vld [vmem:[#allocation2 + $0x108] sm:$0xf] }
 0x1af   : > { %v8789_v62 = vpop.f32.mrf.mxu0  ;;  %v5329_v48 = vrot.slane %v5328_v51, 4  ;;  %v5349_v29 = vshrl.u32 %v4994_v17, 16  ;;  %v8791_v40 = vpop.f32.mrf.mxu1  ;;  %v5338_v58 = vrot.slane %v5336_v43, 4  ;;  %v5355_v20 = vshll.u32 %v4995_v50, 16  ;;  %v4997_v38 = vld [vmem:[#allocation2 + $0x118] sm:$0xf] }
 0x1b0   : > { %9423 = vst [vmem:[#allocation103_spill] sm:$0xff] %v8789_v62  ;;  %7063 = vmatprep.mubr.msk.bf16.mxu0 %vm981_vm7, %v6397_v24  ;;  %v5324_v57 = vsel %vm7551_vm13, %v5319_v4, %v5323_v22  ;;  %v6366_v10 = vcombine.low %v7166_v49, %v7167_v37  ;;  %v5341_v17 = vrot.slane %v5339_v63, 5  ;;  %v5347_v51 = vrot.slane %v5345_v2, 5 }
 0x1b1   : > { %v8796_v33 = vpop.f32.mrf.mxu0  ;;  %v5334_v56 = vsel %vm7551_vm13, %v5329_v48, %v5333_v41  ;;  %v5351_v62 = vrot.slane %v5349_v29, 4  ;;  %v8800_v53 = vpop.f32.mrf.mxu1  ;;  %v5357_v19 = vrot.slane %v5355_v20, 5  ;;  %v205_v22 = vsel %vm7226_vm4, 0, %v204_v34 }
 0x1b2   : > { %9424 = vst [vmem:[#allocation104_spill] sm:$0xff] %v8796_v33  ;;  %v6398_v24 = vcombine.low %v5324_v57, %v5334_v56  ;;  %7033 = vmatprep.mubr.msk.bf16.mxu1 %vm981_vm7, %v6366_v10  ;;  %v5360_v50 = vshrl.u32 %v4996_v27, 16  ;;  %v5342_v43 = vor.u32 %v5341_v17, %v5338_v58  ;;  %206 = vst [vmem:[#allocation2 + $0x11c] sm:$0x1] %v205_v22  ;;  %v5363_v37 = vshll.u32 %v4996_v27, 16  ;;  %v9429_v56 = vld [vmem:[#allocation9_spill] sm:$0xff] }
 0x1b3   : > { %v8805_v4 = vpop.f32.mrf.mxu0  ;;  %v5352_v49 = vor.u32 %v5351_v62, %v5347_v51  ;;  %v5369_v41 = vshll.u32 %v4997_v38, 16  ;;  %v8807_v48 = vpop.f32.mrf.mxu1  ;;  %v8811_v63 = vadd.f32 %v8455_v45, %v8199_v28  ;;  %v5373_v29 = vshrl.u32 %v4997_v38, 16  ;;  %v9430_v17 = vld [vmem:[#allocation43_spill] sm:$0xff]  ;;  %v9431_v28 = vld [vmem:[#allocation5_spill] sm:$0xff]  ;;  %v9433_v38 = vld [vmem:[#allocation6_spill] sm:$0xff] }
 0x1b4   : > { %9425 = vst [vmem:[#allocation105_spill] sm:$0xff] %v8805_v4  ;;  %7064 = vmatmul.mubr.msk.bf16.gmra.mxu0 %vm981_vm7, %v6398_v24  ;;  %v5362_v2 = vrot.slane %v5360_v50, 4  ;;  %v6367_v34 = vcombine.low %v9426_v5, %v8486_v30  ;;  %v5343_v58 = vrot.slane %v5342_v43, 4  ;;  %v5365_v20 = vrot.slane %v5363_v37, 5  ;;  %v9432_v45 = vld [vmem:[#allocation45_spill] sm:$0xff]  ;;  %v9434_v50 = vld [vmem:[#allocation48_spill] sm:$0xff] }
 0x1b5   : > { %v8816_v57 = vpop.f32.mrf.mxu0  ;;  %v5353_v62 = vrot.slane %v5352_v49, 4  ;;  %v5371_v27 = vrot.slane %v5369_v41, 5  ;;  %v8818_v10 = vpop.f32.mrf.mxu1  ;;  %v8822_v22 = vadd.f32 %v9430_v17, %v9429_v56  ;;  %v8826_v24 = vadd.f32 %v9432_v45, %v9431_v28  ;;  %v9436_v49 = vld [vmem:[#allocation11_spill] sm:$0xff]  ;;  %v9437_v37 = vld [vmem:[#allocation50_spill] sm:$0xff] }
 0x1b6   : > { %9427 = vst [vmem:[#allocation47_spill] sm:$0xff] %v8816_v57  ;;  %9428 = vst [vmem:[#allocation106_spill] sm:$0xff] %v8818_v10  ;;  %v8830_v4 = vadd.f32 %v9434_v50, %v9433_v38  ;;  %v5375_v30 = vrot.slane %v5373_v29, 4  ;;  %7034 = vmatmul.mubr.msk.bf16.gmra.mxu1 %vm981_vm7, %v6367_v34  ;;  %v8837_v41 = vadd.f32 %v9437_v37, %v9436_v49  ;;  %v9439_v45 = vld [vmem:[#allocation7_spill] sm:$0xff]  ;;  %v9440_v38 = vld [vmem:[#allocation52_spill] sm:$0xff] }
 0x1b7   : > { %v8833_v43 = vpop.f32.mrf.mxu0  ;;  %v5348_v5 = vsel %vm7551_vm13, %v5343_v58, %v5347_v51  ;;  %v5358_v56 = vsel %vm7551_vm13, %v5353_v62, %v5357_v19  ;;  %v5366_v17 = vor.u32 %v5365_v20, %v5362_v2  ;;  %v8843_v28 = vpop.f32.mrf.mxu1  ;;  %v8847_v29 = vadd.f32 %v9440_v38, %v9439_v45  ;;  %v9441_v34 = vld [vmem:[#allocation13_spill] sm:$0xff]  ;;  %v9443_v57 = vld [vmem:[#allocation8_spill] sm:$0xff]  ;;  %v9447_v20 = vld [vmem:[#allocation58_spill] sm:$0xff] }
 0x1b8   : > { %9435 = vst [vmem:[#allocation9_spill] sm:$0xff] %v8833_v43  ;;  %9438 = vst [vmem:[#allocation43_spill] sm:$0xff] %v8843_v28  ;;  %v8851_v50 = vadd.f32 %v8516_v11, %v9441_v34  ;;  %v6399_v43 = vcombine.low %v5348_v5, %v5358_v56  ;;  %v5376_v49 = vor.u32 %v5375_v30, %v5371_v27  ;;  %v9444_v58 = vld [vmem:[#allocation17_spill] sm:$0xff]  ;;  %v9445_v19 = vld [vmem:[#allocation56_spill] sm:$0xff] }
 0x1b9   : > { %v8853_v37 = vpop.f32.mrf.mxu0  ;;  %v1433_v51 = vadd.f32 %v8525_v12, %v9443_v57  ;;  %v1425_v2 = vadd.f32 %v9445_v19, %v9444_v58  ;;  %v9446_v62 = vld [vmem:[#allocation12_spill] sm:$0xff]  ;;  %v5367_v42 = vrot.slane %v5366_v17, 4  ;;  %v9449_v38 = vld [vmem:[#allocation18_spill] sm:$0xff]  ;;  %v9453_v34 = vld [vmem:[#allocation23_spill] sm:$0xff] }
 0x1ba   : > { %9442 = vst [vmem:[#allocation5_spill] sm:$0xff] %v8853_v37  ;;  %v1436_v33 = vadd.f32 %v9447_v20, %v9446_v62  ;;  %v8861_v45 = vpop.f32.mrf.mxu1  ;;  %v1428_v11 = vadd.f32 %v9450_v47, %v9449_v38  ;;  %7067 = vmatprep.mubr.msk.bf16.mxu0 %vm981_vm7, %v6399_v43  ;;  %v4998_v30 = vld [vmem:[#allocation2 + $0x11c] sm:$0x1]  ;;  %v9452_v12 = vld [vmem:[#allocation16_spill] sm:$0xff]  ;;  %v2152_v58 = vadd.f32 %v9453_v34, %v8642_v16  ;;  %v5377_v17 = vrot.slane %v5376_v49, 4  ;;  %v9455_v20 = vld [vmem:[#allocation19_spill] sm:$0xff] }
 0x1bb   : > { %9448 = vst [vmem:[#allocation45_spill] sm:$0xff] %v8861_v45  ;;  %v9451_v5 = vld [vmem:[#allocation14_spill] sm:$0xff]  ;;  %v2154_v57 = vadd.f32 %v9452_v12, %v8630_v31  ;;  %v8872_v19 = vpop.f32.mrf.mxu0  ;;  %v5379_v62 = vshll.u32 %v4998_v30, 16  ;;  %v9456_v37 = vld [vmem:[#allocation64_spill] sm:$0xff]  ;;  %v9457_v47 = vld [vmem:[#allocation15_spill] sm:$0xff]  ;;  %v5372_v49 = vsel %vm7551_vm13, %v5367_v42, %v5371_v27 }
 0x1bc   : > { %v1449_v56 = vadd.f32 %v8560_v59, %v9451_v5  ;;  %9454 = vst [vmem:[#allocation6_spill] sm:$0xff] %v8872_v19  ;;  %v1441_v44 = vadd.f32 %v9456_v37, %v9455_v20  ;;  %v9458_v38 = vld [vmem:[#allocation66_spill] sm:$0xff]  ;;  %v8878_v45 = vpop.f32.mrf.mxu1  ;;  %v9459_v28 = vld [vmem:[#allocation20_spill] sm:$0xff]  ;;  %v9460_v5 = vld [vmem:[#allocation69_spill] sm:$0xff] }
 0x1bd   : > { %v1452_v43 = vadd.f32 %v9458_v38, %v9457_v47  ;;  %v1444_v59 = vadd.f32 %v8583_v52, %v9459_v28  ;;  %v2848_v31 = vadd.f32 %v9460_v5, %v2154_v57  ;;  %v9461_v12 = vld [vmem:[#allocation71_spill] sm:$0xff]  ;;  %v9462_v16 = vld [vmem:[#allocation26_spill] sm:$0xff]  ;;  %v5381_v30 = vrot.slane %v5379_v62, 5  ;;  %v9464_v47 = vld [vmem:[#allocation29_spill] sm:$0xff] }
 0x1be   : > { %v2846_v10 = vadd.f32 %v9461_v12, %v2152_v58  ;;  %v2158_v34 = vadd.f32 %v9462_v16, %v8665_v3  ;;  %v9463_v37 = vld [vmem:[#allocation27_spill] sm:$0xff]  ;;  %v2157_v38 = vadd.f32 %v9464_v47, %v8678_v14  ;;  %v6900_v19 = vpop.f32.mrf.mxu1  ;;  %v8894_v52 = vpop.f32.mrf.mxu0  ;;  %v9466_v58 = vld [vmem:[#allocation32_spill] sm:$0xff]  ;;  %v9467_v27 = vld [vmem:[#allocation33_spill] sm:$0xff] }
 0x1bf   : > { %v8890_v20 = vadd.f32 %v9463_v37, %v8674_v15  ;;  %v9465_v57 = vld [vmem:[#allocation31_spill] sm:$0xff]  ;;  %v2160_v42 = vadd.f32 %v9466_v58, %v8713_v32  ;;  %v2163_v62 = vadd.f32 %v9467_v27, %v8722_v36  ;;  %v5382_v15 = vsel %vm7551_vm13, %v5377_v17, %v5381_v30  ;;  %v9468_v5 = vld [vmem:[#allocation34_spill] sm:$0xff]  ;;  %v9478_v27 = vld [vmem:[#allocation40_spill] sm:$0xff] }
 0x1c0   : > { %v8897_v28 = vadd.f32 %v8615_v60, %v2158_v34  ;;  %v2162_v3 = vadd.f32 %v9465_v57, %v8690_v54  ;;  %v2851_v14 = vadd.f32 %v8638_v46, %v2157_v38  ;;  %v2161_v12 = vadd.f32 %v9468_v5, %v8726_v61  ;;  %v9469_v60 = vld [vmem:[#allocation35_spill] sm:$0xff]  ;;  %v2834_v34 = vpop.f32.mrf.mxu1  ;;  %v9471_v46 = vld [vmem:[#allocation36_spill] sm:$0xff]  ;;  %v9472_v61 = vld [vmem:[#allocation37_spill] sm:$0xff]  ;;  %v8921_v38 = vpop.f32.mrf.mxu0 }
 0x1c1   : > { %v2166_v16 = vadd.f32 %v9469_v60, %v8738_v13  ;;  %v6400_v37 = vcombine.low %v5372_v49, %v5382_v15  ;;  %v9470_v54 = vld [vmem:[#allocation83_spill] sm:$0xff]  ;;  %v2854_v32 = vadd.f32 %v8656_v35, %v2160_v42  ;;  %v2857_v57 = vadd.f32 %v8661_v23, %v2163_v62  ;;  %v9473_v13 = vld [vmem:[#allocation38_spill] sm:$0xff]  ;;  %v9479_v15 = vld [vmem:[#allocation41_spill] sm:$0xff] }
 0x1c2   : > { %v2856_v47 = vadd.f32 %v9470_v54, %v2162_v3  ;;  %v2855_v36 = vadd.f32 %v8670_v6, %v2161_v12  ;;  %v2164_v17 = vadd.f32 %v9471_v46, %v8761_v25  ;;  %v2167_v30 = vadd.f32 %v9472_v61, %v8770_v21  ;;  %v9474_v35 = vld [vmem:[#allocation39_spill] sm:$0xff]  ;;  %v9475_v6 = vld [vmem:[#allocation42_spill] sm:$0xff]  ;;  %v9477_v25 = vld [vmem:[#allocation89_spill] sm:$0xff] }
 0x1c3   : > { %v2860_v8 = vadd.f32 %v8686_v39, %v2166_v16  ;;  %7068 = vmatmul.mubr.msk.bf16.gmra.mxu0 %vm981_vm7, %v6400_v37  ;;  %v2165_v49 = vadd.f32 %v9473_v13, %v8774_v0  ;;  %v2170_v23 = vadd.f32 %v9474_v35, %v8786_v18  ;;  %v2169_v3 = vadd.f32 %v9475_v6, %v8826_v24  ;;  %v9476_v39 = vld [vmem:[#allocation44_spill] sm:$0xff]  ;;  %v9480_v24 = vld [vmem:[#allocation46_spill] sm:$0xff]  ;;  %v9482_v37 = vld [vmem:[#allocation51_spill] sm:$0xff] }
 0x1c4   : > { %v2174_v58 = vadd.f32 %v9476_v39, %v8830_v4  ;;  %v2858_v42 = vadd.f32 %v9477_v25, %v2164_v17  ;;  %v2861_v21 = vadd.f32 %v8704_v1, %v2167_v30  ;;  %v2168_v62 = vadd.f32 %v9478_v27, %v8811_v63  ;;  %v6939_v0 = vpop.f32.mrf.mxu1  ;;  %v9481_v4 = vld [vmem:[#allocation49_spill] sm:$0xff]  ;;  %v9484_v63 = vld [vmem:[#allocation54_spill] sm:$0xff]  ;;  %v9485_v61 = vld [vmem:[#allocation55_spill] sm:$0xff]  ;;  %v8949_v30 = vpop.f32.mrf.mxu0 }
 0x1c5   : > { %v2171_v5 = vadd.f32 %v9479_v15, %v8822_v22  ;;  %v2863_v12 = vadd.f32 %v8752_v7, %v2169_v3  ;;  %v2172_v60 = vadd.f32 %v9480_v24, %v8837_v41  ;;  %v2175_v16 = vadd.f32 %v9481_v4, %v8847_v29  ;;  %v9483_v54 = vld [vmem:[#allocation53_spill] sm:$0xff]  ;;  %v9487_v35 = vld [vmem:[#allocation59_spill] sm:$0xff]  ;;  %v9488_v3 = vld [vmem:[#allocation106_spill] sm:$0xff] }
 0x1c6   : > { %v2868_v18 = vadd.f32 %v8757_v9, %v2174_v58  ;;  %v2173_v1 = vadd.f32 %v9482_v37, %v8851_v50  ;;  %v2178_v46 = vadd.f32 %v9483_v54, %v1433_v51  ;;  %v2176_v17 = vadd.f32 %v9484_v63, %v1425_v2  ;;  %v9486_v13 = vld [vmem:[#allocation57_spill] sm:$0xff]  ;;  %v3771_v39 = vpop.f32.mrf.mxu1 }
 0x1c7   : > { %v2179_v22 = vadd.f32 %v9485_v61, %v1436_v33  ;;  %v2866_v7 = vadd.f32 %v8766_v55, %v2172_v60  ;;  %v2869_v9 = vadd.f32 %v8782_v26, %v2175_v16  ;;  %v2177_v41 = vadd.f32 %v9486_v13, %v1428_v11  ;;  %v9489_v33 = vld [vmem:[#allocation43_spill] sm:$0xff]  ;;  %v9490_v25 = vld [vmem:[#allocation45_spill] sm:$0xff]  ;;  %v9492_v26 = vld [vmem:[#allocation62_spill] sm:$0xff] }
 0x1c8   : > { %v2182_v6 = vadd.f32 %v9487_v35, %v1449_v56  ;;  %v2867_v29 = vadd.f32 %v8791_v40, %v2173_v1  ;;  %v2872_v50 = vadd.f32 %v8800_v53, %v2178_v46  ;;  %v2870_v51 = vadd.f32 %v8807_v48, %v2176_v17  ;;  %v9491_v55 = vld [vmem:[#allocation61_spill] sm:$0xff]  ;;  %v9493_v11 = vld [vmem:[#allocation92_spill] sm:$0xff]  ;;  %v9494_v56 = vld [vmem:[#allocation63_spill] sm:$0xff]  ;;  %v8967_v48 = vpop.f32.mrf.mxu0 }
 0x1c9   : > { %v2873_v2 = vadd.f32 %v9488_v3, %v2179_v22  ;;  %v2871_v58 = vadd.f32 %v9489_v33, %v2177_v41  ;;  %v2180_v15 = vadd.f32 %v9491_v55, %v1441_v44  ;;  %v2183_v24 = vadd.f32 %v9492_v26, %v1452_v43  ;;  %v9495_v40 = vld [vmem:[#allocation65_spill] sm:$0xff]  ;;  %v9496_v53 = vld [vmem:[#allocation67_spill] sm:$0xff]  ;;  %v9497_v1 = vld [vmem:[#allocation94_spill] sm:$0xff]  ;;  %v8973_v41 = vpop.f32.mrf.mxu1 }
 0x1ca   : > { %v2876_v27 = vadd.f32 %v9490_v25, %v2182_v6  ;;  %v2859_v60 = vadd.f32 %v9493_v11, %v2165_v49  ;;  %v2181_v4 = vadd.f32 %v9494_v56, %v1444_v59  ;;  %v3174_v16 = vadd.f32 %v9495_v40, %v2848_v31  ;;  %v9498_v46 = vld [vmem:[#allocation96_spill] sm:$0xff]  ;;  %v9499_v44 = vld [vmem:[#allocation98_spill] sm:$0xff]  ;;  %v9502_v6 = vld [vmem:[#allocation77_spill] sm:$0xff] }
 0x1cb   : > { %v3172_v37 = vadd.f32 %v9496_v53, %v2846_v10  ;;  %v2864_v54 = vadd.f32 %v9497_v1, %v2170_v23  ;;  %v2862_v63 = vadd.f32 %v9498_v46, %v2168_v62  ;;  %v2874_v17 = vadd.f32 %v8878_v45, %v2180_v15  ;;  %v9500_v59 = vld [vmem:[#allocation78_spill] sm:$0xff]  ;;  %v9501_v10 = vld [vmem:[#allocation72_spill] sm:$0xff]  ;;  %v9503_v3 = vld [vmem:[#allocation79_spill] sm:$0xff]  ;;  %v8998_v11 = vpop.f32.mrf.mxu1 }
 0x1cc   : > { %v2877_v61 = vadd.f32 %v6900_v19, %v2183_v24  ;;  %v2865_v22 = vadd.f32 %v9499_v44, %v2171_v5  ;;  %v2875_v43 = vadd.f32 %v2834_v34, %v2181_v4  ;;  %v3900_v13 = vadd.f32 %v6939_v0, %v3174_v16  ;;  %v9504_v19 = vld [vmem:[#allocation81_spill] sm:$0xff]  ;;  %v9505_v5 = vld [vmem:[#allocation82_spill] sm:$0xff]  ;;  %v9506_v0 = vld [vmem:[#allocation84_spill] sm:$0xff] }
 0x1cd   : > { %v3898_v49 = vadd.f32 %v3771_v39, %v3172_v37  ;;  %v2850_v31 = vadd.f32 %v9500_v59, %v8890_v20  ;;  %v3178_v35 = vadd.f32 %v9501_v10, %v8897_v28  ;;  %v8980_v23 = vadd.f32 %v9502_v6, %v2851_v14  ;;  %v9507_v25 = vld [vmem:[#allocation85_spill] sm:$0xff]  ;;  %v9508_v20 = vld [vmem:[#allocation86_spill] sm:$0xff]  ;;  %v9509_v26 = vld [vmem:[#allocation87_spill] sm:$0xff] }
 0x1ce   : > { %v6977_v62 = vpop.f32.mrf.mxu0  ;;  %v3182_v45 = vadd.f32 %v9503_v3, %v2856_v47  ;;  %v3180_v33 = vadd.f32 %v9504_v19, %v2854_v32  ;;  %v8985_v34 = vadd.f32 %v9505_v5, %v2857_v57  ;;  %v8988_v39 = vadd.f32 %v9506_v0, %v2855_v36  ;;  %v9510_v14 = vld [vmem:[#allocation88_spill] sm:$0xff]  ;;  %v9511_v47 = vld [vmem:[#allocation90_spill] sm:$0xff]  ;;  %v9512_v56 = vld [vmem:[#allocation91_spill] sm:$0xff] }
 0x1cf   : > { %v3186_v55 = vadd.f32 %v9507_v25, %v2860_v8  ;;  %v3184_v15 = vadd.f32 %v9508_v20, %v2858_v42  ;;  %v8993_v28 = vadd.f32 %v9509_v26, %v2861_v21  ;;  %v8996_v24 = vadd.f32 %v9510_v14, %v2859_v60  ;;  %v9513_v4 = vld [vmem:[#allocation93_spill] sm:$0xff]  ;;  %v9514_v36 = vld [vmem:[#allocation95_spill] sm:$0xff]  ;;  %v9517_v37 = vld [vmem:[#allocation100_spill] sm:$0xff] }
 0x1d0   : > { %v3190_v32 = vadd.f32 %v9511_v47, %v2864_v54  ;;  %v3188_v57 = vadd.f32 %v9512_v56, %v2862_v63  ;;  %v3191_v40 = vadd.f32 %v9513_v4, %v2865_v22  ;;  %v9004_v16 = vadd.f32 %v9514_v36, %v2863_v12  ;;  %v9515_v8 = vld [vmem:[#allocation97_spill] sm:$0xff]  ;;  %v9516_v42 = vld [vmem:[#allocation99_spill] sm:$0xff]  ;;  %v4482_v54 = vpop.f32.mrf.mxu0  ;;  %v9519_v44 = vld [vmem:[#allocation102_spill] sm:$0xff] }
 0x1d1   : > { %v9007_v53 = vadd.f32 %v9515_v8, %v2868_v18  ;;  %v9010_v21 = vadd.f32 %v9516_v42, %v2866_v7  ;;  %v9013_v60 = vadd.f32 %v9517_v37, %v2869_v9  ;;  %v9518_v1 = vld [vmem:[#allocation101_spill] sm:$0xff]  ;;  %v9019_v63 = vadd.f32 %v9519_v44, %v2872_v50  ;;  %v9520_v22 = vld [vmem:[#allocation103_spill] sm:$0xff]  ;;  %v9521_v12 = vld [vmem:[#allocation104_spill] sm:$0xff] }
 0x1d2   : > { %v9016_v46 = vadd.f32 %v9518_v1, %v2867_v29  ;;  %v9022_v59 = vadd.f32 %v9520_v22, %v2870_v51  ;;  %v9025_v10 = vadd.f32 %v9521_v12, %v2873_v2  ;;  %v9522_v18 = vld [vmem:[#allocation105_spill] sm:$0xff]  ;;  %v9523_v7 = vld [vmem:[#allocation47_spill] sm:$0xff]  ;;  %v9526_v50 = vld [vmem:[#allocation6_spill] sm:$0xff]  ;;  %v9043_v25 = vadd.f32 %v8894_v52, %v3900_v13  ;;  %v9049_v14 = vpop.f32.mrf.mxu0 }
 0x1d3   : > { %v9028_v6 = vadd.f32 %v9522_v18, %v2871_v58  ;;  %v9031_v3 = vadd.f32 %v9523_v7, %v2876_v27  ;;  %v9524_v9 = vld [vmem:[#allocation9_spill] sm:$0xff]  ;;  %v9040_v0 = vadd.f32 %v9526_v50, %v2875_v43  ;;  %v9046_v2 = vadd.f32 %v8921_v38, %v3898_v49  ;;  %v9527_v20 = vld [vmem:[#allocation74_spill] sm:$0xff] }
 0x1d4   : > { %v9034_v19 = vadd.f32 %v9524_v9, %v2874_v17  ;;  %v9525_v29 = vld [vmem:[#allocation5_spill] sm:$0xff]  ;;  %v6943_v51 = vpop.f32.mrf.mxu1  ;;  %v3176_v27 = vadd.f32 %v9527_v20, %v2850_v31  ;;  %v9055_v43 = vpop.f32.mrf.mxu0 }
 0x1d5   : > { %v9037_v5 = vadd.f32 %v9525_v29, %v2877_v61  ;;  %v3904_v58 = vadd.f32 %v6943_v51, %v3178_v35 }
 0x1d6   : > { %v3787_v26 = vpop.f32.mrf.mxu1 }
 0x1d7   : > { %v3902_v17 = vadd.f32 %v3787_v26, %v3176_v27  ;;  %v9051_v47 = vadd.f32 %v6977_v62, %v3904_v58 }
 0x1d8   : > { %v9057_v56 = vpop.f32.mrf.mxu1 }
 0x1d9   : > { %v9053_v61 = vadd.f32 %v4482_v54, %v3902_v17 }
 0x1da   : > { %v9059_v13 = vpop.f32.mrf.mxu1 }
 0x1de   : > { %v6981_v52 = vpop.f32.mrf.mxu0 }
 0x1e0   : > { %v4498_v38 = vpop.f32.mrf.mxu0 }
 0x1e2   : > { %v9061_v4 = vpop.f32.mrf.mxu0 }
 0x1e3   : > { %v6947_v49 = vpop.f32.mrf.mxu1 }
 0x1e4   : > { %v3908_v35 = vadd.f32 %v6947_v49, %v3182_v45  ;;  %v9065_v62 = vpop.f32.mrf.mxu0 }
 0x1e5   : > { %v3803_v31 = vpop.f32.mrf.mxu1 }
 0x1e6   : > { %v3906_v36 = vadd.f32 %v3803_v31, %v3180_v33  ;;  %v9063_v8 = vadd.f32 %v6981_v52, %v3908_v35 }
 0x1e7   : > { %v9069_v37 = vpop.f32.mrf.mxu1 }
 0x1e8   : > { %v9067_v42 = vadd.f32 %v4498_v38, %v3906_v36 }
 0x1e9   : > { %v9071_v54 = vpop.f32.mrf.mxu1 }
 0x1ec   : > { %v6985_v1 = vpop.f32.mrf.mxu0 }
 0x1ee   : > { %v4514_v44 = vpop.f32.mrf.mxu0 }
 0x1f0   : > { %v9073_v7 = vpop.f32.mrf.mxu0 }
 0x1f1   : > { %v6951_v22 = vpop.f32.mrf.mxu1 }
 0x1f2   : > { %v3912_v12 = vadd.f32 %v6951_v22, %v3186_v55  ;;  %v9079_v29 = vpop.f32.mrf.mxu0 }
 0x1f3   : > { %v3819_v18 = vpop.f32.mrf.mxu1 }
 0x1f4   : > { %v3910_v45 = vadd.f32 %v3819_v18, %v3184_v15  ;;  %v9075_v9 = vadd.f32 %v6985_v1, %v3912_v12 }
 0x1f5   : > { %v9081_v50 = vpop.f32.mrf.mxu1 }
 0x1f6   : > { %v9077_v33 = vadd.f32 %v4514_v44, %v3910_v45 }
 0x1f7   : > { %v9083_v58 = vpop.f32.mrf.mxu1 }
 0x1fc   : > { %v6989_v51 = vpop.f32.mrf.mxu0 }
 0x1fe   : > { %v4530_v20 = vpop.f32.mrf.mxu0 }
 0x200   : > { %v6990_v17 = vpop.f32.mrf.mxu0 }
 0x202   : > { %v4533_v35 = vpop.f32.mrf.mxu0 }
 0x203   : > { %v6955_v27 = vpop.f32.mrf.mxu1 }
 0x204   : > { %v3916_v26 = vadd.f32 %v6955_v27, %v3190_v32 }
 0x205   : > { %v3835_v55 = vpop.f32.mrf.mxu1 }
 0x206   : > { %v3914_v52 = vadd.f32 %v3835_v55, %v3188_v57  ;;  %v9085_v15 = vadd.f32 %v6989_v51, %v3916_v26 }
 0x207   : > { %v6956_v38 = vpop.f32.mrf.mxu1 }
 0x208   : > { %v3917_v49 = vadd.f32 %v6956_v38, %v3191_v40  ;;  %v9087_v31 = vadd.f32 %v4530_v20, %v3914_v52 }
 0x209   : > { %v3838_v36 = vpop.f32.mrf.mxu1 }
 0x20a   : > { %v3915_v1 = vadd.f32 %v3838_v36, %v9004_v16  ;;  %v9090_v44 = vadd.f32 %v6990_v17, %v3917_v49 }
 0x20c   : > { %v6993_v22 = vpop.f32.mrf.mxu0  ;;  %v9092_v12 = vadd.f32 %v4533_v35, %v3915_v1 }
 0x20e   : > { %v4546_v32 = vpop.f32.mrf.mxu0 }
 0x210   : > { %v6959_v18 = vpop.f32.mrf.mxu1  ;;  %v6994_v40 = vpop.f32.mrf.mxu0 }
 0x211   : > { %v3920_v45 = vadd.f32 %v6959_v18, %v9007_v53 }
 0x212   : > { %v3851_v57 = vpop.f32.mrf.mxu1  ;;  %v4549_v38 = vpop.f32.mrf.mxu0 }
 0x213   : > { %v3918_v51 = vadd.f32 %v3851_v57, %v9010_v21  ;;  %v9096_v27 = vadd.f32 %v6993_v22, %v3920_v45 }
 0x214   : > { %v6960_v20 = vpop.f32.mrf.mxu1 }
 0x215   : > { %v3921_v26 = vadd.f32 %v6960_v20, %v9013_v60  ;;  %v9099_v55 = vadd.f32 %v4546_v32, %v3918_v51 }
 0x216   : > { %v3854_v16 = vpop.f32.mrf.mxu1 }
 0x217   : > { %v3919_v17 = vadd.f32 %v3854_v16, %v9016_v46  ;;  %v9102_v52 = vadd.f32 %v6994_v40, %v3921_v26  ;;  %v9533_v16 = vld [vmem:[#allocation24_spill] sm:$0xff] }
 0x219   : > { %v9104_v49 = vadd.f32 %v4549_v38, %v3919_v17  ;;  %v9535_v38 = vld [vmem:[#allocation25_spill] sm:$0xff] }
 0x21b   : > { %v6997_v53 = vpop.f32.mrf.mxu0 }
 0x21d   : > { %v4562_v36 = vpop.f32.mrf.mxu0 }
 0x21f   : > { %v6998_v60 = vpop.f32.mrf.mxu0 }
 0x221   : > { %v6963_v35 = vpop.f32.mrf.mxu1  ;;  %v4565_v20 = vpop.f32.mrf.mxu0 }
 0x222   : > { %v3924_v21 = vadd.f32 %v6963_v35, %v9019_v63  ;;  %v9532_v63 = vld [vmem:[#allocation3_spill] sm:$0xff] }
 0x223   : > { %v3867_v1 = vpop.f32.mrf.mxu1  ;;  %v1340_v17 = vadd.f32 %v9533_v16, %v9532_v63  ;;  %v9541_v63 = vld [vmem:[#allocation75_spill] sm:$0xff] }
 0x224   : > { %v3922_v22 = vadd.f32 %v3867_v1, %v9022_v59  ;;  %v9108_v18 = vadd.f32 %v6997_v53, %v3924_v21  ;;  %v9534_v59 = vld [vmem:[#allocation4_spill] sm:$0xff]  ;;  %v9536_v21 = vld [vmem:[#allocation21_spill] sm:$0xff] }
 0x225   : > { %v6964_v32 = vpop.f32.mrf.mxu1  ;;  %v1332_v53 = vadd.f32 %v9535_v38, %v9534_v59  ;;  %v2155_v1 = vadd.f32 %v9536_v21, %v1340_v17  ;;  %v9542_v21 = vld [vmem:[#allocation68_spill] sm:$0xff] }
 0x226   : > { %9528 = vst [vmem:[#allocation48_spill] sm:$0xff] %v9108_v18  ;;  %v3925_v45 = vadd.f32 %v6964_v32, %v9025_v10  ;;  %v9111_v46 = vadd.f32 %v4562_v36, %v3922_v22  ;;  %v9537_v22 = vld [vmem:[#allocation73_spill] sm:$0xff]  ;;  %v9538_v18 = vld [vmem:[#allocation22_spill] sm:$0xff] }
 0x227   : > { %v3870_v57 = vpop.f32.mrf.mxu1  ;;  %v2849_v32 = vadd.f32 %v9537_v22, %v2155_v1 }
 0x228   : > { %9529 = vst [vmem:[#allocation11_spill] sm:$0xff] %v9111_v46  ;;  %v3923_v51 = vadd.f32 %v3870_v57, %v9028_v6  ;;  %v9114_v40 = vadd.f32 %v6998_v60, %v3925_v45  ;;  %v2153_v6 = vadd.f32 %v9538_v18, %v1332_v53  ;;  %v9539_v57 = vld [vmem:[#allocation10_spill] sm:$0xff] }
 0x229   : > { %v3175_v46 = vadd.f32 %v9542_v21, %v2849_v32 }
 0x22a   : > { %9530 = vst [vmem:[#allocation50_spill] sm:$0xff] %v9114_v40  ;;  %v9116_v26 = vadd.f32 %v4565_v20, %v3923_v51  ;;  %v9540_v51 = vld [vmem:[#allocation30_spill] sm:$0xff]  ;;  %v2847_v16 = vadd.f32 %v9541_v63, %v2153_v6  ;;  %v9545_v6 = vld [vmem:[#allocation80_spill] sm:$0xff] }
 0x22b   : > { %v1356_v20 = vadd.f32 %v9540_v51, %v9539_v57  ;;  %v3901_v22 = vadd.f32 %v8973_v41, %v3175_v46  ;;  %v9544_v57 = vld [vmem:[#allocation70_spill] sm:$0xff] }
 0x22c   : > { %9531 = vst [vmem:[#allocation7_spill] sm:$0xff] %v9116_v26  ;;  %v3173_v51 = vadd.f32 %v9544_v57, %v2847_v16 }
 0x22d   : > { %v4596_v16 = vadd.f32 %v8949_v30, %v3901_v22 }
 0x230   : > { %v7001_v35 = vpop.f32.mrf.mxu0 }
 0x232   : > { %v4578_v10 = vpop.f32.mrf.mxu0  ;;  %v6967_v36 = vpop.f32.mrf.mxu1 }
 0x233   : > { %v3928_v60 = vadd.f32 %v6967_v36, %v9031_v3  ;;  %v9543_v3 = vld [vmem:[#allocation28_spill] sm:$0xff] }
 0x234   : > { %v7002_v45 = vpop.f32.mrf.mxu0  ;;  %v3883_v26 = vpop.f32.mrf.mxu1  ;;  %v2159_v53 = vadd.f32 %v9543_v3, %v1356_v20 }
 0x235   : > { %v3926_v59 = vadd.f32 %v3883_v26, %v9034_v19  ;;  %v9130_v40 = vadd.f32 %v7001_v35, %v3928_v60 }
 0x236   : > { %v4581_v38 = vpop.f32.mrf.mxu0  ;;  %v6968_v17 = vpop.f32.mrf.mxu1  ;;  %v2853_v60 = vadd.f32 %v9545_v6, %v2159_v53 }
 0x237   : > { %v3929_v1 = vadd.f32 %v6968_v17, %v9037_v5  ;;  %v9134_v18 = vadd.f32 %v4578_v10, %v3926_v59  ;;  %v3899_v5 = vadd.f32 %v8998_v11, %v3173_v51 }
 0x238   : > { %v3886_v36 = vpop.f32.mrf.mxu1 }
 0x239   : > { %v3927_v19 = vadd.f32 %v3886_v36, %v9040_v0  ;;  %v9140_v35 = vadd.f32 %v7002_v45, %v3929_v1  ;;  %v9546_v0 = vld [vmem:[#allocation76_spill] sm:$0xff]  ;;  %v4594_v3 = vadd.f32 %v8967_v48, %v3899_v5 }
 0x23a   : > { %v7041_v26 = vpop.f32.mrf.mxu0  ;;  %v7007_v32 = vpop.f32.mrf.mxu1  ;;  %v3179_v17 = vadd.f32 %v9546_v0, %v2853_v60  ;;  %v3909_v0 = vadd.f32 %v9069_v37, %v8985_v34 }
 0x23b   : > { %v9144_v63 = vadd.f32 %v4581_v38, %v3927_v19  ;;  %v4921_v59 = vadd.f32 %v7007_v32, %v9043_v25 }
 0x23c   : > { %v5518_v10 = vpop.f32.mrf.mxu0  ;;  %v4792_v20 = vpop.f32.mrf.mxu1  ;;  %v3905_v11 = vadd.f32 %v9057_v56, %v3179_v17 }
 0x23d   : > { %v4919_v41 = vadd.f32 %v4792_v20, %v9046_v2  ;;  %v5647_v53 = vadd.f32 %v7041_v26, %v4921_v59  ;;  %v3903_v2 = vadd.f32 %v9059_v13, %v8980_v23 }
 0x23e   : > { %v7042_v46 = vpop.f32.mrf.mxu0  ;;  %v7008_v45 = vpop.f32.mrf.mxu1  ;;  %v4600_v6 = vadd.f32 %v9049_v14, %v3905_v11 }
 0x23f   : > { %v4922_v21 = vadd.f32 %v7008_v45, %v4596_v16  ;;  %v5645_v36 = vadd.f32 %v5518_v10, %v4919_v41  ;;  %v4598_v59 = vadd.f32 %v9055_v43, %v3903_v2  ;;  %v5877_v41 = vmul.f32 %v5647_v53, %v5647_v53 }
 0x240   : > { %v5521_v1 = vpop.f32.mrf.mxu0  ;;  %v4795_v38 = vpop.f32.mrf.mxu1  ;;  %v3907_v43 = vadd.f32 %v9071_v54, %v8988_v39 }
 0x241   : > { %v5648_v57 = vadd.f32 %v7042_v46, %v4922_v21  ;;  %v4920_v25 = vadd.f32 %v4795_v38, %v4594_v3  ;;  %v5875_v60 = vmul.f32 %v5645_v36, %v5645_v36 }
 0x242   : > { %v7045_v30 = vpop.f32.mrf.mxu0  ;;  %v7011_v22 = vpop.f32.mrf.mxu1 }
 0x243   : > { %v6525_v51 = vpack.c.bf16 %v5648_v57, %v5647_v53  ;;  %v5646_v48 = vadd.f32 %v5521_v1, %v4920_v25  ;;  %v4925_v56 = vadd.f32 %v7011_v22, %v9051_v47  ;;  %v5878_v14 = vmul.f32 %v5648_v57, %v5648_v57 }
 0x244   : > { %v5534_v19 = vpop.f32.mrf.mxu0  ;;  %v4808_v26 = vpop.f32.mrf.mxu1 }
 0x245   : > { %6597 = vst [vmem:[%s9158_s14 + $0x8] sm:$0xff] %v6525_v51   ;;  %v6520_v23 = vpack.c.bf16 %v5646_v48, %v5645_v36  ;;  %v5837_v13 = vadd.f32 %v5646_v48, %v5645_v36  ;;  %v5876_v32 = vmul.f32 %v5646_v48, %v5646_v48  ;;  %v4923_v5 = vadd.f32 %v4808_v26, %v9053_v61 }
 0x246   : > { %v7046_v10 = vpop.f32.mrf.mxu0  ;;  %v7012_v20 = vpop.f32.mrf.mxu1  ;;  %v5651_v17 = vadd.f32 %v7045_v30, %v4925_v56  ;;  %v4604_v56 = vadd.f32 %v9061_v4, %v3909_v0 }
 0x247   : > { %6521 = vst [vmem:[%s9158_s14] sm:$0xff] %v6520_v23   ;;  %v5838_v46 = vadd.f32 %v5837_v13, %v5647_v53  ;;  %v5907_v16 = vadd.f32 %v5876_v32, %v5875_v60  ;;  %v4926_v47 = vadd.f32 %v7012_v20, %v4600_v6  ;;  %v5649_v45 = vadd.f32 %v5534_v19, %v4923_v5 }
 0x248   : > { %v5537_v21 = vpop.f32.mrf.mxu0  ;;  %v4811_v1 = vpop.f32.mrf.mxu1  ;;  %v4602_v23 = vadd.f32 %v9065_v62, %v3907_v43  ;;  %v5881_v13 = vmul.f32 %v5651_v17, %v5651_v17  ;;  %v3911_v62 = vadd.f32 %v9083_v58, %v8996_v24 }
 0x249   : > { %v5908_v3 = vadd.f32 %v5907_v16, %v5877_v41  ;;  %v5839_v61 = vadd.f32 %v5838_v46, %v5648_v57  ;;  %v5652_v11 = vadd.f32 %v7046_v10, %v4926_v47  ;;  %v4924_v38 = vadd.f32 %v4811_v1, %v4598_v59 }
 0x24a   : > { %v7015_v36 = vpop.f32.mrf.mxu1  ;;  %v5879_v25 = vmul.f32 %v5649_v45, %v5649_v45 }
 0x24b   : > { %v5840_v53 = vadd.f32 %v5839_v61, %v5649_v45  ;;  %v5909_v2 = vadd.f32 %v5908_v3, %v5878_v14  ;;  %v6535_v22 = vpack.c.bf16 %v5652_v11, %v5651_v17  ;;  %v5650_v51 = vadd.f32 %v5537_v21, %v4924_v38 }
 0x24c   : > { %v7049_v34 = vpop.f32.mrf.mxu0  ;;  %v4824_v37 = vpop.f32.mrf.mxu1  ;;  %v4929_v48 = vadd.f32 %v7015_v36, %v9063_v8  ;;  %v3913_v8 = vadd.f32 %v9081_v50, %v8993_v28  ;;  %v5882_v46 = vmul.f32 %v5652_v11, %v5652_v11 }
 0x24d   : > { %v5910_v30 = vadd.f32 %v5909_v2, %v5879_v25  ;;  %6599 = vst [vmem:[%s9158_s14 + $0x18] sm:$0xff] %v6535_v22   ;;  %v4927_v57 = vadd.f32 %v4824_v37, %v9067_v42  ;;  %v6530_v19 = vpack.c.bf16 %v5650_v51, %v5649_v45  ;;  %v5841_v26 = vadd.f32 %v5840_v53, %v5650_v51 }
 0x24e   : > { %v5880_v39 = vmul.f32 %v5650_v51, %v5650_v51  ;;  %v5550_v54 = vpop.f32.mrf.mxu0  ;;  %v7016_v6 = vpop.f32.mrf.mxu1  ;;  %v5655_v4 = vadd.f32 %v7049_v34, %v4929_v48  ;;  %v4608_v43 = vadd.f32 %v9073_v7, %v3913_v8  ;;  %v4606_v2 = vadd.f32 %v9079_v29, %v3911_v62 }
 0x24f   : > { %v4930_v60 = vadd.f32 %v7016_v6, %v4604_v56  ;;  %6598 = vst [vmem:[%s9158_s14 + $0x10] sm:$0xff] %v6530_v19   ;;  %v5842_v32 = vadd.f32 %v5841_v26, %v5651_v17  ;;  %v5653_v10 = vadd.f32 %v5550_v54, %v4927_v57 }
 0x250   : > { %v5911_v5 = vadd.f32 %v5910_v30, %v5880_v39  ;;  %v7050_v20 = vpop.f32.mrf.mxu0  ;;  %v4827_v59 = vpop.f32.mrf.mxu1  ;;  %v5885_v22 = vmul.f32 %v5655_v4, %v5655_v4 }
 0x251   : > { %v5656_v42 = vadd.f32 %v7050_v20, %v4930_v60  ;;  %v4928_v41 = vadd.f32 %v4827_v59, %v4602_v23  ;;  %v5843_v47 = vadd.f32 %v5842_v32, %v5652_v11  ;;  %v5883_v1 = vmul.f32 %v5653_v10, %v5653_v10 }
 0x252   : > { %v5912_v16 = vadd.f32 %v5911_v5, %v5881_v13  ;;  %v5553_v0 = vpop.f32.mrf.mxu0  ;;  %v7019_v14 = vpop.f32.mrf.mxu1 }
 0x253   : > { %v6545_v17 = vpack.c.bf16 %v5656_v42, %v5655_v4  ;;  %v5654_v45 = vadd.f32 %v5553_v0, %v4928_v41  ;;  %v5844_v21 = vadd.f32 %v5843_v47, %v5653_v10  ;;  %v4933_v24 = vadd.f32 %v7019_v14, %v9075_v9 }
 0x254   : > { %v5913_v3 = vadd.f32 %v5912_v16, %v5882_v46  ;;  %v4840_v61 = vpop.f32.mrf.mxu1 }
 0x255   : > { %6601 = vst [vmem:[%s9158_s14 + $0x28] sm:$0xff] %v6545_v17   ;;  %v6540_v28 = vpack.c.bf16 %v5654_v45, %v5653_v10  ;;  %v5884_v50 = vmul.f32 %v5654_v45, %v5654_v45  ;;  %v4931_v38 = vadd.f32 %v4840_v61, %v9077_v33  ;;  %v5845_v36 = vadd.f32 %v5844_v21, %v5654_v45 }
 0x256   : > { %v5914_v11 = vadd.f32 %v5913_v3, %v5883_v1  ;;  %v7053_v53 = vpop.f32.mrf.mxu0  ;;  %v7020_v25 = vpop.f32.mrf.mxu1  ;;  %v5886_v33 = vmul.f32 %v5656_v42, %v5656_v42 }
 0x257   : > { %6600 = vst [vmem:[%s9158_s14 + $0x20] sm:$0xff] %v6540_v28   ;;  %v4934_v58 = vadd.f32 %v7020_v25, %v4608_v43  ;;  %v5846_v51 = vadd.f32 %v5845_v36, %v5655_v4  ;;  %v5659_v39 = vadd.f32 %v7053_v53, %v4933_v24 }
 0x258   : > { %v5915_v34 = vadd.f32 %v5914_v11, %v5884_v50  ;;  %v5566_v37 = vpop.f32.mrf.mxu0  ;;  %v4843_v30 = vpop.f32.mrf.mxu1 }
 0x259   : > { %v5657_v48 = vadd.f32 %v5566_v37, %v4931_v38  ;;  %v4932_v57 = vadd.f32 %v4843_v30, %v4606_v2  ;;  %v5847_v56 = vadd.f32 %v5846_v51, %v5656_v42  ;;  %v5889_v16 = vmul.f32 %v5659_v39, %v5659_v39 }
 0x25a   : > { %v5916_v7 = vadd.f32 %v5915_v34, %v5885_v22  ;;  %v7054_v19 = vpop.f32.mrf.mxu0  ;;  %v7023_v26 = vpop.f32.mrf.mxu1 }
 0x25b   : > { %v5660_v54 = vadd.f32 %v7054_v19, %v4934_v58  ;;  %v5848_v6 = vadd.f32 %v5847_v56, %v5657_v48  ;;  %v5887_v9 = vmul.f32 %v5657_v48, %v5657_v48  ;;  %v4937_v41 = vadd.f32 %v7023_v26, %v9085_v15 }
 0x25c   : > { %v5917_v60 = vadd.f32 %v5916_v7, %v5886_v33  ;;  %v5569_v29 = vpop.f32.mrf.mxu0  ;;  %v4856_v23 = vpop.f32.mrf.mxu1 }
 0x25d   : > { %v6555_v13 = vpack.c.bf16 %v5660_v54, %v5659_v39  ;;  %v5658_v32 = vadd.f32 %v5569_v29, %v4932_v57  ;;  %v4935_v4 = vadd.f32 %v4856_v23, %v9087_v31  ;;  %v5890_v62 = vmul.f32 %v5660_v54, %v5660_v54 }
 0x25e   : > { %v5918_v5 = vadd.f32 %v5917_v60, %v5887_v9  ;;  %v7024_v10 = vpop.f32.mrf.mxu1 }
 0x25f   : > { %6603 = vst [vmem:[%s9158_s14 + $0x38] sm:$0xff] %v6555_v13   ;;  %v6550_v20 = vpack.c.bf16 %v5658_v32, %v5657_v48  ;;  %v5849_v59 = vadd.f32 %v5848_v6, %v5658_v32  ;;  %v5888_v8 = vmul.f32 %v5658_v32, %v5658_v32  ;;  %v4938_v14 = vadd.f32 %v7024_v10, %v9090_v44 }
 0x260   : > { %v7057_v42 = vpop.f32.mrf.mxu0  ;;  %v4859_v46 = vpop.f32.mrf.mxu1 }
 0x261   : > { %6602 = vst [vmem:[%s9158_s14 + $0x30] sm:$0xff] %v6550_v20   ;;  %v5850_v47 = vadd.f32 %v5849_v59, %v5659_v39  ;;  %v5919_v0 = vadd.f32 %v5918_v5, %v5888_v8  ;;  %v4936_v3 = vadd.f32 %v4859_v46, %v9092_v12  ;;  %v5663_v61 = vadd.f32 %v7057_v42, %v4937_v41  ;;  %v9547_v42 = vld [vmem:[#allocation11_spill] sm:$0xff]  ;;  %v9548_v46 = vld [vmem:[#allocation48_spill] sm:$0xff] }
 0x262   : > { %v5582_v17 = vpop.f32.mrf.mxu0 }
 0x263   : > { %v5920_v45 = vadd.f32 %v5919_v0, %v5889_v16  ;;  %v5661_v21 = vadd.f32 %v5582_v17, %v4935_v4  ;;  %v5851_v1 = vadd.f32 %v5850_v47, %v5660_v54  ;;  %v5893_v30 = vmul.f32 %v5663_v61, %v5663_v61  ;;  %v9549_v17 = vld [vmem:[#allocation50_spill] sm:$0xff] }
 0x264   : > { %v7058_v31 = vpop.f32.mrf.mxu0  ;;  %v7027_v28 = vpop.f32.mrf.mxu1 }
 0x265   : > { %v5852_v50 = vadd.f32 %v5851_v1, %v5661_v21  ;;  %v5891_v15 = vmul.f32 %v5661_v21, %v5661_v21  ;;  %v5921_v38 = vadd.f32 %v5920_v45, %v5890_v62  ;;  %v5664_v43 = vadd.f32 %v7058_v31, %v4938_v14 }
 0x266   : > { %v5585_v11 = vpop.f32.mrf.mxu0  ;;  %v4872_v36 = vpop.f32.mrf.mxu1  ;;  %v4941_v34 = vadd.f32 %v7027_v28, %v9096_v27 }
 0x267   : > { %v5922_v53 = vadd.f32 %v5921_v38, %v5891_v15  ;;  %v6565_v44 = vpack.c.bf16 %v5664_v43, %v5663_v61  ;;  %v5662_v25 = vadd.f32 %v5585_v11, %v4936_v3  ;;  %v4939_v12 = vadd.f32 %v4872_v36, %v9099_v55 }
 0x268   : > { %v7028_v24 = vpop.f32.mrf.mxu1  ;;  %v5894_v7 = vmul.f32 %v5664_v43, %v5664_v43 }
 0x269   : > { %6605 = vst [vmem:[%s9158_s14 + $0x48] sm:$0xff] %v6565_v44   ;;  %v6560_v58 = vpack.c.bf16 %v5662_v25, %v5661_v21  ;;  %v5853_v2 = vadd.f32 %v5852_v50, %v5662_v25  ;;  %v5892_v22 = vmul.f32 %v5662_v25, %v5662_v25  ;;  %v4942_v33 = vadd.f32 %v7028_v24, %v9102_v52  ;;  %v9550_v50 = vld [vmem:[#allocation7_spill] sm:$0xff] }
 0x26a   : > { %v7061_v51 = vpop.f32.mrf.mxu0  ;;  %v4875_v37 = vpop.f32.mrf.mxu1 }
 0x26b   : > { %6604 = vst [vmem:[%s9158_s14 + $0x40] sm:$0xff] %v6560_v58   ;;  %v5854_v48 = vadd.f32 %v5853_v2, %v5663_v61  ;;  %v5923_v57 = vadd.f32 %v5922_v53, %v5892_v22  ;;  %v4940_v54 = vadd.f32 %v4875_v37, %v9104_v49  ;;  %v5667_v6 = vadd.f32 %v7061_v51, %v4941_v34 }
 0x26c   : > { %v5598_v56 = vpop.f32.mrf.mxu0 }
 0x26d   : > { %v5924_v19 = vadd.f32 %v5923_v57, %v5893_v30  ;;  %v5665_v26 = vadd.f32 %v5598_v56, %v4939_v12  ;;  %v5855_v39 = vadd.f32 %v5854_v48, %v5664_v43  ;;  %v5897_v0 = vmul.f32 %v5667_v6, %v5667_v6 }
 0x26e   : > { %v7062_v55 = vpop.f32.mrf.mxu0  ;;  %v7031_v9 = vpop.f32.mrf.mxu1 }
 0x26f   : > { %v5856_v60 = vadd.f32 %v5855_v39, %v5665_v26  ;;  %v5895_v27 = vmul.f32 %v5665_v26, %v5665_v26  ;;  %v5925_v29 = vadd.f32 %v5924_v19, %v5894_v7  ;;  %v5668_v23 = vadd.f32 %v7062_v55, %v4942_v33 }
 0x270   : > { %v5601_v13 = vpop.f32.mrf.mxu0  ;;  %v4888_v32 = vpop.f32.mrf.mxu1  ;;  %v4945_v16 = vadd.f32 %v7031_v9, %v9548_v46 }
 0x271   : > { %v5926_v5 = vadd.f32 %v5925_v29, %v5895_v27  ;;  %v6575_v52 = vpack.c.bf16 %v5668_v23, %v5667_v6  ;;  %v5666_v10 = vadd.f32 %v5601_v13, %v4940_v54  ;;  %v4943_v49 = vadd.f32 %v4888_v32, %v9547_v42 }
 0x272   : > { %v7032_v20 = vpop.f32.mrf.mxu1  ;;  %v5898_v21 = vmul.f32 %v5668_v23, %v5668_v23 }
 0x273   : > { %6607 = vst [vmem:[%s9158_s14 + $0x58] sm:$0xff] %v6575_v52   ;;  %v6570_v59 = vpack.c.bf16 %v5666_v10, %v5665_v26  ;;  %v5857_v8 = vadd.f32 %v5856_v60, %v5666_v10  ;;  %v5896_v4 = vmul.f32 %v5666_v10, %v5666_v10  ;;  %v4946_v45 = vadd.f32 %v7032_v20, %v9549_v17 }
 0x274   : > { %v7065_v41 = vpop.f32.mrf.mxu0  ;;  %v4891_v47 = vpop.f32.mrf.mxu1 }
 0x275   : > { %6606 = vst [vmem:[%s9158_s14 + $0x50] sm:$0xff] %v6570_v59   ;;  %v5858_v14 = vadd.f32 %v5857_v8, %v5667_v6  ;;  %v5927_v62 = vadd.f32 %v5926_v5, %v5896_v4  ;;  %v4944_v15 = vadd.f32 %v4891_v47, %v9550_v50  ;;  %v5671_v38 = vadd.f32 %v7065_v41, %v4945_v16 }
 0x276   : > { %v5614_v1 = vpop.f32.mrf.mxu0  ;;  %v7035_v3 = vpop.f32.mrf.mxu1 }
 0x277   : > { %v5928_v61 = vadd.f32 %v5927_v62, %v5897_v0  ;;  %v5669_v31 = vadd.f32 %v5614_v1, %v4943_v49  ;;  %v5859_v28 = vadd.f32 %v5858_v14, %v5668_v23  ;;  %v5901_v30 = vmul.f32 %v5671_v38, %v5671_v38 }
 0x278   : > { %v7066_v43 = vpop.f32.mrf.mxu0  ;;  %v4904_v24 = vpop.f32.mrf.mxu1  ;;  %v4949_v54 = vadd.f32 %v7035_v3, %v9130_v40 }
 0x279   : > { %v5860_v11 = vadd.f32 %v5859_v28, %v5669_v31  ;;  %v5899_v36 = vmul.f32 %v5669_v31, %v5669_v31  ;;  %v5929_v53 = vadd.f32 %v5928_v61, %v5898_v21  ;;  %v5672_v44 = vadd.f32 %v7066_v43, %v4946_v45 }
 0x27a   : > { %v5617_v25 = vpop.f32.mrf.mxu0  ;;  %v7036_v37 = vpop.f32.mrf.mxu1  ;;  %v4947_v56 = vadd.f32 %v4904_v24, %v9134_v18 }
 0x27b   : > { %v5930_v58 = vadd.f32 %v5929_v53, %v5899_v36  ;;  %v6585_v2 = vpack.c.bf16 %v5672_v44, %v5671_v38  ;;  %v5670_v22 = vadd.f32 %v5617_v25, %v4944_v15  ;;  %v5902_v33 = vmul.f32 %v5672_v44, %v5672_v44 }
 0x27c   : > { %v4907_v39 = vpop.f32.mrf.mxu1  ;;  %v4950_v55 = vadd.f32 %v7036_v37, %v9140_v35 }
 0x27d   : > { %6609 = vst [vmem:[%s9158_s14 + $0x68] sm:$0xff] %v6585_v2   ;;  %v6580_v12 = vpack.c.bf16 %v5670_v22, %v5669_v31  ;;  %v5861_v51 = vadd.f32 %v5860_v11, %v5670_v22  ;;  %v5900_v34 = vmul.f32 %v5670_v22, %v5670_v22  ;;  %v4948_v27 = vadd.f32 %v4907_v39, %v9144_v63 }
 0x27f   : > { %6608 = vst [vmem:[%s9158_s14 + $0x60] sm:$0xff] %v6580_v12   ;;  %v5862_v48 = vadd.f32 %v5861_v51, %v5671_v38  ;;  %v5931_v57 = vadd.f32 %v5930_v58, %v5900_v34 }
 0x281   : > { %v5932_v7 = vadd.f32 %v5931_v57, %v5901_v30  ;;  %v5863_v19 = vadd.f32 %v5862_v48, %v5672_v44 }
 0x283   : > { %v7069_v26 = vpop.f32.mrf.mxu0  ;;  %v5933_v6 = vadd.f32 %v5932_v7, %v5902_v33 }
 0x284   : > { %v5675_v23 = vadd.f32 %v7069_v26, %v4949_v54 }
 0x285   : > { %v5630_v9 = vpop.f32.mrf.mxu0 }
 0x286   : > { %v5673_v60 = vadd.f32 %v5630_v9, %v4947_v56  ;;  %v5905_v35 = vmul.f32 %v5675_v23, %v5675_v23 }
 0x287   : > { %v7070_v29 = vpop.f32.mrf.mxu0 }
 0x288   : > { %v5864_v13 = vadd.f32 %v5863_v19, %v5673_v60  ;;  %v5903_v32 = vmul.f32 %v5673_v60, %v5673_v60  ;;  %v5676_v5 = vadd.f32 %v7070_v29, %v4950_v55 }
 0x289   : > { %v5633_v18 = vpop.f32.mrf.mxu0 }
 0x28a   : > { %v5934_v52 = vadd.f32 %v5933_v6, %v5903_v32  ;;  %v6595_v10 = vpack.c.bf16 %v5676_v5, %v5675_v23  ;;  %v5674_v20 = vadd.f32 %v5633_v18, %v4948_v27  ;;  %v5906_v49 = vmul.f32 %v5676_v5, %v5676_v5 }
 0x28c   : > { %6611 = vst [vmem:[%s9158_s14 + $0x78] sm:$0xff] %v6595_v10   ;;  %v6590_v59 = vpack.c.bf16 %v5674_v20, %v5673_v60  ;;  %v5865_v40 = vadd.f32 %v5864_v13, %v5674_v20  ;;  %v5904_v8 = vmul.f32 %v5674_v20, %v5674_v20 }
 0x28e   : > { %6610 = vst [vmem:[%s9158_s14 + $0x70] sm:$0xff] %v6590_v59   ;;  %v5866_v4 = vadd.f32 %v5865_v40, %v5675_v23  ;;  %v5935_v42 = vadd.f32 %v5934_v52, %v5904_v8 }
 0x290   : > { %v5867_v63 = vadd.f32 %v5866_v4, %v5676_v5  ;;  %v5936_v41 = vadd.f32 %v5935_v42, %v5905_v35 }
 0x292   : > { %v5868_v46 = vrot.slane %v5867_v63, 4  ;;  %v5937_v16 = vadd.f32 %v5936_v41, %v5906_v49 }
 0x294   : > { %v5869_v47 = vadd.f32 %v5868_v46, %v5867_v63  ;;  %v5938_v0 = vrot.slane %v5937_v16, 4 }
 0x296   : > { %v5870_v14 = vrot.slane %v5869_v47, 2  ;;  %v5939_v62 = vadd.f32 %v5938_v0, %v5937_v16 }
 0x298   : > { %v5871_v17 = vadd.f32 %v5870_v14, %v5869_v47  ;;  %v5940_v45 = vrot.slane %v5939_v62, 2 }
 0x29a   : > { %v5872_v21 = vrot.slane %v5871_v17, 1  ;;  %v5941_v1 = vadd.f32 %v5940_v45, %v5939_v62 }
 0x29c   : > { %v5873_v3 = vadd.f32 %v5872_v21, %v5871_v17  ;;  %v5942_v61 = vrot.slane %v5941_v1, 1 }
 0x29e   : > { %5874 = vst [vmem:[%s181_s18] sm:$0x1] %v5873_v3  ;;  %v5943_v31 = vadd.f32 %v5942_v61, %v5941_v1 }
 0x2a0   : > { %5944 = vst [vmem:[%s181_s18 + $0x1] sm:$0x1] %v5943_v31 }
 0x2a1 PF: > { %s14_s12 = sadd.s32 1, %s7174_s12  }
 0x2a2   : > { %p11_p4 = scmp.ge.s32.totalorder %s14_s12, 4  }
 0x2a4   :  { %13 = sbr.rel (!%p11_p4) target bundleno = 1 (0x1), region = 81 }

// kernel: conv_block.4
= control target key start
LH: loop header
LB: loop body
LE: loop exit
PB: predicated region body
PF: predicated region fallthrough
CT: control target
= control target key end

     0   :  { %s8050_s18 = smov 0   ;;  %s10318_s0 = inlined_call_operand.vmem [shape: bf16[2,16,16,128], index: 0, kind: input, shape index: {}]   ;;  %s10319_s1 = inlined_call_operand.vmem [shape: f32[1,128], index: 1, kind: input, shape index: {}]   ;;  %s10320_s2 = inlined_call_operand.vmem [shape: f32[1,128], index: 2, kind: input, shape index: {}]   ;;  %s10321_s3 = inlined_call_operand.vmem [shape: bf16[9,128,128], index: 3, kind: input, shape index: {}]   ;;  %s10322_s4 = inlined_call_operand.vmem [shape: bf16[2,16,16,128], index: 4, kind: output, shape index: {0}]   ;;  %s10323_s5 = inlined_call_operand.vmem [shape: f32[2,2,128], index: 5, kind: output, shape index: {1}]  }
   0x1 LB: > { %s6476_s19 = sadd.s32 4294967295, %s8017_s18   ;;  %p6480_p0 = scmp.ge.s32.totalorder %s8017_s18, 1  ;;  %s8017_s18 = sphi %s8050_s18, %s16_s18  }
   0x2   : > { %p190_p1 = scmp.lt.s32.totalorder %s8017_s18, 3 }
   0x4   : > { %p191_p2 = pnand %p6480_p0, %p190_p1 }
   0x6   : > { %194 = sbr.rel (%p191_p2) target bundleno = 708 (0x2c4), region = 36 }
   0xb   : > { %v7859_v0 = vld [vmem:[%s10321_s3 + $0x78] sm:$0xff]   ;;  %v7860_v1 = vld [vmem:[%s10321_s3 + $0x70] sm:$0xff]   ;;  %v8019_v2 = vmov 0   ;;  %p222_p3 = scmp.lt.s32.totalorder %s6476_s19, 1  ;;  %v7861_v3 = vld [vmem:[%s10321_s3 + $0x68] sm:$0xff]   ;;  %vm237_vm0 = vcmask 1043459  }
   0xc   : > { %243 = vst [vmem:[#allocation2 + $0x4] sm:$0xf] %v8019_v2  ;;  %244 = vst [vmem:[#allocation2 + $0x8] sm:$0xf] %v8019_v2  ;;  %7402 = vmatprep.subr.bf16.mxu0 %v7859_v0  ;;  %7834 = vmatprep.subr.bf16.mxu1 %v7859_v0  ;;  %v7862_v4 = vld [vmem:[%s10321_s3 + $0x60] sm:$0xff]   ;;  %v7863_v23 = vld [vmem:[%s10321_s3 + $0x58] sm:$0xff]  }
   0xd   : > { %255 = vst [vmem:[#allocation2 + $0x114] sm:$0xf] %v8019_v2  ;;  %256 = vst [vmem:[#allocation2 + $0x118] sm:$0xf] %v8019_v2  ;;  %7403 = vmatpush3.bf16.msra.mxu0 %v7859_v0  ;;  %7842 = vmatpush3.bf16.msra.mxu1 %v7859_v0  ;;  %s10642_s19 = smov (!%p222_p3, %s6476_s19), 1  ;;  %v7864_v39 = vld [vmem:[%s10321_s3 + $0x50] sm:$0xff]  }
   0xe   : > { %7404 = vmatprep.subr.bf16.mxu0 %v7860_v1  ;;  %7835 = vmatprep.subr.bf16.mxu1 %v7860_v1  ;;  %s6946_s26 = sshll.u32 %s10642_s19, 7  ;;  %v8084_v11 = vld [vmem:[%s10319_s1] ss:$0 sm:$0xff]  ;;  %v7865_v59 = vld [vmem:[%s10321_s3 + $0x48] sm:$0xff]   ;;  %vm238_vm1 = vsmask.f32 7950 }
   0xf   : > { %s8075_s29 = scalar_lea.vmem %s10318_s0, %s6946_s26  ;;  %v8089_v16 = vld [vmem:[%s10320_s2] ss:$0 sm:$0xff]  ;;  %vm246_vm2 = vsmask.f32 256  ;;  %vm245_vm3 = vcmask 1040384   ;;  %vm8398_vm4 = vmand %vm237_vm0, %vm238_vm1  ;;  %s10263_s28 = scalar_lea.vmem %s10322_s4, %s6946_s26 }
  0x10   : > { %v7162_v7 = vld [vmem:[%s8075_s29 + $0x38] sm:$0xff]   ;;  %v7013_v17 = vld [vmem:[%s8075_s29] sm:$0xff]   ;;  %v7156_v38 = vld [vmem:[%s8075_s29 + $0x8] sm:$0xff]   ;;  %vm739_vm6 = vsmask.f32 4368  ;;  %s6485_s26 = sshll.u32 %s10642_s19, 1 }
  0x11   : > { %7405 = vmatpush3.bf16.msra.mxu0 %v7860_v1  ;;  %7843 = vmatpush3.bf16.msra.mxu1 %v7860_v1  ;;  %v7042_v14 = vunpack.c.l.bf16 %v7162_v7  ;;  %v7043_v15 = vunpack.c.h.bf16 %v7162_v7  ;;  %v7163_v18 = vld [vmem:[%s8075_s29 + $0x40] sm:$0xff]   ;;  %v7014_v21 = vunpack.c.l.bf16 %v7013_v17  ;;  %v7015_v22 = vunpack.c.h.bf16 %v7013_v17  ;;  %v7164_v48 = vld [vmem:[%s8075_s29 + $0x48] sm:$0xff]   ;;  %v7157_v53 = vld [vmem:[%s8075_s29 + $0x10] sm:$0xff]   ;;  %s235_s7 = scalar_lea.vmem %s10323_s5, %s6485_s26 }
  0x12   : > { %7406 = vmatprep.subr.bf16.mxu0 %v7861_v3  ;;  %7836 = vmatprep.subr.bf16.mxu1 %v7861_v3  ;;  %v7046_v26 = vunpack.c.l.bf16 %v7163_v18  ;;  %v7047_v27 = vunpack.c.h.bf16 %v7163_v18  ;;  %v7018_v46 = vunpack.c.l.bf16 %v7156_v38  ;;  %v7019_v47 = vunpack.c.h.bf16 %v7156_v38  ;;  %v7165_v58 = vld [vmem:[%s8075_s29 + $0x50] sm:$0xff]   ;;  %vm8422_vm5 = vmand %vm245_vm3, %vm246_vm2 }
  0x13   : > { %v692_v5 = vld [vmem:[#allocation2 + $0x4] sm:$0xf]  ;;  %v693_v6 = vld [vmem:[#allocation2 + $0x8] sm:$0xf]  ;;  %v442_v24 = vmul.f32 %v7042_v14, %v8084_v11  ;;  %v443_v25 = vmul.f32 %v7043_v15, %v8084_v11  ;;  %v428_v29 = vmul.f32 %v7014_v21, %v8084_v11  ;;  %v429_v32 = vmul.f32 %v7015_v22, %v8084_v11  ;;  %vm8440_vm8 = vmor %vm246_vm2, %vm739_vm6 }
  0x14   : > { %v747_v8 = vshrl.u32 %v692_v5, 16  ;;  %v750_v9 = vshll.u32 %v692_v5, 16  ;;  %v756_v10 = vshrl.u32 %v693_v6, 16  ;;  %v759_v12 = vshll.u32 %v693_v6, 16  ;;  %v7866_v14 = vld [vmem:[%s10321_s3 + $0x40] sm:$0xff]  }
  0x15   : > { %v6552_v13 = vcombine.low %v692_v5, %v693_v6  ;;  %7407 = vmatpush3.bf16.msra.mxu0 %v7861_v3  ;;  %7844 = vmatpush3.bf16.msra.mxu1 %v7861_v3  ;;  %v481_v30 = vadd.f32 %v8089_v16, %v442_v24  ;;  %v482_v31 = vadd.f32 %v8089_v16, %v443_v25  ;;  %v7050_v62 = vunpack.c.l.bf16 %v7164_v48  ;;  %v8152_v25 = vld [vmem:[%s10321_s3 + $0x38] sm:$0xff]  }
  0x16   : > { %v8093_v19 = vrot.slane %v747_v8, 7  ;;  %v758_v20 = vrot.slane %v756_v10, 7  ;;  %7408 = vmatprep.subr.bf16.mxu0 %v7862_v4  ;;  %7837 = vmatprep.subr.bf16.mxu1 %v7862_v4  ;;  %v444_v33 = vmul.f32 %v7046_v26, %v8084_v11  ;;  %v467_v36 = vadd.f32 %v8089_v16, %v428_v29 }
  0x17   : > { %7418 = vmatprep.mubr.bf16.mxu0 %v6552_v13  ;;  %v445_v37 = vmul.f32 %v7047_v27, %v8084_v11  ;;  %v513_v40 = vmax.f32 %v481_v30, 0.0  ;;  %v514_v41 = vmax.f32 %v482_v31, 0.0  ;;  %v468_v42 = vadd.f32 %v8089_v16, %v429_v32 }
  0x18   : > { %v8101_v28 = vor.u32 %v750_v9, %v8093_v19  ;;  %v8109_v35 = vor.u32 %v759_v12, %v758_v20  ;;  %v483_v43 = vadd.f32 %v8089_v16, %v444_v33  ;;  %v499_v44 = vmax.f32 %v467_v36, 0.0  ;;  %v7872_v33 = vld [vmem:[%s10321_s3 + $0xb8] sm:$0xff]  }
  0x19   : > { %7409 = vmatpush3.bf16.msra.mxu0 %v7862_v4  ;;  %7845 = vmatpush3.bf16.msra.mxu1 %v7862_v4  ;;  %v484_v45 = vadd.f32 %v8089_v16, %v445_v37  ;;  %v6962_v49 = vpack.c.bf16 %v513_v40, %v513_v40  ;;  %v6963_v50 = vpack.c.bf16 %v514_v41, %v514_v41  ;;  %v500_v51 = vmax.f32 %v468_v42, 0.0  ;;  %v8131_v4 = vld [vmem:[%s8075_s29 + $0x18] sm:$0xff]  }
  0x1a   : > { %7410 = vmatprep.subr.bf16.mxu0 %v7863_v23  ;;  %7838 = vmatprep.subr.bf16.mxu1 %v7863_v23  ;;  %v515_v52 = vmax.f32 %v483_v43, 0.0  ;;  %v6948_v54 = vpack.c.bf16 %v499_v44, %v499_v44  ;;  %v430_v56 = vmul.f32 %v7018_v46, %v8084_v11  ;;  %v431_v57 = vmul.f32 %v7019_v47, %v8084_v11 }
  0x1b   : > { %v516_v55 = vmax.f32 %v484_v45, 0.0  ;;  %673 = vst [vmem:[#allocation2 + $0x84] sm:$0xf] %v6962_v49  ;;  %674 = vst [vmem:[#allocation2 + $0x88] sm:$0xf] %v6963_v50  ;;  %v6949_v60 = vpack.c.bf16 %v500_v51, %v500_v51  ;;  %v7051_v63 = vunpack.c.h.bf16 %v7164_v48  ;;  %v7022_v3 = vunpack.c.l.bf16 %v7157_v53 }
  0x1c   : > { %v6964_v61 = vpack.c.bf16 %v515_v52, %v515_v52  ;;  %659 = vst [vmem:[#allocation2 + $0x14] sm:$0xf] %v6948_v54  ;;  %v469_v1 = vadd.f32 %v8089_v16, %v430_v56  ;;  %v470_v2 = vadd.f32 %v8089_v16, %v431_v57  ;;  %v446_v5 = vmul.f32 %v7050_v62, %v8084_v11 }
  0x1d   : > { %7411 = vmatpush3.bf16.msra.mxu0 %v7863_v23  ;;  %7846 = vmatpush3.bf16.msra.mxu1 %v7863_v23  ;;  %v6965_v0 = vpack.c.bf16 %v516_v55, %v516_v55  ;;  %660 = vst [vmem:[#allocation2 + $0x18] sm:$0xf] %v6949_v60  ;;  %v447_v6 = vmul.f32 %v7051_v63, %v8084_v11  ;;  %v7023_v7 = vunpack.c.h.bf16 %v7157_v53  ;;  %v7054_v8 = vunpack.c.l.bf16 %v7165_v58 }
  0x1e   : > { %7412 = vmatprep.subr.bf16.mxu0 %v7864_v39  ;;  %7839 = vmatprep.subr.bf16.mxu1 %v7864_v39  ;;  %675 = vst [vmem:[#allocation2 + $0x94] sm:$0xf] %v6964_v61  ;;  %v501_v9 = vmax.f32 %v469_v1, 0.0  ;;  %v502_v10 = vmax.f32 %v470_v2, 0.0  ;;  %v432_v12 = vmul.f32 %v7022_v3, %v8084_v11  ;;  %v7055_v13 = vunpack.c.h.bf16 %v7165_v58 }
  0x1f   : > { %676 = vst [vmem:[#allocation2 + $0x98] sm:$0xf] %v6965_v0  ;;  %v485_v15 = vadd.f32 %v8089_v16, %v446_v5  ;;  %v8141_v17 = vadd.f32 %v8089_v16, %v447_v6  ;;  %v433_v18 = vmul.f32 %v7023_v7, %v8084_v11  ;;  %v7026_v20 = vunpack.c.l.bf16 %v8131_v4  ;;  %v7874_v0 = vld [vmem:[%s10321_s3 + $0xb0] sm:$0xff]  }
  0x20   : > { %v6950_v21 = vpack.c.bf16 %v501_v9, %v501_v9  ;;  %v6951_v22 = vpack.c.bf16 %v502_v10, %v502_v10  ;;  %v8146_v23 = vadd.f32 %v8089_v16, %v432_v12  ;;  %v448_v24 = vmul.f32 %v7054_v8, %v8084_v11  ;;  %v7873_v6 = vld [vmem:[%s10321_s3 + $0x30] sm:$0xff]  }
  0x21   : > { %7413 = vmatpush3.bf16.msra.mxu0 %v7864_v39  ;;  %7847 = vmatpush3.bf16.msra.mxu1 %v7864_v39  ;;  %v517_v26 = vmax.f32 %v485_v15, 0.0  ;;  %v518_v27 = vmax.f32 %v8141_v17, 0.0  ;;  %v8156_v29 = vadd.f32 %v8089_v16, %v433_v18  ;;  %v8159_v30 = vmul.f32 %v7055_v13, %v8084_v11  ;;  %v7166_v15 = vld [vmem:[%s8075_s29 + $0x58] sm:$0xff]  }
  0x22   : > { %7414 = vmatprep.subr.bf16.mxu0 %v7865_v59  ;;  %7840 = vmatprep.subr.bf16.mxu1 %v7865_v59  ;;  %v716_v31 = vld [vmem:[#allocation2 + $0x84] sm:$0xf]  ;;  %v717_v32 = vld [vmem:[#allocation2 + $0x88] sm:$0xf]  ;;  %661 = vst [vmem:[#allocation2 + $0x24] sm:$0xf] %v6950_v21  ;;  %v8166_v37 = vadd.f32 %v8089_v16, %v448_v24  ;;  %v7027_v38 = vunpack.c.h.bf16 %v8131_v4  ;;  %v8170_v39 = vmul.f32 %v7026_v20, %v8084_v11 }
  0x23   : > { %662 = vst [vmem:[#allocation2 + $0x28] sm:$0xf] %v6951_v22  ;;  %v503_v36 = vmax.f32 %v8146_v23, 0.0  ;;  %v923_v40 = vshrl.u32 %v716_v31, 16  ;;  %v926_v41 = vshll.u32 %v716_v31, 16  ;;  %v932_v42 = vshrl.u32 %v717_v32, 16 }
  0x24   : > { %v935_v43 = vshll.u32 %v717_v32, 16  ;;  %v695_v44 = vld [vmem:[#allocation2 + $0x14] sm:$0xf]  ;;  %v6560_v45 = vcombine.low %v716_v31, %v717_v32  ;;  %v696_v46 = vld [vmem:[#allocation2 + $0x18] sm:$0xf]  ;;  %v6966_v50 = vpack.c.bf16 %v517_v26, %v517_v26  ;;  %v6967_v13 = vpack.c.bf16 %v518_v27, %v518_v27  ;;  %v7882_v4 = vld [vmem:[%s10321_s3 + $0xa0] sm:$0xff]  }
  0x25   : > { %7415 = vmatpush3.bf16.msra.mxu0 %v7865_v59  ;;  %7848 = vmatpush3.bf16.msra.mxu1 %v7865_v59  ;;  %v769_v47 = vshrl.u32 %v695_v44, 16  ;;  %v772_v48 = vshll.u32 %v695_v44, 16  ;;  %v8172_v49 = vld [vmem:[#allocation2 + $0x94] sm:$0xf]  ;;  %v8174_v51 = vrot.slane %v923_v40, 7  ;;  %v934_v52 = vrot.slane %v932_v42, 7 }
  0x26   : > { %7416 = vmatprep.subr.bf16.mxu0 %v7866_v14  ;;  %7841 = vmatprep.subr.bf16.mxu1 %v7866_v14  ;;  %v778_v53 = vshrl.u32 %v696_v46, 16  ;;  %v781_v54 = vshll.u32 %v696_v46, 16  ;;  %v8176_v55 = vld [vmem:[#allocation2 + $0x98] sm:$0xf]  ;;  %v6553_v57 = vcombine.low %v695_v44, %v696_v46  ;;  %v945_v58 = vshrl.u32 %v8172_v49, 16  ;;  %v7879_v40 = vld [vmem:[%s10321_s3 + $0x28] sm:$0xff]  }
  0x27   : > { %v8178_v56 = vrot.slane %v769_v47, 7  ;;  %677 = vst [vmem:[#allocation2 + $0xa4] sm:$0xf] %v6966_v50  ;;  %v8183_v60 = vor.u32 %v926_v41, %v8174_v51  ;;  %v8186_v62 = vor.u32 %v935_v43, %v934_v52  ;;  %7434 = vmatprep.mubr.bf16.mxu1 %v6560_v45  ;;  %v954_v5 = vshrl.u32 %v8176_v55, 16  ;;  %678 = vst [vmem:[#allocation2 + $0xa8] sm:$0xf] %v6967_v13 }
  0x28   : > { %v780_v63 = vrot.slane %v778_v53, 7  ;;  %v8196_v3 = vrot.slane %v945_v58, 7  ;;  %v6561_v9 = vcombine.low %v8172_v49, %v8176_v55  ;;  %v504_v24 = vmax.f32 %v8156_v29, 0.0 }
  0x29   : > { %7417 = vmatpush3.bf16.msra.mxu0 %v7866_v14  ;;  %7849 = vmatpush3.bf16.msra.mxu1 %v7866_v14  ;;  %10343 = vst [vmem:[#allocation3_spill] sm:$0xff] %v8183_v60  ;;  %v8193_v1 = vor.u32 %v772_v48, %v8178_v56  ;;  %v8207_v10 = vld [vmem:[#allocation2 + $0x24] sm:$0xf]  ;;  %v7880_v14 = vld [vmem:[%s10321_s3 + $0xa8] sm:$0xff]   ;;  %v8215_v17 = vrot.slane %v954_v5, 7  ;;  %v6952_v26 = vpack.c.bf16 %v503_v36, %v503_v36  ;;  %v7058_v41 = vunpack.c.l.bf16 %v7166_v15 }
  0x2a   : > { %7450 = vmatprep.subr.bf16.mxu1 %v8152_v25  ;;  %7498 = vmatprep.subr.bf16.mxu0 %v7872_v33  ;;  %v8202_v7 = vor.u32 %v781_v54, %v780_v63  ;;  %v8209_v12 = vld [vmem:[#allocation2 + $0x28] sm:$0xf]  ;;  %v791_v18 = vshrl.u32 %v8207_v10, 16  ;;  %v488_v32 = vadd.f32 %v8089_v16, %v8159_v30  ;;  %v6953_v36 = vpack.c.bf16 %v504_v24, %v504_v24  ;;  %v8251_v48 = vld [vmem:[%s8075_s29 + $0x60] sm:$0xff]  }
  0x2b   : > { %v800_v21 = vshrl.u32 %v8209_v12, 16  ;;  %v6554_v23 = vcombine.low %v8207_v10, %v8209_v12  ;;  %663 = vst [vmem:[#allocation2 + $0x34] sm:$0xf] %v6952_v26  ;;  %v473_v30 = vadd.f32 %v8089_v16, %v8170_v39  ;;  %v7059_v47 = vunpack.c.h.bf16 %v7166_v15  ;;  %v1711_v60 = vld [vmem:[#allocation2 + $0x28] sm:$0xf] }
  0x2c   : > { %7419 = vmatmul.mubr.bf16.vlgmr.msra.gmra.mxu0 %v6553_v57  ;;  %7435 = vmatmul.mubr.bf16.vlgmr.msra.gmra.mxu1 %v6561_v9  ;;  %v8225_v27 = vrot.slane %v791_v18, 7  ;;  %v520_v44 = vmax.f32 %v488_v32, 0.0  ;;  %664 = vst [vmem:[#allocation2 + $0x38] sm:$0xf] %v6953_v36  ;;  %v450_v39 = vmul.f32 %v7058_v41, %v8084_v11  ;;  %v7881_v57 = vld [vmem:[%s10321_s3 + $0x20] sm:$0xff]   ;;  %v7062_v18 = vunpack.c.l.bf16 %v8251_v48 }
  0x2d   : > { %7499 = vmatpush3.bf16.msra.mxu0 %v7872_v33  ;;  %7451 = vmatpush3.bf16.msra.mxu1 %v8152_v25  ;;  %v8227_v31 = vrot.slane %v800_v21, 7  ;;  %v519_v33 = vmax.f32 %v8166_v37, 0.0  ;;  %v435_v25 = vmul.f32 %v7027_v38, %v8084_v11  ;;  %v7159_v37 = vld [vmem:[%s8075_s29 + $0x20] sm:$0xff]   ;;  %v505_v46 = vmax.f32 %v473_v30, 0.0 }
  0x2e   : > { %7500 = vmatprep.subr.bf16.mxu0 %v7874_v0  ;;  %7452 = vmatprep.subr.bf16.mxu1 %v7873_v6  ;;  %v8235_v29 = vld [vmem:[#allocation2 + $0xa4] sm:$0xf]  ;;  %v6969_v52 = vpack.c.bf16 %v520_v44, %v520_v44  ;;  %v7030_v53 = vunpack.c.l.bf16 %v7159_v37  ;;  %v7031_v54 = vunpack.c.h.bf16 %v7159_v37  ;;  %v489_v5 = vadd.f32 %v8089_v16, %v450_v39  ;;  %v8263_v9 = vld [vmem:[#allocation2 + $0xa8] sm:$0xf] }
  0x2f   : > { %7422 = vmatprep.mubr.bf16.mxu0 %v6554_v23  ;;  %10344 = vst [vmem:[#allocation4_spill] sm:$0xff] %v8235_v29  ;;  %v967_v42 = vshrl.u32 %v8235_v29, 16  ;;  %v6968_v45 = vpack.c.bf16 %v519_v33, %v519_v33  ;;  %v474_v38 = vadd.f32 %v8089_v16, %v435_v25  ;;  %v6954_v63 = vpack.c.bf16 %v505_v46, %v505_v46 }
  0x30   : > { %10345 = vst [vmem:[#allocation5_spill] sm:$0xff] %v8263_v9  ;;  %680 = vst [vmem:[#allocation2 + $0xb8] sm:$0xf] %v6969_v52  ;;  %v436_v13 = vmul.f32 %v7030_v53, %v8084_v11  ;;  %v437_v15 = vmul.f32 %v7031_v54, %v8084_v11  ;;  %v7063_v21 = vunpack.c.h.bf16 %v8251_v48  ;;  %v976_v23 = vshrl.u32 %v8263_v9, 16 }
  0x31   : > { %7501 = vmatpush3.bf16.msra.mxu0 %v7874_v0  ;;  %7453 = vmatpush3.bf16.msra.mxu1 %v7873_v6  ;;  %v8253_v50 = vrot.slane %v967_v42, 7  ;;  %679 = vst [vmem:[#allocation2 + $0xb4] sm:$0xf] %v6968_v45  ;;  %v506_v58 = vmax.f32 %v474_v38, 0.0  ;;  %v451_v0 = vmul.f32 %v7059_v47, %v8084_v11  ;;  %v7888_v6 = vld [vmem:[%s10321_s3 + $0x98] sm:$0xff]   ;;  %v6562_v26 = vcombine.low %v8235_v29, %v8263_v9  ;;  %v7169_v42 = vld [vmem:[%s8075_s29 + $0x70] sm:$0xff]  }
  0x32   : > { %7502 = vmatprep.subr.bf16.mxu0 %v7880_v14  ;;  %7454 = vmatprep.subr.bf16.mxu1 %v7879_v40  ;;  %665 = vst [vmem:[#allocation2 + $0x44] sm:$0xf] %v6954_v63  ;;  %v8273_v33 = vld [vmem:[#allocation2 + $0x34] sm:$0xf]  ;;  %v521_v36 = vmax.f32 %v489_v5, 0.0  ;;  %v475_v25 = vadd.f32 %v8089_v16, %v436_v13  ;;  %v476_v30 = vadd.f32 %v8089_v16, %v437_v15  ;;  %v8278_v41 = vrot.slane %v976_v23, 7 }
  0x33   : > { %v6955_v32 = vpack.c.bf16 %v506_v58, %v506_v58  ;;  %7438 = vmatprep.mubr.bf16.mxu1 %v6562_v26  ;;  %v813_v37 = vshrl.u32 %v8273_v33, 16  ;;  %v452_v44 = vmul.f32 %v7062_v18, %v8084_v11  ;;  %v8286_v45 = vld [vmem:[#allocation2 + $0x38] sm:$0xf]  ;;  %v453_v26 = vmul.f32 %v7063_v21, %v8084_v11  ;;  %v7889_v21 = vld [vmem:[%s10321_s3 + $0x10] sm:$0xff]   ;;  %v1710_v9 = vld [vmem:[#allocation2 + $0x24] sm:$0xf] }
  0x34   : > { %10346 = vst [vmem:[#allocation6_spill] sm:$0xff] %v8278_v41  ;;  %v6970_v46 = vpack.c.bf16 %v521_v36, %v521_v36  ;;  %v507_v47 = vmax.f32 %v475_v25, 0.0  ;;  %v508_v39 = vmax.f32 %v476_v30, 0.0  ;;  %v822_v52 = vshrl.u32 %v8286_v45, 16  ;;  %v7168_v36 = vld [vmem:[%s8075_s29 + $0x68] sm:$0xff]   ;;  %v8331_v30 = vld [vmem:[%s8075_s29 + $0x30] sm:$0xff]  }
  0x35   : > { %7503 = vmatpush3.bf16.msra.mxu0 %v7880_v14  ;;  %7455 = vmatpush3.bf16.msra.mxu1 %v7879_v40  ;;  %v490_v14 = vadd.f32 %v8089_v16, %v451_v0  ;;  %666 = vst [vmem:[#allocation2 + $0x48] sm:$0xf] %v6955_v32  ;;  %v7887_v40 = vld [vmem:[%s10321_s3 + $0x18] sm:$0xff]   ;;  %v8288_v48 = vrot.slane %v813_v37, 7  ;;  %v6555_v54 = vcombine.low %v8273_v33, %v8286_v45  ;;  %vm1752_vm7 = vsmask.f32 3328 }
  0x36   : > { %7504 = vmatprep.subr.bf16.mxu0 %v7882_v4  ;;  %7456 = vmatprep.subr.bf16.mxu1 %v7881_v57  ;;  %681 = vst [vmem:[#allocation2 + $0xc4] sm:$0xf] %v6970_v46  ;;  %v6956_v13 = vpack.c.bf16 %v507_v47, %v507_v47  ;;  %v8301_v15 = vrot.slane %v822_v52, 7  ;;  %v6957_v23 = vpack.c.bf16 %v508_v39, %v508_v39  ;;  %v7896_v52 = vld [vmem:[%s10321_s3 + $0x88] sm:$0xff]   ;;  %v7039_v46 = vunpack.c.h.bf16 %v8331_v30 }
  0x37   : > { %v522_v38 = vmax.f32 %v490_v14, 0.0  ;;  %7423 = vmatmul.mubr.bf16.gmra.mxu0 %v6555_v54  ;;  %v8303_v18 = vld [vmem:[#allocation2 + $0xb8] sm:$0xf]  ;;  %v491_v32 = vadd.f32 %v8089_v16, %v452_v44  ;;  %v7160_v14 = vld [vmem:[%s8075_s29 + $0x28] sm:$0xff]   ;;  %v492_v47 = vadd.f32 %v8089_v16, %v453_v26  ;;  %vm1753_vm9 = vsmask.f32 7440 }
  0x38   : > { %v8294_v58 = vld [vmem:[#allocation2 + $0xb4] sm:$0xf]  ;;  %10348 = vst [vmem:[#allocation8_spill] sm:$0xff] %v8303_v18  ;;  %667 = vst [vmem:[#allocation2 + $0x54] sm:$0xf] %v6956_v13  ;;  %v7066_v13 = vunpack.c.l.bf16 %v7168_v36 }
  0x39   : > { %7505 = vmatpush3.bf16.msra.mxu0 %v7882_v4  ;;  %10347 = vst [vmem:[#allocation7_spill] sm:$0xff] %v8294_v58  ;;  %v7890_v4 = vld [vmem:[%s10321_s3 + $0x90] sm:$0xff]   ;;  %v989_v63 = vshrl.u32 %v8294_v58, 16  ;;  %7457 = vmatpush3.bf16.msra.mxu1 %v7881_v57  ;;  %v6971_v5 = vpack.c.bf16 %v522_v38, %v522_v38  ;;  %v998_v57 = vshrl.u32 %v8303_v18, 16  ;;  %v6563_v37 = vcombine.low %v8294_v58, %v8303_v18  ;;  %v8315_v38 = vld [vmem:[#allocation2 + $0x44] sm:$0xf]  ;;  %vm8481_vm10 = vmor %vm1752_vm7, %vm1753_vm9 }
  0x3a   : > { %7506 = vmatprep.subr.bf16.mxu0 %v7888_v6  ;;  %7458 = vmatprep.subr.bf16.mxu1 %v7887_v40  ;;  %v835_v44 = vshrl.u32 %v8315_v38, 16  ;;  %668 = vst [vmem:[#allocation2 + $0x58] sm:$0xf] %v6957_v23  ;;  %v523_v39 = vmax.f32 %v491_v32, 0.0 }
  0x3b   : > { %v8309_v25 = vrot.slane %v989_v63, 7  ;;  %682 = vst [vmem:[#allocation2 + $0xc8] sm:$0xf] %v6971_v5  ;;  %7439 = vmatmul.mubr.bf16.gmra.mxu1 %v6563_v37  ;;  %v7034_v63 = vunpack.c.l.bf16 %v7160_v14  ;;  %v7035_v5 = vunpack.c.h.bf16 %v7160_v14 }
  0x3c   : > { %v8328_v54 = vld [vmem:[#allocation2 + $0x48] sm:$0xf]  ;;  %v8333_v23 = vrot.slane %v835_v44, 7  ;;  %v6972_v24 = vpack.c.bf16 %v523_v39, %v523_v39  ;;  %v7898_v39 = vld [vmem:[%s10321_s3 + $0x80] sm:$0xff]  }
  0x3d   : > { %10349 = vst [vmem:[#allocation9_spill] sm:$0xff] %v8309_v25  ;;  %7507 = vmatpush3.bf16.msra.mxu0 %v7888_v6  ;;  %v8326_v6 = vrot.slane %v998_v57, 7  ;;  %v844_v26 = vshrl.u32 %v8328_v54, 16  ;;  %v6556_v0 = vcombine.low %v8315_v38, %v8328_v54  ;;  %7459 = vmatpush3.bf16.msra.mxu1 %v7887_v40  ;;  %v524_v57 = vmax.f32 %v492_v47, 0.0  ;;  %v7895_v44 = vld [vmem:[%s10321_s3 + $0x8] sm:$0xff]  }
  0x3e   : > { %7508 = vmatprep.subr.bf16.mxu0 %v7890_v4  ;;  %7460 = vmatprep.subr.bf16.mxu1 %v7889_v21  ;;  %v438_v37 = vmul.f32 %v7034_v63, %v8084_v11  ;;  %v439_v14 = vmul.f32 %v7035_v5, %v8084_v11  ;;  %v8346_v8 = vld [vmem:[#allocation2 + $0xc4] sm:$0xf]  ;;  %v7067_v40 = vunpack.c.h.bf16 %v7168_v36  ;;  %v454_v47 = vmul.f32 %v7066_v13, %v8084_v11 }
  0x3f   : > { %10350 = vst [vmem:[#allocation10_spill] sm:$0xff] %v8326_v6  ;;  %v8344_v43 = vrot.slane %v844_v26, 7  ;;  %7426 = vmatprep.mubr.bf16.mxu0 %v6556_v0  ;;  %10351 = vst [vmem:[#allocation11_spill] sm:$0xff] %v8346_v8  ;;  %v1011_v63 = vshrl.u32 %v8346_v8, 16  ;;  %v6973_v59 = vpack.c.bf16 %v524_v57, %v524_v57  ;;  %v8358_v36 = vld [vmem:[#allocation2 + $0x54] sm:$0xf] }
  0x40   : > { %683 = vst [vmem:[#allocation2 + $0xd4] sm:$0xf] %v6972_v24  ;;  %v477_v0 = vadd.f32 %v8089_v16, %v438_v37  ;;  %v478_v13 = vadd.f32 %v8089_v16, %v439_v14  ;;  %v455_v61 = vmul.f32 %v7067_v40, %v8084_v11  ;;  %v493_v32 = vadd.f32 %v8089_v16, %v454_v47  ;;  %v7897_v47 = vld [vmem:[%s10321_s3] sm:$0xff]   ;;  %v8387_v14 = vld [vmem:[%s10321_s3 + $0x138] sm:$0xff]  }
  0x41   : > { %7509 = vmatpush3.bf16.msra.mxu0 %v7890_v4  ;;  %v7038_v4 = vunpack.c.l.bf16 %v8331_v30  ;;  %7461 = vmatpush3.bf16.msra.mxu1 %v7889_v21  ;;  %v8364_v53 = vrot.slane %v1011_v63, 7  ;;  %v8370_v5 = vld [vmem:[#allocation2 + $0x58] sm:$0xf]  ;;  %684 = vst [vmem:[#allocation2 + $0xd8] sm:$0xf] %v6973_v59  ;;  %v857_v21 = vshrl.u32 %v8358_v36, 16 }
  0x42   : > { %7510 = vmatprep.subr.bf16.mxu0 %v7896_v52  ;;  %v8356_v26 = vld [vmem:[#allocation2 + $0xc8] sm:$0xf]  ;;  %7462 = vmatprep.subr.bf16.mxu1 %v7895_v44  ;;  %v866_v30 = vshrl.u32 %v8370_v5, 16  ;;  %v6557_v59 = vcombine.low %v8358_v36, %v8370_v5  ;;  %v510_v24 = vmax.f32 %v478_v13, 0.0  ;;  %v494_v20 = vadd.f32 %v8089_v16, %v455_v61  ;;  %v8405_v61 = vld [vmem:[%s10321_s3 + $0xf8] sm:$0xff]  }
  0x43   : > { %10352 = vst [vmem:[#allocation12_spill] sm:$0xff] %v8356_v26  ;;  %10353 = vst [vmem:[#allocation13_spill] sm:$0xff] %v8364_v53  ;;  %v1020_v57 = vshrl.u32 %v8356_v26, 16  ;;  %v6564_v37 = vcombine.low %v8346_v8, %v8356_v26  ;;  %v8389_v40 = vrot.slane %v857_v21, 7  ;;  %v441_v13 = vmul.f32 %v7039_v46, %v8084_v11  ;;  %v240_v21 = vld [vmem:[#allocation2] sm:$0x8] }
  0x44   : > { %v8391_v22 = vrot.slane %v866_v30, 7  ;;  %7427 = vmatmul.mubr.bf16.gmra.mxu0 %v6557_v59  ;;  %v6959_v2 = vpack.c.bf16 %v510_v24, %v510_v24  ;;  %v7070_v30 = vunpack.c.l.bf16 %v7169_v42  ;;  %v248_v46 = vld [vmem:[#allocation2 + $0xc] sm:$0x1]  ;;  %v1708_v6 = vld [vmem:[#allocation2 + $0x18] sm:$0xf] }
  0x45   : > { %7511 = vmatpush3.bf16.msra.mxu0 %v7896_v52  ;;  %v8379_v63 = vrot.slane %v1020_v57, 7  ;;  %7442 = vmatprep.mubr.bf16.mxu1 %v6564_v37  ;;  %v509_v52 = vmax.f32 %v477_v0, 0.0  ;;  %v525_v57 = vmax.f32 %v493_v32, 0.0  ;;  %v440_v0 = vmul.f32 %v7038_v4, %v8084_v11 }
  0x46   : > { %7512 = vmatprep.subr.bf16.mxu0 %v7898_v39  ;;  %7463 = vmatpush3.bf16.msra.mxu1 %v7895_v44  ;;  %v526_v44 = vmax.f32 %v494_v20, 0.0  ;;  %v7071_v4 = vunpack.c.h.bf16 %v7169_v42  ;;  %670 = vst [vmem:[#allocation2 + $0x68] sm:$0xf] %v6959_v2  ;;  %v456_v42 = vmul.f32 %v7070_v30, %v8084_v11  ;;  %v10359_v2 = vmov 0  ;;  %v1704_v30 = vld [vmem:[#allocation2 + $0x4] sm:$0xf] }
  0x47   : > { %10354 = vst [vmem:[#allocation14_spill] sm:$0xff] %v8379_v63  ;;  %v6958_v37 = vpack.c.bf16 %v509_v52, %v509_v52  ;;  %v8407_v32 = vld [vmem:[#allocation2 + $0xd4] sm:$0xf]  ;;  %v6974_v24 = vpack.c.bf16 %v525_v57, %v525_v57  ;;  %7464 = vmatprep.subr.bf16.mxu1 %v7897_v47  ;;  %v479_v26 = vadd.f32 %v8089_v16, %v440_v0  ;;  %v241_v57 = vsel %vm8398_vm4, 0, %v240_v21 }
  0x48   : > { %10357 = vst [vmem:[#allocation15_spill] sm:$0xff] %v8407_v32  ;;  %v1033_v59 = vshrl.u32 %v8407_v32, 16  ;;  %v480_v63 = vadd.f32 %v8089_v16, %v441_v13  ;;  %v8414_v8 = vld [vmem:[#allocation2 + $0xd8] sm:$0xf]  ;;  %v6975_v20 = vpack.c.bf16 %v526_v44, %v526_v44  ;;  %v10360_v2 = vsel %vm8422_vm5, 4294967295, %v10359_v2 }
  0x49   : > { %7513 = vmatpush3.bf16.msra.mxu0 %v7898_v39  ;;  %669 = vst [vmem:[#allocation2 + $0x64] sm:$0xf] %v6958_v37  ;;  %10358 = vst [vmem:[#allocation16_spill] sm:$0xff] %v8414_v8  ;;  %v457_v39 = vmul.f32 %v7071_v4, %v8084_v11  ;;  %v1042_v0 = vshrl.u32 %v8414_v8, 16  ;;  %v6565_v44 = vcombine.low %v8407_v32, %v8414_v8  ;;  %v511_v11 = vmax.f32 %v479_v26, 0.0 }
  0x4a   : > { %7594 = vmatprep.subr.bf16.mxu0 %v8387_v14  ;;  %685 = vst [vmem:[#allocation2 + $0xe4] sm:$0xf] %v6974_v24  ;;  %7465 = vmatpush3.bf16.msra.mxu1 %v7897_v47  ;;  %10361 = vst [vmem:[#allocation17_spill] sm:$0xff] %v10360_v2  ;;  %v8426_v37 = vrot.slane %v1033_v59, 7  ;;  %v512_v47 = vmax.f32 %v480_v63, 0.0  ;;  %v495_v21 = vadd.f32 %v8089_v16, %v456_v42  ;;  %v249_v13 = vsel %vm8422_vm5, 0, %v248_v46 }
  0x4b   : > { %242 = vst [vmem:[#allocation2] sm:$0x8] %v241_v57  ;;  %7546 = vmatprep.subr.bf16.mxu1 %v8405_v61  ;;  %686 = vst [vmem:[#allocation2 + $0xe8] sm:$0xf] %v6975_v20  ;;  %v496_v24 = vadd.f32 %v8089_v16, %v457_v39  ;;  %v1705_v4 = vld [vmem:[#allocation2 + $0x8] sm:$0xf]  ;;  %7443 = vmatmul.mubr.bf16.gmra.mxu1 %v6565_v44  ;;  %v6960_v57 = vpack.c.bf16 %v511_v11, %v511_v11 }
  0x4c   : > { %10362 = vst [vmem:[#allocation18_spill] sm:$0xff] %v8426_v37  ;;  %v8435_v59 = vrot.slane %v1042_v0, 7  ;;  %v6961_v52 = vpack.c.bf16 %v512_v47, %v512_v47  ;;  %v527_v8 = vmax.f32 %v495_v21, 0.0  ;;  %250 = vst [vmem:[#allocation2 + $0xc] sm:$0x1] %v249_v13  ;;  %v10366_v16 = vrot.slane %v8093_v19, 4 }
  0x4d   : > { %v528_v20 = vmax.f32 %v496_v24, 0.0  ;;  %v1756_v46 = vshrl.u32 %v1704_v30, 16  ;;  %v1759_v42 = vshll.u32 %v1704_v30, 16  ;;  %v8453_v0 = vld [vmem:[#allocation2 + $0x68] sm:$0xf]  ;;  %v1765_v47 = vshll.u32 %v1705_v4, 16 }
  0x4e   : > { %10363 = vst [vmem:[#allocation19_spill] sm:$0xff] %v8435_v59  ;;  %v8449_v63 = vsel %vm8440_vm8, %v10366_v16, %v8109_v35  ;;  %671 = vst [vmem:[#allocation2 + $0x74] sm:$0xf] %v6960_v57  ;;  %v6976_v44 = vpack.c.bf16 %v527_v8, %v527_v8  ;;  %v1769_v13 = vshrl.u32 %v1705_v4, 16  ;;  %v888_v35 = vshrl.u32 %v8453_v0, 16 }
  0x4f   : > { %672 = vst [vmem:[#allocation2 + $0x78] sm:$0xf] %v6961_v52  ;;  %v6977_v11 = vpack.c.bf16 %v528_v20, %v528_v20  ;;  %v261_v30 = vld [vmem:[#allocation2 + $0x10] sm:$0x8]  ;;  %v1758_v57 = vrot.slane %v1756_v46, 4  ;;  %v1761_v37 = vrot.slane %v1759_v42, 5 }
  0x50   : > { %v8451_v39 = vld [vmem:[#allocation2 + $0x64] sm:$0xf]  ;;  %687 = vst [vmem:[#allocation2 + $0xf4] sm:$0xf] %v6976_v44  ;;  %v8467_v19 = vrot.slane %v888_v35, 7  ;;  %v1767_v35 = vrot.slane %v1765_v47, 5 }
  0x51   : > { %v879_v21 = vshrl.u32 %v8451_v39, 16  ;;  %v8459_v16 = vld [vmem:[#allocation2 + $0xe4] sm:$0xf]  ;;  %v6558_v59 = vcombine.low %v8451_v39, %v8453_v0  ;;  %688 = vst [vmem:[#allocation2 + $0xf8] sm:$0xf] %v6977_v11  ;;  %v1762_v8 = vor.u32 %v1761_v37, %v1758_v57  ;;  %v1771_v58 = vrot.slane %v1769_v13, 4 }
  0x52   : > { %10367 = vst [vmem:[#allocation20_spill] sm:$0xff] %v8459_v16  ;;  %v1055_v52 = vshrl.u32 %v8459_v16, 16  ;;  %v691_v4 = vld [vmem:[#allocation2] sm:$0x8]  ;;  %v8469_v32 = vld [vmem:[#allocation2 + $0xe8] sm:$0xf] }
  0x53   : > { %v8465_v20 = vrot.slane %v879_v21, 7  ;;  %10368 = vst [vmem:[#allocation21_spill] sm:$0xff] %v8469_v32  ;;  %v742_v24 = vshrl.u32 %v691_v4, 16  ;;  %7430 = vmatprep.mubr.bf16.mxu0 %v6558_v59  ;;  %v1064_v18 = vshrl.u32 %v8469_v32, 16  ;;  %v6566_v44 = vcombine.low %v8459_v16, %v8469_v32  ;;  %v309_v11 = vld [vmem:[#allocation2 + $0x1c] sm:$0x1] }
  0x54   : > { %v8471_v53 = vrot.slane %v1055_v52, 7  ;;  %v1706_v21 = vld [vmem:[#allocation2 + $0xc] sm:$0x1]  ;;  %v262_v52 = vsel %vm8398_vm4, 0, %v261_v30  ;;  %v1763_v4 = vrot.slane %v1762_v8, 4  ;;  %v1772_v57 = vor.u32 %v1771_v58, %v1767_v35 }
  0x55   : > { %v6520_v46 = vrot.slane %v742_v24, 11  ;;  %v8477_v25 = vrot.slane %v1064_v18, 7  ;;  %7446 = vmatprep.mubr.bf16.mxu1 %v6566_v44  ;;  %v1775_v42 = vshll.u32 %v1706_v21, 16  ;;  %v10373_v24 = vrot.slane %v8178_v56, 4  ;;  %v8494_v18 = vld [vmem:[#allocation2 + $0x74] sm:$0xf] }
  0x56   : > { %10369 = vst [vmem:[#allocation22_spill] sm:$0xff] %v8471_v53  ;;  %v8496_v47 = vld [vmem:[#allocation2 + $0x78] sm:$0xf]  ;;  %263 = vst [vmem:[#allocation2 + $0x10] sm:$0x8] %v262_v52  ;;  %v310_v30 = vsel %vm8422_vm5, 0, %v309_v11 }
  0x57   : > { %10370 = vst [vmem:[#allocation23_spill] sm:$0xff] %v8477_v25  ;;  %v8492_v37 = vsel %vm8440_vm8, %v10373_v24, %v8202_v7  ;;  %v753_v13 = vsel %vm8440_vm8, %v6520_v46, %v8101_v28  ;;  %v1707_v44 = vld [vmem:[#allocation2 + $0x14] sm:$0xf]  ;;  %v901_v56 = vshrl.u32 %v8494_v18, 16  ;;  %v910_v21 = vshrl.u32 %v8496_v47, 16 }
  0x58   : > { %311 = vst [vmem:[#allocation2 + $0x1c] sm:$0x1] %v310_v30  ;;  %v6559_v28 = vcombine.low %v8494_v18, %v8496_v47  ;;  %v8509_v8 = vld [vmem:[#allocation2 + $0xf4] sm:$0xf]  ;;  %v8511_v58 = vld [vmem:[#allocation2 + $0xf8] sm:$0xf]  ;;  %v6576_v11 = vcombine.low %v753_v13, %v8449_v63  ;;  %v1768_v46 = vsel %vm8481_vm10, %v1763_v4, %v1767_v35 }
  0x59   : > { %10374 = vst [vmem:[#allocation24_spill] sm:$0xff] %v8509_v8  ;;  %10375 = vst [vmem:[#allocation25_spill] sm:$0xff] %v8511_v58  ;;  %v1773_v52 = vrot.slane %v1772_v57, 4  ;;  %v8516_v7 = vrot.slane %v901_v56, 7  ;;  %v8518_v32 = vrot.slane %v910_v21, 7  ;;  %v1077_v30 = vshrl.u32 %v8509_v8, 16 }
  0x5a   : > { %v264_v25 = vld [vmem:[#allocation2 + $0x20] sm:$0x8]  ;;  %7431 = vmatmul.mubr.bf16.gmra.mxu0 %v6559_v28  ;;  %v1086_v16 = vshrl.u32 %v8511_v58, 16  ;;  %v6567_v63 = vcombine.low %v8509_v8, %v8511_v58  ;;  %v1777_v13 = vrot.slane %v1775_v42, 5  ;;  %v312_v35 = vld [vmem:[#allocation2 + $0x2c] sm:$0x1] }
  0x5b   : > { %v8526_v4 = vrot.slane %v1077_v30, 7  ;;  %v1780_v57 = vshrl.u32 %v1707_v44, 16  ;;  %v1783_v56 = vshll.u32 %v1707_v44, 16  ;;  %v1789_v21 = vshll.u32 %v1708_v6, 16 }
  0x5c   : > { %v8528_v41 = vrot.slane %v1086_v16, 7  ;;  %7447 = vmatmul.mubr.bf16.gmra.mxu1 %v6567_v63  ;;  %v1778_v28 = vsel %vm8481_vm10, %v1773_v52, %v1777_v13  ;;  %v1793_v24 = vshrl.u32 %v1708_v6, 16  ;;  %v265_v53 = vsel %vm8398_vm4, 0, %v264_v25 }
  0x5d   : > { %10376 = vst [vmem:[#allocation26_spill] sm:$0xff] %v8526_v4  ;;  %7466 = vmatprep.mubr.bf16.mxu1 %v6576_v11  ;;  %v6616_v42 = vcombine.low %v1768_v46, %v1778_v28  ;;  %v694_v58 = vld [vmem:[#allocation2 + $0x10] sm:$0x8]  ;;  %v1782_v30 = vrot.slane %v1780_v57, 4  ;;  %v1785_v8 = vrot.slane %v1783_v56, 5  ;;  %v1791_v4 = vrot.slane %v1789_v21, 5 }
  0x5e   : > { %10377 = vst [vmem:[#allocation27_spill] sm:$0xff] %v8528_v41  ;;  %266 = vst [vmem:[#allocation2 + $0x20] sm:$0x8] %v265_v53  ;;  %v764_v44 = vshrl.u32 %v694_v58, 16  ;;  %v1795_v16 = vrot.slane %v1793_v24, 4  ;;  %v10378_v63 = vshll.u32 %v8207_v10, 16 }
  0x5f   : > { %v1709_v29 = vld [vmem:[#allocation2 + $0x1c] sm:$0x1]  ;;  %v798_v6 = vrot.slane %v8225_v27, 4  ;;  %7514 = vmatprep.mubr.bf16.mxu0 %v6616_v42  ;;  %v1786_v25 = vor.u32 %v1785_v8, %v1782_v30  ;;  %v10379_v11 = vshll.u32 %v8209_v12, 16  ;;  %v313_v53 = vsel %vm8422_vm5, 0, %v312_v35  ;;  %v7901_v42 = vld [vmem:[%s10321_s3 + $0xf0] sm:$0xff]  }
  0x60   : > { %v8537_v41 = vor.u32 %v10378_v63, %v8225_v27  ;;  %v1799_v52 = vshll.u32 %v1709_v29, 16  ;;  %v6521_v58 = vrot.slane %v764_v44, 11  ;;  %v1796_v13 = vor.u32 %v1795_v16, %v1791_v4  ;;  %314 = vst [vmem:[#allocation2 + $0x2c] sm:$0x1] %v313_v53  ;;  %v267_v8 = vld [vmem:[#allocation2 + $0x30] sm:$0x8] }
  0x61   : > { %v805_v46 = vor.u32 %v10379_v11, %v8227_v31  ;;  %v1804_v24 = vshrl.u32 %v1710_v9, 16  ;;  %v1807_v57 = vshll.u32 %v1710_v9, 16  ;;  %v1787_v10 = vrot.slane %v1786_v25, 4  ;;  %v315_v35 = vld [vmem:[#allocation2 + $0x3c] sm:$0x1] }
  0x62   : > { %v1801_v56 = vrot.slane %v1799_v52, 5  ;;  %v1813_v21 = vshll.u32 %v1711_v60, 16  ;;  %v775_v12 = vsel %vm8440_vm8, %v6521_v58, %v8193_v1  ;;  %v1797_v31 = vrot.slane %v1796_v13, 4  ;;  %v1713_v63 = vld [vmem:[#allocation2 + $0x34] sm:$0xf] }
  0x63   : > { %v806_v27 = vsel %vm8440_vm8, %v798_v6, %v805_v46  ;;  %v1806_v29 = vrot.slane %v1804_v24, 4  ;;  %v1809_v28 = vrot.slane %v1807_v57, 5  ;;  %v6577_v9 = vcombine.low %v775_v12, %v8492_v37  ;;  %v1714_v6 = vld [vmem:[#allocation2 + $0x38] sm:$0xf]  ;;  %v7902_v13 = vld [vmem:[%s10321_s3 + $0x130] sm:$0xff]  }
  0x64   : > { %v1792_v30 = vsel %vm8481_vm10, %v1787_v10, %v1791_v4  ;;  %v8556_v44 = vrot.slane %v1813_v21, 5  ;;  %v1817_v16 = vshrl.u32 %v1711_v60, 16  ;;  %v1802_v1 = vsel %vm8481_vm10, %v1797_v31, %v1801_v56  ;;  %v270_v24 = vld [vmem:[#allocation2 + $0x40] sm:$0x8] }
  0x65   : > { %v697_v25 = vld [vmem:[#allocation2 + $0x20] sm:$0x8]  ;;  %v1810_v52 = vor.u32 %v1809_v28, %v1806_v29  ;;  %v268_v11 = vsel %vm8398_vm4, 0, %v267_v8  ;;  %v10380_v46 = vshll.u32 %v8273_v33, 16  ;;  %7467 = vmatmul.mubr.bf16.vlgmr.msra.gmra.mxu1 %v6577_v9  ;;  %v6617_v4 = vcombine.low %v1792_v30, %v1802_v1  ;;  %v318_v9 = vld [vmem:[#allocation2 + $0x4c] sm:$0x1] }
  0x66   : > { %v786_v53 = vshrl.u32 %v697_v25, 16  ;;  %v1819_v58 = vrot.slane %v1817_v16, 4  ;;  %269 = vst [vmem:[#allocation2 + $0x30] sm:$0x8] %v268_v11  ;;  %v820_v60 = vrot.slane %v8288_v48, 4  ;;  %7547 = vmatpush3.bf16.msra.mxu1 %v8405_v61  ;;  %v10381_v33 = vshll.u32 %v8286_v45, 16 }
  0x67   : > { %v8565_v37 = vor.u32 %v10380_v46, %v8288_v48  ;;  %v1811_v57 = vrot.slane %v1810_v52, 4  ;;  %v316_v56 = vsel %vm8422_vm5, 0, %v315_v35  ;;  %v1828_v21 = vshrl.u32 %v1713_v63, 16  ;;  %7515 = vmatmul.mubr.bf16.vlgmr.msra.gmra.mxu0 %v6617_v4  ;;  %v1712_v12 = vld [vmem:[#allocation2 + $0x2c] sm:$0x1]  ;;  %7548 = vmatprep.subr.bf16.mxu1 %v7901_v42 }
  0x68   : > { %v827_v10 = vor.u32 %v10381_v33, %v8301_v15  ;;  %v6522_v8 = vrot.slane %v786_v53, 11  ;;  %v1820_v48 = vor.u32 %v1819_v58, %v8556_v44  ;;  %317 = vst [vmem:[#allocation2 + $0x3c] sm:$0x1] %v316_v56  ;;  %v1831_v31 = vshll.u32 %v1713_v63, 16  ;;  %v7903_v61 = vld [vmem:[%s10321_s3 + $0xe8] sm:$0xff]   ;;  %7595 = vmatpush3.bf16.msra.mxu0 %v8387_v14 }
  0x69   : > { %v1837_v29 = vshll.u32 %v1714_v6, 16  ;;  %v1816_v45 = vsel %vm8481_vm10, %v1811_v57, %v8556_v44  ;;  %v1823_v15 = vshll.u32 %v1712_v12, 16  ;;  %v1830_v35 = vrot.slane %v1828_v21, 4  ;;  %7596 = vmatprep.subr.bf16.mxu0 %v7902_v13  ;;  %v1716_v14 = vld [vmem:[#allocation2 + $0x44] sm:$0xf]  ;;  %v7904_v44 = vld [vmem:[%s10321_s3 + $0x128] sm:$0xff]  }
  0x6a   : > { %v8587_v28 = vsel %vm8440_vm8, %v820_v60, %v827_v10  ;;  %v797_v30 = vsel %vm8440_vm8, %v6522_v8, %v8537_v41  ;;  %v1821_v16 = vrot.slane %v1820_v48, 4  ;;  %v1833_v63 = vrot.slane %v1831_v31, 5  ;;  %7549 = vmatpush3.bf16.msra.mxu1 %v7901_v42  ;;  %v7905_v42 = vld [vmem:[%s10321_s3 + $0xe0] sm:$0xff]   ;;  %v273_v21 = vld [vmem:[#allocation2 + $0x50] sm:$0x8] }
  0x6b   : > { %v8592_v1 = vrot.slane %v1837_v29, 5  ;;  %v6578_v25 = vcombine.low %v797_v30, %v806_v27  ;;  %v1825_v52 = vrot.slane %v1823_v15, 5  ;;  %v1841_v11 = vshrl.u32 %v1714_v6, 16  ;;  %v1717_v27 = vld [vmem:[#allocation2 + $0x48] sm:$0xf]  ;;  %7550 = vmatprep.subr.bf16.mxu1 %v7903_v61  ;;  %v7906_v8 = vld [vmem:[%s10321_s3 + $0x120] sm:$0xff]  }
  0x6c   : > { %v271_v46 = vsel %vm8398_vm4, 0, %v270_v24  ;;  %v1834_v4 = vor.u32 %v1833_v63, %v1830_v35  ;;  %v10382_v41 = vshll.u32 %v8315_v38, 16  ;;  %v842_v58 = vrot.slane %v8333_v23, 4  ;;  %7597 = vmatpush3.bf16.msra.mxu0 %v7902_v13  ;;  %v7907_v15 = vld [vmem:[%s10321_s3 + $0xd8] sm:$0xff]   ;;  %v1719_v63 = vld [vmem:[#allocation2 + $0x54] sm:$0xf] }
  0x6d   : > { %272 = vst [vmem:[#allocation2 + $0x40] sm:$0x8] %v271_v46  ;;  %v10383_v60 = vshll.u32 %v8328_v54, 16  ;;  %7470 = vmatprep.mubr.bf16.mxu1 %v6578_v25  ;;  %v1826_v6 = vsel %vm8481_vm10, %v1821_v16, %v1825_v52  ;;  %v700_v24 = vld [vmem:[#allocation2 + $0x30] sm:$0x8]  ;;  %v1843_v38 = vrot.slane %v1841_v11, 4  ;;  %7598 = vmatprep.subr.bf16.mxu0 %v7904_v44 }
  0x6e   : > { %v8602_v53 = vor.u32 %v10382_v41, %v8333_v23  ;;  %v319_v23 = vsel %vm8422_vm5, 0, %v318_v9  ;;  %v1852_v33 = vshrl.u32 %v1716_v14, 16  ;;  %v6618_v10 = vcombine.low %v1816_v45, %v1826_v6  ;;  %v321_v45 = vld [vmem:[#allocation2 + $0x5c] sm:$0x1]  ;;  %7551 = vmatpush3.bf16.msra.mxu1 %v7903_v61 }
  0x6f   : > { %v849_v57 = vor.u32 %v10383_v60, %v8344_v43  ;;  %v808_v54 = vshrl.u32 %v700_v24, 16  ;;  %v1835_v43 = vrot.slane %v1834_v4, 4  ;;  %320 = vst [vmem:[#allocation2 + $0x4c] sm:$0x1] %v319_v23  ;;  %v1715_v12 = vld [vmem:[#allocation2 + $0x3c] sm:$0x1]  ;;  %v1844_v13 = vor.u32 %v1843_v38, %v8592_v1  ;;  %7552 = vmatprep.subr.bf16.mxu1 %v7905_v42 }
  0x70   : > { %v1854_v48 = vrot.slane %v1852_v33, 4  ;;  %v1855_v31 = vshll.u32 %v1716_v14, 16  ;;  %v1861_v29 = vshll.u32 %v1717_v27, 16  ;;  %7518 = vmatprep.mubr.bf16.mxu0 %v6618_v10  ;;  %v1847_v30 = vshll.u32 %v1715_v12, 16  ;;  %v7908_v14 = vld [vmem:[%s10321_s3 + $0x118] sm:$0xff]   ;;  %7599 = vmatpush3.bf16.msra.mxu0 %v7904_v44 }
  0x71   : > { %v8617_v56 = vsel %vm8440_vm8, %v842_v58, %v849_v57  ;;  %v6523_v35 = vrot.slane %v808_v54, 11  ;;  %v1840_v9 = vsel %vm8481_vm10, %v1835_v43, %v8592_v1  ;;  %v1865_v16 = vshrl.u32 %v1717_v27, 16  ;;  %7600 = vmatprep.subr.bf16.mxu0 %v7906_v8  ;;  %v1720_v33 = vld [vmem:[#allocation2 + $0x58] sm:$0xf]  ;;  %v276_v54 = vld [vmem:[#allocation2 + $0x60] sm:$0x8] }
  0x72   : > { %v1845_v25 = vrot.slane %v1844_v13, 4  ;;  %v1857_v61 = vrot.slane %v1855_v31, 5  ;;  %v8632_v52 = vrot.slane %v1861_v29, 5  ;;  %v274_v11 = vsel %vm8398_vm4, 0, %v273_v21  ;;  %7553 = vmatpush3.bf16.msra.mxu1 %v7905_v42 }
  0x73   : > { %v819_v1 = vsel %vm8440_vm8, %v6523_v35, %v8565_v37  ;;  %v1849_v46 = vrot.slane %v1847_v30, 5  ;;  %v1867_v4 = vrot.slane %v1865_v16, 4  ;;  %275 = vst [vmem:[#allocation2 + $0x50] sm:$0x8] %v274_v11  ;;  %v10384_v41 = vshll.u32 %v8358_v36, 16  ;;  %7554 = vmatprep.subr.bf16.mxu1 %v7907_v15 }
  0x74   : > { %v6579_v60 = vcombine.low %v819_v1, %v8587_v28  ;;  %v703_v57 = vld [vmem:[#allocation2 + $0x40] sm:$0x8]  ;;  %v1858_v27 = vor.u32 %v1857_v61, %v1854_v48  ;;  %v864_v6 = vrot.slane %v8389_v40, 4  ;;  %v10385_v44 = vshll.u32 %v8370_v5, 16  ;;  %7601 = vmatpush3.bf16.msra.mxu0 %v7906_v8  ;;  %v7910_v48 = vld [vmem:[%s10321_s3 + $0x110] sm:$0xff]   ;;  %v7911_v8 = vld [vmem:[%s10321_s3 + $0xc8] sm:$0xff]  }
  0x75   : > { %v8642_v58 = vor.u32 %v10384_v41, %v8389_v40  ;;  %v1850_v37 = vsel %vm8481_vm10, %v1845_v25, %v1849_v46  ;;  %v830_v38 = vshrl.u32 %v703_v57, 16  ;;  %v1868_v36 = vor.u32 %v1867_v4, %v8632_v52  ;;  %v7909_v40 = vld [vmem:[%s10321_s3 + $0xd0] sm:$0xff]   ;;  %7602 = vmatprep.subr.bf16.mxu0 %v7908_v14  ;;  %v324_v25 = vld [vmem:[#allocation2 + $0x6c] sm:$0x1]  ;;  %v1722_v4 = vld [vmem:[#allocation2 + $0x64] sm:$0xf] }
  0x76   : > { %v871_v24 = vor.u32 %v10385_v44, %v8391_v22  ;;  %v322_v23 = vsel %vm8422_vm5, 0, %v321_v45  ;;  %7471 = vmatmul.mubr.bf16.gmra.mxu1 %v6579_v60  ;;  %v6619_v28 = vcombine.low %v1840_v9, %v1850_v37  ;;  %v1718_v5 = vld [vmem:[#allocation2 + $0x4c] sm:$0x1]  ;;  %v1859_v22 = vrot.slane %v1858_v27, 4  ;;  %v279_v37 = vld [vmem:[#allocation2 + $0x70] sm:$0x8] }
  0x77   : > { %323 = vst [vmem:[#allocation2 + $0x5c] sm:$0x1] %v322_v23  ;;  %v1876_v10 = vshrl.u32 %v1719_v63, 16  ;;  %v6524_v43 = vrot.slane %v830_v38, 11  ;;  %v1869_v21 = vrot.slane %v1868_v36, 4  ;;  %v1871_v12 = vshll.u32 %v1718_v5, 16  ;;  %7555 = vmatpush3.bf16.msra.mxu1 %v7907_v15 }
  0x78   : > { %v8659_v42 = vsel %vm8440_vm8, %v864_v6, %v871_v24  ;;  %v1879_v13 = vshll.u32 %v1719_v63, 16  ;;  %7519 = vmatmul.mubr.bf16.gmra.mxu0 %v6619_v28  ;;  %v1864_v31 = vsel %vm8481_vm10, %v1859_v22, %v8632_v52  ;;  %v1885_v45 = vshll.u32 %v1720_v33, 16  ;;  %7556 = vmatprep.subr.bf16.mxu1 %v7909_v40  ;;  %v8678_v61 = vld [vmem:[%s10321_s3 + $0x108] sm:$0xff]   ;;  %v7913_v38 = vld [vmem:[%s10321_s3 + $0xc0] sm:$0xff]  }
  0x79   : > { %v1878_v29 = vrot.slane %v1876_v10, 4  ;;  %v1889_v35 = vshrl.u32 %v1720_v33, 16  ;;  %v841_v9 = vsel %vm8440_vm8, %v6524_v43, %v8602_v53  ;;  %v1873_v30 = vrot.slane %v1871_v12, 5  ;;  %7603 = vmatpush3.bf16.msra.mxu0 %v7908_v14  ;;  %v7914_v12 = vld [vmem:[%s10321_s3 + $0x100] sm:$0xff]  }
  0x7a   : > { %v1881_v16 = vrot.slane %v1879_v13, 5  ;;  %v277_v63 = vsel %vm8398_vm4, 0, %v276_v54  ;;  %v6580_v15 = vcombine.low %v841_v9, %v8617_v56  ;;  %v706_v52 = vld [vmem:[#allocation2 + $0x50] sm:$0x8]  ;;  %v8681_v11 = vrot.slane %v1885_v45, 5  ;;  %7604 = vmatprep.subr.bf16.mxu0 %v7910_v48 }
  0x7b   : > { %v1891_v1 = vrot.slane %v1889_v35, 4  ;;  %278 = vst [vmem:[#allocation2 + $0x60] sm:$0x8] %v277_v63  ;;  %v10386_v53 = vshll.u32 %v8451_v39, 16  ;;  %v1874_v41 = vsel %vm8481_vm10, %v1869_v21, %v1873_v30  ;;  %v852_v60 = vshrl.u32 %v706_v52, 16  ;;  %7557 = vmatpush3.bf16.msra.mxu1 %v7909_v40 }
  0x7c   : > { %v1882_v57 = vor.u32 %v1881_v16, %v1878_v29  ;;  %v886_v27 = vrot.slane %v8465_v20, 4  ;;  %v1723_v56 = vld [vmem:[#allocation2 + $0x68] sm:$0xf]  ;;  %7474 = vmatprep.mubr.bf16.mxu1 %v6580_v15  ;;  %v6620_v6 = vcombine.low %v1864_v31, %v1874_v41  ;;  %v10387_v39 = vshll.u32 %v8453_v0, 16  ;;  %7558 = vmatprep.subr.bf16.mxu1 %v7911_v8  ;;  %v327_v21 = vld [vmem:[#allocation2 + $0x7c] sm:$0x1] }
  0x7d   : > { %v8686_v46 = vor.u32 %v10386_v53, %v8465_v20  ;;  %v1892_v44 = vor.u32 %v1891_v1, %v8681_v11  ;;  %v325_v14 = vsel %vm8422_vm5, 0, %v324_v25  ;;  %v6525_v20 = vrot.slane %v852_v60, 11  ;;  %7605 = vmatpush3.bf16.msra.mxu0 %v7910_v48  ;;  %v282_v1 = vld [vmem:[#allocation2 + $0x80] sm:$0x8]  ;;  %v330_v60 = vld [vmem:[#allocation2 + $0x8c] sm:$0x1] }
  0x7e   : > { %v893_v24 = vor.u32 %v10387_v39, %v8467_v19  ;;  %v1721_v36 = vld [vmem:[#allocation2 + $0x5c] sm:$0x1]  ;;  %v1883_v23 = vrot.slane %v1882_v57, 4  ;;  %326 = vst [vmem:[#allocation2 + $0x6c] sm:$0x1] %v325_v14  ;;  %v1900_v33 = vshrl.u32 %v1722_v4, 16  ;;  %7522 = vmatprep.mubr.bf16.mxu0 %v6620_v6  ;;  %7606 = vmatprep.subr.bf16.mxu0 %v8678_v61 }
  0x7f   : > { %v1903_v28 = vshll.u32 %v1722_v4, 16  ;;  %v1893_v5 = vrot.slane %v1892_v44, 4  ;;  %v1895_v0 = vshll.u32 %v1721_v36, 16  ;;  %v1909_v22 = vshll.u32 %v1723_v56, 16  ;;  %7559 = vmatpush3.bf16.msra.mxu1 %v7911_v8  ;;  %v8739_v57 = vld [vmem:[%s10321_s3 + $0x1b8] sm:$0xff]  }
  0x80   : > { %v894_v19 = vsel %vm8440_vm8, %v886_v27, %v893_v24  ;;  %v863_v40 = vsel %vm8440_vm8, %v6525_v20, %v8642_v58  ;;  %v1888_v10 = vsel %vm8481_vm10, %v1883_v23, %v8681_v11  ;;  %v1902_v54 = vrot.slane %v1900_v33, 4  ;;  %v1725_v58 = vld [vmem:[#allocation2 + $0x74] sm:$0xf]  ;;  %7560 = vmatprep.subr.bf16.mxu1 %v7913_v38  ;;  %v1726_v11 = vld [vmem:[#allocation2 + $0x78] sm:$0xf] }
  0x81   : > { %v1905_v43 = vrot.slane %v1903_v28, 5  ;;  %v6581_v13 = vcombine.low %v863_v40, %v8659_v42  ;;  %v1897_v48 = vrot.slane %v1895_v0, 5  ;;  %v8713_v31 = vrot.slane %v1909_v22, 5  ;;  %v8726_v42 = vld [vmem:[%s10321_s3 + $0x178] sm:$0xff]   ;;  %7607 = vmatpush3.bf16.msra.mxu0 %v8678_v61  ;;  %v1728_v6 = vld [vmem:[#allocation2 + $0x84] sm:$0xf] }
  0x82   : > { %v1913_v29 = vshrl.u32 %v1723_v56, 16  ;;  %v709_v45 = vld [vmem:[#allocation2 + $0x60] sm:$0x8]  ;;  %v280_v9 = vsel %vm8398_vm4, 0, %v279_v37  ;;  %v10388_v30 = vshll.u32 %v8494_v18, 16  ;;  %v908_v63 = vrot.slane %v8516_v7, 4  ;;  %7608 = vmatprep.subr.bf16.mxu0 %v7914_v12 }
  0x83   : > { %v1906_v35 = vor.u32 %v1905_v43, %v1902_v54  ;;  %7475 = vmatmul.mubr.bf16.gmra.mxu1 %v6581_v13  ;;  %v1898_v8 = vsel %vm8481_vm10, %v1893_v5, %v1897_v48  ;;  %v874_v25 = vshrl.u32 %v709_v45, 16  ;;  %281 = vst [vmem:[#allocation2 + $0x70] sm:$0x8] %v280_v9  ;;  %v10389_v18 = vshll.u32 %v8496_v47, 16  ;;  %v1729_v44 = vld [vmem:[#allocation2 + $0x88] sm:$0xf] }
  0x84   : > { %v8720_v16 = vor.u32 %v10388_v30, %v8516_v7  ;;  %v1915_v15 = vrot.slane %v1913_v29, 4  ;;  %v6621_v7 = vcombine.low %v1888_v10, %v1898_v8  ;;  %v328_v4 = vsel %vm8422_vm5, 0, %v327_v21  ;;  %7561 = vmatpush3.bf16.msra.mxu1 %v7913_v38 }
  0x85   : > { %v915_v52 = vor.u32 %v10389_v18, %v8518_v32  ;;  %v1907_v53 = vrot.slane %v1906_v35, 4  ;;  %v1924_v41 = vshrl.u32 %v1725_v58, 16  ;;  %v6526_v27 = vrot.slane %v874_v25, 11  ;;  %v1724_v47 = vld [vmem:[#allocation2 + $0x6c] sm:$0x1]  ;;  %7642 = vmatprep.subr.bf16.mxu1 %v8726_v42  ;;  %7609 = vmatpush3.bf16.msra.mxu0 %v7914_v12 }
  0x86   : > { %v1916_v32 = vor.u32 %v1915_v15, %v8713_v31  ;;  %329 = vst [vmem:[#allocation2 + $0x7c] sm:$0x1] %v328_v4  ;;  %v1927_v56 = vshll.u32 %v1725_v58, 16  ;;  %7523 = vmatmul.mubr.bf16.gmra.mxu0 %v6621_v7  ;;  %v1919_v24 = vshll.u32 %v1724_v47, 16  ;;  %v1933_v37 = vshll.u32 %v1726_v11, 16  ;;  %7690 = vmatprep.subr.bf16.mxu0 %v8739_v57 }
  0x87   : > { %v916_v61 = vsel %vm8440_vm8, %v908_v63, %v915_v52  ;;  %v1912_v39 = vsel %vm8481_vm10, %v1907_v53, %v8713_v31  ;;  %v1926_v14 = vrot.slane %v1924_v41, 4  ;;  %v885_v20 = vsel %vm8440_vm8, %v6526_v27, %v8686_v46  ;;  %v285_v58 = vld [vmem:[#allocation2 + $0x90] sm:$0x8]  ;;  %v333_v18 = vld [vmem:[#allocation2 + $0x9c] sm:$0x1] }
  0x88   : > { %v1917_v36 = vrot.slane %v1916_v32, 4  ;;  %v1929_v23 = vrot.slane %v1927_v56, 5  ;;  %v1937_v33 = vshrl.u32 %v1726_v11, 16  ;;  %v6582_v28 = vcombine.low %v885_v20, %v894_v19  ;;  %v1731_v4 = vld [vmem:[#allocation2 + $0x94] sm:$0xf] }
  0x89   : > { %v1921_v38 = vrot.slane %v1919_v24, 5  ;;  %v1935_v5 = vrot.slane %v1933_v37, 5  ;;  %v283_v0 = vsel %vm8398_vm4, 0, %v282_v1  ;;  %v10390_v10 = vrot.slane %v8174_v51, 4  ;;  %v1732_v41 = vld [vmem:[#allocation2 + $0x98] sm:$0xf] }
  0x8a   : > { %v1930_v22 = vor.u32 %v1929_v23, %v1926_v14  ;;  %v1939_v40 = vrot.slane %v1937_v33, 4  ;;  %284 = vst [vmem:[#allocation2 + $0x80] sm:$0x8] %v283_v0  ;;  %v331_v19 = vsel %vm8422_vm5, 0, %v330_v60  ;;  %7478 = vmatprep.mubr.bf16.mxu1 %v6582_v28  ;;  %v712_v43 = vld [vmem:[#allocation2 + $0x70] sm:$0x8] }
  0x8b   : > { %v8759_v46 = vsel %vm8440_vm8, %v10390_v10, %v8186_v62  ;;  %v1922_v54 = vsel %vm8481_vm10, %v1917_v36, %v1921_v38  ;;  %332 = vst [vmem:[#allocation2 + $0x8c] sm:$0x1] %v331_v19  ;;  %v1948_v21 = vshrl.u32 %v1728_v6, 16  ;;  %v1951_v12 = vshll.u32 %v1728_v6, 16  ;;  %v288_v6 = vld [vmem:[#allocation2 + $0xa0] sm:$0x8] }
  0x8c   : > { %v1957_v13 = vshll.u32 %v1729_v44, 16  ;;  %v6622_v48 = vcombine.low %v1912_v39, %v1922_v54  ;;  %v896_v31 = vshrl.u32 %v712_v43, 16  ;;  %v1931_v29 = vrot.slane %v1930_v22, 4  ;;  %v10393_v10 = vld [vmem:[#allocation4_spill] sm:$0xff] }
  0x8d   : > { %v1940_v51 = vor.u32 %v1939_v40, %v1935_v5  ;;  %v1727_v45 = vld [vmem:[#allocation2 + $0x7c] sm:$0x1]  ;;  %v1950_v62 = vrot.slane %v1948_v21, 4  ;;  %v1953_v35 = vrot.slane %v1951_v12, 5  ;;  %v1961_v30 = vshrl.u32 %v1729_v44, 16  ;;  %v10395_v21 = vld [vmem:[#allocation3_spill] sm:$0xff] }
  0x8e   : > { %v1959_v9 = vrot.slane %v1957_v13, 5  ;;  %7526 = vmatprep.mubr.bf16.mxu0 %v6622_v48  ;;  %v6527_v63 = vrot.slane %v896_v31, 11  ;;  %v1936_v8 = vsel %vm8481_vm10, %v1931_v29, %v1935_v5  ;;  %v1943_v15 = vshll.u32 %v1727_v45, 16  ;;  %v336_v43 = vld [vmem:[#allocation2 + $0xac] sm:$0x1] }
  0x8f   : > { %v1941_v25 = vrot.slane %v1940_v51, 4  ;;  %v1954_v52 = vor.u32 %v1953_v35, %v1950_v62  ;;  %v1963_v11 = vrot.slane %v1961_v30, 4  ;;  %v286_v1 = vsel %vm8398_vm4, 0, %v285_v58  ;;  %v1734_v29 = vld [vmem:[#allocation2 + $0xa4] sm:$0xf]  ;;  %v10396_v35 = vld [vmem:[#allocation6_spill] sm:$0xff] }
  0x90   : > { %v10391_v7 = vshll.u32 %v8172_v49, 16  ;;  %v907_v60 = vsel %vm8440_vm8, %v6527_v63, %v8720_v16  ;;  %v1945_v27 = vrot.slane %v1943_v15, 5  ;;  %287 = vst [vmem:[#allocation2 + $0x90] sm:$0x8] %v286_v1  ;;  %v952_v47 = vrot.slane %v8196_v3, 4 }
  0x91   : > { %v10392_v32 = vshll.u32 %v8176_v55, 16  ;;  %v6583_v44 = vcombine.low %v907_v60, %v916_v61  ;;  %v715_v39 = vld [vmem:[#allocation2 + $0x80] sm:$0x8]  ;;  %v1955_v49 = vrot.slane %v1954_v52, 4  ;;  %v1964_v24 = vor.u32 %v1963_v11, %v1959_v9 }
  0x92   : > { %v8772_v53 = vor.u32 %v10391_v7, %v8196_v3  ;;  %v334_v14 = vsel %vm8422_vm5, 0, %v333_v18  ;;  %v1946_v37 = vsel %vm8481_vm10, %v1941_v25, %v1945_v27  ;;  %v918_v16 = vshrl.u32 %v715_v39, 16  ;;  %v1730_v20 = vld [vmem:[#allocation2 + $0x8c] sm:$0x1] }
  0x93   : > { %v959_v56 = vor.u32 %v10392_v32, %v8215_v17  ;;  %335 = vst [vmem:[#allocation2 + $0x9c] sm:$0x1] %v334_v14  ;;  %v1972_v36 = vshrl.u32 %v1731_v4, 16  ;;  %7479 = vmatmul.mubr.bf16.gmra.mxu1 %v6583_v44  ;;  %v6623_v55 = vcombine.low %v1936_v8, %v1946_v37  ;;  %v1960_v17 = vsel %vm8481_vm10, %v1955_v49, %v1959_v9  ;;  %v10397_v9 = vld [vmem:[#allocation5_spill] sm:$0xff]  ;;  %v1735_v8 = vld [vmem:[#allocation2 + $0xa8] sm:$0xf] }
  0x94   : > { %v1965_v61 = vrot.slane %v1964_v24, 4  ;;  %v1967_v23 = vshll.u32 %v1730_v20, 16  ;;  %v6528_v33 = vrot.slane %v918_v16, 11  ;;  %v1975_v38 = vshll.u32 %v1731_v4, 16  ;;  %v339_v37 = vld [vmem:[#allocation2 + $0xbc] sm:$0x1] }
  0x95   : > { %v960_v3 = vsel %vm8440_vm8, %v952_v47, %v959_v56  ;;  %v1974_v28 = vrot.slane %v1972_v36, 4  ;;  %v1981_v5 = vshll.u32 %v1732_v41, 16  ;;  %7527 = vmatmul.mubr.bf16.gmra.mxu0 %v6623_v55  ;;  %v1985_v22 = vshrl.u32 %v1732_v41, 16 }
  0x96   : > { %v1969_v0 = vrot.slane %v1967_v23, 5  ;;  %v289_v40 = vsel %vm8398_vm4, 0, %v288_v6  ;;  %v10394_v19 = vshll.u32 %v10393_v10, 16  ;;  %v929_v12 = vsel %vm8440_vm8, %v6528_v33, %v10395_v21  ;;  %v10403_v21 = vld [vmem:[#allocation8_spill] sm:$0xff] }
  0x97   : > { %v1977_v13 = vrot.slane %v1975_v38, 5  ;;  %v1983_v48 = vrot.slane %v1981_v5, 5  ;;  %290 = vst [vmem:[#allocation2 + $0xa0] sm:$0x8] %v289_v40  ;;  %v974_v31 = vrot.slane %v8253_v50, 4  ;;  %v6584_v51 = vcombine.low %v929_v12, %v8759_v46 }
  0x98   : > { %v8794_v54 = vor.u32 %v10394_v19, %v8253_v50  ;;  %v1970_v58 = vsel %vm8481_vm10, %v1965_v61, %v1969_v0  ;;  %v718_v45 = vld [vmem:[#allocation2 + $0x90] sm:$0x8]  ;;  %v1987_v62 = vrot.slane %v1985_v22, 4  ;;  %v10398_v30 = vshll.u32 %v10397_v9, 16  ;;  %v1737_v61 = vld [vmem:[#allocation2 + $0xb4] sm:$0xf] }
  0x99   : > { %v6624_v25 = vcombine.low %v1960_v17, %v1970_v58  ;;  %v940_v15 = vshrl.u32 %v718_v45, 16  ;;  %v1978_v18 = vor.u32 %v1977_v13, %v1974_v28  ;;  %v337_v52 = vsel %vm8422_vm5, 0, %v336_v43  ;;  %v291_v50 = vld [vmem:[#allocation2 + $0xb0] sm:$0x8]  ;;  %7482 = vmatprep.mubr.bf16.mxu1 %v6584_v51  ;;  %v10400_v28 = vld [vmem:[#allocation7_spill] sm:$0xff]  ;;  %v10402_v43 = vld [vmem:[#allocation10_spill] sm:$0xff] }
  0x9a   : > { %v981_v63 = vor.u32 %v10398_v30, %v10396_v35  ;;  %v1733_v11 = vld [vmem:[#allocation2 + $0x9c] sm:$0x1]  ;;  %v1988_v46 = vor.u32 %v1987_v62, %v1983_v48  ;;  %338 = vst [vmem:[#allocation2 + $0xac] sm:$0x1] %v337_v52  ;;  %v1996_v7 = vshrl.u32 %v1734_v29, 16  ;;  %v1999_v4 = vshll.u32 %v1734_v29, 16 }
  0x9b   : > { %7530 = vmatprep.mubr.bf16.mxu0 %v6624_v25  ;;  %v6529_v41 = vrot.slane %v940_v15, 11  ;;  %v1979_v60 = vrot.slane %v1978_v18, 4  ;;  %v1991_v27 = vshll.u32 %v1733_v11, 16  ;;  %v2005_v47 = vshll.u32 %v1735_v8, 16  ;;  %v294_v22 = vld [vmem:[#allocation2 + $0xc0] sm:$0x8] }
  0x9c   : > { %v982_v1 = vsel %vm8440_vm8, %v974_v31, %v981_v63  ;;  %v1989_v32 = vrot.slane %v1988_v46, 4  ;;  %v1998_v56 = vrot.slane %v1996_v7, 4  ;;  %v2001_v6 = vrot.slane %v1999_v4, 5  ;;  %v342_v15 = vld [vmem:[#allocation2 + $0xcc] sm:$0x1] }
  0x9d   : > { %v2009_v44 = vshrl.u32 %v1735_v8, 16  ;;  %v951_v39 = vsel %vm8440_vm8, %v6529_v41, %v8772_v53  ;;  %v1984_v49 = vsel %vm8481_vm10, %v1979_v60, %v1983_v48  ;;  %v1993_v24 = vrot.slane %v1991_v27, 5  ;;  %v10399_v53 = vld [vmem:[#allocation9_spill] sm:$0xff]  ;;  %v1740_v46 = vld [vmem:[#allocation2 + $0xc4] sm:$0xf] }
  0x9e   : > { %v2007_v14 = vrot.slane %v2005_v47, 5  ;;  %v6585_v16 = vcombine.low %v951_v39, %v960_v3  ;;  %v721_v20 = vld [vmem:[#allocation2 + $0xa0] sm:$0x8]  ;;  %v2002_v36 = vor.u32 %v2001_v6, %v1998_v56  ;;  %v292_v17 = vsel %vm8398_vm4, 0, %v291_v50  ;;  %v1738_v3 = vld [vmem:[#allocation2 + $0xb8] sm:$0xf] }
  0x9f   : > { %v2011_v55 = vrot.slane %v2009_v44, 4  ;;  %v1994_v23 = vsel %vm8481_vm10, %v1989_v32, %v1993_v24  ;;  %v962_v33 = vshrl.u32 %v721_v20, 16  ;;  %293 = vst [vmem:[#allocation2 + $0xb0] sm:$0x8] %v292_v17  ;;  %v10401_v38 = vshll.u32 %v10400_v28, 16  ;;  %v10405_v41 = vld [vmem:[#allocation13_spill] sm:$0xff] }
  0xa0   : > { %v996_v0 = vrot.slane %v10399_v53, 4  ;;  %7483 = vmatmul.mubr.bf16.gmra.mxu1 %v6585_v16  ;;  %v6625_v40 = vcombine.low %v1984_v49, %v1994_v23  ;;  %v2003_v10 = vrot.slane %v2002_v36, 4  ;;  %v10404_v12 = vshll.u32 %v10403_v21, 16  ;;  %v10406_v60 = vld [vmem:[#allocation11_spill] sm:$0xff]  ;;  %v1741_v32 = vld [vmem:[#allocation2 + $0xc8] sm:$0xf] }
  0xa1   : > { %v8822_v5 = vor.u32 %v10401_v38, %v10399_v53  ;;  %v2012_v19 = vor.u32 %v2011_v55, %v2007_v14  ;;  %v6530_v48 = vrot.slane %v962_v33, 11  ;;  %v1736_v31 = vld [vmem:[#allocation2 + $0xac] sm:$0x1]  ;;  %v340_v29 = vsel %vm8422_vm5, 0, %v339_v37  ;;  %v10408_v44 = vld [vmem:[#allocation14_spill] sm:$0xff] }
  0xa2   : > { %v1003_v13 = vor.u32 %v10404_v12, %v10402_v43  ;;  %v2020_v51 = vshrl.u32 %v1737_v61, 16  ;;  %v2023_v58 = vshll.u32 %v1737_v61, 16  ;;  %7531 = vmatmul.mubr.bf16.gmra.mxu0 %v6625_v40  ;;  %v2008_v45 = vsel %vm8481_vm10, %v2003_v10, %v2007_v14  ;;  %341 = vst [vmem:[#allocation2 + $0xbc] sm:$0x1] %v340_v29  ;;  %v10409_v39 = vld [vmem:[#allocation12_spill] sm:$0xff] }
  0xa3   : > { %v2013_v62 = vrot.slane %v2012_v19, 4  ;;  %v2015_v35 = vshll.u32 %v1736_v31, 16  ;;  %v973_v30 = vsel %vm8440_vm8, %v6530_v48, %v8794_v54  ;;  %v2029_v25 = vshll.u32 %v1738_v3, 16  ;;  %v297_v55 = vld [vmem:[#allocation2 + $0xd0] sm:$0x8]  ;;  %v10411_v48 = vld [vmem:[#allocation18_spill] sm:$0xff] }
  0xa4   : > { %v1004_v9 = vsel %vm8440_vm8, %v996_v0, %v1003_v13  ;;  %v2022_v63 = vrot.slane %v2020_v51, 4  ;;  %v2025_v8 = vrot.slane %v2023_v58, 5  ;;  %v6586_v18 = vcombine.low %v973_v30, %v982_v1  ;;  %v345_v53 = vld [vmem:[#allocation2 + $0xdc] sm:$0x1]  ;;  %v10412_v31 = vld [vmem:[#allocation15_spill] sm:$0xff] }
  0xa5   : > { %v2017_v52 = vrot.slane %v2015_v35, 5  ;;  %v2033_v50 = vshrl.u32 %v1738_v3, 16  ;;  %v295_v11 = vsel %vm8398_vm4, 0, %v294_v22  ;;  %v2031_v4 = vrot.slane %v2029_v25, 5  ;;  %v1743_v58 = vld [vmem:[#allocation2 + $0xd4] sm:$0xf] }
  0xa6   : > { %v2026_v7 = vor.u32 %v2025_v8, %v2022_v63  ;;  %296 = vst [vmem:[#allocation2 + $0xc0] sm:$0x8] %v295_v11  ;;  %v10407_v27 = vshll.u32 %v10406_v60, 16  ;;  %v1018_v54 = vrot.slane %v10405_v41, 4  ;;  %7486 = vmatprep.mubr.bf16.mxu1 %v6586_v18  ;;  %v724_v56 = vld [vmem:[#allocation2 + $0xb0] sm:$0x8] }
  0xa7   : > { %v2018_v1 = vsel %vm8481_vm10, %v2013_v62, %v2017_v52  ;;  %v2035_v6 = vrot.slane %v2033_v50, 4  ;;  %v10410_v49 = vshll.u32 %v10409_v39, 16  ;;  %v343_v14 = vsel %vm8422_vm5, 0, %v342_v15  ;;  %v10415_v15 = vld [vmem:[#allocation16_spill] sm:$0xff]  ;;  %v1744_v11 = vld [vmem:[#allocation2 + $0xd8] sm:$0xf] }
  0xa8   : > { %v8842_v47 = vor.u32 %v10407_v27, %v10405_v41  ;;  %v6626_v37 = vcombine.low %v2008_v45, %v2018_v1  ;;  %v984_v16 = vshrl.u32 %v724_v56, 16  ;;  %v2027_v20 = vrot.slane %v2026_v7, 4  ;;  %344 = vst [vmem:[#allocation2 + $0xcc] sm:$0x1] %v343_v14  ;;  %v300_v1 = vld [vmem:[#allocation2 + $0xe0] sm:$0x8] }
  0xa9   : > { %v1025_v24 = vor.u32 %v10410_v49, %v10408_v44  ;;  %v2044_v36 = vshrl.u32 %v1740_v46, 16  ;;  %v2036_v17 = vor.u32 %v2035_v6, %v2031_v4  ;;  %v2047_v23 = vshll.u32 %v1740_v46, 16  ;;  %v1739_v38 = vld [vmem:[#allocation2 + $0xbc] sm:$0x1]  ;;  %v348_v49 = vld [vmem:[#allocation2 + $0xec] sm:$0x1] }
  0xaa   : > { %v2053_v33 = vshll.u32 %v1741_v32, 16  ;;  %7534 = vmatprep.mubr.bf16.mxu0 %v6626_v37  ;;  %v6531_v28 = vrot.slane %v984_v16, 11  ;;  %v2032_v0 = vsel %vm8481_vm10, %v2027_v20, %v2031_v4  ;;  %v2057_v22 = vshrl.u32 %v1741_v32, 16 }
  0xab   : > { %v1026_v61 = vsel %vm8440_vm8, %v1018_v54, %v1025_v24  ;;  %v2046_v3 = vrot.slane %v2044_v36, 4  ;;  %v2037_v40 = vrot.slane %v2036_v17, 4  ;;  %v2039_v10 = vshll.u32 %v1739_v38, 16  ;;  %v1746_v24 = vld [vmem:[#allocation2 + $0xe4] sm:$0xf] }
  0xac   : > { %v2049_v19 = vrot.slane %v2047_v23, 5  ;;  %v2055_v43 = vrot.slane %v2053_v33, 5  ;;  %v995_v21 = vsel %vm8440_vm8, %v6531_v28, %v8822_v5  ;;  %v2059_v12 = vrot.slane %v2057_v22, 4  ;;  %v10414_v5 = vld [vmem:[#allocation19_spill] sm:$0xff]  ;;  %v10417_v23 = vld [vmem:[#allocation22_spill] sm:$0xff]  ;;  %v10418_v33 = vld [vmem:[#allocation20_spill] sm:$0xff] }
  0xad   : > { %v298_v13 = vsel %vm8398_vm4, 0, %v297_v55  ;;  %v10413_v29 = vshll.u32 %v10412_v31, 16  ;;  %v6587_v45 = vcombine.low %v995_v21, %v1004_v9  ;;  %v2041_v62 = vrot.slane %v2039_v10, 5  ;;  %v727_v35 = vld [vmem:[#allocation2 + $0xc0] sm:$0x8] }
  0xae   : > { %v2050_v30 = vor.u32 %v2049_v19, %v2046_v3  ;;  %299 = vst [vmem:[#allocation2 + $0xd0] sm:$0x8] %v298_v13  ;;  %v1040_v63 = vrot.slane %v10411_v48, 4  ;;  %v1006_v8 = vshrl.u32 %v727_v35, 16  ;;  %v2060_v25 = vor.u32 %v2059_v12, %v2055_v43  ;;  %v10420_v19 = vld [vmem:[#allocation23_spill] sm:$0xff] }
  0xaf   : > { %v8864_v51 = vor.u32 %v10413_v29, %v10411_v48  ;;  %v10416_v18 = vshll.u32 %v10415_v15, 16  ;;  %v346_v50 = vsel %vm8422_vm5, 0, %v345_v53  ;;  %7487 = vmatmul.mubr.bf16.gmra.mxu1 %v6587_v45  ;;  %v2042_v9 = vsel %vm8481_vm10, %v2037_v40, %v2041_v62  ;;  %v1742_v46 = vld [vmem:[#allocation2 + $0xcc] sm:$0x1]  ;;  %v1747_v13 = vld [vmem:[#allocation2 + $0xe8] sm:$0xf] }
  0xb0   : > { %v2051_v7 = vrot.slane %v2050_v30, 4  ;;  %347 = vst [vmem:[#allocation2 + $0xdc] sm:$0x1] %v346_v50  ;;  %v2068_v4 = vshrl.u32 %v1743_v58, 16  ;;  %v2071_v41 = vshll.u32 %v1743_v58, 16  ;;  %v6627_v60 = vcombine.low %v2032_v0, %v2042_v9 }
  0xb1   : > { %v1047_v52 = vor.u32 %v10416_v18, %v10414_v5  ;;  %v6532_v27 = vrot.slane %v1006_v8, 11  ;;  %v2061_v54 = vrot.slane %v2060_v25, 4  ;;  %v2063_v32 = vshll.u32 %v1742_v46, 16  ;;  %v303_v48 = vld [vmem:[#allocation2 + $0xf0] sm:$0x8] }
  0xb2   : > { %v2056_v56 = vsel %vm8481_vm10, %v2051_v7, %v2055_v43  ;;  %v2070_v44 = vrot.slane %v2068_v4, 4  ;;  %v2073_v39 = vrot.slane %v2071_v41, 5  ;;  %7535 = vmatmul.mubr.bf16.gmra.mxu0 %v6627_v60  ;;  %v2077_v16 = vshll.u32 %v1744_v11, 16  ;;  %v10421_v43 = vld [vmem:[#allocation21_spill] sm:$0xff]  ;;  %v351_v25 = vld [vmem:[#allocation2 + $0xfc] sm:$0x1] }
  0xb3   : > { %v1048_v6 = vsel %vm8440_vm8, %v1040_v63, %v1047_v52  ;;  %v1017_v14 = vsel %vm8440_vm8, %v6532_v27, %v8842_v47  ;;  %v2065_v37 = vrot.slane %v2063_v32, 5  ;;  %v2081_v20 = vshrl.u32 %v1744_v11, 16  ;;  %v1749_v50 = vld [vmem:[#allocation2 + $0xf4] sm:$0xf]  ;;  %v1750_v4 = vld [vmem:[#allocation2 + $0xf8] sm:$0xf] }
  0xb4   : > { %v6588_v36 = vcombine.low %v1017_v14, %v1026_v61  ;;  %v2074_v55 = vor.u32 %v2073_v39, %v2070_v44  ;;  %v301_v17 = vsel %vm8398_vm4, 0, %v300_v1  ;;  %v10419_v53 = vshll.u32 %v10418_v33, 16  ;;  %v10424_v32 = vld [vmem:[#allocation24_spill] sm:$0xff]  ;;  %v10427_v14 = vld [vmem:[#allocation25_spill] sm:$0xff] }
  0xb5   : > { %v2066_v38 = vsel %vm8481_vm10, %v2061_v54, %v2065_v37  ;;  %v730_v0 = vld [vmem:[#allocation2 + $0xd0] sm:$0x8]  ;;  %v2079_v3 = vrot.slane %v2077_v16, 5  ;;  %v2083_v22 = vrot.slane %v2081_v20, 4  ;;  %302 = vst [vmem:[#allocation2 + $0xe0] sm:$0x8] %v301_v17 }
  0xb6   : > { %v8886_v28 = vor.u32 %v10419_v53, %v10417_v23  ;;  %v1062_v47 = vrot.slane %v10417_v23, 4  ;;  %7490 = vmatprep.mubr.bf16.mxu1 %v6588_v36  ;;  %v6628_v61 = vcombine.low %v2056_v56, %v2066_v38  ;;  %v1028_v40 = vshrl.u32 %v730_v0, 16  ;;  %v10423_v54 = vld [vmem:[#allocation26_spill] sm:$0xff]  ;;  %v2461_v38 = vld [vmem:[#allocation2 + $0x10] sm:$0x8] }
  0xb7   : > { %v2075_v10 = vrot.slane %v2074_v55, 4  ;;  %v10422_v21 = vshll.u32 %v10421_v43, 16  ;;  %v1745_v31 = vld [vmem:[#allocation2 + $0xdc] sm:$0x1]  ;;  %v2084_v29 = vor.u32 %v2083_v22, %v2079_v3  ;;  %v349_v58 = vsel %vm8422_vm5, 0, %v348_v49 }
  0xb8   : > { %v2092_v45 = vshrl.u32 %v1746_v24, 16  ;;  %v2095_v62 = vshll.u32 %v1746_v24, 16  ;;  %7538 = vmatprep.mubr.bf16.mxu0 %v6628_v61  ;;  %v6533_v35 = vrot.slane %v1028_v40, 11  ;;  %v2087_v63 = vshll.u32 %v1745_v31, 16  ;;  %350 = vst [vmem:[#allocation2 + $0xec] sm:$0x1] %v349_v58 }
  0xb9   : > { %v1069_v12 = vor.u32 %v10422_v21, %v10420_v19  ;;  %v2080_v30 = vsel %vm8481_vm10, %v2075_v10, %v2079_v3  ;;  %v2085_v5 = vrot.slane %v2084_v29, 4  ;;  %v2101_v52 = vshll.u32 %v1747_v13, 16  ;;  %v10426_v24 = vld [vmem:[#allocation27_spill] sm:$0xff]  ;;  %v8920_v0 = vld [vmem:[#allocation2 + $0x14] sm:$0xf] }
  0xba   : > { %v2094_v15 = vrot.slane %v2092_v45, 4  ;;  %v2097_v18 = vrot.slane %v2095_v62, 5  ;;  %v1039_v11 = vsel %vm8440_vm8, %v6533_v35, %v8864_v51  ;;  %v2089_v9 = vrot.slane %v2087_v63, 5  ;;  %v8927_v31 = vld [vmem:[#allocation2 + $0x18] sm:$0xf] }
  0xbb   : > { %v1070_v8 = vsel %vm8440_vm8, %v1062_v47, %v1069_v12  ;;  %v2105_v46 = vshrl.u32 %v1747_v13, 16  ;;  %v304_v7 = vsel %vm8398_vm4, 0, %v303_v48  ;;  %v6589_v41 = vcombine.low %v1039_v11, %v1048_v6  ;;  %v2464_v63 = vld [vmem:[#allocation2 + $0x20] sm:$0x8] }
  0xbc   : > { %v2098_v60 = vor.u32 %v2097_v18, %v2094_v15  ;;  %v2103_v27 = vrot.slane %v2101_v52, 5  ;;  %305 = vst [vmem:[#allocation2 + $0xf0] sm:$0x8] %v304_v7  ;;  %v10425_v1 = vshll.u32 %v10424_v32, 16  ;;  %v2090_v44 = vsel %vm8481_vm10, %v2085_v5, %v2089_v9  ;;  %v733_v39 = vld [vmem:[#allocation2 + $0xe0] sm:$0x8] }
  0xbd   : > { %v2107_v51 = vrot.slane %v2105_v46, 4  ;;  %v1084_v49 = vrot.slane %v10423_v54, 4  ;;  %v10428_v37 = vshll.u32 %v10427_v14, 16  ;;  %7491 = vmatmul.mubr.bf16.gmra.mxu1 %v6589_v41  ;;  %v6629_v6 = vcombine.low %v2080_v30, %v2090_v44  ;;  %v8931_v52 = vld [vmem:[#allocation2 + $0x24] sm:$0xf] }
  0xbe   : > { %v8908_v56 = vor.u32 %v10425_v1, %v10423_v54  ;;  %v1050_v20 = vshrl.u32 %v733_v39, 16  ;;  %v2099_v36 = vrot.slane %v2098_v60, 4  ;;  %v352_v55 = vsel %vm8422_vm5, 0, %v351_v25  ;;  %v8936_v9 = vld [vmem:[#allocation2 + $0x28] sm:$0xf] }
  0xbf   : > { %v1091_v16 = vor.u32 %v10428_v37, %v10426_v24  ;;  %v2108_v17 = vor.u32 %v2107_v51, %v2103_v27  ;;  %353 = vst [vmem:[#allocation2 + $0xfc] sm:$0x1] %v352_v55  ;;  %v2116_v33 = vshrl.u32 %v1749_v50, 16  ;;  %v2119_v53 = vshll.u32 %v1749_v50, 16  ;;  %7539 = vmatmul.mubr.bf16.gmra.mxu0 %v6629_v6  ;;  %v1748_v22 = vld [vmem:[#allocation2 + $0xec] sm:$0x1] }
  0xc0   : > { %v6534_v3 = vrot.slane %v1050_v20, 11  ;;  %v2104_v47 = vsel %vm8481_vm10, %v2099_v36, %v2103_v27  ;;  %v2125_v61 = vshll.u32 %v1750_v4, 16  ;;  %v2129_v40 = vshrl.u32 %v1750_v4, 16  ;;  %v2467_v6 = vld [vmem:[#allocation2 + $0x30] sm:$0x8] }
  0xc1   : > { %v1092_v23 = vsel %vm8440_vm8, %v1084_v49, %v1091_v16  ;;  %v2109_v10 = vrot.slane %v2108_v17, 4  ;;  %v2111_v19 = vshll.u32 %v1748_v22, 16  ;;  %v2118_v43 = vrot.slane %v2116_v33, 4  ;;  %v8949_v20 = vld [vmem:[#allocation2 + $0x34] sm:$0xf] }
  0xc2   : > { %v2121_v21 = vrot.slane %v2119_v53, 5  ;;  %v1061_v12 = vsel %vm8440_vm8, %v6534_v3, %v8886_v28  ;;  %v2127_v13 = vrot.slane %v2125_v61, 5  ;;  %v2131_v48 = vrot.slane %v2129_v40, 4  ;;  %v8953_v33 = vld [vmem:[#allocation2 + $0x38] sm:$0xf] }
  0xc3   : > { %v2510_v29 = vshrl.u32 %v2461_v38, 16  ;;  %v6590_v58 = vcombine.low %v1061_v12, %v1070_v8  ;;  %v2113_v45 = vrot.slane %v2111_v19, 5  ;;  %v736_v62 = vld [vmem:[#allocation2 + $0xf0] sm:$0x8]  ;;  %v2515_v30 = vshrl.u32 %v8920_v0, 16 }
  0xc4   : > { %v2122_v35 = vor.u32 %v2121_v21, %v2118_v43  ;;  %v1072_v25 = vshrl.u32 %v736_v62, 16  ;;  %v2132_v5 = vor.u32 %v2131_v48, %v2127_v13  ;;  %v2518_v18 = vshll.u32 %v8920_v0, 16  ;;  %v2470_v21 = vld [vmem:[#allocation2 + $0x40] sm:$0x8]  ;;  %v8963_v12 = vld [vmem:[#allocation2 + $0x44] sm:$0xf] }
  0xc5   : > { %v6640_v15 = vrot.slane %v2510_v29, 11  ;;  %7494 = vmatprep.mubr.bf16.mxu1 %v6590_v58  ;;  %v2114_v28 = vsel %vm8481_vm10, %v2109_v10, %v2113_v45  ;;  %v2517_v11 = vrot.slane %v2515_v30, 7  ;;  %v2524_v8 = vshrl.u32 %v8927_v31, 16  ;;  %v8972_v30 = vld [vmem:[#allocation2 + $0x48] sm:$0xf] }
  0xc6   : > { %v2123_v50 = vrot.slane %v2122_v35, 4  ;;  %v6630_v46 = vcombine.low %v2104_v47, %v2114_v28  ;;  %v6535_v7 = vrot.slane %v1072_v25, 11  ;;  %v1751_v4 = vld [vmem:[#allocation2 + $0xfc] sm:$0x1]  ;;  %v2133_v41 = vrot.slane %v2132_v5, 4 }
  0xc7   : > { %v2527_v60 = vshll.u32 %v8927_v31, 16  ;;  %v2135_v54 = vshll.u32 %v1751_v4, 16  ;;  %v2520_v32 = vor.u32 %v2518_v18, %v2517_v11  ;;  %v2522_v1 = vrot.slane %v2517_v11, 4  ;;  %v2473_v18 = vld [vmem:[#allocation2 + $0x50] sm:$0x8] }
  0xc8   : > { %v2128_v27 = vsel %vm8481_vm10, %v2123_v50, %v2127_v13  ;;  %7542 = vmatprep.mubr.bf16.mxu0 %v6630_v46  ;;  %v1083_v44 = vsel %vm8440_vm8, %v6535_v7, %v8908_v56  ;;  %v2526_v39 = vrot.slane %v2524_v8, 7  ;;  %v6712_v51 = vcombine.low %v8920_v0, %v8927_v31  ;;  %v7921_v8 = vld [vmem:[%s10321_s3 + $0x170] sm:$0xff]  }
  0xc9   : > { %v2532_v49 = vshrl.u32 %v2464_v63, 16  ;;  %v6591_v24 = vcombine.low %v1083_v44, %v1092_v23  ;;  %v2137_v14 = vrot.slane %v2135_v54, 5  ;;  %v2521_v37 = vsel %vm8440_vm8, %v6640_v15, %v2520_v32 }
  0xca   : > { %v2537_v16 = vshrl.u32 %v8931_v52, 16  ;;  %v2529_v36 = vor.u32 %v2527_v60, %v2526_v39  ;;  %v2540_v17 = vshll.u32 %v8931_v52, 16  ;;  %v2546_v56 = vshrl.u32 %v8936_v9, 16  ;;  %v8984_v60 = vld [vmem:[#allocation2 + $0x58] sm:$0xf] }
  0xcb   : > { %v6641_v55 = vrot.slane %v2532_v49, 11  ;;  %7495 = vmatmul.mubr.bf16.gmra.mxu1 %v6591_v24  ;;  %v2138_v23 = vsel %vm8481_vm10, %v2133_v41, %v2137_v14  ;;  %v2549_v38 = vshll.u32 %v8936_v9, 16  ;;  %v6713_v0 = vcombine.low %v8931_v52, %v8936_v9  ;;  %v8981_v9 = vld [vmem:[#allocation2 + $0x54] sm:$0xf]  ;;  %v2476_v39 = vld [vmem:[#allocation2 + $0x60] sm:$0x8] }
  0xcc   : > { %v2539_v53 = vrot.slane %v2537_v16, 7  ;;  %v6631_v3 = vcombine.low %v2128_v27, %v2138_v23  ;;  %v2530_v22 = vsel %vm8440_vm8, %v2522_v1, %v2529_v36  ;;  %v2548_v47 = vrot.slane %v2546_v56, 7  ;;  %v7922_v1 = vld [vmem:[%s10321_s3 + $0x1b0] sm:$0xff]   ;;  %v8999_v16 = vld [vmem:[#allocation2 + $0x68] sm:$0xf] }
  0xcd   : > { %v2554_v61 = vshrl.u32 %v2467_v6, 16  ;;  %v6672_v40 = vcombine.low %v2521_v37, %v2530_v22  ;;  %v2559_v43 = vshrl.u32 %v8949_v20, 16  ;;  %v2562_v31 = vshll.u32 %v8949_v20, 16 }
  0xce   : > { %v2542_v10 = vor.u32 %v2540_v17, %v2539_v53  ;;  %v2544_v19 = vrot.slane %v2539_v53, 4  ;;  %7543 = vmatmul.mubr.bf16.gmra.mxu0 %v6631_v3  ;;  %v2551_v13 = vor.u32 %v2549_v38, %v2548_v47  ;;  %v2568_v29 = vshrl.u32 %v8953_v33, 16  ;;  %v7925_v17 = vld [vmem:[%s10321_s3 + $0x168] sm:$0xff]   ;;  %v2479_v47 = vld [vmem:[#allocation2 + $0x70] sm:$0x8] }
  0xcf   : > { %v6642_v48 = vrot.slane %v2554_v61, 11  ;;  %7562 = vmatprep.mubr.bf16.mxu1 %v6672_v40  ;;  %7610 = vmatprep.mubr.bf16.mxu0 %v6712_v51  ;;  %v2561_v45 = vrot.slane %v2559_v43, 7  ;;  %v2571_v62 = vshll.u32 %v8953_v33, 16  ;;  %v6714_v35 = vcombine.low %v8949_v20, %v8953_v33  ;;  %v8994_v51 = vld [vmem:[#allocation2 + $0x64] sm:$0xf] }
  0xd0   : > { %v2543_v58 = vsel %vm8440_vm8, %v6641_v55, %v2542_v10  ;;  %v2552_v63 = vsel %vm8440_vm8, %v2544_v19, %v2551_v13  ;;  %v2570_v25 = vrot.slane %v2568_v29, 7  ;;  %v2576_v5 = vshrl.u32 %v2470_v21, 16  ;;  %v9021_v19 = vld [vmem:[#allocation2 + $0x74] sm:$0xf] }
  0xd1   : > { %v2581_v15 = vshrl.u32 %v8963_v12, 16  ;;  %v6673_v52 = vcombine.low %v2543_v58, %v2552_v63  ;;  %v2564_v28 = vor.u32 %v2562_v31, %v2561_v45  ;;  %v2566_v50 = vrot.slane %v2561_v45, 4  ;;  %v7929_v31 = vld [vmem:[%s10321_s3 + $0x160] sm:$0xff]  }
  0xd2   : > { %v2584_v11 = vshll.u32 %v8963_v12, 16  ;;  %v2573_v46 = vor.u32 %v2571_v62, %v2570_v25  ;;  %v6643_v7 = vrot.slane %v2576_v5, 11  ;;  %v2590_v41 = vshrl.u32 %v8972_v30, 16  ;;  %v9031_v25 = vld [vmem:[#allocation2 + $0x78] sm:$0xf] }
  0xd3   : > { %v2583_v4 = vrot.slane %v2581_v15, 7  ;;  %7563 = vmatmul.mubr.bf16.vlgmr.msra.gmra.mxu1 %v6673_v52  ;;  %v2565_v27 = vsel %vm8440_vm8, %v6642_v48, %v2564_v28  ;;  %v2593_v54 = vshll.u32 %v8972_v30, 16  ;;  %v6715_v32 = vcombine.low %v8963_v12, %v8972_v30 }
  0xd4   : > { %v2598_v44 = vshrl.u32 %v2473_v18, 16  ;;  %7643 = vmatpush3.bf16.msra.mxu1 %v8726_v42  ;;  %v2574_v49 = vsel %vm8440_vm8, %v2566_v50, %v2573_v46  ;;  %v2592_v37 = vrot.slane %v2590_v41, 7  ;;  %v2603_v36 = vshrl.u32 %v8981_v9, 16  ;;  %v2482_v18 = vld [vmem:[#allocation2 + $0x80] sm:$0x8] }
  0xd5   : > { %v2586_v24 = vor.u32 %v2584_v11, %v2583_v4  ;;  %v2588_v14 = vrot.slane %v2583_v4, 4  ;;  %v6674_v6 = vcombine.low %v2565_v27, %v2574_v49  ;;  %7644 = vmatprep.subr.bf16.mxu1 %v7921_v8  ;;  %v2606_v55 = vshll.u32 %v8981_v9, 16  ;;  %v7930_v46 = vld [vmem:[%s10321_s3 + $0x1a0] sm:$0xff]   ;;  %v2485_v27 = vld [vmem:[#allocation2 + $0x90] sm:$0x8] }
  0xd6   : > { %v6644_v20 = vrot.slane %v2598_v44, 11  ;;  %7611 = vmatmul.mubr.bf16.vlgmr.msra.gmra.mxu0 %v6713_v0  ;;  %v2595_v56 = vor.u32 %v2593_v54, %v2592_v37  ;;  %v2612_v33 = vshrl.u32 %v8984_v60, 16  ;;  %v2615_v23 = vshll.u32 %v8984_v60, 16  ;;  %v7933_v54 = vld [vmem:[%s10321_s3 + $0x158] sm:$0xff]  }
  0xd7   : > { %v2587_v42 = vsel %vm8440_vm8, %v6643_v7, %v2586_v24  ;;  %7691 = vmatpush3.bf16.msra.mxu0 %v8739_v57  ;;  %7566 = vmatprep.mubr.bf16.mxu1 %v6674_v6  ;;  %v2605_v53 = vrot.slane %v2603_v36, 7  ;;  %v6716_v38 = vcombine.low %v8981_v9, %v8984_v60  ;;  %v2620_v3 = vshrl.u32 %v2476_v39, 16  ;;  %v7926_v57 = vld [vmem:[%s10321_s3 + $0x1a8] sm:$0xff]   ;;  %v9056_v24 = vld [vmem:[#allocation2 + $0x94] sm:$0xf] }
  0xd8   : > { %v2625_v22 = vshrl.u32 %v8994_v51, 16  ;;  %7614 = vmatprep.mubr.bf16.mxu0 %v6714_v35  ;;  %v2596_v0 = vsel %vm8440_vm8, %v2588_v14, %v2595_v56  ;;  %7645 = vmatpush3.bf16.msra.mxu1 %v7921_v8  ;;  %v2614_v61 = vrot.slane %v2612_v33, 7  ;;  %v2628_v40 = vshll.u32 %v8994_v51, 16  ;;  %v9036_v8 = vld [vmem:[#allocation2 + $0x84] sm:$0xf] }
  0xd9   : > { %v2634_v10 = vshrl.u32 %v8999_v16, 16  ;;  %v6675_v43 = vcombine.low %v2587_v42, %v2596_v0  ;;  %7692 = vmatprep.subr.bf16.mxu0 %v7922_v1  ;;  %v2608_v21 = vor.u32 %v2606_v55, %v2605_v53  ;;  %v2610_v13 = vrot.slane %v2605_v53, 4  ;;  %7646 = vmatprep.subr.bf16.mxu1 %v7925_v17  ;;  %v9038_v9 = vld [vmem:[#allocation2 + $0x88] sm:$0xf]  ;;  %v9058_v14 = vld [vmem:[#allocation2 + $0x98] sm:$0xf] }
  0xda   : > { %v6645_v48 = vrot.slane %v2620_v3, 11  ;;  %v2617_v29 = vor.u32 %v2615_v23, %v2614_v61  ;;  %v2627_v58 = vrot.slane %v2625_v22, 7  ;;  %v2637_v62 = vshll.u32 %v8999_v16, 16  ;;  %v7934_v23 = vld [vmem:[%s10321_s3 + $0x198] sm:$0xff]   ;;  %v7937_v53 = vld [vmem:[%s10321_s3 + $0x150] sm:$0xff]  }
  0xdb   : > { %v2636_v45 = vrot.slane %v2634_v10, 7  ;;  %7567 = vmatmul.mubr.bf16.gmra.mxu1 %v6675_v43  ;;  %7693 = vmatpush3.bf16.msra.mxu0 %v7922_v1  ;;  %v2609_v35 = vsel %vm8440_vm8, %v6644_v20, %v2608_v21  ;;  %v6717_v63 = vcombine.low %v8994_v51, %v8999_v16  ;;  %v2642_v5 = vshrl.u32 %v2479_v47, 16  ;;  %v2491_v16 = vld [vmem:[#allocation2 + $0xb0] sm:$0x8] }
  0xdc   : > { %v2647_v15 = vshrl.u32 %v9021_v19, 16  ;;  %v2618_v52 = vsel %vm8440_vm8, %v2610_v13, %v2617_v29  ;;  %v2630_v28 = vor.u32 %v2628_v40, %v2627_v58  ;;  %v2632_v50 = vrot.slane %v2627_v58, 4  ;;  %7647 = vmatpush3.bf16.msra.mxu1 %v7925_v17  ;;  %7694 = vmatprep.subr.bf16.mxu0 %v7926_v57 }
  0xdd   : > { %v2639_v11 = vor.u32 %v2637_v62, %v2636_v45  ;;  %v6676_v7 = vcombine.low %v2609_v35, %v2618_v52  ;;  %v6646_v4 = vrot.slane %v2642_v5, 11  ;;  %v2650_v60 = vshll.u32 %v9021_v19, 16  ;;  %7648 = vmatprep.subr.bf16.mxu1 %v7929_v31  ;;  %v7938_v62 = vld [vmem:[%s10321_s3 + $0x190] sm:$0xff]   ;;  %v7941_v35 = vld [vmem:[%s10321_s3 + $0x148] sm:$0xff]  }
  0xde   : > { %v2649_v41 = vrot.slane %v2647_v15, 7  ;;  %7615 = vmatmul.mubr.bf16.gmra.mxu0 %v6715_v32  ;;  %v2631_v1 = vsel %vm8440_vm8, %v6645_v48, %v2630_v28  ;;  %v2656_v39 = vshrl.u32 %v9031_v25, 16  ;;  %v2659_v49 = vshll.u32 %v9031_v25, 16  ;;  %v9081_v48 = vld [vmem:[#allocation2 + $0xa4] sm:$0xf] }
  0xdf   : > { %v2640_v44 = vsel %vm8440_vm8, %v2632_v50, %v2639_v11  ;;  %7570 = vmatprep.mubr.bf16.mxu1 %v6676_v7  ;;  %7618 = vmatprep.mubr.bf16.mxu0 %v6716_v38  ;;  %v6718_v30 = vcombine.low %v9021_v19, %v9031_v25  ;;  %v2664_v20 = vshrl.u32 %v2482_v18, 16  ;;  %v2669_v36 = vshrl.u32 %v9036_v8, 16  ;;  %v9097_v18 = vld [vmem:[#allocation2 + $0xa8] sm:$0xf] }
  0xe0   : > { %v6677_v37 = vcombine.low %v2631_v1, %v2640_v44  ;;  %v2652_v6 = vor.u32 %v2650_v60, %v2649_v41  ;;  %v2654_v12 = vrot.slane %v2649_v41, 4  ;;  %7695 = vmatpush3.bf16.msra.mxu0 %v7926_v57  ;;  %v2658_v32 = vrot.slane %v2656_v39, 7  ;;  %7649 = vmatpush3.bf16.msra.mxu1 %v7929_v31  ;;  %v2488_v57 = vld [vmem:[#allocation2 + $0xa0] sm:$0x8] }
  0xe1   : > { %v2672_v55 = vshll.u32 %v9036_v8, 16  ;;  %v2678_v42 = vshrl.u32 %v9038_v9, 16  ;;  %v2681_v56 = vshll.u32 %v9038_v9, 16  ;;  %v6719_v33 = vcombine.low %v9036_v8, %v9038_v9  ;;  %7696 = vmatprep.subr.bf16.mxu0 %v7930_v46  ;;  %7650 = vmatprep.subr.bf16.mxu1 %v7933_v54 }
  0xe2   : > { %v2653_v17 = vsel %vm8440_vm8, %v6646_v4, %v2652_v6  ;;  %v2661_v38 = vor.u32 %v2659_v49, %v2658_v32  ;;  %v6647_v3 = vrot.slane %v2664_v20, 11  ;;  %v2671_v22 = vrot.slane %v2669_v36, 7  ;;  %v7945_v49 = vld [vmem:[%s10321_s3 + $0x140] sm:$0xff]  }
  0xe3   : > { %v2686_v47 = vshrl.u32 %v2485_v27, 16  ;;  %7571 = vmatmul.mubr.bf16.gmra.mxu1 %v6677_v37  ;;  %v2680_v0 = vrot.slane %v2678_v42, 7  ;;  %v2691_v61 = vshrl.u32 %v9056_v24, 16  ;;  %v2694_v40 = vshll.u32 %v9056_v24, 16  ;;  %v9108_v27 = vld [vmem:[#allocation2 + $0xb8] sm:$0xf] }
  0xe4   : > { %v2700_v10 = vshrl.u32 %v9058_v14, 16  ;;  %v2662_v19 = vsel %vm8440_vm8, %v2654_v12, %v2661_v38  ;;  %v2674_v43 = vor.u32 %v2672_v55, %v2671_v22  ;;  %v2676_v21 = vrot.slane %v2671_v22, 4  ;;  %7697 = vmatpush3.bf16.msra.mxu0 %v7930_v46  ;;  %7651 = vmatpush3.bf16.msra.mxu1 %v7933_v54  ;;  %v7942_v46 = vld [vmem:[%s10321_s3 + $0x188] sm:$0xff]   ;;  %v2494_v36 = vld [vmem:[#allocation2 + $0xc0] sm:$0x8] }
  0xe5   : > { %v6648_v13 = vrot.slane %v2686_v47, 11  ;;  %v6678_v31 = vcombine.low %v2653_v17, %v2662_v19  ;;  %v2683_v29 = vor.u32 %v2681_v56, %v2680_v0  ;;  %v2693_v58 = vrot.slane %v2691_v61, 7  ;;  %7698 = vmatprep.subr.bf16.mxu0 %v7934_v23  ;;  %7652 = vmatprep.subr.bf16.mxu1 %v7937_v53  ;;  %v9122_v55 = vld [vmem:[#allocation2 + $0xc4] sm:$0xf]  ;;  %v9139_v61 = vld [vmem:[%s10321_s3 + $0x1f8] sm:$0xff]  }
  0xe6   : > { %v2702_v45 = vrot.slane %v2700_v10, 7  ;;  %7619 = vmatmul.mubr.bf16.gmra.mxu0 %v6717_v63  ;;  %v2675_v25 = vsel %vm8440_vm8, %v6647_v3, %v2674_v43  ;;  %v2703_v5 = vshll.u32 %v9058_v14, 16  ;;  %v6720_v15 = vcombine.low %v9056_v24, %v9058_v14  ;;  %v9102_v63 = vld [vmem:[#allocation2 + $0xb4] sm:$0xf]  ;;  %v7946_v0 = vld [vmem:[%s10321_s3 + $0x180] sm:$0xff]  }
  0xe7   : > { %v2708_v52 = vshrl.u32 %v2488_v57, 16  ;;  %7574 = vmatprep.mubr.bf16.mxu1 %v6678_v31  ;;  %7622 = vmatprep.mubr.bf16.mxu0 %v6718_v30  ;;  %v2684_v28 = vsel %vm8440_vm8, %v2676_v21, %v2683_v29  ;;  %v2696_v50 = vor.u32 %v2694_v40, %v2693_v58  ;;  %v2698_v11 = vrot.slane %v2693_v58, 4  ;;  %v2497_v43 = vld [vmem:[#allocation2 + $0xd0] sm:$0x8]  ;;  %v9149_v58 = vld [vmem:[#allocation2 + $0xd4] sm:$0xf] }
  0xe8   : > { %v2713_v51 = vshrl.u32 %v9081_v48, 16  ;;  %v6679_v7 = vcombine.low %v2675_v25, %v2684_v28  ;;  %v2705_v4 = vor.u32 %v2703_v5, %v2702_v45  ;;  %v2716_v60 = vshll.u32 %v9081_v48, 16  ;;  %7699 = vmatpush3.bf16.msra.mxu0 %v7934_v23  ;;  %7653 = vmatpush3.bf16.msra.mxu1 %v7937_v53  ;;  %v9126_v53 = vld [vmem:[#allocation2 + $0xc8] sm:$0xf]  ;;  %v9162_v28 = vld [vmem:[%s10321_s3 + $0x238] sm:$0xff]  }
  0xe9   : > { %v6649_v41 = vrot.slane %v2708_v52, 11  ;;  %v2697_v54 = vsel %vm8440_vm8, %v6648_v13, %v2696_v50  ;;  %v2722_v44 = vshrl.u32 %v9097_v18, 16  ;;  %v2725_v39 = vshll.u32 %v9097_v18, 16  ;;  %7700 = vmatprep.subr.bf16.mxu0 %v7938_v62  ;;  %7654 = vmatprep.subr.bf16.mxu1 %v7941_v35  ;;  %v2500_v52 = vld [vmem:[#allocation2 + $0xe0] sm:$0x8] }
  0xea   : > { %v2715_v1 = vrot.slane %v2713_v51, 7  ;;  %v2706_v24 = vsel %vm8440_vm8, %v2698_v11, %v2705_v4  ;;  %v6721_v14 = vcombine.low %v9081_v48, %v9097_v18  ;;  %v2730_v37 = vshrl.u32 %v2491_v16, 16  ;;  %v9198_v18 = vld [vmem:[#allocation2 + $0xf8] sm:$0xf] }
  0xeb   : > { %v2735_v6 = vshrl.u32 %v9102_v63, 16  ;;  %7575 = vmatmul.mubr.bf16.gmra.mxu1 %v6679_v7  ;;  %v6680_v12 = vcombine.low %v2697_v54, %v2706_v24  ;;  %v2724_v20 = vrot.slane %v2722_v44, 7  ;;  %v2738_v56 = vshll.u32 %v9102_v63, 16 }
  0xec   : > { %v2718_v30 = vor.u32 %v2716_v60, %v2715_v1  ;;  %v2720_v32 = vrot.slane %v2715_v1, 4  ;;  %v6650_v17 = vrot.slane %v2730_v37, 11  ;;  %v2744_v23 = vshrl.u32 %v9108_v27, 16  ;;  %7701 = vmatpush3.bf16.msra.mxu0 %v7938_v62  ;;  %7655 = vmatpush3.bf16.msra.mxu1 %v7941_v35  ;;  %v9153_v62 = vld [vmem:[#allocation2 + $0xd8] sm:$0xf]  ;;  %v9170_v7 = vpop.f32.mrf.mxu0  ;;  %v9176_v37 = vpop.f32.mrf.mxu1 }
  0xed   : > { %v2737_v42 = vrot.slane %v2735_v6, 7  ;;  %7578 = vmatprep.mubr.bf16.mxu1 %v6680_v12  ;;  %v2727_v3 = vor.u32 %v2725_v39, %v2724_v20  ;;  %v2747_v22 = vshll.u32 %v9108_v27, 16  ;;  %v6722_v47 = vcombine.low %v9102_v63, %v9108_v27  ;;  %7702 = vmatprep.subr.bf16.mxu0 %v7942_v46  ;;  %v9172_v1 = vld [vmem:[#allocation2 + $0xe8] sm:$0xf]  ;;  %10429 = vst [vmem:[#allocation4_spill] sm:$0xff] %v9176_v37 }
  0xee   : > { %v2719_v38 = vsel %vm8440_vm8, %v6649_v41, %v2718_v30  ;;  %7623 = vmatmul.mubr.bf16.gmra.mxu0 %v6719_v33  ;;  %v2746_v57 = vrot.slane %v2744_v23, 7  ;;  %v2752_v19 = vshrl.u32 %v2494_v36, 16  ;;  %7656 = vmatprep.subr.bf16.mxu1 %v7945_v49  ;;  %v2757_v13 = vshrl.u32 %v9122_v55, 16  ;;  %v9188_v23 = vld [vmem:[#allocation2 + $0xf4] sm:$0xf]  ;;  %v9205_v27 = vpop.f32.mrf.mxu1 }
  0xef   : > { %v2740_v40 = vor.u32 %v2738_v56, %v2737_v42  ;;  %v2742_v10 = vrot.slane %v2737_v42, 4  ;;  %7626 = vmatprep.mubr.bf16.mxu0 %v6720_v15  ;;  %v2728_v21 = vsel %vm8440_vm8, %v2720_v32, %v2727_v3  ;;  %v2760_v31 = vshll.u32 %v9122_v55, 16  ;;  %v2503_v56 = vld [vmem:[#allocation2 + $0xf0] sm:$0x8]  ;;  %10430 = vst [vmem:[#allocation3_spill] sm:$0xff] %v9205_v27 }
  0xf0   : > { %v2766_v29 = vshrl.u32 %v9126_v53, 16  ;;  %v6681_v8 = vcombine.low %v2719_v38, %v2728_v21  ;;  %v2749_v33 = vor.u32 %v2747_v22, %v2746_v57  ;;  %v6651_v45 = vrot.slane %v2752_v19, 11  ;;  %7703 = vmatpush3.bf16.msra.mxu0 %v7942_v46  ;;  %7657 = vmatpush3.bf16.msra.mxu1 %v7945_v49  ;;  %v9168_v46 = vld [vmem:[#allocation2 + $0xe4] sm:$0xf]  ;;  %v9190_v38 = vpop.f32.mrf.mxu0 }
  0xf1   : > { %v2741_v9 = vsel %vm8440_vm8, %v6650_v17, %v2740_v40  ;;  %v2759_v35 = vrot.slane %v2757_v13, 7  ;;  %v2769_v5 = vshll.u32 %v9126_v53, 16  ;;  %v6723_v15 = vcombine.low %v9122_v55, %v9126_v53  ;;  %7704 = vmatprep.subr.bf16.mxu0 %v7946_v0  ;;  %7738 = vmatprep.subr.bf16.mxu1 %v9139_v61 }
  0xf2   : > { %v2768_v25 = vrot.slane %v2766_v29, 7  ;;  %v2750_v50 = vsel %vm8440_vm8, %v2742_v10, %v2749_v33  ;;  %v2774_v11 = vshrl.u32 %v2497_v43, 16  ;;  %v2779_v51 = vshrl.u32 %v9149_v58, 16 }
  0xf3   : > { %v2782_v16 = vshll.u32 %v9149_v58, 16  ;;  %7579 = vmatmul.mubr.bf16.gmra.mxu1 %v6681_v8  ;;  %v6682_v4 = vcombine.low %v2741_v9, %v2750_v50  ;;  %v2762_v41 = vor.u32 %v2760_v31, %v2759_v35  ;;  %v2764_v60 = vrot.slane %v2759_v35, 4  ;;  %v7170_v8 = vld [vmem:[%s8075_s29 + $0x78] sm:$0xff]   ;;  %v9214_v9 = vpop.f32.mrf.mxu0 }
  0xf4   : > { %v2771_v54 = vor.u32 %v2769_v5, %v2768_v25  ;;  %v6652_v44 = vrot.slane %v2774_v11, 11  ;;  %v2781_v39 = vrot.slane %v2779_v51, 7  ;;  %v2788_v49 = vshrl.u32 %v9153_v62, 16  ;;  %7705 = vmatpush3.bf16.msra.mxu0 %v7946_v0  ;;  %v3537_v11 = vld [vmem:[#allocation2 + $0x14] sm:$0xf]  ;;  %v9218_v51 = vpop.f32.mrf.mxu1 }
  0xf5   : > { %v2791_v24 = vshll.u32 %v9153_v62, 16  ;;  %7582 = vmatprep.mubr.bf16.mxu1 %v6682_v4  ;;  %v2763_v6 = vsel %vm8440_vm8, %v6651_v45, %v2762_v41  ;;  %v6724_v30 = vcombine.low %v9149_v58, %v9153_v62  ;;  %v2796_v32 = vshrl.u32 %v2500_v52, 16  ;;  %7786 = vmatprep.subr.bf16.mxu0 %v9162_v28  ;;  %v306_v58 = vld [vmem:[#allocation2 + $0x100] sm:$0x8]  ;;  %10431 = vst [vmem:[#allocation6_spill] sm:$0xff] %v9218_v51 }
  0xf6   : > { %v2772_v12 = vsel %vm8440_vm8, %v2764_v60, %v2771_v54  ;;  %7627 = vmatmul.mubr.bf16.gmra.mxu0 %v6721_v14  ;;  %v2784_v36 = vor.u32 %v2782_v16, %v2781_v39  ;;  %v2786_v17 = vrot.slane %v2781_v39, 4  ;;  %v2790_v42 = vrot.slane %v2788_v49, 7  ;;  %v3538_v54 = vld [vmem:[#allocation2 + $0x18] sm:$0xf]  ;;  %v4318_v51 = vld [vmem:[#allocation2 + $0xa8] sm:$0xf] }
  0xf7   : > { %v6683_v20 = vcombine.low %v2763_v6, %v2772_v12  ;;  %7630 = vmatprep.mubr.bf16.mxu0 %v6722_v47  ;;  %v6653_v3 = vrot.slane %v2796_v32, 11  ;;  %v2801_v22 = vshrl.u32 %v9168_v46, 16  ;;  %v2804_v0 = vshll.u32 %v9168_v46, 16  ;;  %v9229_v12 = vpop.f32.mrf.mxu0 }
  0xf8   : > { %v2810_v48 = vshrl.u32 %v9172_v1, 16  ;;  %v2785_v14 = vsel %vm8440_vm8, %v6652_v44, %v2784_v36  ;;  %v2793_v40 = vor.u32 %v2791_v24, %v2790_v42  ;;  %v2813_v10 = vshll.u32 %v9172_v1, 16  ;;  %v3539_v44 = vld [vmem:[#allocation2 + $0x1c] sm:$0x1] }
  0xf9   : > { %v6725_v63 = vcombine.low %v9168_v46, %v9172_v1  ;;  %v2803_v47 = vrot.slane %v2801_v22, 7  ;;  %v2818_v19 = vshrl.u32 %v2503_v56, 16  ;;  %v2823_v43 = vshrl.u32 %v9188_v23, 16  ;;  %v4293_v22 = vld [vmem:[#allocation2 + $0x24] sm:$0xf] }
  0xfa   : > { %v2812_v57 = vrot.slane %v2810_v48, 7  ;;  %v2794_v21 = vsel %vm8440_vm8, %v2786_v17, %v2793_v40  ;;  %v2826_v13 = vshll.u32 %v9188_v23, 16  ;;  %v2832_v31 = vshrl.u32 %v9198_v18, 16 }
  0xfb   : > { %v2835_v29 = vshll.u32 %v9198_v18, 16  ;;  %7583 = vmatmul.mubr.bf16.gmra.mxu1 %v6683_v20  ;;  %v6684_v33 = vcombine.low %v2785_v14, %v2794_v21  ;;  %v2806_v45 = vor.u32 %v2804_v0, %v2803_v47  ;;  %v2808_v62 = vrot.slane %v2803_v47, 4  ;;  %v7978_v20 = vld [vmem:[%s10319_s1] ss:$0 sm:$0xff]  ;;  %v9238_v0 = vpop.f32.mrf.mxu1  ;;  %v9243_v21 = vpop.f32.mrf.mxu0 }
  0xfc   : > { %v2815_v35 = vor.u32 %v2813_v10, %v2812_v57  ;;  %v6654_v25 = vrot.slane %v2818_v19, 11  ;;  %v2825_v5 = vrot.slane %v2823_v43, 7  ;;  %v2834_v52 = vrot.slane %v2832_v31, 7  ;;  %10432 = vst [vmem:[#allocation5_spill] sm:$0xff] %v9238_v0  ;;  %v7979_v14 = vld [vmem:[%s10320_s2] ss:$0 sm:$0xff] }
  0xfd   : > { %v6726_v50 = vcombine.low %v9188_v23, %v9198_v18  ;;  %7586 = vmatprep.mubr.bf16.mxu1 %v6684_v33  ;;  %v2807_v16 = vsel %vm8440_vm8, %v6653_v3, %v2806_v45  ;;  %v307_v41 = vsel %vm8398_vm4, 0, %v306_v58  ;;  %v7074_v60 = vunpack.c.l.bf16 %v7170_v8  ;;  %v4292_v3 = vld [vmem:[#allocation2 + $0x20] sm:$0x8] }
  0xfe   : > { %v2816_v4 = vsel %vm8440_vm8, %v2808_v62, %v2815_v35  ;;  %7631 = vmatmul.mubr.bf16.gmra.mxu0 %v6723_v15  ;;  %v2828_v49 = vor.u32 %v2826_v13, %v2825_v5  ;;  %v2830_v24 = vrot.slane %v2825_v5, 4  ;;  %v2837_v6 = vor.u32 %v2835_v29, %v2834_v52  ;;  %308 = vst [vmem:[#allocation2 + $0x100] sm:$0x8] %v307_v41  ;;  %v4294_v29 = vld [vmem:[#allocation2 + $0x28] sm:$0xf]  ;;  %v9245_v5 = vpop.f32.mrf.mxu1 }
  0xff   : > { %v6685_v39 = vcombine.low %v2807_v16, %v2816_v4  ;;  %7634 = vmatprep.mubr.bf16.mxu0 %v6724_v30  ;;  %v7075_v32 = vunpack.c.h.bf16 %v7170_v8  ;;  %v458_v36 = vmul.f32 %v7978_v20, %v7074_v60  ;;  %v3586_v17 = vshrl.u32 %v3537_v11, 16  ;;  %10433 = vst [vmem:[#allocation9_spill] sm:$0xff] %v9245_v5 }
 0x100   : > { %v3589_v42 = vshll.u32 %v3537_v11, 16  ;;  %v2829_v55 = vsel %vm8440_vm8, %v6654_v25, %v2828_v49  ;;  %v2838_v53 = vsel %vm8440_vm8, %v2830_v24, %v2837_v6  ;;  %v3595_v15 = vshll.u32 %v3538_v54, 16  ;;  %v3540_v25 = vld [vmem:[#allocation2 + $0x24] sm:$0xf]  ;;  %v3541_v49 = vld [vmem:[#allocation2 + $0x28] sm:$0xf]  ;;  %v9250_v24 = vpop.f32.mrf.mxu0 }
 0x101   : > { %v3599_v56 = vshrl.u32 %v3538_v54, 16  ;;  %v6686_v30 = vcombine.low %v2829_v55, %v2838_v53  ;;  %v459_v48 = vmul.f32 %v7978_v20, %v7075_v32  ;;  %v497_v40 = vadd.f32 %v7979_v14, %v458_v36  ;;  %v4296_v53 = vld [vmem:[#allocation2 + $0x34] sm:$0xf] }
 0x102   : > { %v3588_v10 = vrot.slane %v3586_v17, 4  ;;  %v3591_v47 = vrot.slane %v3589_v42, 5  ;;  %v3597_v57 = vrot.slane %v3595_v15, 5  ;;  %v3605_v43 = vshll.u32 %v3539_v44, 16  ;;  %v3542_v17 = vld [vmem:[#allocation2 + $0x2c] sm:$0x1]  ;;  %v9261_v15 = vpop.f32.mrf.mxu1 }
 0x103   : > { %v3601_v19 = vrot.slane %v3599_v56, 4  ;;  %7587 = vmatmul.mubr.bf16.gmra.mxu1 %v6685_v39  ;;  %v498_v13 = vadd.f32 %v7979_v14, %v459_v48  ;;  %v529_v31 = vmax.f32 %v497_v40, 0.0  ;;  %v4341_v58 = vshrl.u32 %v4292_v3, 16  ;;  %v4295_v42 = vld [vmem:[#allocation2 + $0x30] sm:$0x8]  ;;  %10434 = vst [vmem:[#allocation7_spill] sm:$0xff] %v9261_v15  ;;  %v9267_v14 = vpop.f32.mrf.mxu0 }
 0x104   : > { %v4346_v8 = vshrl.u32 %v4293_v22, 16  ;;  %7590 = vmatprep.mubr.bf16.mxu1 %v6686_v30  ;;  %v3592_v33 = vor.u32 %v3591_v47, %v3588_v10  ;;  %v3607_v62 = vrot.slane %v3605_v43, 5  ;;  %v4349_v35 = vshll.u32 %v4293_v22, 16  ;;  %v4297_v47 = vld [vmem:[#allocation2 + $0x38] sm:$0xf] }
 0x105   : > { %v3602_v45 = vor.u32 %v3601_v19, %v3597_v57  ;;  %v530_v52 = vmax.f32 %v498_v13, 0.0  ;;  %v6978_v11 = vpack.c.bf16 %v529_v31, %v529_v31  ;;  %v2506_v16 = vld [vmem:[#allocation2 + $0x100] sm:$0x8]  ;;  %v6776_v4 = vrot.slane %v4341_v58, 11  ;;  %v9271_v58 = vpop.f32.mrf.mxu1  ;;  %v4317_v15 = vld [vmem:[#allocation2 + $0xa4] sm:$0xf] }
 0x106   : > { %v4348_v41 = vrot.slane %v4346_v8, 7  ;;  %7635 = vmatmul.mubr.bf16.gmra.mxu0 %v6725_v63  ;;  %v2840_v60 = vshrl.u32 %v2506_v16, 16  ;;  %v3593_v54 = vrot.slane %v3592_v33, 4  ;;  %v4355_v39 = vshrl.u32 %v4294_v29, 16  ;;  %10435 = vst [vmem:[#allocation10_spill] sm:$0xff] %v9271_v58 }
 0x107   : > { %v3603_v44 = vrot.slane %v3602_v45, 4  ;;  %7638 = vmatprep.mubr.bf16.mxu0 %v6726_v50  ;;  %v6979_v6 = vpack.c.bf16 %v530_v52, %v530_v52  ;;  %689 = vst [vmem:[#allocation2 + $0x104] sm:$0xf] %v6978_v11  ;;  %v4358_v36 = vshll.u32 %v4294_v29, 16  ;;  %v3610_v50 = vshrl.u32 %v3540_v25, 16 }
 0x108   : > { %v4351_v32 = vor.u32 %v4349_v35, %v4348_v41  ;;  %v4353_v20 = vrot.slane %v4348_v41, 4  ;;  %v9255_v46 = vrot.slane %v2840_v60, 11  ;;  %v3598_v1 = vsel %vm8481_vm10, %v3593_v54, %v3597_v57  ;;  %v3543_v35 = vld [vmem:[#allocation2 + $0x34] sm:$0xf]  ;;  %v9273_v41 = vpop.f32.mrf.mxu0  ;;  %v4315_v58 = vld [vmem:[#allocation2 + $0x98] sm:$0xf] }
 0x109   : > { %v3608_v63 = vsel %vm8481_vm10, %v3603_v44, %v3607_v62  ;;  %v4357_v55 = vrot.slane %v4355_v39, 7  ;;  %690 = vst [vmem:[#allocation2 + $0x108] sm:$0xf] %v6979_v6  ;;  %v3613_v56 = vshll.u32 %v3540_v25, 16  ;;  %v3619_v22 = vshll.u32 %v3541_v49, 16 }
 0x10a   : > { %v9263_v23 = vcombine.low %v3598_v1, %v3608_v63  ;;  %v4352_v18 = vsel %vm8440_vm8, %v6776_v4, %v4351_v32  ;;  %v3623_v30 = vshrl.u32 %v3541_v49, 16  ;;  %v3629_v48 = vshll.u32 %v3542_v17, 16  ;;  %v9275_v17 = vpop.f32.mrf.mxu1 }
 0x10b   : > { %v4360_v3 = vor.u32 %v4358_v36, %v4357_v55  ;;  %v3612_v40 = vrot.slane %v3610_v50, 4  ;;  %v3615_v10 = vrot.slane %v3613_v56, 5  ;;  %v4363_v57 = vshrl.u32 %v4295_v42, 16  ;;  %10436 = vst [vmem:[#allocation8_spill] sm:$0xff] %v9275_v17 }
 0x10c   : > { %v4368_v19 = vshrl.u32 %v4296_v53, 16  ;;  %v3621_v13 = vrot.slane %v3619_v22, 5  ;;  %v3625_v31 = vrot.slane %v3623_v30, 4  ;;  %v3631_v29 = vrot.slane %v3629_v48, 5  ;;  %v3545_v22 = vld [vmem:[#allocation2 + $0x3c] sm:$0x1]  ;;  %v9283_v30 = vpop.f32.mrf.mxu0 }
 0x10d   : > { %v4361_v43 = vsel %vm8440_vm8, %v4353_v20, %v4360_v3  ;;  %v3616_v33 = vor.u32 %v3615_v10, %v3612_v40  ;;  %v6777_v45 = vrot.slane %v4363_v57, 11  ;;  %v4371_v11 = vshll.u32 %v4296_v53, 16  ;;  %v3544_v53 = vld [vmem:[#allocation2 + $0x38] sm:$0xf]  ;;  %v4298_v57 = vld [vmem:[#allocation2 + $0x40] sm:$0x8] }
 0x10e   : > { %v6808_v8 = vcombine.low %v4352_v18, %v4361_v43  ;;  %v4370_v62 = vrot.slane %v4368_v19, 7  ;;  %v2507_v25 = vld [vmem:[#allocation2 + $0x104] sm:$0xf]  ;;  %v3626_v52 = vor.u32 %v3625_v31, %v3621_v13  ;;  %v4377_v16 = vshrl.u32 %v4297_v47, 16 }
 0x10f   : > { %v4380_v4 = vshll.u32 %v4297_v47, 16  ;;  %v2845_v60 = vshrl.u32 %v2507_v25, 16  ;;  %v2848_v54 = vshll.u32 %v2507_v25, 16  ;;  %v3617_v44 = vrot.slane %v3616_v33, 4  ;;  %v4299_v19 = vld [vmem:[#allocation2 + $0x44] sm:$0xf] }
 0x110   : > { %v4375_v39 = vrot.slane %v4370_v62, 4  ;;  %v2508_v49 = vld [vmem:[#allocation2 + $0x108] sm:$0xf]  ;;  %v3627_v6 = vrot.slane %v3626_v52, 4  ;;  %v4373_v32 = vor.u32 %v4371_v11, %v4370_v62  ;;  %v4379_v20 = vrot.slane %v4377_v16, 7 }
 0x111   : > { %v3634_v36 = vshrl.u32 %v3543_v35, 16  ;;  %v2847_v42 = vrot.slane %v2845_v60, 7  ;;  %v2854_v1 = vshrl.u32 %v2508_v49, 16  ;;  %v2857_v63 = vshll.u32 %v2508_v49, 16  ;;  %v4300_v33 = vld [vmem:[#allocation2 + $0x48] sm:$0xf] }
 0x112   : > { %v6727_v55 = vcombine.low %v2507_v25, %v2508_v49  ;;  %v3622_v18 = vsel %vm8481_vm10, %v3617_v44, %v3621_v13  ;;  %v3632_v50 = vsel %vm8481_vm10, %v3627_v6, %v3631_v29  ;;  %v4374_v56 = vsel %vm8440_vm8, %v6777_v45, %v4373_v32  ;;  %v9289_v45 = vpop.f32.mrf.mxu1  ;;  %v3546_v16 = vld [vmem:[#allocation2 + $0x44] sm:$0xf] }
 0x113   : > { %v4382_v3 = vor.u32 %v4380_v4, %v4379_v20  ;;  %v2850_v48 = vor.u32 %v2848_v54, %v2847_v42  ;;  %v2852_v40 = vrot.slane %v2847_v42, 4  ;;  %v2856_v10 = vrot.slane %v2854_v1, 7  ;;  %10437 = vst [vmem:[#allocation13_spill] sm:$0xff] %v9289_v45  ;;  %v3547_v4 = vld [vmem:[#allocation2 + $0x48] sm:$0xf] }
 0x114   : > { %7639 = vmatmul.mubr.bf16.gmra.mxu0 %v6727_v55  ;;  %v9285_v47 = vcombine.low %v3622_v18, %v3632_v50  ;;  %v3636_v13 = vrot.slane %v3634_v36, 4  ;;  %v3637_v31 = vshll.u32 %v3543_v35, 16  ;;  %v3643_v29 = vshll.u32 %v3544_v53, 16  ;;  %v9298_v1 = vpop.f32.mrf.mxu1  ;;  %v7950_v50 = vld [vmem:[%s10321_s3 + $0x230] sm:$0xff]  }
 0x115   : > { %7706 = vmatprep.mubr.bf16.mxu0 %v6808_v8  ;;  %v4383_v43 = vsel %vm8440_vm8, %v4375_v39, %v4382_v3  ;;  %v2851_v62 = vsel %vm8440_vm8, %v9255_v46, %v2850_v48  ;;  %v2859_v25 = vor.u32 %v2857_v63, %v2856_v10  ;;  %v3647_v11 = vshrl.u32 %v3544_v53, 16  ;;  %v9294_v39 = vpop.f32.mrf.mxu0  ;;  %10438 = vst [vmem:[#allocation11_spill] sm:$0xff] %v9298_v1  ;;  %v3548_v3 = vld [vmem:[#allocation2 + $0x4c] sm:$0x1] }
 0x116   : > { %v6809_v52 = vcombine.low %v4374_v56, %v4383_v43  ;;  %v3639_v60 = vrot.slane %v3637_v31, 5  ;;  %v3645_v8 = vrot.slane %v3643_v29, 5  ;;  %v3653_v54 = vshll.u32 %v3545_v22, 16  ;;  %v4301_v31 = vld [vmem:[#allocation2 + $0x50] sm:$0x8] }
 0x117   : > { %v4385_v44 = vshrl.u32 %v4298_v57, 16  ;;  %v2860_v35 = vsel %vm8440_vm8, %v2852_v40, %v2859_v25  ;;  %v3649_v49 = vrot.slane %v3647_v11, 4  ;;  %v4390_v6 = vshrl.u32 %v4299_v19, 16  ;;  %v9303_v10 = vpop.f32.mrf.mxu0  ;;  %v4302_v11 = vld [vmem:[#allocation2 + $0x54] sm:$0xf] }
 0x118   : > { %v4393_v32 = vshll.u32 %v4299_v19, 16  ;;  %v6687_v20 = vcombine.low %v2851_v62, %v2860_v35  ;;  %v3640_v36 = vor.u32 %v3639_v60, %v3636_v13  ;;  %v3655_v46 = vrot.slane %v3653_v54, 5  ;;  %10439 = vst [vmem:[#allocation14_spill] sm:$0xff] %v9303_v10  ;;  %v3579_v10 = vld [vmem:[#allocation2 + $0xf4] sm:$0xf] }
 0x119   : > { %v6778_v42 = vrot.slane %v4385_v44, 11  ;;  %v3650_v63 = vor.u32 %v3649_v49, %v3645_v8  ;;  %v4392_v55 = vrot.slane %v4390_v6, 7  ;;  %v4399_v53 = vshrl.u32 %v4300_v33, 16  ;;  %v4303_v49 = vld [vmem:[#allocation2 + $0x58] sm:$0xf] }
 0x11a   : > { %v4402_v18 = vshll.u32 %v4300_v33, 16  ;;  %7591 = vmatmul.mubr.bf16.gmra.mxu1 %v6687_v20  ;;  %v3641_v56 = vrot.slane %v3640_v36, 4  ;;  %v3658_v22 = vshrl.u32 %v3546_v16, 16  ;;  %v3661_v48 = vshll.u32 %v3546_v16, 16  ;;  %v9311_v16 = vpop.f32.mrf.mxu1  ;;  %v9320_v20 = vpop.f32.mrf.mxu0 }
 0x11b   : > { %v3667_v40 = vshll.u32 %v3547_v4, 16  ;;  %7658 = vmatprep.mubr.bf16.mxu1 %v9263_v23  ;;  %v3651_v57 = vrot.slane %v3650_v63, 4  ;;  %v4395_v19 = vor.u32 %v4393_v32, %v4392_v55  ;;  %v4397_v43 = vrot.slane %v4392_v55, 4  ;;  %10440 = vst [vmem:[#allocation12_spill] sm:$0xff] %v9311_v16  ;;  %v3549_v32 = vld [vmem:[#allocation2 + $0x54] sm:$0xf] }
 0x11c   : > { %7707 = vmatmul.mubr.bf16.vlgmr.msra.gmra.mxu0 %v6809_v52  ;;  %v4401_v13 = vrot.slane %v4399_v53, 7  ;;  %v3646_v29 = vsel %vm8481_vm10, %v3641_v56, %v3645_v8  ;;  %v3660_v33 = vrot.slane %v3658_v22, 4  ;;  %v3663_v62 = vrot.slane %v3661_v48, 5  ;;  %10441 = vst [vmem:[#allocation18_spill] sm:$0xff] %v9320_v20  ;;  %v3551_v22 = vld [vmem:[#allocation2 + $0x5c] sm:$0x1]  ;;  %v9327_v48 = vpop.f32.mrf.mxu1 }
 0x11d   : > { %7787 = vmatpush3.bf16.msra.mxu0 %v9162_v28  ;;  %v9309_v25 = vrot.slane %v3667_v40, 5  ;;  %v3656_v23 = vsel %vm8481_vm10, %v3651_v57, %v3655_v46  ;;  %v4396_v52 = vsel %vm8440_vm8, %v6778_v42, %v4395_v19  ;;  %v3671_v54 = vshrl.u32 %v3547_v4, 16  ;;  %v7952_v28 = vld [vmem:[%s10321_s3 + $0x228] sm:$0xff]   ;;  %v3550_v4 = vld [vmem:[#allocation2 + $0x58] sm:$0xf]  ;;  %10442 = vst [vmem:[#allocation15_spill] sm:$0xff] %v9327_v48 }
 0x11e   : > { %v4404_v60 = vor.u32 %v4402_v18, %v4401_v13  ;;  %7788 = vmatprep.subr.bf16.mxu0 %v7950_v50  ;;  %v6754_v8 = vcombine.low %v3646_v29, %v3656_v23  ;;  %v3664_v44 = vor.u32 %v3663_v62, %v3660_v33  ;;  %v3677_v35 = vshll.u32 %v3548_v3, 16  ;;  %v7949_v3 = vld [vmem:[%s10321_s3 + $0x1f0] sm:$0xff]   ;;  %v4304_v13 = vld [vmem:[#allocation2 + $0x60] sm:$0x8]  ;;  %v9337_v23 = vpop.f32.mrf.mxu0 }
 0x11f   : > { %v4407_v6 = vshrl.u32 %v4301_v31, 16  ;;  %v3673_v46 = vrot.slane %v3671_v54, 4  ;;  %v4412_v42 = vshrl.u32 %v4302_v11, 16  ;;  %v4415_v63 = vshll.u32 %v4302_v11, 16  ;;  %v7954_v31 = vld [vmem:[%s10321_s3 + $0x220] sm:$0xff]   ;;  %10443 = vst [vmem:[#allocation19_spill] sm:$0xff] %v9337_v23 }
 0x120   : > { %v4405_v36 = vsel %vm8440_vm8, %v4397_v43, %v4404_v60  ;;  %v3665_v53 = vrot.slane %v3664_v44, 4  ;;  %v3679_v18 = vrot.slane %v3677_v35, 5  ;;  %v4421_v19 = vshrl.u32 %v4303_v49, 16  ;;  %v4305_v11 = vld [vmem:[#allocation2 + $0x64] sm:$0xf] }
 0x121   : > { %v6810_v55 = vcombine.low %v4396_v52, %v4405_v36  ;;  %v6779_v56 = vrot.slane %v4407_v6, 11  ;;  %7789 = vmatpush3.bf16.msra.mxu0 %v7950_v50  ;;  %v3674_v40 = vor.u32 %v3673_v46, %v9309_v25  ;;  %v4414_v57 = vrot.slane %v4412_v42, 7  ;;  %v9347_v36 = vpop.f32.mrf.mxu0 }
 0x122   : > { %v4424_v43 = vshll.u32 %v4303_v49, 16  ;;  %7790 = vmatprep.subr.bf16.mxu0 %v7952_v28  ;;  %7659 = vmatmul.mubr.bf16.vlgmr.msra.gmra.mxu1 %v9285_v47  ;;  %v3670_v50 = vsel %vm8481_vm10, %v3665_v53, %v9309_v25  ;;  %v3682_v29 = vshrl.u32 %v3549_v32, 16  ;;  %v3685_v33 = vshll.u32 %v3549_v32, 16  ;;  %v7951_v47 = vld [vmem:[%s10321_s3 + $0x1e8] sm:$0xff]   ;;  %v9345_v32 = vpop.f32.mrf.mxu1  ;;  %10445 = vst [vmem:[#allocation22_spill] sm:$0xff] %v9347_v36 }
 0x123   : > { %7710 = vmatprep.mubr.bf16.mxu0 %v6810_v55  ;;  %v3691_v62 = vshll.u32 %v3550_v4, 16  ;;  %7739 = vmatpush3.bf16.msra.mxu1 %v9139_v61  ;;  %v3675_v52 = vrot.slane %v3674_v40, 4  ;;  %v4417_v60 = vor.u32 %v4415_v63, %v4414_v57  ;;  %v4419_v54 = vrot.slane %v4414_v57, 4  ;;  %10444 = vst [vmem:[#allocation16_spill] sm:$0xff] %v9345_v32  ;;  %v7956_v63 = vld [vmem:[%s10321_s3 + $0x218] sm:$0xff]  }
 0x124   : > { %7662 = vmatprep.mubr.bf16.mxu1 %v6754_v8  ;;  %v4423_v44 = vrot.slane %v4421_v19, 7  ;;  %7740 = vmatprep.subr.bf16.mxu1 %v7949_v3  ;;  %v3684_v35 = vrot.slane %v3682_v29, 4  ;;  %v3687_v25 = vrot.slane %v3685_v33, 5  ;;  %v3695_v6 = vshrl.u32 %v3550_v4, 16  ;;  %v4306_v53 = vld [vmem:[#allocation2 + $0x68] sm:$0xf]  ;;  %v9356_v19 = vpop.f32.mrf.mxu1  ;;  %v9360_v33 = vpop.f32.mrf.mxu0 }
 0x125   : > { %v9343_v49 = vrot.slane %v3691_v62, 5  ;;  %7791 = vmatpush3.bf16.msra.mxu0 %v7952_v28  ;;  %v3680_v61 = vsel %vm8481_vm10, %v3675_v52, %v3679_v18  ;;  %v4418_v8 = vsel %vm8440_vm8, %v6779_v56, %v4417_v60  ;;  %v3701_v42 = vshll.u32 %v3551_v22, 16  ;;  %v3552_v57 = vld [vmem:[#allocation2 + $0x64] sm:$0xf]  ;;  %10446 = vst [vmem:[#allocation20_spill] sm:$0xff] %v9356_v19  ;;  %10447 = vst [vmem:[#allocation23_spill] sm:$0xff] %v9360_v33 }
 0x126   : > { %v4426_v46 = vor.u32 %v4424_v43, %v4423_v44  ;;  %7792 = vmatprep.subr.bf16.mxu0 %v7954_v31  ;;  %v6755_v55 = vcombine.low %v3670_v50, %v3680_v61  ;;  %v3688_v4 = vor.u32 %v3687_v25, %v3684_v35  ;;  %v3697_v28 = vrot.slane %v3695_v6, 4  ;;  %v3553_v29 = vld [vmem:[#allocation2 + $0x68] sm:$0xf]  ;;  %v3554_v44 = vld [vmem:[#allocation2 + $0x6c] sm:$0x1]  ;;  %v7958_v6 = vld [vmem:[%s10321_s3 + $0x210] sm:$0xff]  }
 0x127   : > { %v4429_v40 = vshrl.u32 %v4304_v13, 16  ;;  %7741 = vmatpush3.bf16.msra.mxu1 %v7949_v3  ;;  %v3703_v56 = vrot.slane %v3701_v42, 5  ;;  %v4434_v43 = vshrl.u32 %v4305_v11, 16  ;;  %v4437_v22 = vshll.u32 %v4305_v11, 16  ;;  %v7953_v13 = vld [vmem:[%s10321_s3 + $0x1e0] sm:$0xff]  }
 0x128   : > { %v4427_v18 = vsel %vm8440_vm8, %v4419_v54, %v4426_v46  ;;  %v3689_v52 = vrot.slane %v3688_v4, 4  ;;  %v3698_v50 = vor.u32 %v3697_v28, %v9343_v49  ;;  %7742 = vmatprep.subr.bf16.mxu1 %v7951_v47  ;;  %v9366_v54 = vpop.f32.mrf.mxu1  ;;  %v4443_v35 = vshrl.u32 %v4306_v53, 16  ;;  %v4307_v42 = vld [vmem:[#allocation2 + $0x70] sm:$0x8]  ;;  %v4311_v32 = vld [vmem:[#allocation2 + $0x84] sm:$0xf] }
 0x129   : > { %v6811_v62 = vcombine.low %v4418_v8, %v4427_v18  ;;  %v6780_v60 = vrot.slane %v4429_v40, 11  ;;  %7793 = vmatpush3.bf16.msra.mxu0 %v7954_v31  ;;  %10448 = vst [vmem:[#allocation21_spill] sm:$0xff] %v9366_v54  ;;  %v4436_v3 = vrot.slane %v4434_v43, 7  ;;  %v4446_v11 = vshll.u32 %v4306_v53, 16  ;;  %v4308_v43 = vld [vmem:[#allocation2 + $0x74] sm:$0xf]  ;;  %v9376_v54 = vpop.f32.mrf.mxu0 }
 0x12a   : > { %v3706_v25 = vshrl.u32 %v3552_v57, 16  ;;  %7794 = vmatprep.subr.bf16.mxu0 %v7956_v63  ;;  %7663 = vmatmul.mubr.bf16.gmra.mxu1 %v6755_v55  ;;  %v3694_v61 = vsel %vm8481_vm10, %v3689_v52, %v9343_v49  ;;  %v3699_v8 = vrot.slane %v3698_v50, 4  ;;  %v3709_v46 = vshll.u32 %v3552_v57, 16  ;;  %v9374_v4 = vpop.f32.mrf.mxu1  ;;  %10450 = vst [vmem:[#allocation24_spill] sm:$0xff] %v9376_v54  ;;  %v4309_v57 = vld [vmem:[#allocation2 + $0x78] sm:$0xf] }
 0x12b   : > { %7711 = vmatmul.mubr.bf16.gmra.mxu0 %v6811_v62  ;;  %v3715_v31 = vshll.u32 %v3553_v29, 16  ;;  %10449 = vst [vmem:[#allocation26_spill] sm:$0xff] %v9374_v4  ;;  %v4439_v28 = vor.u32 %v4437_v22, %v4436_v3  ;;  %v4441_v53 = vrot.slane %v4436_v3, 4  ;;  %v4445_v40 = vrot.slane %v4443_v35, 7  ;;  %7743 = vmatpush3.bf16.msra.mxu1 %v7951_v47  ;;  %v7955_v22 = vld [vmem:[%s10321_s3 + $0x1d8] sm:$0xff]  }
 0x12c   : > { %v3708_v18 = vrot.slane %v3706_v25, 4  ;;  %v3704_v55 = vsel %vm8481_vm10, %v3699_v8, %v3703_v56  ;;  %v3711_v62 = vrot.slane %v3709_v46, 5  ;;  %v3719_v49 = vshrl.u32 %v3553_v29, 16  ;;  %7744 = vmatprep.subr.bf16.mxu1 %v7953_v13  ;;  %v7960_v56 = vld [vmem:[%s10321_s3 + $0x208] sm:$0xff]   ;;  %v9390_v35 = vpop.f32.mrf.mxu1  ;;  %v4321_v33 = vld [vmem:[#allocation2 + $0xb8] sm:$0xf] }
 0x12d   : > { %v9380_v19 = vrot.slane %v3715_v31, 5  ;;  %7795 = vmatpush3.bf16.msra.mxu0 %v7956_v63  ;;  %v6756_v52 = vcombine.low %v3694_v61, %v3704_v55  ;;  %v4440_v47 = vsel %vm8440_vm8, %v6780_v60, %v4439_v28  ;;  %v4448_v50 = vor.u32 %v4446_v11, %v4445_v40  ;;  %v3555_v31 = vld [vmem:[#allocation2 + $0x74] sm:$0xf]  ;;  %v9394_v28 = vpop.f32.mrf.mxu0 }
 0x12e   : > { %v3725_v3 = vshll.u32 %v3554_v44, 16  ;;  %7796 = vmatprep.subr.bf16.mxu0 %v7958_v6  ;;  %v3712_v29 = vor.u32 %v3711_v62, %v3708_v18  ;;  %v3721_v25 = vrot.slane %v3719_v49, 4  ;;  %v4451_v8 = vshrl.u32 %v4307_v42, 16  ;;  %v3556_v44 = vld [vmem:[#allocation2 + $0x78] sm:$0xf]  ;;  %v7957_v42 = vld [vmem:[%s10321_s3 + $0x1d0] sm:$0xff]   ;;  %v9400_v62 = vpop.f32.mrf.mxu1 }
 0x12f   : > { %v4456_v46 = vshrl.u32 %v4308_v43, 16  ;;  %7666 = vmatprep.mubr.bf16.mxu1 %v6756_v52  ;;  %v4449_v63 = vsel %vm8440_vm8, %v4441_v53, %v4448_v50  ;;  %v4459_v60 = vshll.u32 %v4308_v43, 16  ;;  %v4465_v11 = vshrl.u32 %v4309_v57, 16  ;;  %7745 = vmatpush3.bf16.msra.mxu1 %v7953_v13  ;;  %v7962_v13 = vld [vmem:[%s10321_s3 + $0x200] sm:$0xff]  }
 0x130   : > { %v3727_v61 = vrot.slane %v3725_v3, 5  ;;  %v6812_v40 = vcombine.low %v4440_v47, %v4449_v63  ;;  %v3713_v55 = vrot.slane %v3712_v29, 4  ;;  %v3722_v4 = vor.u32 %v3721_v25, %v9380_v19  ;;  %7746 = vmatprep.subr.bf16.mxu1 %v7955_v22  ;;  %v3557_v3 = vld [vmem:[#allocation2 + $0x7c] sm:$0x1]  ;;  %v9408_v25 = vpop.f32.mrf.mxu0 }
 0x131   : > { %v6781_v18 = vrot.slane %v4451_v8, 11  ;;  %7797 = vmatpush3.bf16.msra.mxu0 %v7958_v6  ;;  %v4458_v53 = vrot.slane %v4456_v46, 7  ;;  %v4467_v43 = vrot.slane %v4465_v11, 7  ;;  %v4468_v49 = vshll.u32 %v4309_v57, 16  ;;  %v4310_v11 = vld [vmem:[#allocation2 + $0x80] sm:$0x8] }
 0x132   : > { %v3730_v52 = vshrl.u32 %v3555_v31, 16  ;;  %7798 = vmatprep.subr.bf16.mxu0 %v7960_v56  ;;  %7714 = vmatprep.mubr.bf16.mxu0 %v6812_v40  ;;  %v3718_v47 = vsel %vm8481_vm10, %v3713_v55, %v9380_v19  ;;  %v3723_v50 = vrot.slane %v3722_v4, 4  ;;  %v3733_v29 = vshll.u32 %v3555_v31, 16  ;;  %v4312_v19 = vld [vmem:[#allocation2 + $0x88] sm:$0xf]  ;;  %v9412_v4 = vpop.f32.mrf.mxu1 }
 0x133   : > { %v3739_v6 = vshll.u32 %v3556_v44, 16  ;;  %v4461_v8 = vor.u32 %v4459_v60, %v4458_v53  ;;  %v4463_v46 = vrot.slane %v4458_v53, 4  ;;  %v4470_v57 = vor.u32 %v4468_v49, %v4467_v43  ;;  %7747 = vmatpush3.bf16.msra.mxu1 %v7955_v22  ;;  %v7959_v22 = vld [vmem:[%s10321_s3 + $0x1c8] sm:$0xff]  }
 0x134   : > { %v3732_v63 = vrot.slane %v3730_v52, 4  ;;  %v3728_v40 = vsel %vm8481_vm10, %v3723_v50, %v3727_v61  ;;  %v3735_v48 = vrot.slane %v3733_v29, 5  ;;  %v3743_v1 = vshrl.u32 %v3556_v44, 16  ;;  %7748 = vmatprep.subr.bf16.mxu1 %v7957_v42  ;;  %v9421_v52 = vpop.f32.mrf.mxu0 }
 0x135   : > { %v3741_v16 = vrot.slane %v3739_v6, 5  ;;  %7799 = vmatpush3.bf16.msra.mxu0 %v7960_v56  ;;  %v6757_v31 = vcombine.low %v3718_v47, %v3728_v40  ;;  %v4462_v60 = vsel %vm8440_vm8, %v6781_v18, %v4461_v8  ;;  %v4471_v55 = vsel %vm8440_vm8, %v4463_v46, %v4470_v57  ;;  %v3558_v56 = vld [vmem:[#allocation2 + $0x84] sm:$0xf]  ;;  %v3559_v6 = vld [vmem:[#allocation2 + $0x88] sm:$0xf]  ;;  %v9423_v40 = vpop.f32.mrf.mxu1 }
 0x136   : > { %v3749_v53 = vshll.u32 %v3557_v3, 16  ;;  %7800 = vmatprep.subr.bf16.mxu0 %v7962_v13  ;;  %v6813_v61 = vcombine.low %v4462_v60, %v4471_v55  ;;  %v3736_v44 = vor.u32 %v3735_v48, %v3732_v63  ;;  %v3745_v43 = vrot.slane %v3743_v1, 4  ;;  %v3560_v55 = vld [vmem:[#allocation2 + $0x8c] sm:$0x1] }
 0x137   : > { %v4473_v49 = vshrl.u32 %v4310_v11, 16  ;;  %7667 = vmatmul.mubr.bf16.gmra.mxu1 %v6757_v31  ;;  %v4478_v50 = vshrl.u32 %v4311_v32, 16  ;;  %v4481_v18 = vshll.u32 %v4311_v32, 16  ;;  %v4487_v29 = vshrl.u32 %v4312_v19, 16  ;;  %v7961_v31 = vld [vmem:[%s10321_s3 + $0x1c0] sm:$0xff]  }
 0x138   : > { %v3751_v47 = vrot.slane %v3749_v53, 5  ;;  %7715 = vmatmul.mubr.bf16.gmra.mxu0 %v6813_v61  ;;  %v3737_v3 = vrot.slane %v3736_v44, 4  ;;  %v3746_v8 = vor.u32 %v3745_v43, %v3741_v16  ;;  %v4490_v57 = vshll.u32 %v4312_v19, 16  ;;  %7749 = vmatpush3.bf16.msra.mxu1 %v7957_v42  ;;  %v9430_v42 = vpop.f32.mrf.mxu0 }
 0x139   : > { %v6782_v46 = vrot.slane %v4473_v49, 11  ;;  %v4480_v48 = vrot.slane %v4478_v50, 7  ;;  %v4489_v1 = vrot.slane %v4487_v29, 7  ;;  %v3754_v63 = vshrl.u32 %v3558_v56, 16  ;;  %7750 = vmatprep.subr.bf16.mxu1 %v7959_v22  ;;  %7801 = vmatpush3.bf16.msra.mxu0 %v7962_v13  ;;  %v4314_v50 = vld [vmem:[#allocation2 + $0x94] sm:$0xf] }
 0x13a   : > { %v3757_v11 = vshll.u32 %v3558_v56, 16  ;;  %v3742_v32 = vsel %vm8481_vm10, %v3737_v3, %v3741_v16  ;;  %v3747_v60 = vrot.slane %v3746_v8, 4  ;;  %v3763_v53 = vshll.u32 %v3559_v6, 16  ;;  %v4313_v56 = vld [vmem:[#allocation2 + $0x90] sm:$0x8]  ;;  %v9434_v16 = vpop.f32.mrf.mxu1 }
 0x13b   : > { %v3767_v19 = vshrl.u32 %v3559_v6, 16  ;;  %v4483_v61 = vor.u32 %v4481_v18, %v4480_v48  ;;  %v4485_v44 = vrot.slane %v4480_v48, 4  ;;  %v4492_v43 = vor.u32 %v4490_v57, %v4489_v1 }
 0x13c   : > { %v3756_v49 = vrot.slane %v3754_v63, 4  ;;  %v3752_v29 = vsel %vm8481_vm10, %v3747_v60, %v3751_v47  ;;  %v3759_v45 = vrot.slane %v3757_v11, 5  ;;  %v3765_v13 = vrot.slane %v3763_v53, 5  ;;  %7751 = vmatpush3.bf16.msra.mxu1 %v7959_v22  ;;  %v3561_v63 = vld [vmem:[#allocation2 + $0x94] sm:$0xf]  ;;  %v9440_v11 = vpop.f32.mrf.mxu0  ;;  %v9442_v60 = vpop.f32.mrf.mxu1 }
 0x13d   : > { %v3769_v17 = vrot.slane %v3767_v19, 4  ;;  %v6758_v3 = vcombine.low %v3742_v32, %v3752_v29  ;;  %v4484_v6 = vsel %vm8440_vm8, %v6782_v46, %v4483_v61  ;;  %v4493_v18 = vsel %vm8440_vm8, %v4485_v44, %v4492_v43  ;;  %7752 = vmatprep.subr.bf16.mxu1 %v7961_v31  ;;  %v3562_v46 = vld [vmem:[#allocation2 + $0x98] sm:$0xf] }
 0x13e   : > { %v3773_v8 = vshll.u32 %v3560_v55, 16  ;;  %v6814_v57 = vcombine.low %v4484_v6, %v4493_v18  ;;  %v3760_v48 = vor.u32 %v3759_v45, %v3756_v49  ;;  %v4495_v47 = vshrl.u32 %v4313_v56, 16  ;;  %v9444_v45 = vpop.f32.mrf.mxu0  ;;  %v3563_v18 = vld [vmem:[#allocation2 + $0x9c] sm:$0x1] }
 0x13f   : > { %v3770_v1 = vor.u32 %v3769_v17, %v3765_v13  ;;  %7670 = vmatprep.mubr.bf16.mxu1 %v6758_v3  ;;  %v4500_v32 = vshrl.u32 %v4314_v50, 16  ;;  %v4503_v53 = vshll.u32 %v4314_v50, 16  ;;  %v4509_v19 = vshrl.u32 %v4315_v58, 16  ;;  %v9446_v17 = vpop.f32.mrf.mxu1 }
 0x140   : > { %v3775_v22 = vrot.slane %v3773_v8, 5  ;;  %7718 = vmatprep.mubr.bf16.mxu0 %v6814_v57  ;;  %v3761_v61 = vrot.slane %v3760_v48, 4  ;;  %v6783_v55 = vrot.slane %v4495_v47, 11  ;;  %v4512_v43 = vshll.u32 %v4315_v58, 16  ;;  %7753 = vmatpush3.bf16.msra.mxu1 %v7961_v31  ;;  %v4316_v48 = vld [vmem:[#allocation2 + $0xa0] sm:$0x8]  ;;  %v9452_v5 = vpop.f32.mrf.mxu0 }
 0x141   : > { %v3771_v44 = vrot.slane %v3770_v1, 4  ;;  %v4502_v49 = vrot.slane %v4500_v32, 7  ;;  %v4511_v56 = vrot.slane %v4509_v19, 7  ;;  %v3778_v29 = vshrl.u32 %v3561_v63, 16 }
 0x142   : > { %v3781_v6 = vshll.u32 %v3561_v63, 16  ;;  %v3766_v3 = vsel %vm8481_vm10, %v3761_v61, %v3765_v13  ;;  %v3787_v8 = vshll.u32 %v3562_v46, 16  ;;  %v3791_v57 = vshrl.u32 %v3562_v46, 16  ;;  %v9454_v13 = vpop.f32.mrf.mxu1  ;;  %v9460_v27 = vpop.f32.mrf.mxu0 }
 0x143   : > { %v3776_v50 = vsel %vm8481_vm10, %v3771_v44, %v3775_v22  ;;  %v4505_v31 = vor.u32 %v4503_v53, %v4502_v49  ;;  %v4507_v1 = vrot.slane %v4502_v49, 4  ;;  %v4514_v47 = vor.u32 %v4512_v43, %v4511_v56 }
 0x144   : > { %v6759_v58 = vcombine.low %v3766_v3, %v3776_v50  ;;  %v3780_v32 = vrot.slane %v3778_v29, 4  ;;  %v3783_v19 = vrot.slane %v3781_v6, 5  ;;  %v3789_v63 = vrot.slane %v3787_v8, 5  ;;  %v3564_v29 = vld [vmem:[#allocation2 + $0xa4] sm:$0xf] }
 0x145   : > { %v3793_v0 = vrot.slane %v3791_v57, 4  ;;  %v4506_v22 = vsel %vm8440_vm8, %v6783_v55, %v4505_v31  ;;  %v4515_v46 = vsel %vm8440_vm8, %v4507_v1, %v4514_v47  ;;  %v3797_v53 = vshll.u32 %v3563_v18, 16  ;;  %v3565_v6 = vld [vmem:[#allocation2 + $0xa8] sm:$0xf]  ;;  %v9462_v1 = vpop.f32.mrf.mxu1 }
 0x146   : > { %7671 = vmatmul.mubr.bf16.gmra.mxu1 %v6759_v58  ;;  %v4517_v61 = vshrl.u32 %v4316_v48, 16  ;;  %v6815_v44 = vcombine.low %v4506_v22, %v4515_v46  ;;  %v3784_v43 = vor.u32 %v3783_v19, %v3780_v32  ;;  %v4522_v56 = vshrl.u32 %v4317_v15, 16  ;;  %v3566_v48 = vld [vmem:[#allocation2 + $0xac] sm:$0x1] }
 0x147   : > { %v3794_v49 = vor.u32 %v3793_v0, %v3789_v63  ;;  %v3799_v3 = vrot.slane %v3797_v53, 5  ;;  %v4525_v8 = vshll.u32 %v4317_v15, 16  ;;  %v4531_v57 = vshrl.u32 %v4318_v51, 16  ;;  %v4319_v53 = vld [vmem:[#allocation2 + $0xb0] sm:$0x8] }
 0x148   : > { %v6784_v50 = vrot.slane %v4517_v61, 11  ;;  %7719 = vmatmul.mubr.bf16.gmra.mxu0 %v6815_v44  ;;  %v3785_v58 = vrot.slane %v3784_v43, 4  ;;  %v4524_v31 = vrot.slane %v4522_v56, 7  ;;  %v4534_v37 = vshll.u32 %v4318_v51, 16  ;;  %v4320_v61 = vld [vmem:[#allocation2 + $0xb4] sm:$0xf]  ;;  %v9468_v56 = vpop.f32.mrf.mxu0 }
 0x149   : > { %v3795_v55 = vrot.slane %v3794_v49, 4  ;;  %v4533_v18 = vrot.slane %v4531_v57, 7  ;;  %v3802_v47 = vshrl.u32 %v3564_v29, 16  ;;  %v3805_v0 = vshll.u32 %v3564_v29, 16  ;;  %v9470_v57 = vpop.f32.mrf.mxu1 }
 0x14a   : > { %v3811_v32 = vshll.u32 %v3565_v6, 16  ;;  %v3790_v19 = vsel %vm8481_vm10, %v3785_v58, %v3789_v63  ;;  %v4527_v22 = vor.u32 %v4525_v8, %v4524_v31  ;;  %v4529_v46 = vrot.slane %v4524_v31, 4  ;;  %v3567_v31 = vld [vmem:[#allocation2 + $0xb4] sm:$0xf] }
 0x14b   : > { %v3800_v15 = vsel %vm8481_vm10, %v3795_v55, %v3799_v3  ;;  %v4536_v43 = vor.u32 %v4534_v37, %v4533_v18  ;;  %v3804_v51 = vrot.slane %v3802_v47, 4  ;;  %v3807_v49 = vrot.slane %v3805_v0, 5  ;;  %v9476_v18 = vpop.f32.mrf.mxu0 }
 0x14c   : > { %v6760_v44 = vcombine.low %v3790_v19, %v3800_v15  ;;  %v4528_v29 = vsel %vm8440_vm8, %v6784_v50, %v4527_v22  ;;  %v3813_v54 = vrot.slane %v3811_v32, 5  ;;  %v3815_v63 = vshrl.u32 %v3565_v6, 16  ;;  %10451 = vst [vmem:[#allocation27_spill] sm:$0xff] %v9476_v18  ;;  %v9478_v22 = vpop.f32.mrf.mxu1 }
 0x14d   : > { %v3821_v58 = vshll.u32 %v3566_v48, 16  ;;  %v4537_v3 = vsel %vm8440_vm8, %v4529_v46, %v4536_v43  ;;  %v3808_v8 = vor.u32 %v3807_v49, %v3804_v51  ;;  %v4539_v55 = vshrl.u32 %v4319_v53, 16  ;;  %v3568_v48 = vld [vmem:[#allocation2 + $0xb8] sm:$0xf]  ;;  %10452 = vst [vmem:[#allocation25_spill] sm:$0xff] %v9478_v22 }
 0x14e   : > { %7674 = vmatprep.mubr.bf16.mxu1 %v6760_v44  ;;  %v4544_v37 = vshrl.u32 %v4320_v61, 16  ;;  %v6816_v47 = vcombine.low %v4528_v29, %v4537_v3  ;;  %v3817_v0 = vrot.slane %v3815_v63, 4  ;;  %v4547_v15 = vshll.u32 %v4320_v61, 16  ;;  %v3569_v43 = vld [vmem:[#allocation2 + $0xbc] sm:$0x1]  ;;  %v9482_v3 = vpop.f32.mrf.mxu0  ;;  %v9486_v22 = vpop.f32.mrf.mxu1 }
 0x14f   : > { %v3823_v19 = vrot.slane %v3821_v58, 5  ;;  %v3809_v36 = vrot.slane %v3808_v8, 4  ;;  %v6785_v50 = vrot.slane %v4539_v55, 11  ;;  %v4553_v6 = vshrl.u32 %v4321_v33, 16  ;;  %v4322_v61 = vld [vmem:[#allocation2 + $0xc0] sm:$0x8] }
 0x150   : > { %v4546_v32 = vrot.slane %v4544_v37, 7  ;;  %7722 = vmatprep.mubr.bf16.mxu0 %v6816_v47  ;;  %v3818_v44 = vor.u32 %v3817_v0, %v3813_v54  ;;  %v4556_v46 = vshll.u32 %v4321_v33, 16  ;;  %v3826_v53 = vshrl.u32 %v3567_v31, 16  ;;  %10453 = vst [vmem:[#allocation28_spill] sm:$0xff] %v9482_v3  ;;  %10454 = vst [vmem:[#allocation29_spill] sm:$0xff] %v9486_v22 }
 0x151   : > { %v3829_v51 = vshll.u32 %v3567_v31, 16  ;;  %v3814_v49 = vsel %vm8481_vm10, %v3809_v36, %v3813_v54  ;;  %v4555_v58 = vrot.slane %v4553_v6, 7  ;;  %v3835_v23 = vshll.u32 %v3568_v48, 16  ;;  %v4323_v31 = vld [vmem:[#allocation2 + $0xc4] sm:$0xf] }
 0x152   : > { %v4549_v29 = vor.u32 %v4547_v15, %v4546_v32  ;;  %v4551_v63 = vrot.slane %v4546_v32, 4  ;;  %v3819_v8 = vrot.slane %v3818_v44, 4  ;;  %v3828_v55 = vrot.slane %v3826_v53, 4  ;;  %v4324_v32 = vld [vmem:[#allocation2 + $0xc8] sm:$0xf] }
 0x153   : > { %v3831_v37 = vrot.slane %v3829_v51, 5  ;;  %v4558_v33 = vor.u32 %v4556_v46, %v4555_v58  ;;  %v3839_v0 = vshrl.u32 %v3568_v48, 16  ;;  %v3845_v20 = vshll.u32 %v3569_v43, 16  ;;  %v9492_v46 = vpop.f32.mrf.mxu0  ;;  %v3571_v22 = vld [vmem:[#allocation2 + $0xc8] sm:$0xf] }
 0x154   : > { %v4550_v47 = vsel %vm8440_vm8, %v6785_v50, %v4549_v29  ;;  %v3824_v36 = vsel %vm8481_vm10, %v3819_v8, %v3823_v19  ;;  %v3837_v15 = vrot.slane %v3835_v23, 5  ;;  %v4561_v6 = vshrl.u32 %v4322_v61, 16  ;;  %v3570_v50 = vld [vmem:[#allocation2 + $0xc4] sm:$0xf]  ;;  %10455 = vst [vmem:[#allocation30_spill] sm:$0xff] %v9492_v46  ;;  %v9494_v61 = vpop.f32.mrf.mxu1 }
 0x155   : > { %v3832_v54 = vor.u32 %v3831_v37, %v3828_v55  ;;  %v6761_v44 = vcombine.low %v3814_v49, %v3824_v36  ;;  %v4559_v53 = vsel %vm8440_vm8, %v4551_v63, %v4558_v33  ;;  %v3841_v51 = vrot.slane %v3839_v0, 4  ;;  %10456 = vst [vmem:[#allocation31_spill] sm:$0xff] %v9494_v61  ;;  %v3572_v63 = vld [vmem:[#allocation2 + $0xcc] sm:$0x1]  ;;  %v4326_v61 = vld [vmem:[#allocation2 + $0xd4] sm:$0xf] }
 0x156   : > { %v3847_v3 = vrot.slane %v3845_v20, 5  ;;  %v6817_v48 = vcombine.low %v4550_v47, %v4559_v53  ;;  %v6786_v29 = vrot.slane %v4561_v6, 11  ;;  %v4566_v58 = vshrl.u32 %v4323_v31, 16  ;;  %v4325_v6 = vld [vmem:[#allocation2 + $0xd0] sm:$0x8] }
 0x157   : > { %v3833_v43 = vrot.slane %v3832_v54, 4  ;;  %7675 = vmatmul.mubr.bf16.gmra.mxu1 %v6761_v44  ;;  %v3842_v19 = vor.u32 %v3841_v51, %v3837_v15  ;;  %v4569_v8 = vshll.u32 %v4323_v31, 16  ;;  %v4575_v23 = vshrl.u32 %v4324_v32, 16  ;;  %v9498_v44 = vpop.f32.mrf.mxu0  ;;  %v9500_v31 = vpop.f32.mrf.mxu1 }
 0x158   : > { %v4578_v55 = vshll.u32 %v4324_v32, 16  ;;  %7723 = vmatmul.mubr.bf16.gmra.mxu0 %v6817_v48  ;;  %v4568_v20 = vrot.slane %v4566_v58, 7  ;;  %v3850_v37 = vshrl.u32 %v3570_v50, 16  ;;  %v3853_v33 = vshll.u32 %v3570_v50, 16  ;;  %10457 = vst [vmem:[#allocation32_spill] sm:$0xff] %v9498_v44  ;;  %10458 = vst [vmem:[#allocation33_spill] sm:$0xff] %v9500_v31 }
 0x159   : > { %v3838_v49 = vsel %vm8481_vm10, %v3833_v43, %v3837_v15  ;;  %v3843_v47 = vrot.slane %v3842_v19, 4  ;;  %v4577_v0 = vrot.slane %v4575_v23, 7  ;;  %v3859_v36 = vshll.u32 %v3571_v22, 16  ;;  %v9504_v19 = vpop.f32.mrf.mxu0  ;;  %v9506_v23 = vpop.f32.mrf.mxu1 }
 0x15a   : > { %v3863_v54 = vshrl.u32 %v3571_v22, 16  ;;  %v4571_v32 = vor.u32 %v4569_v8, %v4568_v20  ;;  %v4573_v53 = vrot.slane %v4568_v20, 4  ;;  %v3852_v51 = vrot.slane %v3850_v37, 4  ;;  %10459 = vst [vmem:[#allocation34_spill] sm:$0xff] %v9504_v19  ;;  %10460 = vst [vmem:[#allocation35_spill] sm:$0xff] %v9506_v23 }
 0x15b   : > { %v3855_v48 = vrot.slane %v3853_v33, 5  ;;  %v3848_v15 = vsel %vm8481_vm10, %v3843_v47, %v3847_v3  ;;  %v4580_v43 = vor.u32 %v4578_v55, %v4577_v0  ;;  %v3861_v58 = vrot.slane %v3859_v36, 5  ;;  %v4327_v20 = vld [vmem:[#allocation2 + $0xd8] sm:$0xf]  ;;  %v3573_v55 = vld [vmem:[#allocation2 + $0xd4] sm:$0xf]  ;;  %v9512_v47 = vpop.f32.mrf.mxu0 }
 0x15c   : > { %v3865_v50 = vrot.slane %v3863_v54, 4  ;;  %v6762_v22 = vcombine.low %v3838_v49, %v3848_v15  ;;  %v4572_v44 = vsel %vm8440_vm8, %v6786_v29, %v4571_v32  ;;  %v3869_v8 = vshll.u32 %v3572_v63, 16  ;;  %10461 = vst [vmem:[#allocation36_spill] sm:$0xff] %v9512_v47  ;;  %v3574_v63 = vld [vmem:[#allocation2 + $0xd8] sm:$0xf] }
 0x15d   : > { %v3856_v31 = vor.u32 %v3855_v48, %v3852_v51  ;;  %v4581_v37 = vsel %vm8440_vm8, %v4573_v53, %v4580_v43  ;;  %v4583_v46 = vshrl.u32 %v4325_v6, 16  ;;  %v4588_v3 = vshrl.u32 %v4326_v61, 16  ;;  %v9514_v51 = vpop.f32.mrf.mxu1  ;;  %v3575_v48 = vld [vmem:[#allocation2 + $0xdc] sm:$0x1] }
 0x15e   : > { %v3866_v33 = vor.u32 %v3865_v50, %v3861_v58  ;;  %7678 = vmatprep.mubr.bf16.mxu1 %v6762_v22  ;;  %v6818_v0 = vcombine.low %v4572_v44, %v4581_v37  ;;  %v3871_v54 = vrot.slane %v3869_v8, 5  ;;  %v4591_v49 = vshll.u32 %v4326_v61, 16  ;;  %10462 = vst [vmem:[#allocation37_spill] sm:$0xff] %v9514_v51  ;;  %v4329_v8 = vld [vmem:[#allocation2 + $0xe4] sm:$0xf]  ;;  %v9520_v37 = vpop.f32.mrf.mxu0 }
 0x15f   : > { %v3857_v36 = vrot.slane %v3856_v31, 4  ;;  %v6787_v23 = vrot.slane %v4583_v46, 11  ;;  %v4590_v29 = vrot.slane %v4588_v3, 7  ;;  %v4597_v32 = vshrl.u32 %v4327_v20, 16  ;;  %v4328_v46 = vld [vmem:[#allocation2 + $0xe0] sm:$0x8] }
 0x160   : > { %v3867_v15 = vrot.slane %v3866_v33, 4  ;;  %7726 = vmatprep.mubr.bf16.mxu0 %v6818_v0  ;;  %v4600_v53 = vshll.u32 %v4327_v20, 16  ;;  %v3874_v43 = vshrl.u32 %v3573_v55, 16  ;;  %v3877_v50 = vshll.u32 %v3573_v55, 16  ;;  %10463 = vst [vmem:[#allocation38_spill] sm:$0xff] %v9520_v37  ;;  %v9524_v19 = vpop.f32.mrf.mxu1 }
 0x161   : > { %v3862_v6 = vsel %vm8481_vm10, %v3857_v36, %v3861_v58  ;;  %v4593_v31 = vor.u32 %v4591_v49, %v4590_v29  ;;  %v4595_v61 = vrot.slane %v4590_v29, 4  ;;  %v4599_v22 = vrot.slane %v4597_v32, 7  ;;  %v4330_v51 = vld [vmem:[#allocation2 + $0xe8] sm:$0xf]  ;;  %10464 = vst [vmem:[#allocation39_spill] sm:$0xff] %v9524_v19 }
 0x162   : > { %v3872_v44 = vsel %vm8481_vm10, %v3867_v15, %v3871_v54  ;;  %v3876_v3 = vrot.slane %v3874_v43, 4  ;;  %v3879_v0 = vrot.slane %v3877_v50, 5  ;;  %v3883_v47 = vshll.u32 %v3574_v63, 16  ;;  %v3576_v32 = vld [vmem:[#allocation2 + $0xe4] sm:$0xf]  ;;  %v9528_v37 = vpop.f32.mrf.mxu0 }
 0x163   : > { %v6763_v33 = vcombine.low %v3862_v6, %v3872_v44  ;;  %v4594_v58 = vsel %vm8440_vm8, %v6787_v23, %v4593_v31  ;;  %v4602_v20 = vor.u32 %v4600_v53, %v4599_v22  ;;  %v3887_v36 = vshrl.u32 %v3574_v63, 16  ;;  %10465 = vst [vmem:[#allocation40_spill] sm:$0xff] %v9528_v37  ;;  %v9530_v23 = vpop.f32.mrf.mxu1  ;;  %v3577_v22 = vld [vmem:[#allocation2 + $0xe8] sm:$0xf]  ;;  %v4332_v19 = vld [vmem:[#allocation2 + $0xf4] sm:$0xf] }
 0x164   : > { %v3893_v55 = vshll.u32 %v3575_v48, 16  ;;  %v3880_v54 = vor.u32 %v3879_v0, %v3876_v3  ;;  %v3885_v49 = vrot.slane %v3883_v47, 5  ;;  %v4605_v15 = vshrl.u32 %v4328_v46, 16  ;;  %10466 = vst [vmem:[#allocation41_spill] sm:$0xff] %v9530_v23  ;;  %v3578_v3 = vld [vmem:[#allocation2 + $0xec] sm:$0x1]  ;;  %v9534_v37 = vpop.f32.mrf.mxu0 }
 0x165   : > { %7679 = vmatmul.mubr.bf16.gmra.mxu1 %v6763_v33  ;;  %v4610_v29 = vshrl.u32 %v4329_v8, 16  ;;  %v4603_v6 = vsel %vm8440_vm8, %v4595_v61, %v4602_v20  ;;  %v3889_v43 = vrot.slane %v3887_v36, 4  ;;  %v4613_v44 = vshll.u32 %v4329_v8, 16  ;;  %10467 = vst [vmem:[#allocation42_spill] sm:$0xff] %v9534_v37 }
 0x166   : > { %v3895_v50 = vrot.slane %v3893_v55, 5  ;;  %v6819_v63 = vcombine.low %v4594_v58, %v4603_v6  ;;  %v3881_v53 = vrot.slane %v3880_v54, 4  ;;  %v6788_v48 = vrot.slane %v4605_v15, 11  ;;  %v4331_v55 = vld [vmem:[#allocation2 + $0xf0] sm:$0x8]  ;;  %v9536_v6 = vpop.f32.mrf.mxu1 }
 0x167   : > { %v4612_v31 = vrot.slane %v4610_v29, 7  ;;  %v3890_v33 = vor.u32 %v3889_v43, %v3885_v49  ;;  %v4619_v47 = vshrl.u32 %v4330_v51, 16  ;;  %v4622_v46 = vshll.u32 %v4330_v51, 16  ;;  %10468 = vst [vmem:[#allocation43_spill] sm:$0xff] %v9536_v6  ;;  %v9542_v6 = vpop.f32.mrf.mxu0 }
 0x168   : > { %v3898_v0 = vshrl.u32 %v3576_v32, 16  ;;  %7727 = vmatmul.mubr.bf16.gmra.mxu0 %v6819_v63  ;;  %v3886_v61 = vsel %vm8481_vm10, %v3881_v53, %v3885_v49  ;;  %v3901_v36 = vshll.u32 %v3576_v32, 16  ;;  %v3907_v29 = vshll.u32 %v3577_v22, 16  ;;  %v4333_v53 = vld [vmem:[#allocation2 + $0xf8] sm:$0xf]  ;;  %10469 = vst [vmem:[#allocation44_spill] sm:$0xff] %v9542_v6  ;;  %v9546_v18 = vpop.f32.mrf.mxu1 }
 0x169   : > { %v4615_v20 = vor.u32 %v4613_v44, %v4612_v31  ;;  %v4617_v8 = vrot.slane %v4612_v31, 4  ;;  %v3891_v58 = vrot.slane %v3890_v33, 4  ;;  %v4621_v54 = vrot.slane %v4619_v47, 7 }
 0x16a   : > { %v3900_v15 = vrot.slane %v3898_v0, 4  ;;  %v3903_v43 = vrot.slane %v3901_v36, 5  ;;  %v3911_v63 = vshrl.u32 %v3577_v22, 16  ;;  %v3917_v23 = vshll.u32 %v3578_v3, 16  ;;  %v3580_v36 = vld [vmem:[#allocation2 + $0xf8] sm:$0xf] }
 0x16b   : > { %v4616_v51 = vsel %vm8440_vm8, %v6788_v48, %v4615_v20  ;;  %v3896_v49 = vsel %vm8481_vm10, %v3891_v58, %v3895_v50  ;;  %v4624_v32 = vor.u32 %v4622_v46, %v4621_v54  ;;  %v3909_v44 = vrot.slane %v3907_v29, 5 }
 0x16c   : > { %v4627_v31 = vshrl.u32 %v4331_v55, 16  ;;  %v6764_v33 = vcombine.low %v3886_v61, %v3896_v49  ;;  %v3904_v47 = vor.u32 %v3903_v43, %v3900_v15  ;;  %v3913_v0 = vrot.slane %v3911_v63, 4  ;;  %v4334_v49 = vld [vmem:[#allocation2 + $0x100] sm:$0x8] }
 0x16d   : > { %v3919_v37 = vrot.slane %v3917_v23, 5  ;;  %v4625_v48 = vsel %vm8440_vm8, %v4617_v8, %v4624_v32  ;;  %v4632_v3 = vshrl.u32 %v4332_v19, 16  ;;  %v4635_v20 = vshll.u32 %v4332_v19, 16  ;;  %v3581_v23 = vld [vmem:[#allocation2 + $0xfc] sm:$0x1]  ;;  %v9550_v32 = vpop.f32.mrf.mxu0 }
 0x16e   : > { %v6789_v22 = vrot.slane %v4627_v31, 11  ;;  %7682 = vmatprep.mubr.bf16.mxu1 %v6764_v33  ;;  %v6820_v50 = vcombine.low %v4616_v51, %v4625_v48  ;;  %v3905_v46 = vrot.slane %v3904_v47, 4  ;;  %v3914_v55 = vor.u32 %v3913_v0, %v3909_v44  ;;  %10470 = vst [vmem:[#allocation45_spill] sm:$0xff] %v9550_v32  ;;  %v4335_v0 = vld [vmem:[#allocation2 + $0x104] sm:$0xf] }
 0x16f   : > { %v4641_v61 = vshrl.u32 %v4333_v53, 16  ;;  %v4634_v58 = vrot.slane %v4632_v3, 7  ;;  %v4644_v54 = vshll.u32 %v4333_v53, 16  ;;  %v3922_v15 = vshrl.u32 %v3579_v10, 16  ;;  %v9552_v48 = vpop.f32.mrf.mxu1  ;;  %v4336_v32 = vld [vmem:[#allocation2 + $0x108] sm:$0xf] }
 0x170   : > { %v3925_v29 = vshll.u32 %v3579_v10, 16  ;;  %7730 = vmatprep.mubr.bf16.mxu0 %v6820_v50  ;;  %v3910_v8 = vsel %vm8481_vm10, %v3905_v46, %v3909_v44  ;;  %v3915_v43 = vrot.slane %v3914_v55, 4  ;;  %v3931_v19 = vshll.u32 %v3580_v36, 16  ;;  %10471 = vst [vmem:[#allocation46_spill] sm:$0xff] %v9552_v48 }
 0x171   : > { %v4643_v63 = vrot.slane %v4641_v61, 7  ;;  %v4637_v31 = vor.u32 %v4635_v20, %v4634_v58  ;;  %v4639_v51 = vrot.slane %v4634_v58, 4  ;;  %v3924_v33 = vrot.slane %v3922_v15, 4  ;;  %v354_v20 = vld [vmem:[#allocation2 + $0x10c] sm:$0x1]  ;;  %v9558_v58 = vpop.f32.mrf.mxu1 }
 0x172   : > { %v3927_v47 = vrot.slane %v3925_v29, 5  ;;  %v3920_v10 = vsel %vm8481_vm10, %v3915_v43, %v3919_v37  ;;  %v3933_v3 = vrot.slane %v3931_v19, 5  ;;  %v3935_v50 = vshrl.u32 %v3580_v36, 16  ;;  %v3582_v37 = vld [vmem:[#allocation2 + $0x104] sm:$0xf] }
 0x173   : > { %v4646_v53 = vor.u32 %v4644_v54, %v4643_v63  ;;  %v6765_v44 = vcombine.low %v3910_v8, %v3920_v10  ;;  %v4638_v46 = vsel %vm8440_vm8, %v6789_v22, %v4637_v31  ;;  %v3941_v61 = vshll.u32 %v3581_v23, 16  ;;  %v9562_v54 = vpop.f32.mrf.mxu0  ;;  %v9566_v10 = vpop.f32.mrf.mxu1 }
 0x174   : > { %v3928_v55 = vor.u32 %v3927_v47, %v3924_v33  ;;  %v3937_v29 = vrot.slane %v3935_v50, 4  ;;  %v4649_v48 = vshrl.u32 %v4334_v49, 16  ;;  %v4654_v6 = vshrl.u32 %v4335_v0, 16  ;;  %v3583_v33 = vld [vmem:[#allocation2 + $0x108] sm:$0xf]  ;;  %10473 = vst [vmem:[#allocation48_spill] sm:$0xff] %v9566_v10 }
 0x175   : > { %v4647_v15 = vsel %vm8440_vm8, %v4639_v51, %v4646_v53  ;;  %7683 = vmatmul.mubr.bf16.gmra.mxu1 %v6765_v44  ;;  %v3943_v43 = vrot.slane %v3941_v61, 5  ;;  %v4657_v22 = vshll.u32 %v4335_v0, 16  ;;  %v4663_v31 = vshrl.u32 %v4336_v32, 16  ;;  %v9564_v47 = vpop.f32.mrf.mxu0  ;;  %v252_v44 = vld [vmem:[#allocation2 + $0x110] sm:$0x8] }
 0x176   : > { %v6821_v36 = vcombine.low %v4638_v46, %v4647_v15  ;;  %v3929_v8 = vrot.slane %v3928_v55, 4  ;;  %v3938_v63 = vor.u32 %v3937_v29, %v3933_v3  ;;  %v6790_v23 = vrot.slane %v4649_v48, 11  ;;  %10472 = vst [vmem:[#allocation47_spill] sm:$0xff] %v9564_v47  ;;  %v4338_v55 = vld [vmem:[#allocation2 + $0x114] sm:$0xf] }
 0x177   : > { %v4656_v19 = vrot.slane %v4654_v6, 7  ;;  %v4666_v51 = vshll.u32 %v4336_v32, 16  ;;  %v355_v53 = vsel %vm8422_vm5, 0, %v354_v20  ;;  %v3946_v50 = vshrl.u32 %v3582_v37, 16  ;;  %v9572_v61 = vpop.f32.mrf.mxu0  ;;  %v9574_v47 = vld [vmem:[#allocation2 + $0x118] sm:$0xf] }
 0x178   : > { %7731 = vmatmul.mubr.bf16.gmra.mxu0 %v6821_v36  ;;  %v3934_v49 = vsel %vm8481_vm10, %v3929_v8, %v3933_v3  ;;  %v3939_v0 = vrot.slane %v3938_v63, 4  ;;  %v4665_v6 = vrot.slane %v4663_v31, 7  ;;  %356 = vst [vmem:[#allocation2 + $0x10c] sm:$0x1] %v355_v53  ;;  %10474 = vst [vmem:[#allocation49_spill] sm:$0xff] %v9572_v61  ;;  %v3949_v29 = vshll.u32 %v3582_v37, 16 }
 0x179   : > { %v4659_v46 = vor.u32 %v4657_v22, %v4656_v19  ;;  %v4661_v48 = vrot.slane %v4656_v19, 4  ;;  %v3948_v15 = vrot.slane %v3946_v50, 4  ;;  %v3955_v36 = vshll.u32 %v3583_v33, 16  ;;  %10475 = vst [vmem:[#allocation50_spill] sm:$0xff] %v9574_v47  ;;  %v9582_v22 = vpop.f32.mrf.mxu1 }
 0x17a   : > { %v3959_v10 = vshrl.u32 %v3583_v33, 16  ;;  %v3944_v32 = vsel %vm8481_vm10, %v3939_v0, %v3943_v43  ;;  %v4668_v20 = vor.u32 %v4666_v51, %v4665_v6  ;;  %v253_v8 = vsel %vm8398_vm4, 0, %v252_v44  ;;  %v5368_v33 = vld [vmem:[#allocation2 + $0x24] sm:$0xf]  ;;  %v9587_v51 = vpop.f32.mrf.mxu0 }
 0x17b   : > { %v4660_v3 = vsel %vm8440_vm8, %v6790_v23, %v4659_v46  ;;  %v6766_v63 = vcombine.low %v3934_v49, %v3944_v32  ;;  %v3951_v19 = vrot.slane %v3949_v29, 5  ;;  %v3957_v31 = vrot.slane %v3955_v36, 5  ;;  %254 = vst [vmem:[#allocation2 + $0x110] sm:$0x8] %v253_v8  ;;  %v5369_v23 = vld [vmem:[#allocation2 + $0x28] sm:$0xf] }
 0x17c   : > { %v3961_v37 = vrot.slane %v3959_v10, 4  ;;  %v4669_v53 = vsel %vm8440_vm8, %v4661_v48, %v4668_v20  ;;  %v4676_v50 = vshrl.u32 %v4338_v55, 16  ;;  %v4679_v43 = vshll.u32 %v4338_v55, 16  ;;  %10476 = vst [vmem:[#allocation51_spill] sm:$0xff] %v9587_v51  ;;  %v7980_v29 = vld [vmem:[#allocation2 + $0x24] sm:$0xf] }
 0x17d   : > { %v4685_v0 = vshrl.u32 %v9574_v47, 16  ;;  %7686 = vmatprep.mubr.bf16.mxu1 %v6766_v63  ;;  %v6822_v34 = vcombine.low %v4660_v3, %v4669_v53  ;;  %v3952_v44 = vor.u32 %v3951_v19, %v3948_v15  ;;  %v4688_v49 = vshll.u32 %v9574_v47, 16  ;;  %v7981_v36 = vld [vmem:[#allocation2 + $0x28] sm:$0xf]  ;;  %v5370_v8 = vld [vmem:[#allocation2 + $0x2c] sm:$0x1]  ;;  %v9590_v20 = vpop.f32.mrf.mxu1 }
 0x17e   : > { %v3962_v46 = vor.u32 %v3961_v37, %v3957_v31  ;;  %v4678_v6 = vrot.slane %v4676_v50, 7  ;;  %v6848_v32 = vcombine.low %v7980_v29, %v7981_v36  ;;  %v5417_v48 = vshrl.u32 %v5368_v33, 16  ;;  %10477 = vst [vmem:[#allocation52_spill] sm:$0xff] %v9590_v20 }
 0x17f   : > { %v4687_v10 = vrot.slane %v4685_v0, 7  ;;  %7734 = vmatprep.mubr.bf16.mxu0 %v6822_v34  ;;  %v3584_v55 = vld [vmem:[#allocation2 + $0x10c] sm:$0x1]  ;;  %v3953_v2 = vrot.slane %v3952_v44, 4  ;;  %v5420_v51 = vshll.u32 %v5368_v33, 16  ;;  %v5426_v63 = vshll.u32 %v5369_v23, 16  ;;  %v9592_v53 = vpop.f32.mrf.mxu0  ;;  %v9594_v50 = vpop.f32.mrf.mxu1 }
 0x180   : > { %v3963_v61 = vrot.slane %v3962_v46, 4  ;;  %v3965_v3 = vshll.u32 %v3584_v55, 16  ;;  %v4681_v15 = vor.u32 %v4679_v43, %v4678_v6  ;;  %v4683_v19 = vrot.slane %v4678_v6, 4  ;;  %10478 = vst [vmem:[#allocation53_spill] sm:$0xff] %v9592_v53  ;;  %10479 = vst [vmem:[#allocation54_spill] sm:$0xff] %v9594_v50 }
 0x181   : > { %v4690_v37 = vor.u32 %v4688_v49, %v4687_v10  ;;  %v3958_v0 = vsel %vm8481_vm10, %v3953_v2, %v3957_v31  ;;  %v5419_v29 = vrot.slane %v5417_v48, 4  ;;  %v5422_v36 = vrot.slane %v5420_v51, 5  ;;  %v5371_v34 = vld [vmem:[#allocation2 + $0x34] sm:$0xf]  ;;  %v9600_v6 = vpop.f32.mrf.mxu0  ;;  %v9606_v2 = vld [vmem:[#allocation2 + $0x38] sm:$0xf]  ;;  %v9610_v48 = vpop.f32.mrf.mxu1 }
 0x182   : > { %v5428_v47 = vrot.slane %v5426_v63, 5  ;;  %v3967_v20 = vrot.slane %v3965_v3, 5  ;;  %v4337_v44 = vld [vmem:[#allocation2 + $0x110] sm:$0x8]  ;;  %v5430_v46 = vshrl.u32 %v5369_v23, 16  ;;  %v5436_v43 = vshll.u32 %v5370_v8, 16 }
 0x183   : > { %v4691_v33 = vsel %vm8440_vm8, %v4683_v19, %v4690_v37  ;;  %10480 = vst [vmem:[#allocation55_spill] sm:$0xff] %v9600_v6  ;;  %v4671_v49 = vshrl.u32 %v4337_v44, 16  ;;  %v5423_v10 = vor.u32 %v5422_v36, %v5419_v29  ;;  %v1586_v55 = vadd.f32 %v9390_v35, %v9170_v7  ;;  %v9604_v50 = vld [vmem:[#allocation2 + $0x34] sm:$0xf]  ;;  %v5372_v51 = vld [vmem:[#allocation2 + $0x38] sm:$0xf]  ;;  %v9617_v53 = vpop.f32.mrf.mxu0 }
 0x184   : > { %v3968_v23 = vsel %vm8481_vm10, %v3963_v61, %v3967_v20  ;;  %v5432_v8 = vrot.slane %v5430_v46, 4  ;;  %v5438_v63 = vrot.slane %v5436_v43, 5  ;;  %v5373_v3 = vld [vmem:[#allocation2 + $0x3c] sm:$0x1]  ;;  %v5441_v19 = vshrl.u32 %v5371_v34, 16  ;;  %v9623_v43 = vpop.f32.mrf.mxu1 }
 0x185   : > { %v6767_v37 = vcombine.low %v3958_v0, %v3968_v23  ;;  %v6791_v29 = vrot.slane %v4671_v49, 11  ;;  %v5424_v7 = vrot.slane %v5423_v10, 4  ;;  %v9615_v35 = vadd.f32 %v9394_v28, %v1586_v55 }
 0x186   : > { %v5433_v36 = vor.u32 %v5432_v8, %v5428_v47  ;;  %v5443_v44 = vrot.slane %v5441_v19, 4  ;;  %v5444_v6 = vshll.u32 %v5371_v34, 16  ;;  %v5450_v31 = vshll.u32 %v5372_v51, 16  ;;  %v5376_v19 = vld [vmem:[#allocation2 + $0x4c] sm:$0x1] }
 0x187   : > { %7687 = vmatmul.mubr.bf16.gmra.mxu1 %v6767_v37  ;;  %v4682_v61 = vsel %vm8440_vm8, %v6791_v29, %v4681_v15  ;;  %v5429_v20 = vsel %vm8481_vm10, %v5424_v7, %v5428_v47  ;;  %v5454_v46 = vshrl.u32 %v5372_v51, 16  ;;  %v5460_v0 = vshll.u32 %v5373_v3, 16  ;;  %v5374_v15 = vld [vmem:[#allocation2 + $0x44] sm:$0xf]  ;;  %v5375_v3 = vld [vmem:[#allocation2 + $0x48] sm:$0xf]  ;;  %v9633_v37 = vpop.f32.mrf.mxu0 }
 0x188   : > { %v6823_v49 = vcombine.low %v4682_v61, %v4691_v33  ;;  %7754 = vmatprep.mubr.bf16.mxu1 %v6848_v32  ;;  %v5434_v28 = vrot.slane %v5433_v36, 4  ;;  %v5446_v10 = vrot.slane %v5444_v6, 5  ;;  %v5452_v55 = vrot.slane %v5450_v31, 5  ;;  %v7984_v33 = vld [vmem:[#allocation2 + $0x44] sm:$0xf] }
 0x189   : > { %v5456_v34 = vrot.slane %v5454_v46, 4  ;;  %v5462_v23 = vrot.slane %v5460_v0, 5  ;;  %v1578_v8 = vadd.f32 %v9400_v62, %v9190_v38  ;;  %v1589_v26 = vadd.f32 %v9412_v4, %v9214_v9  ;;  %v7985_v6 = vld [vmem:[#allocation2 + $0x48] sm:$0xf] }
 0x18a   : > { %7735 = vmatmul.mubr.bf16.gmra.mxu0 %v6823_v49  ;;  %v5439_v47 = vsel %vm8481_vm10, %v5434_v28, %v5438_v63  ;;  %v5447_v51 = vor.u32 %v5446_v10, %v5443_v44  ;;  %v1581_v32 = vadd.f32 %v9423_v40, %v9229_v12  ;;  %v6850_v31 = vcombine.low %v7984_v33, %v7985_v6  ;;  %v5377_v28 = vld [vmem:[#allocation2 + $0x54] sm:$0xf]  ;;  %v7987_v6 = vld [vmem:[#allocation2 + $0x58] sm:$0xf] }
 0x18b   : > { %v6888_v38 = vcombine.low %v5429_v20, %v5439_v47  ;;  %v5457_v62 = vor.u32 %v5456_v34, %v5452_v55  ;;  %v9636_v9 = vadd.f32 %v9408_v25, %v1578_v8  ;;  %v9639_v4 = vadd.f32 %v9421_v52, %v1589_v26  ;;  %v9641_v63 = vpop.f32.mrf.mxu1  ;;  %v7986_v33 = vld [vmem:[#allocation2 + $0x54] sm:$0xf] }
 0x18c   : > { %v5448_v29 = vrot.slane %v5447_v51, 4  ;;  %v9644_v12 = vadd.f32 %v9430_v42, %v1581_v32  ;;  %v5465_v40 = vshrl.u32 %v5374_v15, 16  ;;  %v5468_v7 = vshll.u32 %v5374_v15, 16  ;;  %v5378_v42 = vld [vmem:[#allocation2 + $0x58] sm:$0xf] }
 0x18d   : > { %7802 = vmatprep.mubr.bf16.mxu0 %v6888_v38  ;;  %v5458_v36 = vrot.slane %v5457_v62, 4  ;;  %v5474_v44 = vshll.u32 %v5375_v3, 16  ;;  %v5478_v61 = vshrl.u32 %v5375_v3, 16  ;;  %v5484_v20 = vshll.u32 %v5376_v19, 16  ;;  %v9646_v46 = vpop.f32.mrf.mxu1 }
 0x18e   : > { %v5453_v25 = vsel %vm8481_vm10, %v5448_v29, %v5452_v55  ;;  %v5467_v52 = vrot.slane %v5465_v40, 4  ;;  %v5470_v0 = vrot.slane %v5468_v7, 5  ;;  %v1602_v49 = vadd.f32 %v9434_v16, %v9243_v21  ;;  %v9652_v10 = vpop.f32.mrf.mxu0  ;;  %v5379_v55 = vld [vmem:[#allocation2 + $0x5c] sm:$0x1] }
 0x18f   : > { %v10481_v34 = vcombine.low %v9604_v50, %v9606_v2  ;;  %v5463_v8 = vsel %vm8481_vm10, %v5458_v36, %v5462_v23  ;;  %v5476_v26 = vrot.slane %v5474_v44, 5  ;;  %v5480_v15 = vrot.slane %v5478_v61, 4  ;;  %v9659_v51 = vpop.f32.mrf.mxu1 }
 0x190   : > { %v5486_v47 = vrot.slane %v5484_v20, 5  ;;  %v6889_v32 = vcombine.low %v5453_v25, %v5463_v8  ;;  %v5471_v21 = vor.u32 %v5470_v0, %v5467_v52  ;;  %v9662_v16 = vadd.f32 %v9440_v11, %v1602_v49  ;;  %v9664_v50 = vpop.f32.mrf.mxu0  ;;  %v5380_v25 = vld [vmem:[#allocation2 + $0x64] sm:$0xf] }
 0x191   : > { %7755 = vmatmul.mubr.bf16.vlgmr.msra.gmra.mxu1 %v10481_v34  ;;  %v6851_v3 = vcombine.low %v7986_v33, %v7987_v6  ;;  %v5481_v2 = vor.u32 %v5480_v15, %v5476_v26  ;;  %v5489_v19 = vshrl.u32 %v5377_v28, 16  ;;  %v5492_v23 = vshll.u32 %v5377_v28, 16  ;;  %v9666_v62 = vpop.f32.mrf.mxu1  ;;  %v7988_v33 = vld [vmem:[#allocation2 + $0x64] sm:$0xf] }
 0x192   : > { %7758 = vmatprep.mubr.bf16.mxu1 %v6850_v31  ;;  %v5498_v38 = vshll.u32 %v5378_v42, 16  ;;  %7803 = vmatmul.mubr.bf16.vlgmr.msra.gmra.mxu0 %v6889_v32  ;;  %v5472_v29 = vrot.slane %v5471_v21, 4  ;;  %v5502_v40 = vshrl.u32 %v5378_v42, 16  ;;  %v5508_v7 = vshll.u32 %v5379_v55, 16  ;;  %v9670_v11 = vpop.f32.mrf.mxu0  ;;  %v5381_v55 = vld [vmem:[#allocation2 + $0x68] sm:$0xf] }
 0x193   : > { %v1594_v31 = vadd.f32 %v9442_v60, %v9250_v24  ;;  %v5482_v36 = vrot.slane %v5481_v2, 4  ;;  %v5491_v44 = vrot.slane %v5489_v19, 4  ;;  %v5494_v61 = vrot.slane %v5492_v23, 5  ;;  %v9672_v52 = vpop.f32.mrf.mxu1  ;;  %v5382_v2 = vld [vmem:[#allocation2 + $0x6c] sm:$0x1] }
 0x194   : > { %v5500_v20 = vrot.slane %v5498_v38, 5  ;;  %v5477_v0 = vsel %vm8481_vm10, %v5472_v29, %v5476_v26  ;;  %v5504_v49 = vrot.slane %v5502_v40, 4  ;;  %v5510_v28 = vrot.slane %v5508_v7, 5  ;;  %v9679_v34 = vpop.f32.mrf.mxu0 }
 0x195   : > { %v9677_v42 = vadd.f32 %v9444_v45, %v1594_v31  ;;  %v5487_v24 = vsel %vm8481_vm10, %v5482_v36, %v5486_v47  ;;  %v5495_v60 = vor.u32 %v5494_v61, %v5491_v44  ;;  %v1605_v8 = vadd.f32 %v9446_v17, %v9267_v14  ;;  %v9687_v32 = vpop.f32.mrf.mxu1  ;;  %v7989_v45 = vld [vmem:[#allocation2 + $0x68] sm:$0xf]  ;;  %v5383_v44 = vld [vmem:[#allocation2 + $0x74] sm:$0xf]  ;;  %v5384_v61 = vld [vmem:[#allocation2 + $0x78] sm:$0xf] }
 0x196   : > { %v1597_v15 = vadd.f32 %v9454_v13, %v9273_v41  ;;  %v6890_v26 = vcombine.low %v5477_v0, %v5487_v24  ;;  %v5505_v21 = vor.u32 %v5504_v49, %v5500_v20  ;;  %v6852_v6 = vcombine.low %v7988_v33, %v7989_v45  ;;  %v9689_v23 = vpop.f32.mrf.mxu0 }
 0x197   : > { %v5513_v19 = vshrl.u32 %v5380_v25, 16  ;;  %v5496_v47 = vrot.slane %v5495_v60, 4  ;;  %v9692_v38 = vadd.f32 %v9452_v5, %v1605_v8  ;;  %v5516_v41 = vshll.u32 %v5380_v25, 16  ;;  %v9697_v17 = vpop.f32.mrf.mxu1  ;;  %v7990_v60 = vld [vmem:[#allocation2 + $0x74] sm:$0xf] }
 0x198   : > { %v9695_v14 = vadd.f32 %v9460_v27, %v1597_v15  ;;  %7806 = vmatprep.mubr.bf16.mxu0 %v6890_v26  ;;  %v5506_v13 = vrot.slane %v5505_v21, 4  ;;  %v5522_v40 = vshll.u32 %v5381_v55, 16  ;;  %v5526_v7 = vshrl.u32 %v5381_v55, 16  ;;  %v9699_v31 = vpop.f32.mrf.mxu0  ;;  %v7991_v8 = vld [vmem:[#allocation2 + $0x78] sm:$0xf] }
 0x199   : > { %7759 = vmatmul.mubr.bf16.gmra.mxu1 %v6851_v3  ;;  %v5515_v29 = vrot.slane %v5513_v19, 4  ;;  %v5501_v3 = vsel %vm8481_vm10, %v5496_v47, %v5500_v20  ;;  %v5518_v36 = vrot.slane %v5516_v41, 5  ;;  %v5532_v5 = vshll.u32 %v5382_v2, 16  ;;  %v9705_v25 = vpop.f32.mrf.mxu1  ;;  %v5385_v55 = vld [vmem:[#allocation2 + $0x7c] sm:$0x1] }
 0x19a   : > { %7762 = vmatprep.mubr.bf16.mxu1 %v6852_v6  ;;  %v1618_v27 = vadd.f32 %v9462_v1, %v9283_v30  ;;  %v5511_v0 = vsel %vm8481_vm10, %v5506_v13, %v5510_v28  ;;  %v5524_v49 = vrot.slane %v5522_v40, 5  ;;  %v5528_v24 = vrot.slane %v5526_v7, 4  ;;  %v9709_v26 = vpop.f32.mrf.mxu0 }
 0x19b   : > { %v6853_v15 = vcombine.low %v7990_v60, %v7991_v8  ;;  %v6891_v20 = vcombine.low %v5501_v3, %v5511_v0  ;;  %v5519_v21 = vor.u32 %v5518_v36, %v5515_v29  ;;  %v5534_v33 = vrot.slane %v5532_v5, 5  ;;  %v9714_v1 = vpop.f32.mrf.mxu1  ;;  %v5386_v5 = vld [vmem:[#allocation2 + $0x84] sm:$0xf] }
 0x19c   : > { %v9712_v30 = vadd.f32 %v9468_v56, %v1618_v27  ;;  %v5529_v45 = vor.u32 %v5528_v24, %v5524_v49  ;;  %v5537_v6 = vshrl.u32 %v5383_v44, 16  ;;  %v5540_v2 = vshll.u32 %v5383_v44, 16  ;;  %v9716_v19 = vpop.f32.mrf.mxu0 }
 0x19d   : > { %v5546_v28 = vshll.u32 %v5384_v61, 16  ;;  %7807 = vmatmul.mubr.bf16.gmra.mxu0 %v6891_v20  ;;  %v5520_v47 = vrot.slane %v5519_v21, 4  ;;  %v5550_v41 = vshrl.u32 %v5384_v61, 16  ;;  %v5556_v13 = vshll.u32 %v5385_v55, 16  ;;  %v9720_v29 = vpop.f32.mrf.mxu1  ;;  %v10483_v61 = vld [vmem:[#allocation27_spill] sm:$0xff]  ;;  %v10485_v55 = vld [vmem:[#allocation14_spill] sm:$0xff] }
 0x19e   : > { %10482 = vst [vmem:[#allocation56_spill] sm:$0xff] %v9712_v30  ;;  %v1610_v40 = vadd.f32 %v9470_v57, %v9294_v39  ;;  %v5530_v7 = vrot.slane %v5529_v45, 4  ;;  %v5539_v56 = vrot.slane %v5537_v6, 4  ;;  %v5542_v3 = vrot.slane %v5540_v2, 5  ;;  %v9722_v27 = vpop.f32.mrf.mxu0  ;;  %v10486_v20 = vld [vmem:[#allocation25_spill] sm:$0xff]  ;;  %v10487_v45 = vld [vmem:[#allocation18_spill] sm:$0xff] }
 0x19f   : > { %v5548_v36 = vrot.slane %v5546_v28, 5  ;;  %v5525_v44 = vsel %vm8481_vm10, %v5520_v47, %v5524_v49  ;;  %v5552_v0 = vrot.slane %v5550_v41, 4  ;;  %v5558_v24 = vrot.slane %v5556_v13, 5  ;;  %v9729_v8 = vpop.f32.mrf.mxu1  ;;  %v10488_v6 = vld [vmem:[#allocation29_spill] sm:$0xff]  ;;  %v5387_v28 = vld [vmem:[#allocation2 + $0x88] sm:$0xf] }
 0x1a0   : > { %v9727_v60 = vadd.f32 %v10483_v61, %v1610_v40  ;;  %v5535_v39 = vsel %vm8481_vm10, %v5530_v7, %v5534_v33  ;;  %v5543_v57 = vor.u32 %v5542_v3, %v5539_v56  ;;  %v1621_v21 = vadd.f32 %v10486_v20, %v10485_v55  ;;  %v9737_v49 = vpop.f32.mrf.mxu0  ;;  %v7992_v41 = vld [vmem:[#allocation2 + $0x84] sm:$0xf]  ;;  %v7993_v13 = vld [vmem:[#allocation2 + $0x88] sm:$0xf]  ;;  %v5388_v61 = vld [vmem:[#allocation2 + $0x8c] sm:$0x1] }
 0x1a1   : > { %7763 = vmatmul.mubr.bf16.gmra.mxu1 %v6853_v15  ;;  %v1613_v2 = vadd.f32 %v10488_v6, %v10487_v45  ;;  %10489 = vst [vmem:[#allocation14_spill] sm:$0xff] %v9737_v49  ;;  %v6892_v15 = vcombine.low %v5525_v44, %v5535_v39  ;;  %v5553_v47 = vor.u32 %v5552_v0, %v5548_v36  ;;  %v9739_v30 = vpop.f32.mrf.mxu1  ;;  %v10491_v7 = vld [vmem:[#allocation28_spill] sm:$0xff]  ;;  %v10493_v3 = vld [vmem:[#allocation30_spill] sm:$0xff]  ;;  %v5564_v20 = vshll.u32 %v5386_v5, 16 }
 0x1a2   : > { %10484 = vst [vmem:[#allocation27_spill] sm:$0xff] %v9727_v60  ;;  %v6854_v40 = vcombine.low %v7992_v41, %v7993_v13  ;;  %v5561_v60 = vshrl.u32 %v5386_v5, 16  ;;  %10490 = vst [vmem:[#allocation25_spill] sm:$0xff] %v9739_v30  ;;  %v5544_v33 = vrot.slane %v5543_v57, 4  ;;  %v9742_v56 = vadd.f32 %v10491_v7, %v1621_v21  ;;  %v9747_v45 = vpop.f32.mrf.mxu0  ;;  %v10497_v7 = vld [vmem:[#allocation19_spill] sm:$0xff] }
 0x1a3   : > { %v9745_v55 = vadd.f32 %v10493_v3, %v1613_v2  ;;  %10495 = vst [vmem:[#allocation28_spill] sm:$0xff] %v9747_v45  ;;  %7810 = vmatprep.mubr.bf16.mxu0 %v6892_v15  ;;  %v5554_v44 = vrot.slane %v5553_v47, 4  ;;  %v5570_v39 = vshll.u32 %v5387_v28, 16  ;;  %v5574_v6 = vshrl.u32 %v5387_v28, 16  ;;  %v9749_v41 = vpop.f32.mrf.mxu1  ;;  %v5389_v3 = vld [vmem:[#allocation2 + $0x94] sm:$0xf] }
 0x1a4   : > { %10492 = vst [vmem:[#allocation18_spill] sm:$0xff] %v9742_v56  ;;  %7766 = vmatprep.mubr.bf16.mxu1 %v6854_v40  ;;  %v5563_v0 = vrot.slane %v5561_v60, 4  ;;  %10496 = vst [vmem:[#allocation30_spill] sm:$0xff] %v9749_v41  ;;  %v5549_v57 = vsel %vm8481_vm10, %v5544_v33, %v5548_v36  ;;  %v5566_v13 = vrot.slane %v5564_v20, 5  ;;  %v5580_v21 = vshll.u32 %v5388_v61, 16  ;;  %v10498_v56 = vld [vmem:[#allocation31_spill] sm:$0xff] }
 0x1a5   : > { %10494 = vst [vmem:[#allocation29_spill] sm:$0xff] %v9745_v55  ;;  %v1634_v2 = vadd.f32 %v10498_v56, %v10497_v7  ;;  %v5390_v5 = vld [vmem:[#allocation2 + $0x98] sm:$0xf]  ;;  %v9755_v55 = vpop.f32.mrf.mxu0  ;;  %v5559_v15 = vsel %vm8481_vm10, %v5554_v44, %v5558_v24  ;;  %v5572_v60 = vrot.slane %v5570_v39, 5  ;;  %v5576_v47 = vrot.slane %v5574_v6, 4  ;;  %v9759_v49 = vpop.f32.mrf.mxu1  ;;  %v10501_v20 = vld [vmem:[#allocation32_spill] sm:$0xff] }
 0x1a6   : > { %10499 = vst [vmem:[#allocation19_spill] sm:$0xff] %v9755_v55  ;;  %v7994_v28 = vld [vmem:[#allocation2 + $0x94] sm:$0xf]  ;;  %v7995_v40 = vld [vmem:[#allocation2 + $0x98] sm:$0xf]  ;;  %10500 = vst [vmem:[#allocation31_spill] sm:$0xff] %v9759_v49  ;;  %v6893_v36 = vcombine.low %v5549_v57, %v5559_v15  ;;  %v5567_v61 = vor.u32 %v5566_v13, %v5563_v0 }
 0x1a7   : > { %v6855_v45 = vcombine.low %v7994_v28, %v7995_v40  ;;  %v5391_v41 = vld [vmem:[#allocation2 + $0x9c] sm:$0x1]  ;;  %v5582_v33 = vrot.slane %v5580_v21, 5  ;;  %v9762_v56 = vadd.f32 %v10501_v20, %v1634_v2  ;;  %v9764_v7 = vpop.f32.mrf.mxu0  ;;  %v5577_v55 = vor.u32 %v5576_v47, %v5572_v60  ;;  %v9766_v39 = vpop.f32.mrf.mxu1  ;;  %v10506_v57 = vld [vmem:[#allocation33_spill] sm:$0xff]  ;;  %v5392_v47 = vld [vmem:[#allocation2 + $0xa4] sm:$0xf] }
 0x1a8   : > { %10503 = vst [vmem:[#allocation57_spill] sm:$0xff] %v9764_v7  ;;  %v5585_v30 = vshrl.u32 %v5389_v3, 16  ;;  %v5588_v24 = vshll.u32 %v5389_v3, 16  ;;  %v5594_v44 = vshll.u32 %v5390_v5, 16  ;;  %10504 = vst [vmem:[#allocation58_spill] sm:$0xff] %v9766_v39  ;;  %7811 = vmatmul.mubr.bf16.gmra.mxu0 %v6893_v36  ;;  %v5568_v6 = vrot.slane %v5567_v61, 4 }
 0x1a9   : > { %10502 = vst [vmem:[#allocation32_spill] sm:$0xff] %v9762_v56  ;;  %7767 = vmatmul.mubr.bf16.gmra.mxu1 %v6855_v45  ;;  %v5598_v28 = vshrl.u32 %v5390_v5, 16  ;;  %v5604_v40 = vshll.u32 %v5391_v41, 16  ;;  %v10505_v49 = vld [vmem:[#allocation22_spill] sm:$0xff]  ;;  %v9770_v13 = vpop.f32.mrf.mxu0  ;;  %v5578_v21 = vrot.slane %v5577_v55, 4  ;;  %v9772_v45 = vpop.f32.mrf.mxu1 }
 0x1aa   : > { %v1626_v0 = vadd.f32 %v10506_v57, %v10505_v49  ;;  %10507 = vst [vmem:[#allocation22_spill] sm:$0xff] %v9770_v13  ;;  %v5587_v2 = vrot.slane %v5585_v30, 4  ;;  %v5590_v15 = vrot.slane %v5588_v24, 5  ;;  %v5596_v20 = vrot.slane %v5594_v44, 5  ;;  %10508 = vst [vmem:[#allocation33_spill] sm:$0xff] %v9772_v45  ;;  %v10509_v61 = vld [vmem:[#allocation34_spill] sm:$0xff] }
 0x1ab   : > { %v5573_v3 = vsel %vm8481_vm10, %v5568_v6, %v5572_v60  ;;  %v5600_v56 = vrot.slane %v5598_v28, 4  ;;  %v5606_v36 = vrot.slane %v5604_v40, 5  ;;  %v9779_v41 = vpop.f32.mrf.mxu0  ;;  %v5583_v49 = vsel %vm8481_vm10, %v5578_v21, %v5582_v33  ;;  %v10512_v30 = vld [vmem:[#allocation23_spill] sm:$0xff]  ;;  %v10514_v57 = vld [vmem:[#allocation24_spill] sm:$0xff]  ;;  %v10515_v13 = vld [vmem:[#allocation37_spill] sm:$0xff]  ;;  %v9787_v39 = vpop.f32.mrf.mxu1 }
 0x1ac   : > { %v9777_v5 = vadd.f32 %v10509_v61, %v1626_v0  ;;  %10511 = vst [vmem:[#allocation59_spill] sm:$0xff] %v9779_v41  ;;  %v5591_v55 = vor.u32 %v5590_v15, %v5587_v2  ;;  %v10513_v24 = vld [vmem:[#allocation35_spill] sm:$0xff]  ;;  %v1629_v7 = vadd.f32 %v10515_v13, %v10514_v57  ;;  %v5393_v45 = vld [vmem:[#allocation2 + $0xa8] sm:$0xf]  ;;  %10516 = vst [vmem:[#allocation23_spill] sm:$0xff] %v9787_v39  ;;  %v5612_v13 = vshll.u32 %v5392_v47, 16 }
 0x1ad   : > { %v1637_v44 = vadd.f32 %v10513_v24, %v10512_v30  ;;  %v6894_v60 = vcombine.low %v5573_v3, %v5583_v49  ;;  %v5601_v6 = vor.u32 %v5600_v56, %v5596_v20  ;;  %v7996_v28 = vld [vmem:[#allocation2 + $0xa4] sm:$0xf]  ;;  %v7997_v40 = vld [vmem:[#allocation2 + $0xa8] sm:$0xf]  ;;  %v5394_v61 = vld [vmem:[#allocation2 + $0xac] sm:$0x1]  ;;  %v9789_v41 = vpop.f32.mrf.mxu0  ;;  %v9797_v24 = vpop.f32.mrf.mxu1 }
 0x1ae   : > { %10510 = vst [vmem:[#allocation34_spill] sm:$0xff] %v9777_v5  ;;  %v6856_v0 = vcombine.low %v7996_v28, %v7997_v40  ;;  %v5609_v5 = vshrl.u32 %v5392_v47, 16  ;;  %10517 = vst [vmem:[#allocation35_spill] sm:$0xff] %v9789_v41  ;;  %v5592_v33 = vrot.slane %v5591_v55, 4  ;;  %v10518_v21 = vld [vmem:[#allocation36_spill] sm:$0xff]  ;;  %v10520_v15 = vld [vmem:[#allocation38_spill] sm:$0xff] }
 0x1af   : > { %v9792_v2 = vadd.f32 %v10518_v21, %v1637_v44  ;;  %v9795_v30 = vadd.f32 %v10520_v15, %v1629_v7  ;;  %10522 = vst [vmem:[#allocation36_spill] sm:$0xff] %v9797_v24  ;;  %7814 = vmatprep.mubr.bf16.mxu0 %v6894_v60  ;;  %v5602_v3 = vrot.slane %v5601_v6, 4  ;;  %v5618_v49 = vshll.u32 %v5393_v45, 16  ;;  %v9799_v28 = vpop.f32.mrf.mxu0  ;;  %v10524_v21 = vld [vmem:[#allocation4_spill] sm:$0xff]  ;;  %v5395_v15 = vld [vmem:[#allocation2 + $0xb4] sm:$0xf] }
 0x1b0   : > { %7770 = vmatprep.mubr.bf16.mxu1 %v6856_v0  ;;  %v5611_v56 = vrot.slane %v5609_v5, 4  ;;  %v5622_v57 = vshrl.u32 %v5393_v45, 16  ;;  %10523 = vst [vmem:[#allocation38_spill] sm:$0xff] %v9799_v28  ;;  %v5597_v55 = vsel %vm8481_vm10, %v5592_v33, %v5596_v20  ;;  %v5614_v40 = vrot.slane %v5612_v13, 5  ;;  %v5396_v47 = vld [vmem:[#allocation2 + $0xb8] sm:$0xf] }
 0x1b1   : > { %10519 = vst [vmem:[#allocation24_spill] sm:$0xff] %v9792_v2  ;;  %10521 = vst [vmem:[#allocation37_spill] sm:$0xff] %v9795_v30  ;;  %v5628_v44 = vshll.u32 %v5394_v61, 16  ;;  %v10525_v2 = vld [vmem:[#allocation39_spill] sm:$0xff]  ;;  %v9805_v30 = vpop.f32.mrf.mxu1  ;;  %v5607_v60 = vsel %vm8481_vm10, %v5602_v3, %v5606_v36  ;;  %v5620_v5 = vrot.slane %v5618_v49, 5  ;;  %v9809_v41 = vpop.f32.mrf.mxu0  ;;  %v10528_v13 = vld [vmem:[#allocation40_spill] sm:$0xff] }
 0x1b2   : > { %v1650_v7 = vadd.f32 %v10525_v2, %v10524_v21  ;;  %10526 = vst [vmem:[#allocation4_spill] sm:$0xff] %v9805_v30  ;;  %v5624_v6 = vrot.slane %v5622_v57, 4  ;;  %v7998_v45 = vld [vmem:[#allocation2 + $0xb4] sm:$0xf]  ;;  %v7999_v0 = vld [vmem:[#allocation2 + $0xb8] sm:$0xf]  ;;  %v6895_v20 = vcombine.low %v5597_v55, %v5607_v60  ;;  %v5615_v61 = vor.u32 %v5614_v40, %v5611_v56 }
 0x1b3   : > { %v6857_v28 = vcombine.low %v7998_v45, %v7999_v0  ;;  %v5397_v24 = vld [vmem:[#allocation2 + $0xbc] sm:$0x1]  ;;  %10527 = vst [vmem:[#allocation39_spill] sm:$0xff] %v9809_v41  ;;  %v5630_v33 = vrot.slane %v5628_v44, 5  ;;  %v9814_v21 = vpop.f32.mrf.mxu1  ;;  %v5633_v39 = vshrl.u32 %v5395_v15, 16  ;;  %v5636_v36 = vshll.u32 %v5395_v15, 16  ;;  %v9816_v49 = vpop.f32.mrf.mxu0 }
 0x1b4   : > { %v9812_v2 = vadd.f32 %v10528_v13, %v1650_v7  ;;  %v5625_v30 = vor.u32 %v5624_v6, %v5620_v5  ;;  %v5642_v3 = vshll.u32 %v5396_v47, 16  ;;  %10530 = vst [vmem:[#allocation60_spill] sm:$0xff] %v9816_v49  ;;  %7815 = vmatmul.mubr.bf16.gmra.mxu0 %v6895_v20  ;;  %v5616_v57 = vrot.slane %v5615_v61, 4  ;;  %v10531_v41 = vld [vmem:[#allocation3_spill] sm:$0xff]  ;;  %v10532_v55 = vld [vmem:[#allocation41_spill] sm:$0xff]  ;;  %v10535_v61 = vld [vmem:[#allocation42_spill] sm:$0xff] }
 0x1b5   : > { %7771 = vmatmul.mubr.bf16.gmra.mxu1 %v6857_v28  ;;  %v5646_v45 = vshrl.u32 %v5396_v47, 16  ;;  %v5652_v0 = vshll.u32 %v5397_v24, 16  ;;  %v1642_v56 = vadd.f32 %v10532_v55, %v10531_v41  ;;  %v9820_v40 = vpop.f32.mrf.mxu1  ;;  %v5635_v7 = vrot.slane %v5633_v39, 4  ;;  %v5398_v6 = vld [vmem:[#allocation2 + $0xc4] sm:$0xf]  ;;  %v9822_v28 = vpop.f32.mrf.mxu0  ;;  %v10538_v39 = vld [vmem:[#allocation6_spill] sm:$0xff] }
 0x1b6   : > { %10529 = vst [vmem:[#allocation40_spill] sm:$0xff] %v9812_v2  ;;  %10533 = vst [vmem:[#allocation3_spill] sm:$0xff] %v9820_v40  ;;  %v5626_v44 = vrot.slane %v5625_v30, 4  ;;  %v5638_v60 = vrot.slane %v5636_v36, 5  ;;  %v5644_v13 = vrot.slane %v5642_v3, 5  ;;  %v5621_v15 = vsel %vm8481_vm10, %v5616_v57, %v5620_v5  ;;  %v10539_v36 = vld [vmem:[#allocation43_spill] sm:$0xff] }
 0x1b7   : > { %10534 = vst [vmem:[#allocation41_spill] sm:$0xff] %v9822_v28  ;;  %v5648_v49 = vrot.slane %v5646_v45, 4  ;;  %v5654_v20 = vrot.slane %v5652_v0, 5  ;;  %v9827_v47 = vadd.f32 %v10535_v61, %v1642_v56  ;;  %v9829_v24 = vpop.f32.mrf.mxu1  ;;  %v1653_v3 = vadd.f32 %v10539_v36, %v10538_v39  ;;  %v10540_v55 = vld [vmem:[#allocation5_spill] sm:$0xff]  ;;  %v5399_v40 = vld [vmem:[#allocation2 + $0xc8] sm:$0xf]  ;;  %v9837_v2 = vpop.f32.mrf.mxu0 }
 0x1b8   : > { %10537 = vst [vmem:[#allocation61_spill] sm:$0xff] %v9829_v24  ;;  %v5631_v41 = vsel %vm8481_vm10, %v5626_v44, %v5630_v33  ;;  %v5639_v30 = vor.u32 %v5638_v60, %v5635_v7  ;;  %v1645_v28 = vadd.f32 %v9546_v18, %v10540_v55  ;;  %10541 = vst [vmem:[#allocation6_spill] sm:$0xff] %v9837_v2  ;;  %v8000_v45 = vld [vmem:[#allocation2 + $0xc4] sm:$0xf]  ;;  %v8001_v0 = vld [vmem:[#allocation2 + $0xc8] sm:$0xf] }
 0x1b9   : > { %10536 = vst [vmem:[#allocation42_spill] sm:$0xff] %v9827_v47  ;;  %v6896_v5 = vcombine.low %v5621_v15, %v5631_v41  ;;  %v5649_v57 = vor.u32 %v5648_v49, %v5644_v13  ;;  %v6858_v56 = vcombine.low %v8000_v45, %v8001_v0  ;;  %v5400_v61 = vld [vmem:[#allocation2 + $0xcc] sm:$0x1]  ;;  %v5657_v24 = vshrl.u32 %v5398_v6, 16  ;;  %v9839_v47 = vpop.f32.mrf.mxu1  ;;  %v10544_v60 = vld [vmem:[#allocation45_spill] sm:$0xff]  ;;  %v9847_v36 = vpop.f32.mrf.mxu0  ;;  %v10549_v2 = vld [vmem:[#allocation46_spill] sm:$0xff] }
 0x1ba   : > { %10542 = vst [vmem:[#allocation43_spill] sm:$0xff] %v9839_v47  ;;  %v5640_v33 = vrot.slane %v5639_v30, 4  ;;  %v10543_v44 = vld [vmem:[#allocation44_spill] sm:$0xff]  ;;  %v9845_v39 = vadd.f32 %v10544_v60, %v1645_v28  ;;  %v5660_v18 = vshll.u32 %v5398_v6, 16  ;;  %v5666_v41 = vshll.u32 %v5399_v40, 16 }
 0x1bb   : > { %v9842_v7 = vadd.f32 %v10543_v44, %v1653_v3  ;;  %10546 = vst [vmem:[#allocation44_spill] sm:$0xff] %v9847_v36  ;;  %7818 = vmatprep.mubr.bf16.mxu0 %v6896_v5  ;;  %v5650_v15 = vrot.slane %v5649_v57, 4  ;;  %7774 = vmatprep.mubr.bf16.mxu1 %v6858_v56  ;;  %v5659_v49 = vrot.slane %v5657_v24, 4  ;;  %v5670_v55 = vshrl.u32 %v5399_v40, 16  ;;  %v9849_v45 = vpop.f32.mrf.mxu1  ;;  %v10548_v44 = vld [vmem:[#allocation9_spill] sm:$0xff] }
 0x1bc   : > { %10545 = vst [vmem:[#allocation5_spill] sm:$0xff] %v9845_v39  ;;  %10547 = vst [vmem:[#allocation45_spill] sm:$0xff] %v9849_v45  ;;  %v5645_v30 = vsel %vm8481_vm10, %v5640_v33, %v5644_v13  ;;  %v5662_v0 = vrot.slane %v5660_v18, 5  ;;  %v5676_v3 = vshll.u32 %v5400_v61, 16  ;;  %v1666_v28 = vadd.f32 %v10549_v2, %v10548_v44  ;;  %v5401_v60 = vld [vmem:[#allocation2 + $0xd4] sm:$0xf]  ;;  %v9855_v39 = vpop.f32.mrf.mxu0 }
 0x1bd   : > { %v5402_v6 = vld [vmem:[#allocation2 + $0xd8] sm:$0xf]  ;;  %10550 = vst [vmem:[#allocation9_spill] sm:$0xff] %v9855_v39  ;;  %v5655_v5 = vsel %vm8481_vm10, %v5650_v15, %v5654_v20  ;;  %v5668_v24 = vrot.slane %v5666_v41, 5  ;;  %v5672_v57 = vrot.slane %v5670_v55, 4  ;;  %v9859_v47 = vpop.f32.mrf.mxu1  ;;  %v5681_v39 = vshrl.u32 %v5401_v60, 16 }
 0x1be   : > { %v8002_v40 = vld [vmem:[#allocation2 + $0xd4] sm:$0xf]  ;;  %v8003_v56 = vld [vmem:[#allocation2 + $0xd8] sm:$0xf]  ;;  %v5403_v45 = vld [vmem:[#allocation2 + $0xdc] sm:$0x1]  ;;  %v6897_v13 = vcombine.low %v5645_v30, %v5655_v5  ;;  %v5663_v61 = vor.u32 %v5662_v0, %v5659_v49  ;;  %v9862_v2 = vadd.f32 %v9562_v54, %v1666_v28  ;;  %v9864_v18 = vpop.f32.mrf.mxu0 }
 0x1bf   : > { %v6859_v36 = vcombine.low %v8002_v40, %v8003_v56  ;;  %10551 = vst [vmem:[#allocation46_spill] sm:$0xff] %v9859_v47  ;;  %v5678_v33 = vrot.slane %v5676_v3, 5  ;;  %10552 = vst [vmem:[#allocation62_spill] sm:$0xff] %v9864_v18  ;;  %v5673_v44 = vor.u32 %v5672_v57, %v5668_v24  ;;  %v5684_v20 = vshll.u32 %v5401_v60, 16  ;;  %v10553_v56 = vld [vmem:[#allocation7_spill] sm:$0xff]  ;;  %v9870_v49 = vpop.f32.mrf.mxu1 }
 0x1c0   : > { %v5690_v15 = vshll.u32 %v5402_v6, 16  ;;  %7819 = vmatmul.mubr.bf16.gmra.mxu0 %v6897_v13  ;;  %v5664_v41 = vrot.slane %v5663_v61, 4  ;;  %v5694_v55 = vshrl.u32 %v5402_v6, 16  ;;  %v5700_v40 = vshll.u32 %v5403_v45, 16  ;;  %v9868_v30 = vpop.f32.mrf.mxu0  ;;  %10555 = vst [vmem:[#allocation63_spill] sm:$0xff] %v9870_v49  ;;  %v10556_v13 = vld [vmem:[#allocation47_spill] sm:$0xff] }
 0x1c1   : > { %7775 = vmatmul.mubr.bf16.gmra.mxu1 %v6859_v36  ;;  %v1658_v47 = vadd.f32 %v9558_v58, %v10553_v56  ;;  %10554 = vst [vmem:[#allocation7_spill] sm:$0xff] %v9868_v30  ;;  %v5674_v54 = vrot.slane %v5673_v44, 4  ;;  %v5683_v0 = vrot.slane %v5681_v39, 4  ;;  %v5686_v3 = vrot.slane %v5684_v20, 5  ;;  %v5404_v5 = vld [vmem:[#allocation2 + $0xe4] sm:$0xf]  ;;  %v9885_v49 = vpop.f32.mrf.mxu1 }
 0x1c2   : > { %v5692_v28 = vrot.slane %v5690_v15, 5  ;;  %v5669_v36 = vsel %vm8481_vm10, %v5664_v41, %v5668_v24  ;;  %v5696_v60 = vrot.slane %v5694_v55, 4  ;;  %v5702_v57 = vrot.slane %v5700_v40, 5  ;;  %v9877_v45 = vpop.f32.mrf.mxu0  ;;  %v10559_v56 = vld [vmem:[#allocation10_spill] sm:$0xff]  ;;  %v10560_v44 = vld [vmem:[#allocation48_spill] sm:$0xff]  ;;  %v10613_v59 = vld [vmem:[#allocation3_spill] sm:$0xff] }
 0x1c3   : > { %v9875_v6 = vadd.f32 %v10556_v13, %v1658_v47  ;;  %10558 = vst [vmem:[#allocation64_spill] sm:$0xff] %v9877_v45  ;;  %v5679_v58 = vsel %vm8481_vm10, %v5674_v54, %v5678_v33  ;;  %v5687_v61 = vor.u32 %v5686_v3, %v5683_v0  ;;  %v1669_v39 = vadd.f32 %v10560_v44, %v10559_v56  ;;  %v10561_v20 = vld [vmem:[#allocation8_spill] sm:$0xff]  ;;  %v8004_v41 = vld [vmem:[#allocation2 + $0xe4] sm:$0xf]  ;;  %v10564_v54 = vld [vmem:[#allocation49_spill] sm:$0xff] }
 0x1c4   : > { %v1661_v15 = vadd.f32 %v9582_v22, %v10561_v20  ;;  %v5405_v30 = vld [vmem:[#allocation2 + $0xe8] sm:$0xf]  ;;  %v6898_v18 = vcombine.low %v5669_v36, %v5679_v58  ;;  %v5697_v24 = vor.u32 %v5696_v60, %v5692_v28  ;;  %v5406_v47 = vld [vmem:[#allocation2 + $0xec] sm:$0x1]  ;;  %v5705_v13 = vshrl.u32 %v5404_v5, 16  ;;  %10562 = vst [vmem:[#allocation10_spill] sm:$0xff] %v9885_v49  ;;  %v9887_v45 = vpop.f32.mrf.mxu0 }
 0x1c5   : > { %10557 = vst [vmem:[#allocation47_spill] sm:$0xff] %v9875_v6  ;;  %v8005_v55 = vld [vmem:[#allocation2 + $0xe8] sm:$0xf]  ;;  %10563 = vst [vmem:[#allocation48_spill] sm:$0xff] %v9887_v45  ;;  %v5688_v33 = vrot.slane %v5687_v61, 4  ;;  %v9890_v0 = vadd.f32 %v10564_v54, %v1669_v39  ;;  %v10566_v3 = vld [vmem:[#allocation51_spill] sm:$0xff] }
 0x1c6   : > { %v6860_v40 = vcombine.low %v8004_v41, %v8005_v55  ;;  %v9893_v56 = vadd.f32 %v10566_v3, %v1661_v15  ;;  %v5708_v22 = vshll.u32 %v5404_v5, 16  ;;  %7822 = vmatprep.mubr.bf16.mxu0 %v6898_v18  ;;  %v5698_v36 = vrot.slane %v5697_v24, 4  ;;  %v9895_v20 = vpop.f32.mrf.mxu0  ;;  %v10569_v45 = vld [vmem:[#allocation13_spill] sm:$0xff]  ;;  %v10570_v39 = vld [vmem:[#allocation52_spill] sm:$0xff]  ;;  %v5408_v15 = vld [vmem:[#allocation2 + $0xf8] sm:$0xf] }
 0x1c7   : > { %10565 = vst [vmem:[#allocation8_spill] sm:$0xff] %v9890_v0  ;;  %v5707_v60 = vrot.slane %v5705_v13, 4  ;;  %v5714_v58 = vshll.u32 %v5405_v30, 16  ;;  %v5718_v44 = vshrl.u32 %v5405_v30, 16  ;;  %10568 = vst [vmem:[#allocation51_spill] sm:$0xff] %v9895_v20  ;;  %v5693_v41 = vsel %vm8481_vm10, %v5688_v33, %v5692_v28  ;;  %v9903_v20 = vpop.f32.mrf.mxu1  ;;  %v10576_v6 = vld [vmem:[#allocation54_spill] sm:$0xff] }
 0x1c8   : > { %10567 = vst [vmem:[#allocation49_spill] sm:$0xff] %v9893_v56  ;;  %7778 = vmatprep.mubr.bf16.mxu1 %v6860_v40  ;;  %v5710_v55 = vrot.slane %v5708_v22, 5  ;;  %v5724_v61 = vshll.u32 %v5406_v47, 16  ;;  %v1682_v54 = vadd.f32 %v10570_v39, %v10569_v45  ;;  %v5407_v49 = vld [vmem:[#allocation2 + $0xf4] sm:$0xf]  ;;  %v5703_v18 = vsel %vm8481_vm10, %v5698_v36, %v5702_v57  ;;  %10571 = vst [vmem:[#allocation13_spill] sm:$0xff] %v9903_v20  ;;  %v9905_v56 = vpop.f32.mrf.mxu0 }
 0x1c9   : > { %v5716_v5 = vrot.slane %v5714_v58, 5  ;;  %v5720_v24 = vrot.slane %v5718_v44, 4  ;;  %v8006_v40 = vld [vmem:[#allocation2 + $0xf4] sm:$0xf]  ;;  %v8007_v13 = vld [vmem:[#allocation2 + $0xf8] sm:$0xf]  ;;  %v6899_v28 = vcombine.low %v5693_v41, %v5703_v18  ;;  %v9914_v18 = vpop.f32.mrf.mxu1 }
 0x1ca   : > { %v6861_v30 = vcombine.low %v8006_v40, %v8007_v13  ;;  %v5409_v3 = vld [vmem:[#allocation2 + $0xfc] sm:$0x1]  ;;  %10572 = vst [vmem:[#allocation52_spill] sm:$0xff] %v9905_v56  ;;  %v5711_v47 = vor.u32 %v5710_v55, %v5707_v60  ;;  %v5726_v33 = vrot.slane %v5724_v61, 5  ;;  %v10573_v22 = vld [vmem:[#allocation53_spill] sm:$0xff]  ;;  %v5729_v0 = vshrl.u32 %v5407_v49, 16  ;;  %v9910_v58 = vpop.f32.mrf.mxu0 }
 0x1cb   : > { %v9908_v45 = vadd.f32 %v10573_v22, %v1682_v54  ;;  %v5721_v39 = vor.u32 %v5720_v24, %v5716_v5  ;;  %v5732_v57 = vshll.u32 %v5407_v49, 16  ;;  %v5738_v36 = vshll.u32 %v5408_v15, 16  ;;  %10574 = vst [vmem:[#allocation53_spill] sm:$0xff] %v9910_v58  ;;  %7823 = vmatmul.mubr.bf16.gmra.mxu0 %v6899_v28  ;;  %v10575_v20 = vld [vmem:[#allocation11_spill] sm:$0xff] }
 0x1cc   : > { %7779 = vmatmul.mubr.bf16.gmra.mxu1 %v6861_v30  ;;  %v5712_v44 = vrot.slane %v5711_v47, 4  ;;  %v5742_v40 = vshrl.u32 %v5408_v15, 16  ;;  %v5748_v13 = vshll.u32 %v5409_v3, 16  ;;  %v1674_v56 = vadd.f32 %v10576_v6, %v10575_v20  ;;  %v5410_v54 = vld [vmem:[#allocation2 + $0x104] sm:$0xf]  ;;  %v9921_v15 = vpop.f32.mrf.mxu0 }
 0x1cd   : > { %v5722_v41 = vrot.slane %v5721_v39, 4  ;;  %v5731_v60 = vrot.slane %v5729_v0, 4  ;;  %v5734_v55 = vrot.slane %v5732_v57, 5  ;;  %v5740_v61 = vrot.slane %v5738_v36, 5  ;;  %v10577_v22 = vld [vmem:[#allocation55_spill] sm:$0xff]  ;;  %10578 = vst [vmem:[#allocation11_spill] sm:$0xff] %v9921_v15 }
 0x1ce   : > { %v5717_v49 = vsel %vm8481_vm10, %v5712_v44, %v5716_v5  ;;  %v5744_v24 = vrot.slane %v5742_v40, 4  ;;  %v5750_v30 = vrot.slane %v5748_v13, 5  ;;  %v9919_v28 = vadd.f32 %v10577_v22, %v1674_v56  ;;  %v10579_v0 = vld [vmem:[#allocation12_spill] sm:$0xff]  ;;  %v10580_v47 = vld [vmem:[#allocation15_spill] sm:$0xff] }
 0x1cf   : > { %v5727_v6 = vsel %vm8481_vm10, %v5722_v41, %v5726_v33  ;;  %v5735_v20 = vor.u32 %v5734_v55, %v5731_v60  ;;  %v1685_v3 = vadd.f32 %v9610_v48, %v10579_v0  ;;  %v1677_v39 = vadd.f32 %v9623_v43, %v10580_v47  ;;  %v5411_v57 = vld [vmem:[#allocation2 + $0x108] sm:$0xf]  ;;  %v8008_v44 = vld [vmem:[#allocation2 + $0x104] sm:$0xf]  ;;  %v5412_v56 = vld [vmem:[#allocation2 + $0x10c] sm:$0x1]  ;;  %v9935_v48 = vpop.f32.mrf.mxu1 }
 0x1d0   : > { %v6900_v36 = vcombine.low %v5717_v49, %v5727_v6  ;;  %v5745_v5 = vor.u32 %v5744_v24, %v5740_v61  ;;  %v8009_v40 = vld [vmem:[#allocation2 + $0x108] sm:$0xf]  ;;  %v5753_v22 = vshrl.u32 %v5410_v54, 16  ;;  %v5756_v41 = vshll.u32 %v5410_v54, 16  ;;  %v9937_v24 = vpop.f32.mrf.mxu0  ;;  %v5413_v54 = vld [vmem:[#allocation2 + $0x114] sm:$0xf] }
 0x1d1   : > { %v6862_v13 = vcombine.low %v8008_v44, %v8009_v40  ;;  %v5736_v58 = vrot.slane %v5735_v20, 4  ;;  %v9930_v15 = vadd.f32 %v9617_v53, %v1685_v3  ;;  %v9933_v33 = vadd.f32 %v9633_v37, %v1677_v39  ;;  %10581 = vst [vmem:[#allocation54_spill] sm:$0xff] %v9937_v24  ;;  %v10582_v0 = vld [vmem:[#allocation16_spill] sm:$0xff]  ;;  %v257_v3 = vld [vmem:[#allocation2 + $0x11c] sm:$0x1] }
 0x1d2   : > { %7826 = vmatprep.mubr.bf16.mxu0 %v6900_v36  ;;  %v5746_v43 = vrot.slane %v5745_v5, 4  ;;  %v5755_v60 = vrot.slane %v5753_v22, 4  ;;  %v5762_v55 = vshll.u32 %v5411_v57, 16  ;;  %v5766_v49 = vshrl.u32 %v5411_v57, 16  ;;  %v8010_v5 = vld [vmem:[#allocation2 + $0x114] sm:$0xf] }
 0x1d3   : > { %7782 = vmatprep.mubr.bf16.mxu1 %v6862_v13  ;;  %v5741_v6 = vsel %vm8481_vm10, %v5736_v58, %v5740_v61  ;;  %v5758_v20 = vrot.slane %v5756_v41, 5  ;;  %v5772_v53 = vshll.u32 %v5412_v56, 16  ;;  %v1698_v37 = vadd.f32 %v9641_v63, %v10582_v0  ;;  %v10583_v44 = vld [vmem:[#allocation50_spill] sm:$0xff]  ;;  %v9949_v61 = vpop.f32.mrf.mxu1 }
 0x1d4   : > { %v5751_v47 = vsel %vm8481_vm10, %v5746_v43, %v5750_v30  ;;  %v5764_v39 = vrot.slane %v5762_v55, 5  ;;  %v5768_v36 = vrot.slane %v5766_v49, 4  ;;  %v6863_v57 = vcombine.low %v8010_v5, %v10583_v44  ;;  %v5414_v40 = vld [vmem:[#allocation2 + $0x118] sm:$0xf]  ;;  %v9953_v55 = vpop.f32.mrf.mxu0 }
 0x1d5   : > { %v6901_v13 = vcombine.low %v5741_v6, %v5751_v47  ;;  %v5759_v22 = vor.u32 %v5758_v20, %v5755_v60  ;;  %v5774_v24 = vrot.slane %v5772_v53, 5  ;;  %v9947_v58 = vadd.f32 %v9652_v10, %v1698_v37  ;;  %v10585_v20 = vld [vmem:[#allocation20_spill] sm:$0xff]  ;;  %v10586_v47 = vld [vmem:[#allocation21_spill] sm:$0xff] }
 0x1d6   : > { %v5769_v63 = vor.u32 %v5768_v36, %v5764_v39  ;;  %7783 = vmatmul.mubr.bf16.gmra.mxu1 %v6863_v57  ;;  %v258_v41 = vsel %vm8422_vm5, 0, %v257_v3  ;;  %v5777_v30 = vshrl.u32 %v5413_v54, 16  ;;  %v5780_v43 = vshll.u32 %v5413_v54, 16  ;;  %v9959_v5 = vpop.f32.mrf.mxu0 }
 0x1d7   : > { %7827 = vmatmul.mubr.bf16.gmra.mxu0 %v6901_v13  ;;  %v5760_v49 = vrot.slane %v5759_v22, 4  ;;  %259 = vst [vmem:[#allocation2 + $0x11c] sm:$0x1] %v258_v41  ;;  %v5786_v6 = vshll.u32 %v5414_v40, 16  ;;  %v5790_v60 = vshrl.u32 %v5414_v40, 16  ;;  %v1690_v10 = vadd.f32 %v9646_v46, %v10585_v20  ;;  %v9966_v40 = vpop.f32.mrf.mxu1 }
 0x1d8   : > { %v5770_v53 = vrot.slane %v5769_v63, 4  ;;  %v5779_v0 = vrot.slane %v5777_v30, 4  ;;  %v5782_v37 = vrot.slane %v5780_v43, 5  ;;  %v1701_v36 = vadd.f32 %v9659_v51, %v10586_v47  ;;  %v10587_v51 = vld [vmem:[#allocation26_spill] sm:$0xff]  ;;  %v9975_v56 = vpop.f32.mrf.mxu0 }
 0x1d9   : > { %v5765_v3 = vsel %vm8481_vm10, %v5760_v49, %v5764_v39  ;;  %v5788_v54 = vrot.slane %v5786_v6, 5  ;;  %v5792_v44 = vrot.slane %v5790_v60, 4  ;;  %v9964_v57 = vadd.f32 %v9664_v50, %v1690_v10  ;;  %v10589_v10 = vld [vmem:[#allocation14_spill] sm:$0xff] }
 0x1da   : > { %v5775_v46 = vsel %vm8481_vm10, %v5770_v53, %v5774_v24  ;;  %v5783_v13 = vor.u32 %v5782_v37, %v5779_v0  ;;  %v9971_v22 = vadd.f32 %v9670_v11, %v1701_v36  ;;  %v1693_v63 = vadd.f32 %v9666_v62, %v10587_v51  ;;  %v9988_v49 = vpop.f32.mrf.mxu0  ;;  %v10591_v0 = vld [vmem:[#allocation30_spill] sm:$0xff] }
 0x1db   : > { %v6902_v39 = vcombine.low %v5765_v3, %v5775_v46  ;;  %v5793_v41 = vor.u32 %v5792_v44, %v5788_v54  ;;  %v3153_v50 = vadd.f32 %v9672_v52, %v9615_v35  ;;  %v3151_v30 = vadd.f32 %v9687_v32, %v9636_v9  ;;  %v9998_v52 = vpop.f32.mrf.mxu1  ;;  %v10594_v36 = vld [vmem:[#allocation18_spill] sm:$0xff]  ;;  %v10596_v44 = vld [vmem:[#allocation28_spill] sm:$0xff] }
 0x1dc   : > { %v5784_v43 = vrot.slane %v5783_v13, 4  ;;  %v9982_v24 = vadd.f32 %v9679_v34, %v1693_v63  ;;  %v3154_v11 = vadd.f32 %v9697_v17, %v9639_v4  ;;  %v3152_v62 = vadd.f32 %v9705_v25, %v9644_v12  ;;  %v10010_v17 = vpop.f32.mrf.mxu0  ;;  %v10595_v3 = vld [vmem:[#allocation58_spill] sm:$0xff]  ;;  %v10599_v13 = vld [vmem:[#allocation33_spill] sm:$0xff] }
 0x1dd   : > { %7830 = vmatprep.mubr.bf16.mxu0 %v6902_v39  ;;  %v5794_v6 = vrot.slane %v5793_v41, 4  ;;  %v9991_v60 = vadd.f32 %v9689_v23, %v3153_v50  ;;  %v9994_v35 = vadd.f32 %v9699_v31, %v3151_v30  ;;  %v3157_v9 = vadd.f32 %v9714_v1, %v9662_v16  ;;  %v10588_v1 = vld [vmem:[#allocation25_spill] sm:$0xff]  ;;  %v10601_v30 = vld [vmem:[#allocation22_spill] sm:$0xff] }
 0x1de   : > { %v5415_v34 = vld [vmem:[#allocation2 + $0x11c] sm:$0x1]  ;;  %v5789_v4 = vsel %vm8481_vm10, %v5784_v43, %v5788_v54  ;;  %v10003_v12 = vadd.f32 %v9709_v26, %v3154_v11  ;;  %v10006_v32 = vadd.f32 %v9716_v19, %v3152_v62  ;;  %v3155_v23 = vadd.f32 %v9720_v29, %v9677_v42  ;;  %v3136_v26 = vpop.f32.mrf.mxu1  ;;  %v10590_v19 = vld [vmem:[#allocation56_spill] sm:$0xff]  ;;  %v10592_v42 = vld [vmem:[#allocation27_spill] sm:$0xff]  ;;  %v4855_v39 = vpop.f32.mrf.mxu0 }
 0x1df   : > { %v5796_v31 = vshll.u32 %v5415_v34, 16  ;;  %v10013_v16 = vadd.f32 %v9722_v27, %v3157_v9  ;;  %v3158_v25 = vadd.f32 %v9729_v8, %v9692_v38  ;;  %v3156_v20 = vadd.f32 %v10588_v1, %v9695_v14  ;;  %v10593_v29 = vld [vmem:[#allocation31_spill] sm:$0xff]  ;;  %v10598_v14 = vld [vmem:[#allocation29_spill] sm:$0xff]  ;;  %v10603_v9 = vld [vmem:[#allocation32_spill] sm:$0xff] }
 0x1e0   : > { %v10020_v53 = vadd.f32 %v10589_v10, %v3155_v23  ;;  %v3161_v37 = vadd.f32 %v10591_v0, %v10590_v19  ;;  %v3159_v47 = vadd.f32 %v10593_v29, %v10592_v42  ;;  %v3162_v27 = vadd.f32 %v10595_v3, %v10594_v36  ;;  %v10597_v38 = vld [vmem:[#allocation19_spill] sm:$0xff]  ;;  %v7593_v63 = vpop.f32.mrf.mxu1  ;;  %v10600_v41 = vld [vmem:[#allocation57_spill] sm:$0xff]  ;;  %v10607_v10 = vld [vmem:[#allocation36_spill] sm:$0xff] }
 0x1e1   : > { %v5798_v54 = vrot.slane %v5796_v31, 5  ;;  %v10029_v46 = vadd.f32 %v10596_v44, %v3158_v25  ;;  %v10032_v8 = vadd.f32 %v10597_v38, %v3156_v20  ;;  %v3160_v51 = vadd.f32 %v10599_v13, %v10598_v14  ;;  %v10602_v11 = vld [vmem:[#allocation59_spill] sm:$0xff]  ;;  %v10606_v20 = vld [vmem:[#allocation34_spill] sm:$0xff]  ;;  %v10608_v0 = vld [vmem:[#allocation24_spill] sm:$0xff] }
 0x1e2   : > { %v10037_v50 = vadd.f32 %v10600_v41, %v3161_v37  ;;  %v10040_v43 = vadd.f32 %v10601_v30, %v3159_v47  ;;  %v10043_v62 = vadd.f32 %v10602_v11, %v3162_v27  ;;  %v10604_v34 = vld [vmem:[#allocation23_spill] sm:$0xff]  ;;  %v3163_v19 = vadd.f32 %v10607_v10, %v10606_v20  ;;  %v10609_v37 = vld [vmem:[#allocation4_spill] sm:$0xff]  ;;  %v3139_v29 = vpop.f32.mrf.mxu1  ;;  %v10610_v36 = vld [vmem:[#allocation38_spill] sm:$0xff] }
 0x1e3   : > { %v3165_v23 = vadd.f32 %v10604_v34, %v10603_v9  ;;  %v5799_v31 = vsel %vm8481_vm10, %v5794_v6, %v5798_v54  ;;  %v10605_v25 = vld [vmem:[#allocation35_spill] sm:$0xff]  ;;  %v3166_v42 = vadd.f32 %v10609_v37, %v10608_v0  ;;  %v10611_v27 = vld [vmem:[#allocation37_spill] sm:$0xff]  ;;  %v10612_v38 = vld [vmem:[#allocation40_spill] sm:$0xff] }
 0x1e4   : > { %v10050_v1 = vadd.f32 %v10605_v25, %v3160_v51  ;;  %v6903_v47 = vcombine.low %v5789_v4, %v5799_v31  ;;  %v3164_v44 = vadd.f32 %v9814_v21, %v10611_v27  ;;  %v3169_v6 = vadd.f32 %v10613_v59, %v10612_v38  ;;  %v10614_v54 = vld [vmem:[#allocation39_spill] sm:$0xff]  ;;  %v10615_v13 = vld [vmem:[#allocation60_spill] sm:$0xff]  ;;  %v10616_v41 = vld [vmem:[#allocation42_spill] sm:$0xff]  ;;  %v7660_v34 = vpop.f32.mrf.mxu1 }
 0x1e5   : > { %v10057_v3 = vadd.f32 %v10610_v36, %v3165_v23  ;;  %v10064_v14 = vadd.f32 %v10614_v54, %v3163_v19  ;;  %v10067_v51 = vadd.f32 %v10615_v13, %v3166_v42  ;;  %v10617_v30 = vld [vmem:[#allocation61_spill] sm:$0xff]  ;;  %v10618_v4 = vld [vmem:[#allocation43_spill] sm:$0xff]  ;;  %v10073_v23 = vpop.f32.mrf.mxu0  ;;  %v10620_v25 = vld [vmem:[#allocation6_spill] sm:$0xff] }
 0x1e6   : > { %v3167_v11 = vadd.f32 %v10617_v30, %v10616_v41  ;;  %v3170_v9 = vadd.f32 %v10618_v4, %v9842_v7  ;;  %7831 = vmatmul.mubr.bf16.gmra.mxu0 %v6903_v47  ;;  %v10619_v21 = vld [vmem:[#allocation41_spill] sm:$0xff]  ;;  %v10079_v20 = vadd.f32 %v10620_v25, %v3169_v6  ;;  %v10623_v37 = vld [vmem:[#allocation46_spill] sm:$0xff]  ;;  %v10624_v36 = vld [vmem:[#allocation44_spill] sm:$0xff]  ;;  %v4132_v6 = vpop.f32.mrf.mxu1 }
 0x1e7   : > { %v10076_v31 = vadd.f32 %v10619_v21, %v3164_v44  ;;  %v10621_v10 = vld [vmem:[#allocation5_spill] sm:$0xff]  ;;  %v3173_v42 = vadd.f32 %v10623_v37, %v9862_v2  ;;  %v10626_v59 = vld [vmem:[#allocation47_spill] sm:$0xff]  ;;  %v10628_v44 = vld [vmem:[#allocation8_spill] sm:$0xff] }
 0x1e8   : > { %v10622_v19 = vld [vmem:[#allocation45_spill] sm:$0xff]  ;;  %v10086_v27 = vadd.f32 %v10624_v36, %v3167_v11  ;;  %v10627_v47 = vld [vmem:[#allocation63_spill] sm:$0xff]  ;;  %v10629_v13 = vld [vmem:[#allocation10_spill] sm:$0xff] }
 0x1e9   : > { %v3168_v0 = vadd.f32 %v10622_v19, %v10621_v10  ;;  %v10625_v7 = vld [vmem:[#allocation9_spill] sm:$0xff]  ;;  %v3171_v54 = vadd.f32 %v10627_v47, %v10626_v59  ;;  %v3174_v41 = vadd.f32 %v10629_v13, %v10628_v44  ;;  %v10630_v30 = vld [vmem:[#allocation62_spill] sm:$0xff]  ;;  %v10631_v21 = vld [vmem:[#allocation7_spill] sm:$0xff]  ;;  %v3175_v59 = vadd.f32 %v9935_v48, %v9919_v28  ;;  %v10117_v47 = vpop.f32.mrf.mxu0 }
 0x1ea   : > { %v10089_v38 = vadd.f32 %v10625_v7, %v3170_v9  ;;  %v10099_v25 = vadd.f32 %v10631_v21, %v3173_v42  ;;  %v10632_v2 = vld [vmem:[#allocation49_spill] sm:$0xff]  ;;  %v3177_v9 = vadd.f32 %v9914_v18, %v9908_v45  ;;  %v10634_v19 = vld [vmem:[#allocation64_spill] sm:$0xff]  ;;  %v10115_v42 = vpop.f32.mrf.mxu1  ;;  %v10636_v44 = vld [vmem:[#allocation51_spill] sm:$0xff]  ;;  %v3182_v21 = vadd.f32 %v7593_v63, %v9971_v22 }
 0x1eb   : > { %v10096_v4 = vadd.f32 %v10630_v30, %v3168_v0  ;;  %v10633_v10 = vld [vmem:[#allocation13_spill] sm:$0xff]  ;;  %v10106_v37 = vadd.f32 %v10634_v19, %v3171_v54  ;;  %v10635_v36 = vld [vmem:[#allocation48_spill] sm:$0xff]  ;;  %v3178_v0 = vadd.f32 %v9949_v61, %v9930_v15  ;;  %v3176_v54 = vadd.f32 %v9966_v40, %v9933_v33  ;;  %v10639_v15 = vld [vmem:[#allocation11_spill] sm:$0xff] }
 0x1ec   : > { %v3172_v11 = vadd.f32 %v10633_v10, %v10632_v2  ;;  %v10109_v7 = vadd.f32 %v10635_v36, %v3174_v41  ;;  %v10637_v45 = vld [vmem:[#allocation52_spill] sm:$0xff]  ;;  %v3181_v41 = vadd.f32 %v9998_v52, %v9947_v58  ;;  %v10638_v28 = vld [vmem:[#allocation53_spill] sm:$0xff]  ;;  %v3179_v30 = vadd.f32 %v3136_v26, %v9964_v57  ;;  %v10137_v2 = vpop.f32.mrf.mxu1  ;;  %v10640_v10 = vld [vmem:[#allocation54_spill] sm:$0xff]  ;;  %v7712_v26 = vpop.f32.mrf.mxu0 }
 0x1ed   : > { %v10123_v18 = vadd.f32 %v10637_v45, %v3177_v9  ;;  %v10130_v48 = vadd.f32 %v10638_v28, %v3175_v59  ;;  %v10133_v61 = vadd.f32 %v10639_v15, %v3178_v0  ;;  %v3180_v58 = vadd.f32 %v3139_v29, %v9982_v24 }
 0x1ee   : > { %v10120_v13 = vadd.f32 %v10636_v44, %v3172_v11  ;;  %v10140_v11 = vadd.f32 %v10640_v10, %v3176_v54  ;;  %v10143_v33 = vadd.f32 %v9953_v55, %v3181_v41  ;;  %v4261_v40 = vadd.f32 %v7660_v34, %v9991_v60  ;;  %v7664_v22 = vpop.f32.mrf.mxu1 }
 0x1ef   : > { %v10148_v52 = vadd.f32 %v9959_v5, %v3179_v30  ;;  %v10151_v9 = vadd.f32 %v9975_v56, %v3182_v21  ;;  %v4259_v57 = vadd.f32 %v4132_v6, %v9994_v35  ;;  %v10155_v63 = vadd.f32 %v9988_v49, %v3180_v58  ;;  %v4871_v5 = vpop.f32.mrf.mxu0 }
 0x1f0   : > { %v10158_v55 = vadd.f32 %v10010_v17, %v4261_v40  ;;  %v4265_v24 = vadd.f32 %v7664_v22, %v10013_v16  ;;  %v4148_v60 = vpop.f32.mrf.mxu1 }
 0x1f1   : > { %v10161_v29 = vadd.f32 %v4855_v39, %v4259_v57  ;;  %v4263_v56 = vadd.f32 %v4148_v60, %v10020_v53  ;;  %v10170_v6 = vpop.f32.mrf.mxu0 }
 0x1f2   : > { %v10163_v34 = vadd.f32 %v7712_v26, %v4265_v24  ;;  %v10168_v35 = vpop.f32.mrf.mxu1 }
 0x1f3   : > { %v10166_v19 = vadd.f32 %v4871_v5, %v4263_v56  ;;  %v10174_v17 = vpop.f32.mrf.mxu0 }
 0x1f4   : > { %v10172_v49 = vpop.f32.mrf.mxu1 }
 0x1f7   : > { %v7668_v36 = vpop.f32.mrf.mxu1 }
 0x1f8   : > { %v4269_v16 = vadd.f32 %v7668_v36, %v10037_v50  ;;  %v7716_v39 = vpop.f32.mrf.mxu0 }
 0x1f9   : > { %v4164_v59 = vpop.f32.mrf.mxu1 }
 0x1fa   : > { %v10177_v0 = vadd.f32 %v7716_v39, %v4269_v16  ;;  %v4267_v44 = vadd.f32 %v4164_v59, %v10040_v43  ;;  %v4887_v53 = vpop.f32.mrf.mxu0 }
 0x1fb   : > { %v7669_v45 = vpop.f32.mrf.mxu1 }
 0x1fc   : > { %v10180_v54 = vadd.f32 %v4887_v53, %v4267_v44  ;;  %v4270_v41 = vadd.f32 %v7669_v45, %v10043_v62  ;;  %v7717_v28 = vpop.f32.mrf.mxu0 }
 0x1fd   : > { %v4167_v15 = vpop.f32.mrf.mxu1 }
 0x1fe   : > { %v10183_v30 = vadd.f32 %v7717_v28, %v4270_v41  ;;  %v4268_v21 = vadd.f32 %v4167_v15, %v10050_v1  ;;  %v4890_v10 = vpop.f32.mrf.mxu0 }
 0x200   : > { %v10186_v50 = vadd.f32 %v4890_v10, %v4268_v21 }
 0x206   : > { %v7672_v58 = vpop.f32.mrf.mxu1 }
 0x207   : > { %v4273_v40 = vadd.f32 %v7672_v58, %v10057_v3 }
 0x208   : > { %v4180_v57 = vpop.f32.mrf.mxu1  ;;  %v7720_v43 = vpop.f32.mrf.mxu0 }
 0x209   : > { %v4271_v22 = vadd.f32 %v4180_v57, %v10064_v14  ;;  %v10190_v26 = vadd.f32 %v7720_v43, %v4273_v40 }
 0x20a   : > { %v7673_v24 = vpop.f32.mrf.mxu1  ;;  %v4903_v62 = vpop.f32.mrf.mxu0 }
 0x20b   : > { %v4274_v60 = vadd.f32 %v7673_v24, %v10067_v51  ;;  %v10193_v5 = vadd.f32 %v4903_v62, %v4271_v22 }
 0x20c   : > { %v4183_v56 = vpop.f32.mrf.mxu1  ;;  %v7721_v1 = vpop.f32.mrf.mxu0 }
 0x20d   : > { %v4272_v36 = vadd.f32 %v4183_v56, %v10076_v31  ;;  %v10196_v16 = vadd.f32 %v7721_v1, %v4274_v60 }
 0x20e   : > { %v4906_v39 = vpop.f32.mrf.mxu0 }
 0x20f   : > { %v10198_v3 = vadd.f32 %v4906_v39, %v4272_v36 }
 0x217   : > { %v7676_v59 = vpop.f32.mrf.mxu1 }
 0x218   : > { %v4277_v14 = vadd.f32 %v7676_v59, %v10079_v20  ;;  %v7724_v44 = vpop.f32.mrf.mxu0 }
 0x219   : > { %v4196_v53 = vpop.f32.mrf.mxu1 }
 0x21a   : > { %v10201_v45 = vadd.f32 %v7724_v44, %v4277_v14  ;;  %v4275_v51 = vadd.f32 %v4196_v53, %v10086_v27  ;;  %v4919_v41 = vpop.f32.mrf.mxu0 }
 0x21b   : > { %v7677_v28 = vpop.f32.mrf.mxu1 }
 0x21c   : > { %v10204_v15 = vadd.f32 %v4919_v41, %v4275_v51  ;;  %v4278_v31 = vadd.f32 %v7677_v28, %v10089_v38  ;;  %v7725_v21 = vpop.f32.mrf.mxu0 }
 0x21d   : > { %v4199_v10 = vpop.f32.mrf.mxu1 }
 0x21e   : > { %v10207_v58 = vadd.f32 %v7725_v21, %v4278_v31  ;;  %v4276_v40 = vadd.f32 %v4199_v10, %v10096_v4  ;;  %v4922_v57 = vpop.f32.mrf.mxu0 }
 0x220   : > { %v10210_v20 = vadd.f32 %v4922_v57, %v4276_v40 }
 0x225   : > { %v7680_v43 = vpop.f32.mrf.mxu1 }
 0x226   : > { %v4281_v22 = vadd.f32 %v7680_v43, %v10099_v25 }
 0x227   : > { %v4212_v24 = vpop.f32.mrf.mxu1 }
 0x228   : > { %v4279_v27 = vadd.f32 %v4212_v24, %v10106_v37  ;;  %v7728_v62 = vpop.f32.mrf.mxu0 }
 0x229   : > { %v7681_v60 = vpop.f32.mrf.mxu1  ;;  %v10214_v56 = vadd.f32 %v7728_v62, %v4281_v22 }
 0x22a   : > { %v4282_v38 = vadd.f32 %v7681_v60, %v10109_v7  ;;  %v4935_v1 = vpop.f32.mrf.mxu0 }
 0x22b   : > { %v4215_v36 = vpop.f32.mrf.mxu1  ;;  %v10217_v39 = vadd.f32 %v4935_v1, %v4279_v27 }
 0x22c   : > { %v4280_v4 = vadd.f32 %v4215_v36, %v10120_v13  ;;  %v7729_v59 = vpop.f32.mrf.mxu0 }
 0x22d   : > { %v10220_v14 = vadd.f32 %v7729_v59, %v4282_v38 }
 0x22e   : > { %v4938_v44 = vpop.f32.mrf.mxu0 }
 0x22f   : > { %v10222_v25 = vadd.f32 %v4938_v44, %v4280_v4 }
 0x235   : > { %v7684_v53 = vpop.f32.mrf.mxu1 }
 0x236   : > { %v4285_v37 = vadd.f32 %v7684_v53, %v10123_v18 }
 0x237   : > { %v4228_v41 = vpop.f32.mrf.mxu1 }
 0x238   : > { %v7732_v51 = vpop.f32.mrf.mxu0  ;;  %v4283_v7 = vadd.f32 %v4228_v41, %v10130_v48 }
 0x239   : > { %v10225_v28 = vadd.f32 %v7732_v51, %v4285_v37  ;;  %v7685_v21 = vpop.f32.mrf.mxu1 }
 0x23a   : > { %v4951_v31 = vpop.f32.mrf.mxu0  ;;  %v4286_v13 = vadd.f32 %v7685_v21, %v10133_v61 }
 0x23b   : > { %v10228_v10 = vadd.f32 %v4951_v31, %v4283_v7  ;;  %v4231_v57 = vpop.f32.mrf.mxu1 }
 0x23c   : > { %v7733_v40 = vpop.f32.mrf.mxu0  ;;  %v4284_v22 = vadd.f32 %v4231_v57, %v10140_v11  ;;  %v4262_v11 = vadd.f32 %v10115_v42, %v10003_v12 }
 0x23d   : > { %v10231_v43 = vadd.f32 %v7733_v40, %v4286_v13 }
 0x23e   : > { %v4954_v24 = vpop.f32.mrf.mxu0 }
 0x23f   : > { %v10234_v18 = vadd.f32 %v4954_v24, %v4284_v22 }
 0x247   : > { %v7688_v27 = vpop.f32.mrf.mxu1 }
 0x248   : > { %v4289_v62 = vadd.f32 %v7688_v27, %v10143_v33 }
 0x249   : > { %v4244_v60 = vpop.f32.mrf.mxu1 }
 0x24a   : > { %v7736_v48 = vpop.f32.mrf.mxu0  ;;  %v4287_v38 = vadd.f32 %v4244_v60, %v10148_v52  ;;  %v4260_v52 = vadd.f32 %v10137_v2, %v10006_v32 }
 0x24b   : > { %v10238_v1 = vadd.f32 %v7736_v48, %v4289_v62  ;;  %v7689_v36 = vpop.f32.mrf.mxu1 }
 0x24c   : > { %v4967_v61 = vpop.f32.mrf.mxu0  ;;  %v4290_v4 = vadd.f32 %v7689_v36, %v10151_v9  ;;  %v4985_v9 = vadd.f32 %v10073_v23, %v4262_v11  ;;  %v4266_v23 = vadd.f32 %v10168_v35, %v10029_v46 }
 0x24d   : > { %v10241_v59 = vadd.f32 %v4967_v61, %v4287_v38  ;;  %v4247_v44 = vpop.f32.mrf.mxu1  ;;  %v4264_v38 = vadd.f32 %v10172_v49, %v10032_v8 }
 0x24e   : > { %v7737_v53 = vpop.f32.mrf.mxu0  ;;  %v4288_v37 = vadd.f32 %v4247_v44, %v10155_v63  ;;  %v4983_v63 = vadd.f32 %v10117_v47, %v4260_v52  ;;  %v4989_v44 = vadd.f32 %v10170_v6, %v4266_v23 }
 0x24f   : > { %v10246_v33 = vadd.f32 %v7737_v53, %v4290_v4 }
 0x250   : > { %v4970_v41 = vpop.f32.mrf.mxu0 }
 0x251   : > { %v7756_v51 = vpop.f32.mrf.mxu1  ;;  %v10250_v7 = vadd.f32 %v4970_v41, %v4288_v37 }
 0x252   : > { %v7804_v21 = vpop.f32.mrf.mxu0  ;;  %v5338_v13 = vadd.f32 %v7756_v51, %v10158_v55 }
 0x253   : > { %v5209_v31 = vpop.f32.mrf.mxu1 }
 0x254   : > { %v5336_v12 = vadd.f32 %v5209_v31, %v10161_v29  ;;  %v5963_v40 = vpop.f32.mrf.mxu0  ;;  %v6092_v2 = vadd.f32 %v7804_v21, %v5338_v13  ;;  %v4987_v31 = vadd.f32 %v10174_v17, %v4264_v38 }
 0x255   : > { %v7757_v42 = vpop.f32.mrf.mxu1 }
 0x256   : > { %v5339_v57 = vadd.f32 %v7757_v42, %v4985_v9  ;;  %v7805_v24 = vpop.f32.mrf.mxu0  ;;  %v6090_v27 = vadd.f32 %v5963_v40, %v5336_v12  ;;  %v6322_v53 = vmul.f32 %v6092_v2, %v6092_v2 }
 0x257   : > { %v5212_v22 = vpop.f32.mrf.mxu1 }
 0x258   : > { %v5337_v32 = vadd.f32 %v5212_v22, %v4983_v63  ;;  %v6093_v62 = vadd.f32 %v7805_v24, %v5339_v57  ;;  %v5966_v47 = vpop.f32.mrf.mxu0  ;;  %v6320_v36 = vmul.f32 %v6090_v27, %v6090_v27 }
 0x259   : > { %v7760_v60 = vpop.f32.mrf.mxu1 }
 0x25a   : > { %v7084_v55 = vpack.c.bf16 %v6093_v62, %v6092_v2  ;;  %v6091_v29 = vadd.f32 %v5966_v47, %v5337_v32  ;;  %v5342_v8 = vadd.f32 %v7760_v60, %v10163_v34  ;;  %v6323_v9 = vmul.f32 %v6093_v62, %v6093_v62 }
 0x25b   : > { %v5225_v48 = vpop.f32.mrf.mxu1 }
 0x25c   : > { %7171 = vst [vmem:[%s10263_s28 + $0x8] sm:$0xff] %v7084_v55   ;;  %v7079_v61 = vpack.c.bf16 %v6091_v29, %v6090_v27  ;;  %v6282_v4 = vadd.f32 %v6091_v29, %v6090_v27  ;;  %v6321_v46 = vmul.f32 %v6091_v29, %v6091_v29  ;;  %v5340_v11 = vadd.f32 %v5225_v48, %v10166_v19 }
 0x25d   : > { %v7761_v35 = vpop.f32.mrf.mxu1  ;;  %v7808_v52 = vpop.f32.mrf.mxu0 }
 0x25e   : > { %7080 = vst [vmem:[%s10263_s28] sm:$0xff] %v7079_v61   ;;  %v6283_v37 = vadd.f32 %v6282_v4, %v6092_v2  ;;  %v6352_v51 = vadd.f32 %v6321_v46, %v6320_v36  ;;  %v5343_v49 = vadd.f32 %v7761_v35, %v4989_v44  ;;  %v6096_v22 = vadd.f32 %v7808_v52, %v5342_v8 }
 0x25f   : > { %v5228_v41 = vpop.f32.mrf.mxu1  ;;  %v5979_v13 = vpop.f32.mrf.mxu0 }
 0x260   : > { %v6353_v21 = vadd.f32 %v6352_v51, %v6322_v53  ;;  %v6284_v12 = vadd.f32 %v6283_v37, %v6093_v62  ;;  %v6094_v6 = vadd.f32 %v5979_v13, %v5340_v11  ;;  %v5341_v63 = vadd.f32 %v5228_v41, %v4987_v31 }
 0x261   : > { %v7764_v42 = vpop.f32.mrf.mxu1  ;;  %v7809_v40 = vpop.f32.mrf.mxu0  ;;  %v6326_v36 = vmul.f32 %v6096_v22, %v6096_v22 }
 0x262   : > { %v6354_v19 = vadd.f32 %v6353_v21, %v6323_v9  ;;  %v6285_v24 = vadd.f32 %v6284_v12, %v6094_v6  ;;  %v6324_v32 = vmul.f32 %v6094_v6, %v6094_v6  ;;  %v6097_v2 = vadd.f32 %v7809_v40, %v5343_v49 }
 0x263   : > { %v5241_v57 = vpop.f32.mrf.mxu1  ;;  %v5982_v17 = vpop.f32.mrf.mxu0  ;;  %v5346_v35 = vadd.f32 %v7764_v42, %v10177_v0 }
 0x264   : > { %v6355_v34 = vadd.f32 %v6354_v19, %v6324_v32  ;;  %v7094_v60 = vpack.c.bf16 %v6097_v2, %v6096_v22  ;;  %v6095_v23 = vadd.f32 %v5982_v17, %v5341_v63  ;;  %v5344_v48 = vadd.f32 %v5241_v57, %v10180_v54 }
 0x265   : > { %v7765_v27 = vpop.f32.mrf.mxu1  ;;  %v6327_v53 = vmul.f32 %v6097_v2, %v6097_v2 }
 0x266   : > { %7173 = vst [vmem:[%s10263_s28 + $0x18] sm:$0xff] %v7094_v60   ;;  %v7089_v62 = vpack.c.bf16 %v6095_v23, %v6094_v6  ;;  %v6286_v55 = vadd.f32 %v6285_v24, %v6095_v23  ;;  %v6325_v29 = vmul.f32 %v6095_v23, %v6095_v23  ;;  %v5347_v44 = vadd.f32 %v7765_v27, %v10183_v30 }
 0x267   : > { %v5244_v47 = vpop.f32.mrf.mxu1 }
 0x268   : > { %7172 = vst [vmem:[%s10263_s28 + $0x10] sm:$0xff] %v7089_v62   ;;  %v6287_v61 = vadd.f32 %v6286_v55, %v6096_v22  ;;  %v6356_v4 = vadd.f32 %v6355_v34, %v6325_v29  ;;  %v7812_v46 = vpop.f32.mrf.mxu0  ;;  %v5345_v31 = vadd.f32 %v5244_v47, %v10186_v50 }
 0x269   : > { %v7768_v38 = vpop.f32.mrf.mxu1  ;;  %v6100_v9 = vadd.f32 %v7812_v46, %v5346_v35 }
 0x26a   : > { %v6357_v37 = vadd.f32 %v6356_v4, %v6326_v36  ;;  %v5995_v51 = vpop.f32.mrf.mxu0  ;;  %v6288_v52 = vadd.f32 %v6287_v61, %v6097_v2  ;;  %v5350_v27 = vadd.f32 %v7768_v38, %v10190_v26 }
 0x26b   : > { %v5257_v11 = vpop.f32.mrf.mxu1  ;;  %v6098_v41 = vadd.f32 %v5995_v51, %v5344_v48  ;;  %v6330_v24 = vmul.f32 %v6100_v9, %v6100_v9 }
 0x26c   : > { %v6358_v8 = vadd.f32 %v6357_v37, %v6327_v53  ;;  %v7813_v49 = vpop.f32.mrf.mxu0  ;;  %v5348_v22 = vadd.f32 %v5257_v11, %v10193_v5 }
 0x26d   : > { %v7769_v54 = vpop.f32.mrf.mxu1  ;;  %v6289_v21 = vadd.f32 %v6288_v52, %v6098_v41  ;;  %v6328_v13 = vmul.f32 %v6098_v41, %v6098_v41  ;;  %v6101_v12 = vadd.f32 %v7813_v49, %v5347_v44 }
 0x26e   : > { %v5998_v0 = vpop.f32.mrf.mxu0  ;;  %v5351_v34 = vadd.f32 %v7769_v54, %v10196_v16 }
 0x26f   : > { %v5260_v42 = vpop.f32.mrf.mxu1  ;;  %v6359_v30 = vadd.f32 %v6358_v8, %v6328_v13  ;;  %v7104_v6 = vpack.c.bf16 %v6101_v12, %v6100_v9  ;;  %v6099_v63 = vadd.f32 %v5998_v0, %v5345_v31  ;;  %v6331_v23 = vmul.f32 %v6101_v12, %v6101_v12 }
 0x270   : > { %v5349_v48 = vadd.f32 %v5260_v42, %v10198_v3 }
 0x271   : > { %7175 = vst [vmem:[%s10263_s28 + $0x28] sm:$0xff] %v7104_v6   ;;  %v7099_v19 = vpack.c.bf16 %v6099_v63, %v6098_v41  ;;  %v6290_v40 = vadd.f32 %v6289_v21, %v6099_v63  ;;  %v6329_v57 = vmul.f32 %v6099_v63, %v6099_v63 }
 0x273   : > { %7174 = vst [vmem:[%s10263_s28 + $0x20] sm:$0xff] %v7099_v19   ;;  %v6291_v32 = vadd.f32 %v6290_v40, %v6100_v9  ;;  %v6360_v2 = vadd.f32 %v6359_v30, %v6329_v57 }
 0x274   : > { %v7816_v17 = vpop.f32.mrf.mxu0 }
 0x275   : > { %v7772_v50 = vpop.f32.mrf.mxu1  ;;  %v6361_v47 = vadd.f32 %v6360_v2, %v6330_v24  ;;  %v6292_v55 = vadd.f32 %v6291_v32, %v6101_v12  ;;  %v6104_v4 = vadd.f32 %v7816_v17, %v5350_v27 }
 0x276   : > { %v6011_v62 = vpop.f32.mrf.mxu0  ;;  %v5354_v9 = vadd.f32 %v7772_v50, %v10201_v45 }
 0x277   : > { %v5273_v60 = vpop.f32.mrf.mxu1  ;;  %v6102_v29 = vadd.f32 %v6011_v62, %v5348_v22  ;;  %v6362_v36 = vadd.f32 %v6361_v47, %v6331_v23  ;;  %v6334_v31 = vmul.f32 %v6104_v4, %v6104_v4 }
 0x278   : > { %v7817_v61 = vpop.f32.mrf.mxu0  ;;  %v5352_v41 = vadd.f32 %v5273_v60, %v10204_v15 }
 0x279   : > { %v7773_v5 = vpop.f32.mrf.mxu1  ;;  %v6293_v46 = vadd.f32 %v6292_v55, %v6102_v29  ;;  %v6332_v35 = vmul.f32 %v6102_v29, %v6102_v29  ;;  %v6105_v44 = vadd.f32 %v7817_v61, %v5351_v34 }
 0x27a   : > { %v6014_v26 = vpop.f32.mrf.mxu0  ;;  %v5355_v21 = vadd.f32 %v7773_v5, %v10207_v58 }
 0x27b   : > { %v5276_v38 = vpop.f32.mrf.mxu1  ;;  %v6363_v16 = vadd.f32 %v6362_v36, %v6332_v35  ;;  %v7114_v11 = vpack.c.bf16 %v6105_v44, %v6104_v4  ;;  %v6103_v53 = vadd.f32 %v6014_v26, %v5349_v48  ;;  %v6335_v12 = vmul.f32 %v6105_v44, %v6105_v44 }
 0x27c   : > { %v5353_v63 = vadd.f32 %v5276_v38, %v10210_v20 }
 0x27d   : > { %7177 = vst [vmem:[%s10263_s28 + $0x38] sm:$0xff] %v7114_v11   ;;  %v7109_v37 = vpack.c.bf16 %v6103_v53, %v6102_v29  ;;  %v6294_v51 = vadd.f32 %v6293_v46, %v6103_v53  ;;  %v6333_v52 = vmul.f32 %v6103_v53, %v6103_v53 }
 0x27f   : > { %7176 = vst [vmem:[%s10263_s28 + $0x30] sm:$0xff] %v7109_v37   ;;  %v6295_v54 = vadd.f32 %v6294_v51, %v6104_v4  ;;  %v6364_v8 = vadd.f32 %v6363_v16, %v6333_v52 }
 0x280   : > { %v7820_v49 = vpop.f32.mrf.mxu0 }
 0x281   : > { %v7776_v3 = vpop.f32.mrf.mxu1  ;;  %v6365_v0 = vadd.f32 %v6364_v8, %v6334_v31  ;;  %v6296_v30 = vadd.f32 %v6295_v54, %v6105_v44  ;;  %v6108_v57 = vadd.f32 %v7820_v49, %v5354_v9 }
 0x282   : > { %v6027_v42 = vpop.f32.mrf.mxu0  ;;  %v5358_v48 = vadd.f32 %v7776_v3, %v10214_v56 }
 0x283   : > { %v5289_v13 = vpop.f32.mrf.mxu1  ;;  %v6106_v6 = vadd.f32 %v6027_v42, %v5352_v41  ;;  %v6366_v19 = vadd.f32 %v6365_v0, %v6335_v12  ;;  %v6338_v47 = vmul.f32 %v6108_v57, %v6108_v57 }
 0x284   : > { %v7821_v40 = vpop.f32.mrf.mxu0  ;;  %v5356_v23 = vadd.f32 %v5289_v13, %v10217_v39 }
 0x285   : > { %v7777_v15 = vpop.f32.mrf.mxu1  ;;  %v6297_v22 = vadd.f32 %v6296_v30, %v6106_v6  ;;  %v6336_v24 = vmul.f32 %v6106_v6, %v6106_v6  ;;  %v6109_v32 = vadd.f32 %v7821_v40, %v5355_v21 }
 0x286   : > { %v6030_v45 = vpop.f32.mrf.mxu0  ;;  %v5359_v5 = vadd.f32 %v7777_v15, %v10220_v14 }
 0x287   : > { %v5292_v50 = vpop.f32.mrf.mxu1  ;;  %v6367_v58 = vadd.f32 %v6366_v19, %v6336_v24  ;;  %v7124_v2 = vpack.c.bf16 %v6109_v32, %v6108_v57  ;;  %v6107_v17 = vadd.f32 %v6030_v45, %v5353_v63  ;;  %v6339_v36 = vmul.f32 %v6109_v32, %v6109_v32 }
 0x288   : > { %v5357_v26 = vadd.f32 %v5292_v50, %v10222_v25 }
 0x289   : > { %7179 = vst [vmem:[%s10263_s28 + $0x48] sm:$0xff] %v7124_v2   ;;  %v7119_v27 = vpack.c.bf16 %v6107_v17, %v6106_v6  ;;  %v6298_v34 = vadd.f32 %v6297_v22, %v6107_v17  ;;  %v6337_v60 = vmul.f32 %v6107_v17, %v6107_v17 }
 0x28b   : > { %7178 = vst [vmem:[%s10263_s28 + $0x40] sm:$0xff] %v7119_v27   ;;  %v6299_v62 = vadd.f32 %v6298_v34, %v6108_v57  ;;  %v6368_v55 = vadd.f32 %v6367_v58, %v6337_v60  ;;  %v7824_v29 = vpop.f32.mrf.mxu0 }
 0x28c   : > { %v7780_v20 = vpop.f32.mrf.mxu1  ;;  %v6112_v16 = vadd.f32 %v7824_v29, %v5358_v48 }
 0x28d   : > { %v6369_v61 = vadd.f32 %v6368_v55, %v6338_v47  ;;  %v6043_v4 = vpop.f32.mrf.mxu0  ;;  %v6300_v46 = vadd.f32 %v6299_v62, %v6109_v32  ;;  %v5362_v12 = vadd.f32 %v7780_v20, %v10225_v28 }
 0x28e   : > { %v5305_v35 = vpop.f32.mrf.mxu1  ;;  %v6110_v44 = vadd.f32 %v6043_v4, %v5356_v23  ;;  %v6342_v25 = vmul.f32 %v6112_v16, %v6112_v16 }
 0x28f   : > { %v6370_v39 = vadd.f32 %v6369_v61, %v6339_v36  ;;  %v7825_v38 = vpop.f32.mrf.mxu0  ;;  %v5360_v8 = vadd.f32 %v5305_v35, %v10228_v10 }
 0x290   : > { %v6301_v11 = vadd.f32 %v6300_v46, %v6110_v44  ;;  %v6340_v53 = vmul.f32 %v6110_v44, %v6110_v44  ;;  %v6113_v37 = vadd.f32 %v7825_v38, %v5359_v5  ;;  %v7781_v56 = vpop.f32.mrf.mxu1 }
 0x291   : > { %v6046_v51 = vpop.f32.mrf.mxu0  ;;  %v5363_v0 = vadd.f32 %v7781_v56, %v10231_v43 }
 0x292   : > { %v6371_v52 = vadd.f32 %v6370_v39, %v6340_v53  ;;  %v7134_v14 = vpack.c.bf16 %v6113_v37, %v6112_v16  ;;  %v6111_v41 = vadd.f32 %v6046_v51, %v5357_v26  ;;  %v5308_v49 = vpop.f32.mrf.mxu1  ;;  %v6343_v42 = vmul.f32 %v6113_v37, %v6113_v37 }
 0x293   : > { %v5361_v19 = vadd.f32 %v5308_v49, %v10234_v18 }
 0x294   : > { %7181 = vst [vmem:[%s10263_s28 + $0x58] sm:$0xff] %v7134_v14   ;;  %v7129_v3 = vpack.c.bf16 %v6111_v41, %v6110_v44  ;;  %v6302_v31 = vadd.f32 %v6301_v11, %v6111_v41  ;;  %v6341_v54 = vmul.f32 %v6111_v41, %v6111_v41 }
 0x296   : > { %7180 = vst [vmem:[%s10263_s28 + $0x50] sm:$0xff] %v7129_v3   ;;  %v6303_v9 = vadd.f32 %v6302_v31, %v6112_v16  ;;  %v6372_v21 = vadd.f32 %v6371_v52, %v6341_v54  ;;  %v7784_v40 = vpop.f32.mrf.mxu1 }
 0x297   : > { %v7828_v13 = vpop.f32.mrf.mxu0  ;;  %v5366_v61 = vadd.f32 %v7784_v40, %v10238_v1 }
 0x298   : > { %v6373_v30 = vadd.f32 %v6372_v21, %v6342_v25  ;;  %v6304_v63 = vadd.f32 %v6303_v9, %v6113_v37  ;;  %v6116_v22 = vadd.f32 %v7828_v13, %v5362_v12  ;;  %v5321_v2 = vpop.f32.mrf.mxu1 }
 0x299   : > { %v6059_v6 = vpop.f32.mrf.mxu0  ;;  %v5364_v29 = vadd.f32 %v5321_v2, %v10241_v59 }
 0x29a   : > { %v6114_v15 = vadd.f32 %v6059_v6, %v5360_v8  ;;  %v6374_v10 = vadd.f32 %v6373_v30, %v6343_v42  ;;  %v6346_v60 = vmul.f32 %v6116_v22, %v6116_v22  ;;  %v7785_v20 = vpop.f32.mrf.mxu1 }
 0x29b   : > { %v7829_v57 = vpop.f32.mrf.mxu0  ;;  %v5367_v4 = vadd.f32 %v7785_v20, %v10246_v33 }
 0x29c   : > { %v6305_v24 = vadd.f32 %v6304_v63, %v6114_v15  ;;  %v6344_v32 = vmul.f32 %v6114_v15, %v6114_v15  ;;  %v6117_v45 = vadd.f32 %v7829_v57, %v5363_v0  ;;  %v5324_v36 = vpop.f32.mrf.mxu1 }
 0x29d   : > { %v6062_v50 = vpop.f32.mrf.mxu0  ;;  %v5365_v44 = vadd.f32 %v5324_v36, %v10250_v7 }
 0x29e   : > { %v6375_v28 = vadd.f32 %v6374_v10, %v6344_v32  ;;  %v7144_v58 = vpack.c.bf16 %v6117_v45, %v6116_v22  ;;  %v6115_v43 = vadd.f32 %v6062_v50, %v5361_v19  ;;  %v6347_v47 = vmul.f32 %v6117_v45, %v6117_v45 }
 0x2a0   : > { %7183 = vst [vmem:[%s10263_s28 + $0x68] sm:$0xff] %v7144_v58   ;;  %v7139_v17 = vpack.c.bf16 %v6115_v43, %v6114_v15  ;;  %v6306_v27 = vadd.f32 %v6305_v24, %v6115_v43  ;;  %v6345_v34 = vmul.f32 %v6115_v43, %v6115_v43 }
 0x2a2   : > { %7182 = vst [vmem:[%s10263_s28 + $0x60] sm:$0xff] %v7139_v17   ;;  %v6307_v18 = vadd.f32 %v6306_v27, %v6116_v22  ;;  %v6376_v23 = vadd.f32 %v6375_v28, %v6345_v34 }
 0x2a4   : > { %v6377_v62 = vadd.f32 %v6376_v23, %v6346_v60  ;;  %v6308_v55 = vadd.f32 %v6307_v18, %v6117_v45 }
 0x2a6   : > { %v7832_v48 = vpop.f32.mrf.mxu0  ;;  %v6378_v5 = vadd.f32 %v6377_v62, %v6347_v47 }
 0x2a7   : > { %v6120_v39 = vadd.f32 %v7832_v48, %v5366_v61 }
 0x2a8   : > { %v6075_v46 = vpop.f32.mrf.mxu0 }
 0x2a9   : > { %v6118_v35 = vadd.f32 %v6075_v46, %v5364_v29  ;;  %v6350_v33 = vmul.f32 %v6120_v39, %v6120_v39 }
 0x2aa   : > { %v7833_v26 = vpop.f32.mrf.mxu0 }
 0x2ab   : > { %v6309_v38 = vadd.f32 %v6308_v55, %v6118_v35  ;;  %v6348_v16 = vmul.f32 %v6118_v35, %v6118_v35  ;;  %v6121_v11 = vadd.f32 %v7833_v26, %v5367_v4 }
 0x2ac   : > { %v6078_v53 = vpop.f32.mrf.mxu0 }
 0x2ad   : > { %v6379_v59 = vadd.f32 %v6378_v5, %v6348_v16  ;;  %v7154_v37 = vpack.c.bf16 %v6121_v11, %v6120_v39  ;;  %v6119_v51 = vadd.f32 %v6078_v53, %v5365_v44  ;;  %v6351_v3 = vmul.f32 %v6121_v11, %v6121_v11 }
 0x2af   : > { %7185 = vst [vmem:[%s10263_s28 + $0x78] sm:$0xff] %v7154_v37   ;;  %v7149_v56 = vpack.c.bf16 %v6119_v51, %v6118_v35  ;;  %v6310_v1 = vadd.f32 %v6309_v38, %v6119_v51  ;;  %v6349_v52 = vmul.f32 %v6119_v51, %v6119_v51 }
 0x2b1   : > { %7184 = vst [vmem:[%s10263_s28 + $0x70] sm:$0xff] %v7149_v56   ;;  %v6311_v14 = vadd.f32 %v6310_v1, %v6120_v39  ;;  %v6380_v41 = vadd.f32 %v6379_v59, %v6349_v52 }
 0x2b3   : > { %v6312_v7 = vadd.f32 %v6311_v14, %v6121_v11  ;;  %v6381_v31 = vadd.f32 %v6380_v41, %v6350_v33 }
 0x2b5   : > { %v6313_v54 = vrot.slane %v6312_v7, 4  ;;  %v6382_v8 = vadd.f32 %v6381_v31, %v6351_v3 }
 0x2b7   : > { %v6314_v49 = vadd.f32 %v6313_v54, %v6312_v7  ;;  %v6383_v25 = vrot.slane %v6382_v8, 4 }
 0x2b9   : > { %v6315_v9 = vrot.slane %v6314_v49, 2  ;;  %v6384_v21 = vadd.f32 %v6383_v25, %v6382_v8 }
 0x2bb   : > { %v6316_v13 = vadd.f32 %v6315_v9, %v6314_v49  ;;  %v6385_v12 = vrot.slane %v6384_v21, 2 }
 0x2bd   : > { %v6317_v0 = vrot.slane %v6316_v13, 1  ;;  %v6386_v42 = vadd.f32 %v6385_v12, %v6384_v21 }
 0x2bf   : > { %v6318_v30 = vadd.f32 %v6317_v0, %v6316_v13  ;;  %v6387_v6 = vrot.slane %v6386_v42, 1 }
 0x2c1   : > { %6319 = vst [vmem:[%s235_s7] sm:$0x1] %v6318_v30  ;;  %v6388_v63 = vadd.f32 %v6387_v6, %v6386_v42 }
 0x2c3   : > { %6389 = vst [vmem:[%s235_s7 + $0x1] sm:$0x1] %v6388_v63 }
 0x2c4 PF: > { %s16_s18 = sadd.s32 1, %s8017_s18  }
 0x2c5   : > { %p13_p4 = scmp.ge.s32.totalorder %s16_s18, 4  }
 0x2c7   :  { %15 = sbr.rel (!%p13_p4) target bundleno = 1 (0x1), region = 89 }

</bundles_post_ra>
